<compile_context>
chip_gen: v5e
topology: v5e:2x2
jax: 0.10.0
libtpu: 0.0.40
codegen_flags: <defaults>
</compile_context>

<pallas_src>
import functools

import jax
import jax.numpy as jnp
from jax import lax
from jax.experimental import pallas as pl
from jax.experimental.pallas import tpu as pltpu

# Static geometry implied by Linear(32*7*7, 10)  =>  28x28, Cin=1 inputs.
H1 = W1 = 28                 # conv1 input spatial
K = 5                        # conv kernel size
C1_IN, C1_OUT, C2_OUT = 1, 16, 32
HO1 = WO1 = 14               # after pool1
HO2 = WO2 = 7                # after pool2
WP2 = WO1 + 4                # 18: padded width of conv2 input plane
HP2 = HO1 + 4 + 1            # 19: +1 extra zero row so shifted flat windows stay in-bounds
L2 = HP2 * WP2               # 342: flattened padded conv2-input plane
LW1 = H1 * W1                # 784: conv1 output plane (exact windows -> no junk columns)
LW2 = HO1 * WP2              # 252: conv2 output plane (flat, width WP2; cols >= 14 junk, never read)
NTAPS = K * K                # 25
F_OUT = 10
F_PAD = 128                  # logits padded to a full lane group (sliced back outside)


def _fused_cnn_kernel(nb, x_ref, w1_ref, b1_ref, w2_ref, b2_ref, w3_ref, b3_ref,
                      o_ref, s1_ref, h1_ref, s2_ref, f_ref):
    # Zero the padded conv2-input plane once; only its interior is ever rewritten,
    # so the zero borders provide the padding=2 for conv2 (and one spare row).
    h1_ref[...] = jnp.zeros((L2, C1_OUT), jnp.float32)

    for n in range(nb):                                   # static unroll, nb is small
        # ---- conv1: one im2col matmul, contraction depth 25 (bf16 MXU, f32 acc) ----
        a1 = jnp.dot(x_ref[n], w1_ref[...], preferred_element_type=jnp.float32)
        s1_ref[...] = jnp.maximum(a1 + b1_ref[...], 0.0)  # (784, 16) bias + ReLU

        # ---- 2x2 max-pool 28x28 -> 14x14, written into the padded conv2 plane ----
        for ho in range(HO1):
            base = 2 * ho * W1
            m = jnp.maximum(
                jnp.maximum(s1_ref[pl.ds(base, 2 * WO1 - 1), :],
                            s1_ref[pl.ds(base + 1, 2 * WO1 - 1), :]),
                jnp.maximum(s1_ref[pl.ds(base + W1, 2 * WO1 - 1), :],
                            s1_ref[pl.ds(base + W1 + 1, 2 * WO1 - 1), :]))
            s1_ref[pl.ds(base, 2 * WO1 - 1), :] = m       # anchored 2x2 window maxima
            row = s1_ref[pl.ds(base, WO1, 2), :]          # single stride-2 downsample (14,16)
            h1_ref[pl.ds((ho + 2) * WP2 + 2, WO1), :] = row

        # ---- conv2 on the flattened padded plane: 25 per-tap matmuls (bf16) ----
        a2 = jnp.zeros((LW2, C2_OUT), jnp.float32)
        for dy in range(K):
            for dx in range(K):
                start = dy * WP2 + dx                     # static shift of the flat window
                a2 = a2 + jnp.dot(
                    h1_ref[pl.ds(start, LW2), :].astype(jnp.bfloat16),
                    w2_ref[dy * K + dx],
                    preferred_element_type=jnp.float32)
        s2_ref[...] = jnp.maximum(a2 + b2_ref[...], 0.0)  # (252, 32)

        # ---- 2x2 max-pool 14x14 -> 7x7, into the per-block feature buffer ----
        for ho in range(HO2):
            base = 2 * ho * WP2
            m = jnp.maximum(
                jnp.maximum(s2_ref[pl.ds(base, 2 * WO2 - 1), :],
                            s2_ref[pl.ds(base + 1, 2 * WO2 - 1), :]),
                jnp.maximum(s2_ref[pl.ds(base + WP2, 2 * WO2 - 1), :],
                            s2_ref[pl.ds(base + WP2 + 1, 2 * WO2 - 1), :]))
            s2_ref[pl.ds(base, 2 * WO2 - 1), :] = m
            f_ref[pl.ds(ho * WO2, WO2), n, :] = s2_ref[pl.ds(base, WO2, 2), :]

    # ---- linear, batched over the block's images: y = feats @ W3 + b3 ----
    acc = jnp.broadcast_to(b3_ref[...], (nb, F_PAD))
    for p in range(HO2 * WO2):
        acc = acc + jnp.dot(f_ref[p].astype(jnp.bfloat16), w3_ref[p],
                            preferred_element_type=jnp.float32)
    o_ref[0] = acc                                        # single lane-dense (nb,128) store


def _cnn_forward_impl(x, w1, b1, w2, b2, w3, b3, *, block_n):
    n = x.shape[0]
    assert x.shape[1:] == (C1_IN, H1, W1), x.shape
    assert n % block_n == 0
    g = n // block_n

    # ---- trace-time layout plumbing (weights reordered once, input im2col'd once) ----
    xp = jnp.pad(x[:, 0].astype(jnp.float32), ((0, 0), (2, 2), (2, 2)))      # (N,32,32)
    cols = [xp[:, dy:dy + H1, dx:dx + W1] for dy in range(K) for dx in range(K)]
    xcol = jnp.stack(cols, axis=-1).reshape(n, LW1, NTAPS).astype(jnp.bfloat16)

    w1k = jnp.transpose(w1, (2, 3, 1, 0)).reshape(NTAPS * C1_IN, C1_OUT).astype(jnp.bfloat16)
    b1r = b1.reshape(1, C1_OUT).astype(jnp.float32)
    w2k = jnp.transpose(w2, (2, 3, 1, 0)).reshape(NTAPS, C1_OUT, C2_OUT).astype(jnp.bfloat16)
    b2r = b2.reshape(1, C2_OUT).astype(jnp.float32)
    # Permute w3's columns from torch's (c, ho, wo) flatten order to our (ho*7+wo, c)
    # feature order, and pad the 10 logits out to 128 lanes.
    w3k = jnp.transpose(w3.reshape(F_OUT, C2_OUT, HO2, WO2), (2, 3, 1, 0))
    w3k = w3k.reshape(HO2 * WO2, C2_OUT, F_OUT)
    w3k = jnp.pad(w3k, ((0, 0), (0, 0), (0, F_PAD - F_OUT))).astype(jnp.bfloat16)
    b3r = jnp.pad(b3, (0, F_PAD - F_OUT)).reshape(1, F_PAD).astype(jnp.float32)

    out = pl.pallas_call(
        functools.partial(_fused_cnn_kernel, block_n),
        out_shape=jax.ShapeDtypeStruct((g, block_n, F_PAD), jnp.float32),
        grid=(g,),
        in_specs=[
            pl.BlockSpec((block_n, LW1, NTAPS), lambda i: (i, 0, 0)),        # conv1 im2col input
            pl.BlockSpec((NTAPS * C1_IN, C1_OUT), lambda i: (0, 0)),         # w1
            pl.BlockSpec((1, C1_OUT), lambda i: (0, 0)),                     # b1
            pl.BlockSpec((NTAPS, C1_OUT, C2_OUT), lambda i: (0, 0, 0)),      # w2 (per tap)
            pl.BlockSpec((1, C2_OUT), lambda i: (0, 0)),                     # b2
            pl.BlockSpec((HO2 * WO2, C2_OUT, F_PAD), lambda i: (0, 0, 0)),   # w3 (permuted+padded)
            pl.BlockSpec((1, F_PAD), lambda i: (0, 0)),                      # b3 (padded)
        ],
        out_specs=pl.BlockSpec((1, block_n, F_PAD), lambda i: (i, 0, 0)),
        scratch_shapes=[
            pltpu.VMEM((LW1, C1_OUT), jnp.float32),                 # s1: conv1 activation plane
            pltpu.VMEM((L2, C1_OUT), jnp.float32),                  # h1: padded conv2 input plane
            pltpu.VMEM((LW2, C2_OUT), jnp.float32),                 # s2: conv2 activation plane
            pltpu.VMEM((HO2 * WO2, block_n, C2_OUT), jnp.float32),  # feats for the linear
        ],
        compiler_params=pltpu.CompilerParams(dimension_semantics=("parallel",)),
    )(xcol, w1k, b1r, w2k, b2r, w3k, b3r)

    return out.reshape(n, F_PAD)[:, :F_OUT]


@jax.jit
def cnn_forward(x, w1, b1, w2, b2, w3, b3):
    n = x.shape[0]
    # Keep >= 2 grid steps (so both v7x TensorCores get work); block more images per
    # step for larger batches to amortize per-step overhead (VMEM use stays tiny).
    block_n = 1
    for cand in (8, 4, 2):
        if n % cand == 0 and n // cand >= 2:
            block_n = cand
            break
    return _cnn_forward_impl(x, w1, b1, w2, b2, w3, b3, block_n=block_n)


# Pure-JAX f32 reference of the PyTorch module (numerical sanity check).
def reference_forward(x, w1, b1, w2, b2, w3, b3):
    def block(x, w, b):
        y = lax.conv_general_dilated(x, w, (1, 1), ((2, 2), (2, 2)),
                                     dimension_numbers=("NCHW", "OIHW", "NCHW"))
        y = jnp.maximum(y + b[None, :, None, None], 0.0)
        return lax.reduce_window(y, -jnp.inf, lax.max,
                                 (1, 1, 2, 2), (1, 1, 2, 2), "VALID")
    h = block(x, w1, b1)
    h = block(h, w2, b2)
    h = h.reshape(h.shape[0], -1)
    return h @ w3.T + b3


if __name__ == "__main__":
    key = jax.random.PRNGKey(0)
    ks = jax.random.split(key, 7)

    # Batch=2, MNIST-like 28x28 (implied by Linear(32*7*7, 10)), NCHW.
    x = jax.random.normal(ks[0], (2, 1, 28, 28), jnp.float32)
    w1 = 0.10 * jax.random.normal(ks[1], (16, 1, 5, 5), jnp.float32)
    b1 = 0.10 * jax.random.normal(ks[2], (16,), jnp.float32)
    w2 = 0.05 * jax.random.normal(ks[3], (32, 16, 5, 5), jnp.float32)
    b2 = 0.05 * jax.random.normal(ks[4], (32,), jnp.float32)
    w3 = 0.05 * jax.random.normal(ks[5], (10, 32 * 7 * 7), jnp.float32)
    b3 = 0.05 * jax.random.normal(ks[6], (10,), jnp.float32)

    out = jax.block_until_ready(cnn_forward(x, w1, b1, w2, b2, w3, b3))
    assert out.shape == (2, 10) and out.dtype == jnp.float32

    ref = reference_forward(x, w1, b1, w2, b2, w3, b3)
    # Tolerance reflects bf16 MXU inputs (f32 accumulation); observed error is O(1e-3).
    assert jnp.allclose(out, ref, rtol=2e-2, atol=2e-2), (out, ref)

    print("KERNEL_OK")
</pallas_src>

<mosaic_0001>
module attributes {stable_mosaic.version = 11 : i64} {
  func.func @_fused_cnn_kernel(%arg0: i32, %arg1: memref<1x784x25xbf16, #tpu.memory_space<vmem>>, %arg2: memref<25x16xbf16, #tpu.memory_space<vmem>>, %arg3: memref<1x16xf32, #tpu.memory_space<vmem>>, %arg4: memref<25x16x32xbf16, #tpu.memory_space<vmem>>, %arg5: memref<1x32xf32, #tpu.memory_space<vmem>>, %arg6: memref<49x32x128xbf16, #tpu.memory_space<vmem>>, %arg7: memref<1x128xf32, #tpu.memory_space<vmem>>, %arg8: memref<1x1x128xf32, #tpu.memory_space<vmem>>, %arg9: memref<784x16xf32, #tpu.memory_space<vmem>>, %arg10: memref<342x16xf32, #tpu.memory_space<vmem>>, %arg11: memref<252x32xf32, #tpu.memory_space<vmem>>, %arg12: memref<49x1x32xf32, #tpu.memory_space<vmem>>) attributes {dimension_semantics = [#tpu.dimension_semantics<parallel>], iteration_bounds = array<i64: 2>, scalar_prefetch = 0 : i64, scratch_operands = 4 : i64, tpu.core_type = #tpu.core_type<tc>, window_params = [{transform_indices = @transform_0, window_bounds = array<i64: 1, 784, 25>}, {pipeline_mode = #tpu.pipeline_mode<synchronous>, transform_indices = @transform_1, window_bounds = array<i64: 25, 16>}, {pipeline_mode = #tpu.pipeline_mode<synchronous>, transform_indices = @transform_2, window_bounds = array<i64: 1, 16>}, {pipeline_mode = #tpu.pipeline_mode<synchronous>, transform_indices = @transform_3, window_bounds = array<i64: 25, 16, 32>}, {pipeline_mode = #tpu.pipeline_mode<synchronous>, transform_indices = @transform_4, window_bounds = array<i64: 1, 32>}, {pipeline_mode = #tpu.pipeline_mode<synchronous>, transform_indices = @transform_5, window_bounds = array<i64: 49, 32, 128>}, {pipeline_mode = #tpu.pipeline_mode<synchronous>, transform_indices = @transform_6, window_bounds = array<i64: 1, 128>}, {transform_indices = @transform_7, window_bounds = array<i64: 1, 1, 128>}]} {
    %cst = arith.constant 0.000000e+00 : f32
    %0 = vector.broadcast %cst : f32 to vector<342x16xf32>
    %c0 = arith.constant 0 : index
    %c0_0 = arith.constant 0 : index
    %1 = vector.load %arg10[%c0, %c0_0] : memref<342x16xf32, #tpu.memory_space<vmem>>, vector<342x16xf32>
    tpu.vector_store %arg10[%c0, %c0_0], %0 {strides = array<i32>} : memref<342x16xf32, #tpu.memory_space<vmem>>, vector<342x16xf32>,
    %c0_1 = arith.constant 0 : index
    %c0_2 = arith.constant 0 : index
    %c0_3 = arith.constant 0 : index
    %2 = vector.load %arg1[%c0_1, %c0_2, %c0_3] : memref<1x784x25xbf16, #tpu.memory_space<vmem>>, vector<1x784x25xbf16>
    %3 = vector.shape_cast %2 : vector<1x784x25xbf16> to vector<784x25xbf16>
    %c0_4 = arith.constant 0 : index
    %c0_5 = arith.constant 0 : index
    %4 = vector.load %arg2[%c0_4, %c0_5] : memref<25x16xbf16, #tpu.memory_space<vmem>>, vector<25x16xbf16>
    %cst_6 = arith.constant dense<0.000000e+00> : vector<784x16xf32>
    %5 = tpu.matmul %3, %4, %cst_6 {dimension_numbers = #tpu.dot_dimension_numbers<[1], [0], [0], [1], [0, 0, 1, 1], [], []>} : vector<784x25xbf16>, vector<25x16xbf16>, vector<784x16xf32> -> vector<784x16xf32>
    %c0_7 = arith.constant 0 : index
    %c0_8 = arith.constant 0 : index
    %6 = vector.load %arg3[%c0_7, %c0_8] : memref<1x16xf32, #tpu.memory_space<vmem>>, vector<1x16xf32>
    %7 = vector.broadcast %6 : vector<1x16xf32> to vector<784x16xf32>
    %8 = arith.addf %5, %7 : vector<784x16xf32>
    %cst_9 = arith.constant 0.000000e+00 : f32
    %9 = vector.broadcast %cst_9 : f32 to vector<784x16xf32>
    %10 = arith.maximumf %8, %9 : vector<784x16xf32>
    %c0_10 = arith.constant 0 : index
    %c0_11 = arith.constant 0 : index
    %11 = vector.load %arg9[%c0_10, %c0_11] : memref<784x16xf32, #tpu.memory_space<vmem>>, vector<784x16xf32>
    tpu.vector_store %arg9[%c0_10, %c0_11], %10 {strides = array<i32>} : memref<784x16xf32, #tpu.memory_space<vmem>>, vector<784x16xf32>,
    %c0_12 = arith.constant 0 : index
    %c0_13 = arith.constant 0 : index
    %12 = vector.load %arg9[%c0_12, %c0_13] : memref<784x16xf32, #tpu.memory_space<vmem>>, vector<27x16xf32>
    %c1 = arith.constant 1 : index
    %c0_14 = arith.constant 0 : index
    %13 = vector.load %arg9[%c1, %c0_14] : memref<784x16xf32, #tpu.memory_space<vmem>>, vector<27x16xf32>
    %14 = arith.maximumf %12, %13 : vector<27x16xf32>
    %c28 = arith.constant 28 : index
    %c0_15 = arith.constant 0 : index
    %15 = vector.load %arg9[%c28, %c0_15] : memref<784x16xf32, #tpu.memory_space<vmem>>, vector<27x16xf32>
    %c29 = arith.constant 29 : index
    %c0_16 = arith.constant 0 : index
    %16 = vector.load %arg9[%c29, %c0_16] : memref<784x16xf32, #tpu.memory_space<vmem>>, vector<27x16xf32>
    %17 = arith.maximumf %15, %16 : vector<27x16xf32>
    %18 = arith.maximumf %14, %17 : vector<27x16xf32>
    %c0_17 = arith.constant 0 : index
    %c0_18 = arith.constant 0 : index
    %19 = vector.load %arg9[%c0_17, %c0_18] : memref<784x16xf32, #tpu.memory_space<vmem>>, vector<27x16xf32>
    tpu.vector_store %arg9[%c0_17, %c0_18], %18 {strides = array<i32>} : memref<784x16xf32, #tpu.memory_space<vmem>>, vector<27x16xf32>,
    %c0_19 = arith.constant 0 : index
    %c0_20 = arith.constant 0 : index
    %20 = tpu.strided_load %arg9[%c0_19, %c0_20] {strides = array<i32: 2, 1>} : memref<784x16xf32, #tpu.memory_space<vmem>>, vector<14x16xf32>
    %c38 = arith.constant 38 : index
    %c0_21 = arith.constant 0 : index
    %21 = vector.load %arg10[%c38, %c0_21] : memref<342x16xf32, #tpu.memory_space<vmem>>, vector<14x16xf32>
    tpu.vector_store %arg10[%c38, %c0_21], %20 {strides = array<i32>} : memref<342x16xf32, #tpu.memory_space<vmem>>, vector<14x16xf32>,
    %c56 = arith.constant 56 : index
    %c0_22 = arith.constant 0 : index
    %22 = vector.load %arg9[%c56, %c0_22] : memref<784x16xf32, #tpu.memory_space<vmem>>, vector<27x16xf32>
    %c57 = arith.constant 57 : index
    %c0_23 = arith.constant 0 : index
    %23 = vector.load %arg9[%c57, %c0_23] : memref<784x16xf32, #tpu.memory_space<vmem>>, vector<27x16xf32>
    %24 = arith.maximumf %22, %23 : vector<27x16xf32>
    %c84 = arith.constant 84 : index
    %c0_24 = arith.constant 0 : index
    %25 = vector.load %arg9[%c84, %c0_24] : memref<784x16xf32, #tpu.memory_space<vmem>>, vector<27x16xf32>
    %c85 = arith.constant 85 : index
    %c0_25 = arith.constant 0 : index
    %26 = vector.load %arg9[%c85, %c0_25] : memref<784x16xf32, #tpu.memory_space<vmem>>, vector<27x16xf32>
    %27 = arith.maximumf %25, %26 : vector<27x16xf32>
    %28 = arith.maximumf %24, %27 : vector<27x16xf32>
    %c56_26 = arith.constant 56 : index
    %c0_27 = arith.constant 0 : index
    %29 = vector.load %arg9[%c56_26, %c0_27] : memref<784x16xf32, #tpu.memory_space<vmem>>, vector<27x16xf32>
    tpu.vector_store %arg9[%c56_26, %c0_27], %28 {strides = array<i32>} : memref<784x16xf32, #tpu.memory_space<vmem>>, vector<27x16xf32>,
    %c56_28 = arith.constant 56 : index
    %c0_29 = arith.constant 0 : index
    %30 = tpu.strided_load %arg9[%c56_28, %c0_29] {strides = array<i32: 2, 1>} : memref<784x16xf32, #tpu.memory_space<vmem>>, vector<14x16xf32>
    %c56_30 = arith.constant 56 : index
    %c0_31 = arith.constant 0 : index
    %31 = vector.load %arg10[%c56_30, %c0_31] : memref<342x16xf32, #tpu.memory_space<vmem>>, vector<14x16xf32>
    tpu.vector_store %arg10[%c56_30, %c0_31], %30 {strides = array<i32>} : memref<342x16xf32, #tpu.memory_space<vmem>>, vector<14x16xf32>,
    %c112 = arith.constant 112 : index
    %c0_32 = arith.constant 0 : index
    %32 = vector.load %arg9[%c112, %c0_32] : memref<784x16xf32, #tpu.memory_space<vmem>>, vector<27x16xf32>
    %c113 = arith.constant 113 : index
    %c0_33 = arith.constant 0 : index
    %33 = vector.load %arg9[%c113, %c0_33] : memref<784x16xf32, #tpu.memory_space<vmem>>, vector<27x16xf32>
    %34 = arith.maximumf %32, %33 : vector<27x16xf32>
    %c140 = arith.constant 140 : index
    %c0_34 = arith.constant 0 : index
    %35 = vector.load %arg9[%c140, %c0_34] : memref<784x16xf32, #tpu.memory_space<vmem>>, vector<27x16xf32>
    %c141 = arith.constant 141 : index
    %c0_35 = arith.constant 0 : index
    %36 = vector.load %arg9[%c141, %c0_35] : memref<784x16xf32, #tpu.memory_space<vmem>>, vector<27x16xf32>
    %37 = arith.maximumf %35, %36 : vector<27x16xf32>
    %38 = arith.maximumf %34, %37 : vector<27x16xf32>
    %c112_36 = arith.constant 112 : index
    %c0_37 = arith.constant 0 : index
    %39 = vector.load %arg9[%c112_36, %c0_37] : memref<784x16xf32, #tpu.memory_space<vmem>>, vector<27x16xf32>
    tpu.vector_store %arg9[%c112_36, %c0_37], %38 {strides = array<i32>} : memref<784x16xf32, #tpu.memory_space<vmem>>, vector<27x16xf32>,
    %c112_38 = arith.constant 112 : index
    %c0_39 = arith.constant 0 : index
    %40 = tpu.strided_load %arg9[%c112_38, %c0_39] {strides = array<i32: 2, 1>} : memref<784x16xf32, #tpu.memory_space<vmem>>, vector<14x16xf32>
    %c74 = arith.constant 74 : index
    %c0_40 = arith.constant 0 : index
    %41 = vector.load %arg10[%c74, %c0_40] : memref<342x16xf32, #tpu.memory_space<vmem>>, vector<14x16xf32>
    tpu.vector_store %arg10[%c74, %c0_40], %40 {strides = array<i32>} : memref<342x16xf32, #tpu.memory_space<vmem>>, vector<14x16xf32>,
    %c168 = arith.constant 168 : index
    %c0_41 = arith.constant 0 : index
    %42 = vector.load %arg9[%c168, %c0_41] : memref<784x16xf32, #tpu.memory_space<vmem>>, vector<27x16xf32>
    %c169 = arith.constant 169 : index
    %c0_42 = arith.constant 0 : index
    %43 = vector.load %arg9[%c169, %c0_42] : memref<784x16xf32, #tpu.memory_space<vmem>>, vector<27x16xf32>
    %44 = arith.maximumf %42, %43 : vector<27x16xf32>
    %c196 = arith.constant 196 : index
    %c0_43 = arith.constant 0 : index
    %45 = vector.load %arg9[%c196, %c0_43] : memref<784x16xf32, #tpu.memory_space<vmem>>, vector<27x16xf32>
    %c197 = arith.constant 197 : index
    %c0_44 = arith.constant 0 : index
    %46 = vector.load %arg9[%c197, %c0_44] : memref<784x16xf32, #tpu.memory_space<vmem>>, vector<27x16xf32>
    %47 = arith.maximumf %45, %46 : vector<27x16xf32>
    %48 = arith.maximumf %44, %47 : vector<27x16xf32>
    %c168_45 = arith.constant 168 : index
    %c0_46 = arith.constant 0 : index
    %49 = vector.load %arg9[%c168_45, %c0_46] : memref<784x16xf32, #tpu.memory_space<vmem>>, vector<27x16xf32>
    tpu.vector_store %arg9[%c168_45, %c0_46], %48 {strides = array<i32>} : memref<784x16xf32, #tpu.memory_space<vmem>>, vector<27x16xf32>,
    %c168_47 = arith.constant 168 : index
    %c0_48 = arith.constant 0 : index
    %50 = tpu.strided_load %arg9[%c168_47, %c0_48] {strides = array<i32: 2, 1>} : memref<784x16xf32, #tpu.memory_space<vmem>>, vector<14x16xf32>
    %c92 = arith.constant 92 : index
    %c0_49 = arith.constant 0 : index
    %51 = vector.load %arg10[%c92, %c0_49] : memref<342x16xf32, #tpu.memory_space<vmem>>, vector<14x16xf32>
    tpu.vector_store %arg10[%c92, %c0_49], %50 {strides = array<i32>} : memref<342x16xf32, #tpu.memory_space<vmem>>, vector<14x16xf32>,
    %c224 = arith.constant 224 : index
    %c0_50 = arith.constant 0 : index
    %52 = vector.load %arg9[%c224, %c0_50] : memref<784x16xf32, #tpu.memory_space<vmem>>, vector<27x16xf32>
    %c225 = arith.constant 225 : index
    %c0_51 = arith.constant 0 : index
    %53 = vector.load %arg9[%c225, %c0_51] : memref<784x16xf32, #tpu.memory_space<vmem>>, vector<27x16xf32>
    %54 = arith.maximumf %52, %53 : vector<27x16xf32>
    %c252 = arith.constant 252 : index
    %c0_52 = arith.constant 0 : index
    %55 = vector.load %arg9[%c252, %c0_52] : memref<784x16xf32, #tpu.memory_space<vmem>>, vector<27x16xf32>
    %c253 = arith.constant 253 : index
    %c0_53 = arith.constant 0 : index
    %56 = vector.load %arg9[%c253, %c0_53] : memref<784x16xf32, #tpu.memory_space<vmem>>, vector<27x16xf32>
    %57 = arith.maximumf %55, %56 : vector<27x16xf32>
    %58 = arith.maximumf %54, %57 : vector<27x16xf32>
    %c224_54 = arith.constant 224 : index
    %c0_55 = arith.constant 0 : index
    %59 = vector.load %arg9[%c224_54, %c0_55] : memref<784x16xf32, #tpu.memory_space<vmem>>, vector<27x16xf32>
    tpu.vector_store %arg9[%c224_54, %c0_55], %58 {strides = array<i32>} : memref<784x16xf32, #tpu.memory_space<vmem>>, vector<27x16xf32>,
    %c224_56 = arith.constant 224 : index
    %c0_57 = arith.constant 0 : index
    %60 = tpu.strided_load %arg9[%c224_56, %c0_57] {strides = array<i32: 2, 1>} : memref<784x16xf32, #tpu.memory_space<vmem>>, vector<14x16xf32>
    %c110 = arith.constant 110 : index
    %c0_58 = arith.constant 0 : index
    %61 = vector.load %arg10[%c110, %c0_58] : memref<342x16xf32, #tpu.memory_space<vmem>>, vector<14x16xf32>
    tpu.vector_store %arg10[%c110, %c0_58], %60 {strides = array<i32>} : memref<342x16xf32, #tpu.memory_space<vmem>>, vector<14x16xf32>,
    %c280 = arith.constant 280 : index
    %c0_59 = arith.constant 0 : index
    %62 = vector.load %arg9[%c280, %c0_59] : memref<784x16xf32, #tpu.memory_space<vmem>>, vector<27x16xf32>
    %c281 = arith.constant 281 : index
    %c0_60 = arith.constant 0 : index
    %63 = vector.load %arg9[%c281, %c0_60] : memref<784x16xf32, #tpu.memory_space<vmem>>, vector<27x16xf32>
    %64 = arith.maximumf %62, %63 : vector<27x16xf32>
    %c308 = arith.constant 308 : index
    %c0_61 = arith.constant 0 : index
    %65 = vector.load %arg9[%c308, %c0_61] : memref<784x16xf32, #tpu.memory_space<vmem>>, vector<27x16xf32>
    %c309 = arith.constant 309 : index
    %c0_62 = arith.constant 0 : index
    %66 = vector.load %arg9[%c309, %c0_62] : memref<784x16xf32, #tpu.memory_space<vmem>>, vector<27x16xf32>
    %67 = arith.maximumf %65, %66 : vector<27x16xf32>
    %68 = arith.maximumf %64, %67 : vector<27x16xf32>
    %c280_63 = arith.constant 280 : index
    %c0_64 = arith.constant 0 : index
    %69 = vector.load %arg9[%c280_63, %c0_64] : memref<784x16xf32, #tpu.memory_space<vmem>>, vector<27x16xf32>
    tpu.vector_store %arg9[%c280_63, %c0_64], %68 {strides = array<i32>} : memref<784x16xf32, #tpu.memory_space<vmem>>, vector<27x16xf32>,
    %c280_65 = arith.constant 280 : index
    %c0_66 = arith.constant 0 : index
    %70 = tpu.strided_load %arg9[%c280_65, %c0_66] {strides = array<i32: 2, 1>} : memref<784x16xf32, #tpu.memory_space<vmem>>, vector<14x16xf32>
    %c128 = arith.constant 128 : index
    %c0_67 = arith.constant 0 : index
    %71 = vector.load %arg10[%c128, %c0_67] : memref<342x16xf32, #tpu.memory_space<vmem>>, vector<14x16xf32>
    tpu.vector_store %arg10[%c128, %c0_67], %70 {strides = array<i32>} : memref<342x16xf32, #tpu.memory_space<vmem>>, vector<14x16xf32>,
    %c336 = arith.constant 336 : index
    %c0_68 = arith.constant 0 : index
    %72 = vector.load %arg9[%c336, %c0_68] : memref<784x16xf32, #tpu.memory_space<vmem>>, vector<27x16xf32>
    %c337 = arith.constant 337 : index
    %c0_69 = arith.constant 0 : index
    %73 = vector.load %arg9[%c337, %c0_69] : memref<784x16xf32, #tpu.memory_space<vmem>>, vector<27x16xf32>
    %74 = arith.maximumf %72, %73 : vector<27x16xf32>
    %c364 = arith.constant 364 : index
    %c0_70 = arith.constant 0 : index
    %75 = vector.load %arg9[%c364, %c0_70] : memref<784x16xf32, #tpu.memory_space<vmem>>, vector<27x16xf32>
    %c365 = arith.constant 365 : index
    %c0_71 = arith.constant 0 : index
    %76 = vector.load %arg9[%c365, %c0_71] : memref<784x16xf32, #tpu.memory_space<vmem>>, vector<27x16xf32>
    %77 = arith.maximumf %75, %76 : vector<27x16xf32>
    %78 = arith.maximumf %74, %77 : vector<27x16xf32>
    %c336_72 = arith.constant 336 : index
    %c0_73 = arith.constant 0 : index
    %79 = vector.load %arg9[%c336_72, %c0_73] : memref<784x16xf32, #tpu.memory_space<vmem>>, vector<27x16xf32>
    tpu.vector_store %arg9[%c336_72, %c0_73], %78 {strides = array<i32>} : memref<784x16xf32, #tpu.memory_space<vmem>>, vector<27x16xf32>,
    %c336_74 = arith.constant 336 : index
    %c0_75 = arith.constant 0 : index
    %80 = tpu.strided_load %arg9[%c336_74, %c0_75] {strides = array<i32: 2, 1>} : memref<784x16xf32, #tpu.memory_space<vmem>>, vector<14x16xf32>
    %c146 = arith.constant 146 : index
    %c0_76 = arith.constant 0 : index
    %81 = vector.load %arg10[%c146, %c0_76] : memref<342x16xf32, #tpu.memory_space<vmem>>, vector<14x16xf32>
    tpu.vector_store %arg10[%c146, %c0_76], %80 {strides = array<i32>} : memref<342x16xf32, #tpu.memory_space<vmem>>, vector<14x16xf32>,
    %c392 = arith.constant 392 : index
    %c0_77 = arith.constant 0 : index
    %82 = vector.load %arg9[%c392, %c0_77] : memref<784x16xf32, #tpu.memory_space<vmem>>, vector<27x16xf32>
    %c393 = arith.constant 393 : index
    %c0_78 = arith.constant 0 : index
    %83 = vector.load %arg9[%c393, %c0_78] : memref<784x16xf32, #tpu.memory_space<vmem>>, vector<27x16xf32>
    %84 = arith.maximumf %82, %83 : vector<27x16xf32>
    %c420 = arith.constant 420 : index
    %c0_79 = arith.constant 0 : index
    %85 = vector.load %arg9[%c420, %c0_79] : memref<784x16xf32, #tpu.memory_space<vmem>>, vector<27x16xf32>
    %c421 = arith.constant 421 : index
    %c0_80 = arith.constant 0 : index
    %86 = vector.load %arg9[%c421, %c0_80] : memref<784x16xf32, #tpu.memory_space<vmem>>, vector<27x16xf32>
    %87 = arith.maximumf %85, %86 : vector<27x16xf32>
    %88 = arith.maximumf %84, %87 : vector<27x16xf32>
    %c392_81 = arith.constant 392 : index
    %c0_82 = arith.constant 0 : index
    %89 = vector.load %arg9[%c392_81, %c0_82] : memref<784x16xf32, #tpu.memory_space<vmem>>, vector<27x16xf32>
    tpu.vector_store %arg9[%c392_81, %c0_82], %88 {strides = array<i32>} : memref<784x16xf32, #tpu.memory_space<vmem>>, vector<27x16xf32>,
    %c392_83 = arith.constant 392 : index
    %c0_84 = arith.constant 0 : index
    %90 = tpu.strided_load %arg9[%c392_83, %c0_84] {strides = array<i32: 2, 1>} : memref<784x16xf32, #tpu.memory_space<vmem>>, vector<14x16xf32>
    %c164 = arith.constant 164 : index
    %c0_85 = arith.constant 0 : index
    %91 = vector.load %arg10[%c164, %c0_85] : memref<342x16xf32, #tpu.memory_space<vmem>>, vector<14x16xf32>
    tpu.vector_store %arg10[%c164, %c0_85], %90 {strides = array<i32>} : memref<342x16xf32, #tpu.memory_space<vmem>>, vector<14x16xf32>,
    %c448 = arith.constant 448 : index
    %c0_86 = arith.constant 0 : index
    %92 = vector.load %arg9[%c448, %c0_86] : memref<784x16xf32, #tpu.memory_space<vmem>>, vector<27x16xf32>
    %c449 = arith.constant 449 : index
    %c0_87 = arith.constant 0 : index
    %93 = vector.load %arg9[%c449, %c0_87] : memref<784x16xf32, #tpu.memory_space<vmem>>, vector<27x16xf32>
    %94 = arith.maximumf %92, %93 : vector<27x16xf32>
    %c476 = arith.constant 476 : index
    %c0_88 = arith.constant 0 : index
    %95 = vector.load %arg9[%c476, %c0_88] : memref<784x16xf32, #tpu.memory_space<vmem>>, vector<27x16xf32>
    %c477 = arith.constant 477 : index
    %c0_89 = arith.constant 0 : index
    %96 = vector.load %arg9[%c477, %c0_89] : memref<784x16xf32, #tpu.memory_space<vmem>>, vector<27x16xf32>
    %97 = arith.maximumf %95, %96 : vector<27x16xf32>
    %98 = arith.maximumf %94, %97 : vector<27x16xf32>
    %c448_90 = arith.constant 448 : index
    %c0_91 = arith.constant 0 : index
    %99 = vector.load %arg9[%c448_90, %c0_91] : memref<784x16xf32, #tpu.memory_space<vmem>>, vector<27x16xf32>
    tpu.vector_store %arg9[%c448_90, %c0_91], %98 {strides = array<i32>} : memref<784x16xf32, #tpu.memory_space<vmem>>, vector<27x16xf32>,
    %c448_92 = arith.constant 448 : index
    %c0_93 = arith.constant 0 : index
    %100 = tpu.strided_load %arg9[%c448_92, %c0_93] {strides = array<i32: 2, 1>} : memref<784x16xf32, #tpu.memory_space<vmem>>, vector<14x16xf32>
    %c182 = arith.constant 182 : index
    %c0_94 = arith.constant 0 : index
    %101 = vector.load %arg10[%c182, %c0_94] : memref<342x16xf32, #tpu.memory_space<vmem>>, vector<14x16xf32>
    tpu.vector_store %arg10[%c182, %c0_94], %100 {strides = array<i32>} : memref<342x16xf32, #tpu.memory_space<vmem>>, vector<14x16xf32>,
    %c504 = arith.constant 504 : index
    %c0_95 = arith.constant 0 : index
    %102 = vector.load %arg9[%c504, %c0_95] : memref<784x16xf32, #tpu.memory_space<vmem>>, vector<27x16xf32>
    %c505 = arith.constant 505 : index
    %c0_96 = arith.constant 0 : index
    %103 = vector.load %arg9[%c505, %c0_96] : memref<784x16xf32, #tpu.memory_space<vmem>>, vector<27x16xf32>
    %104 = arith.maximumf %102, %103 : vector<27x16xf32>
    %c532 = arith.constant 532 : index
    %c0_97 = arith.constant 0 : index
    %105 = vector.load %arg9[%c532, %c0_97] : memref<784x16xf32, #tpu.memory_space<vmem>>, vector<27x16xf32>
    %c533 = arith.constant 533 : index
    %c0_98 = arith.constant 0 : index
    %106 = vector.load %arg9[%c533, %c0_98] : memref<784x16xf32, #tpu.memory_space<vmem>>, vector<27x16xf32>
    %107 = arith.maximumf %105, %106 : vector<27x16xf32>
    %108 = arith.maximumf %104, %107 : vector<27x16xf32>
    %c504_99 = arith.constant 504 : index
    %c0_100 = arith.constant 0 : index
    %109 = vector.load %arg9[%c504_99, %c0_100] : memref<784x16xf32, #tpu.memory_space<vmem>>, vector<27x16xf32>
    tpu.vector_store %arg9[%c504_99, %c0_100], %108 {strides = array<i32>} : memref<784x16xf32, #tpu.memory_space<vmem>>, vector<27x16xf32>,
    %c504_101 = arith.constant 504 : index
    %c0_102 = arith.constant 0 : index
    %110 = tpu.strided_load %arg9[%c504_101, %c0_102] {strides = array<i32: 2, 1>} : memref<784x16xf32, #tpu.memory_space<vmem>>, vector<14x16xf32>
    %c200 = arith.constant 200 : index
    %c0_103 = arith.constant 0 : index
    %111 = vector.load %arg10[%c200, %c0_103] : memref<342x16xf32, #tpu.memory_space<vmem>>, vector<14x16xf32>
    tpu.vector_store %arg10[%c200, %c0_103], %110 {strides = array<i32>} : memref<342x16xf32, #tpu.memory_space<vmem>>, vector<14x16xf32>,
    %c560 = arith.constant 560 : index
    %c0_104 = arith.constant 0 : index
    %112 = vector.load %arg9[%c560, %c0_104] : memref<784x16xf32, #tpu.memory_space<vmem>>, vector<27x16xf32>
    %c561 = arith.constant 561 : index
    %c0_105 = arith.constant 0 : index
    %113 = vector.load %arg9[%c561, %c0_105] : memref<784x16xf32, #tpu.memory_space<vmem>>, vector<27x16xf32>
    %114 = arith.maximumf %112, %113 : vector<27x16xf32>
    %c588 = arith.constant 588 : index
    %c0_106 = arith.constant 0 : index
    %115 = vector.load %arg9[%c588, %c0_106] : memref<784x16xf32, #tpu.memory_space<vmem>>, vector<27x16xf32>
    %c589 = arith.constant 589 : index
    %c0_107 = arith.constant 0 : index
    %116 = vector.load %arg9[%c589, %c0_107] : memref<784x16xf32, #tpu.memory_space<vmem>>, vector<27x16xf32>
    %117 = arith.maximumf %115, %116 : vector<27x16xf32>
    %118 = arith.maximumf %114, %117 : vector<27x16xf32>
    %c560_108 = arith.constant 560 : index
    %c0_109 = arith.constant 0 : index
    %119 = vector.load %arg9[%c560_108, %c0_109] : memref<784x16xf32, #tpu.memory_space<vmem>>, vector<27x16xf32>
    tpu.vector_store %arg9[%c560_108, %c0_109], %118 {strides = array<i32>} : memref<784x16xf32, #tpu.memory_space<vmem>>, vector<27x16xf32>,
    %c560_110 = arith.constant 560 : index
    %c0_111 = arith.constant 0 : index
    %120 = tpu.strided_load %arg9[%c560_110, %c0_111] {strides = array<i32: 2, 1>} : memref<784x16xf32, #tpu.memory_space<vmem>>, vector<14x16xf32>
    %c218 = arith.constant 218 : index
    %c0_112 = arith.constant 0 : index
    %121 = vector.load %arg10[%c218, %c0_112] : memref<342x16xf32, #tpu.memory_space<vmem>>, vector<14x16xf32>
    tpu.vector_store %arg10[%c218, %c0_112], %120 {strides = array<i32>} : memref<342x16xf32, #tpu.memory_space<vmem>>, vector<14x16xf32>,
    %c616 = arith.constant 616 : index
    %c0_113 = arith.constant 0 : index
    %122 = vector.load %arg9[%c616, %c0_113] : memref<784x16xf32, #tpu.memory_space<vmem>>, vector<27x16xf32>
    %c617 = arith.constant 617 : index
    %c0_114 = arith.constant 0 : index
    %123 = vector.load %arg9[%c617, %c0_114] : memref<784x16xf32, #tpu.memory_space<vmem>>, vector<27x16xf32>
    %124 = arith.maximumf %122, %123 : vector<27x16xf32>
    %c644 = arith.constant 644 : index
    %c0_115 = arith.constant 0 : index
    %125 = vector.load %arg9[%c644, %c0_115] : memref<784x16xf32, #tpu.memory_space<vmem>>, vector<27x16xf32>
    %c645 = arith.constant 645 : index
    %c0_116 = arith.constant 0 : index
    %126 = vector.load %arg9[%c645, %c0_116] : memref<784x16xf32, #tpu.memory_space<vmem>>, vector<27x16xf32>
    %127 = arith.maximumf %125, %126 : vector<27x16xf32>
    %128 = arith.maximumf %124, %127 : vector<27x16xf32>
    %c616_117 = arith.constant 616 : index
    %c0_118 = arith.constant 0 : index
    %129 = vector.load %arg9[%c616_117, %c0_118] : memref<784x16xf32, #tpu.memory_space<vmem>>, vector<27x16xf32>
    tpu.vector_store %arg9[%c616_117, %c0_118], %128 {strides = array<i32>} : memref<784x16xf32, #tpu.memory_space<vmem>>, vector<27x16xf32>,
    %c616_119 = arith.constant 616 : index
    %c0_120 = arith.constant 0 : index
    %130 = tpu.strided_load %arg9[%c616_119, %c0_120] {strides = array<i32: 2, 1>} : memref<784x16xf32, #tpu.memory_space<vmem>>, vector<14x16xf32>
    %c236 = arith.constant 236 : index
    %c0_121 = arith.constant 0 : index
    %131 = vector.load %arg10[%c236, %c0_121] : memref<342x16xf32, #tpu.memory_space<vmem>>, vector<14x16xf32>
    tpu.vector_store %arg10[%c236, %c0_121], %130 {strides = array<i32>} : memref<342x16xf32, #tpu.memory_space<vmem>>, vector<14x16xf32>,
    %c672 = arith.constant 672 : index
    %c0_122 = arith.constant 0 : index
    %132 = vector.load %arg9[%c672, %c0_122] : memref<784x16xf32, #tpu.memory_space<vmem>>, vector<27x16xf32>
    %c673 = arith.constant 673 : index
    %c0_123 = arith.constant 0 : index
    %133 = vector.load %arg9[%c673, %c0_123] : memref<784x16xf32, #tpu.memory_space<vmem>>, vector<27x16xf32>
    %134 = arith.maximumf %132, %133 : vector<27x16xf32>
    %c700 = arith.constant 700 : index
    %c0_124 = arith.constant 0 : index
    %135 = vector.load %arg9[%c700, %c0_124] : memref<784x16xf32, #tpu.memory_space<vmem>>, vector<27x16xf32>
    %c701 = arith.constant 701 : index
    %c0_125 = arith.constant 0 : index
    %136 = vector.load %arg9[%c701, %c0_125] : memref<784x16xf32, #tpu.memory_space<vmem>>, vector<27x16xf32>
    %137 = arith.maximumf %135, %136 : vector<27x16xf32>
    %138 = arith.maximumf %134, %137 : vector<27x16xf32>
    %c672_126 = arith.constant 672 : index
    %c0_127 = arith.constant 0 : index
    %139 = vector.load %arg9[%c672_126, %c0_127] : memref<784x16xf32, #tpu.memory_space<vmem>>, vector<27x16xf32>
    tpu.vector_store %arg9[%c672_126, %c0_127], %138 {strides = array<i32>} : memref<784x16xf32, #tpu.memory_space<vmem>>, vector<27x16xf32>,
    %c672_128 = arith.constant 672 : index
    %c0_129 = arith.constant 0 : index
    %140 = tpu.strided_load %arg9[%c672_128, %c0_129] {strides = array<i32: 2, 1>} : memref<784x16xf32, #tpu.memory_space<vmem>>, vector<14x16xf32>
    %c254 = arith.constant 254 : index
    %c0_130 = arith.constant 0 : index
    %141 = vector.load %arg10[%c254, %c0_130] : memref<342x16xf32, #tpu.memory_space<vmem>>, vector<14x16xf32>
    tpu.vector_store %arg10[%c254, %c0_130], %140 {strides = array<i32>} : memref<342x16xf32, #tpu.memory_space<vmem>>, vector<14x16xf32>,
    %c728 = arith.constant 728 : index
    %c0_131 = arith.constant 0 : index
    %142 = vector.load %arg9[%c728, %c0_131] : memref<784x16xf32, #tpu.memory_space<vmem>>, vector<27x16xf32>
    %c729 = arith.constant 729 : index
    %c0_132 = arith.constant 0 : index
    %143 = vector.load %arg9[%c729, %c0_132] : memref<784x16xf32, #tpu.memory_space<vmem>>, vector<27x16xf32>
    %144 = arith.maximumf %142, %143 : vector<27x16xf32>
    %c756 = arith.constant 756 : index
    %c0_133 = arith.constant 0 : index
    %145 = vector.load %arg9[%c756, %c0_133] : memref<784x16xf32, #tpu.memory_space<vmem>>, vector<27x16xf32>
    %c757 = arith.constant 757 : index
    %c0_134 = arith.constant 0 : index
    %146 = vector.load %arg9[%c757, %c0_134] : memref<784x16xf32, #tpu.memory_space<vmem>>, vector<27x16xf32>
    %147 = arith.maximumf %145, %146 : vector<27x16xf32>
    %148 = arith.maximumf %144, %147 : vector<27x16xf32>
    %c728_135 = arith.constant 728 : index
    %c0_136 = arith.constant 0 : index
    %149 = vector.load %arg9[%c728_135, %c0_136] : memref<784x16xf32, #tpu.memory_space<vmem>>, vector<27x16xf32>
    tpu.vector_store %arg9[%c728_135, %c0_136], %148 {strides = array<i32>} : memref<784x16xf32, #tpu.memory_space<vmem>>, vector<27x16xf32>,
    %c728_137 = arith.constant 728 : index
    %c0_138 = arith.constant 0 : index
    %150 = tpu.strided_load %arg9[%c728_137, %c0_138] {strides = array<i32: 2, 1>} : memref<784x16xf32, #tpu.memory_space<vmem>>, vector<14x16xf32>
    %c272 = arith.constant 272 : index
    %c0_139 = arith.constant 0 : index
    %151 = vector.load %arg10[%c272, %c0_139] : memref<342x16xf32, #tpu.memory_space<vmem>>, vector<14x16xf32>
    tpu.vector_store %arg10[%c272, %c0_139], %150 {strides = array<i32>} : memref<342x16xf32, #tpu.memory_space<vmem>>, vector<14x16xf32>,
    %cst_140 = arith.constant 0.000000e+00 : f32
    %152 = vector.broadcast %cst_140 : f32 to vector<252x32xf32>
    %c0_141 = arith.constant 0 : index
    %c0_142 = arith.constant 0 : index
    %153 = vector.load %arg10[%c0_141, %c0_142] : memref<342x16xf32, #tpu.memory_space<vmem>>, vector<252x16xf32>
    %154 = arith.truncf %153 : vector<252x16xf32> to vector<252x16xbf16>
    %c0_143 = arith.constant 0 : index
    %c0_144 = arith.constant 0 : index
    %c0_145 = arith.constant 0 : index
    %155 = vector.load %arg4[%c0_143, %c0_144, %c0_145] : memref<25x16x32xbf16, #tpu.memory_space<vmem>>, vector<1x16x32xbf16>
    %156 = vector.shape_cast %155 : vector<1x16x32xbf16> to vector<16x32xbf16>
    %cst_146 = arith.constant dense<0.000000e+00> : vector<252x32xf32>
    %157 = tpu.matmul %154, %156, %cst_146 {dimension_numbers = #tpu.dot_dimension_numbers<[1], [0], [0], [1], [0, 0, 1, 1], [], []>} : vector<252x16xbf16>, vector<16x32xbf16>, vector<252x32xf32> -> vector<252x32xf32>
    %158 = arith.addf %152, %157 : vector<252x32xf32>
    %c1_147 = arith.constant 1 : index
    %c0_148 = arith.constant 0 : index
    %159 = vector.load %arg10[%c1_147, %c0_148] : memref<342x16xf32, #tpu.memory_space<vmem>>, vector<252x16xf32>
    %160 = arith.truncf %159 : vector<252x16xf32> to vector<252x16xbf16>
    %c1_149 = arith.constant 1 : index
    %c0_150 = arith.constant 0 : index
    %c0_151 = arith.constant 0 : index
    %161 = vector.load %arg4[%c1_149, %c0_150, %c0_151] : memref<25x16x32xbf16, #tpu.memory_space<vmem>>, vector<1x16x32xbf16>
    %162 = vector.shape_cast %161 : vector<1x16x32xbf16> to vector<16x32xbf16>
    %cst_152 = arith.constant dense<0.000000e+00> : vector<252x32xf32>
    %163 = tpu.matmul %160, %162, %cst_152 {dimension_numbers = #tpu.dot_dimension_numbers<[1], [0], [0], [1], [0, 0, 1, 1], [], []>} : vector<252x16xbf16>, vector<16x32xbf16>, vector<252x32xf32> -> vector<252x32xf32>
    %164 = arith.addf %158, %163 : vector<252x32xf32>
    %c2 = arith.constant 2 : index
    %c0_153 = arith.constant 0 : index
    %165 = vector.load %arg10[%c2, %c0_153] : memref<342x16xf32, #tpu.memory_space<vmem>>, vector<252x16xf32>
    %166 = arith.truncf %165 : vector<252x16xf32> to vector<252x16xbf16>
    %c2_154 = arith.constant 2 : index
    %c0_155 = arith.constant 0 : index
    %c0_156 = arith.constant 0 : index
    %167 = vector.load %arg4[%c2_154, %c0_155, %c0_156] : memref<25x16x32xbf16, #tpu.memory_space<vmem>>, vector<1x16x32xbf16>
    %168 = vector.shape_cast %167 : vector<1x16x32xbf16> to vector<16x32xbf16>
    %cst_157 = arith.constant dense<0.000000e+00> : vector<252x32xf32>
    %169 = tpu.matmul %166, %168, %cst_157 {dimension_numbers = #tpu.dot_dimension_numbers<[1], [0], [0], [1], [0, 0, 1, 1], [], []>} : vector<252x16xbf16>, vector<16x32xbf16>, vector<252x32xf32> -> vector<252x32xf32>
    %170 = arith.addf %164, %169 : vector<252x32xf32>
    %c3 = arith.constant 3 : index
    %c0_158 = arith.constant 0 : index
    %171 = vector.load %arg10[%c3, %c0_158] : memref<342x16xf32, #tpu.memory_space<vmem>>, vector<252x16xf32>
    %172 = arith.truncf %171 : vector<252x16xf32> to vector<252x16xbf16>
    %c3_159 = arith.constant 3 : index
    %c0_160 = arith.constant 0 : index
    %c0_161 = arith.constant 0 : index
    %173 = vector.load %arg4[%c3_159, %c0_160, %c0_161] : memref<25x16x32xbf16, #tpu.memory_space<vmem>>, vector<1x16x32xbf16>
    %174 = vector.shape_cast %173 : vector<1x16x32xbf16> to vector<16x32xbf16>
    %cst_162 = arith.constant dense<0.000000e+00> : vector<252x32xf32>
    %175 = tpu.matmul %172, %174, %cst_162 {dimension_numbers = #tpu.dot_dimension_numbers<[1], [0], [0], [1], [0, 0, 1, 1], [], []>} : vector<252x16xbf16>, vector<16x32xbf16>, vector<252x32xf32> -> vector<252x32xf32>
    %176 = arith.addf %170, %175 : vector<252x32xf32>
    %c4 = arith.constant 4 : index
    %c0_163 = arith.constant 0 : index
    %177 = vector.load %arg10[%c4, %c0_163] : memref<342x16xf32, #tpu.memory_space<vmem>>, vector<252x16xf32>
    %178 = arith.truncf %177 : vector<252x16xf32> to vector<252x16xbf16>
    %c4_164 = arith.constant 4 : index
    %c0_165 = arith.constant 0 : index
    %c0_166 = arith.constant 0 : index
    %179 = vector.load %arg4[%c4_164, %c0_165, %c0_166] : memref<25x16x32xbf16, #tpu.memory_space<vmem>>, vector<1x16x32xbf16>
    %180 = vector.shape_cast %179 : vector<1x16x32xbf16> to vector<16x32xbf16>
    %cst_167 = arith.constant dense<0.000000e+00> : vector<252x32xf32>
    %181 = tpu.matmul %178, %180, %cst_167 {dimension_numbers = #tpu.dot_dimension_numbers<[1], [0], [0], [1], [0, 0, 1, 1], [], []>} : vector<252x16xbf16>, vector<16x32xbf16>, vector<252x32xf32> -> vector<252x32xf32>
    %182 = arith.addf %176, %181 : vector<252x32xf32>
    %c18 = arith.constant 18 : index
    %c0_168 = arith.constant 0 : index
    %183 = vector.load %arg10[%c18, %c0_168] : memref<342x16xf32, #tpu.memory_space<vmem>>, vector<252x16xf32>
    %184 = arith.truncf %183 : vector<252x16xf32> to vector<252x16xbf16>
    %c5 = arith.constant 5 : index
    %c0_169 = arith.constant 0 : index
    %c0_170 = arith.constant 0 : index
    %185 = vector.load %arg4[%c5, %c0_169, %c0_170] : memref<25x16x32xbf16, #tpu.memory_space<vmem>>, vector<1x16x32xbf16>
    %186 = vector.shape_cast %185 : vector<1x16x32xbf16> to vector<16x32xbf16>
    %cst_171 = arith.constant dense<0.000000e+00> : vector<252x32xf32>
    %187 = tpu.matmul %184, %186, %cst_171 {dimension_numbers = #tpu.dot_dimension_numbers<[1], [0], [0], [1], [0, 0, 1, 1], [], []>} : vector<252x16xbf16>, vector<16x32xbf16>, vector<252x32xf32> -> vector<252x32xf32>
    %188 = arith.addf %182, %187 : vector<252x32xf32>
    %c19 = arith.constant 19 : index
    %c0_172 = arith.constant 0 : index
    %189 = vector.load %arg10[%c19, %c0_172] : memref<342x16xf32, #tpu.memory_space<vmem>>, vector<252x16xf32>
    %190 = arith.truncf %189 : vector<252x16xf32> to vector<252x16xbf16>
    %c6 = arith.constant 6 : index
    %c0_173 = arith.constant 0 : index
    %c0_174 = arith.constant 0 : index
    %191 = vector.load %arg4[%c6, %c0_173, %c0_174] : memref<25x16x32xbf16, #tpu.memory_space<vmem>>, vector<1x16x32xbf16>
    %192 = vector.shape_cast %191 : vector<1x16x32xbf16> to vector<16x32xbf16>
    %cst_175 = arith.constant dense<0.000000e+00> : vector<252x32xf32>
    %193 = tpu.matmul %190, %192, %cst_175 {dimension_numbers = #tpu.dot_dimension_numbers<[1], [0], [0], [1], [0, 0, 1, 1], [], []>} : vector<252x16xbf16>, vector<16x32xbf16>, vector<252x32xf32> -> vector<252x32xf32>
    %194 = arith.addf %188, %193 : vector<252x32xf32>
    %c20 = arith.constant 20 : index
    %c0_176 = arith.constant 0 : index
    %195 = vector.load %arg10[%c20, %c0_176] : memref<342x16xf32, #tpu.memory_space<vmem>>, vector<252x16xf32>
    %196 = arith.truncf %195 : vector<252x16xf32> to vector<252x16xbf16>
    %c7 = arith.constant 7 : index
    %c0_177 = arith.constant 0 : index
    %c0_178 = arith.constant 0 : index
    %197 = vector.load %arg4[%c7, %c0_177, %c0_178] : memref<25x16x32xbf16, #tpu.memory_space<vmem>>, vector<1x16x32xbf16>
    %198 = vector.shape_cast %197 : vector<1x16x32xbf16> to vector<16x32xbf16>
    %cst_179 = arith.constant dense<0.000000e+00> : vector<252x32xf32>
    %199 = tpu.matmul %196, %198, %cst_179 {dimension_numbers = #tpu.dot_dimension_numbers<[1], [0], [0], [1], [0, 0, 1, 1], [], []>} : vector<252x16xbf16>, vector<16x32xbf16>, vector<252x32xf32> -> vector<252x32xf32>
    %200 = arith.addf %194, %199 : vector<252x32xf32>
    %c21 = arith.constant 21 : index
    %c0_180 = arith.constant 0 : index
    %201 = vector.load %arg10[%c21, %c0_180] : memref<342x16xf32, #tpu.memory_space<vmem>>, vector<252x16xf32>
    %202 = arith.truncf %201 : vector<252x16xf32> to vector<252x16xbf16>
    %c8 = arith.constant 8 : index
    %c0_181 = arith.constant 0 : index
    %c0_182 = arith.constant 0 : index
    %203 = vector.load %arg4[%c8, %c0_181, %c0_182] : memref<25x16x32xbf16, #tpu.memory_space<vmem>>, vector<1x16x32xbf16>
    %204 = vector.shape_cast %203 : vector<1x16x32xbf16> to vector<16x32xbf16>
    %cst_183 = arith.constant dense<0.000000e+00> : vector<252x32xf32>
    %205 = tpu.matmul %202, %204, %cst_183 {dimension_numbers = #tpu.dot_dimension_numbers<[1], [0], [0], [1], [0, 0, 1, 1], [], []>} : vector<252x16xbf16>, vector<16x32xbf16>, vector<252x32xf32> -> vector<252x32xf32>
    %206 = arith.addf %200, %205 : vector<252x32xf32>
    %c22 = arith.constant 22 : index
    %c0_184 = arith.constant 0 : index
    %207 = vector.load %arg10[%c22, %c0_184] : memref<342x16xf32, #tpu.memory_space<vmem>>, vector<252x16xf32>
    %208 = arith.truncf %207 : vector<252x16xf32> to vector<252x16xbf16>
    %c9 = arith.constant 9 : index
    %c0_185 = arith.constant 0 : index
    %c0_186 = arith.constant 0 : index
    %209 = vector.load %arg4[%c9, %c0_185, %c0_186] : memref<25x16x32xbf16, #tpu.memory_space<vmem>>, vector<1x16x32xbf16>
    %210 = vector.shape_cast %209 : vector<1x16x32xbf16> to vector<16x32xbf16>
    %cst_187 = arith.constant dense<0.000000e+00> : vector<252x32xf32>
    %211 = tpu.matmul %208, %210, %cst_187 {dimension_numbers = #tpu.dot_dimension_numbers<[1], [0], [0], [1], [0, 0, 1, 1], [], []>} : vector<252x16xbf16>, vector<16x32xbf16>, vector<252x32xf32> -> vector<252x32xf32>
    %212 = arith.addf %206, %211 : vector<252x32xf32>
    %c36 = arith.constant 36 : index
    %c0_188 = arith.constant 0 : index
    %213 = vector.load %arg10[%c36, %c0_188] : memref<342x16xf32, #tpu.memory_space<vmem>>, vector<252x16xf32>
    %214 = arith.truncf %213 : vector<252x16xf32> to vector<252x16xbf16>
    %c10 = arith.constant 10 : index
    %c0_189 = arith.constant 0 : index
    %c0_190 = arith.constant 0 : index
    %215 = vector.load %arg4[%c10, %c0_189, %c0_190] : memref<25x16x32xbf16, #tpu.memory_space<vmem>>, vector<1x16x32xbf16>
    %216 = vector.shape_cast %215 : vector<1x16x32xbf16> to vector<16x32xbf16>
    %cst_191 = arith.constant dense<0.000000e+00> : vector<252x32xf32>
    %217 = tpu.matmul %214, %216, %cst_191 {dimension_numbers = #tpu.dot_dimension_numbers<[1], [0], [0], [1], [0, 0, 1, 1], [], []>} : vector<252x16xbf16>, vector<16x32xbf16>, vector<252x32xf32> -> vector<252x32xf32>
    %218 = arith.addf %212, %217 : vector<252x32xf32>
    %c37 = arith.constant 37 : index
    %c0_192 = arith.constant 0 : index
    %219 = vector.load %arg10[%c37, %c0_192] : memref<342x16xf32, #tpu.memory_space<vmem>>, vector<252x16xf32>
    %220 = arith.truncf %219 : vector<252x16xf32> to vector<252x16xbf16>
    %c11 = arith.constant 11 : index
    %c0_193 = arith.constant 0 : index
    %c0_194 = arith.constant 0 : index
    %221 = vector.load %arg4[%c11, %c0_193, %c0_194] : memref<25x16x32xbf16, #tpu.memory_space<vmem>>, vector<1x16x32xbf16>
    %222 = vector.shape_cast %221 : vector<1x16x32xbf16> to vector<16x32xbf16>
    %cst_195 = arith.constant dense<0.000000e+00> : vector<252x32xf32>
    %223 = tpu.matmul %220, %222, %cst_195 {dimension_numbers = #tpu.dot_dimension_numbers<[1], [0], [0], [1], [0, 0, 1, 1], [], []>} : vector<252x16xbf16>, vector<16x32xbf16>, vector<252x32xf32> -> vector<252x32xf32>
    %224 = arith.addf %218, %223 : vector<252x32xf32>
    %c38_196 = arith.constant 38 : index
    %c0_197 = arith.constant 0 : index
    %225 = vector.load %arg10[%c38_196, %c0_197] : memref<342x16xf32, #tpu.memory_space<vmem>>, vector<252x16xf32>
    %226 = arith.truncf %225 : vector<252x16xf32> to vector<252x16xbf16>
    %c12 = arith.constant 12 : index
    %c0_198 = arith.constant 0 : index
    %c0_199 = arith.constant 0 : index
    %227 = vector.load %arg4[%c12, %c0_198, %c0_199] : memref<25x16x32xbf16, #tpu.memory_space<vmem>>, vector<1x16x32xbf16>
    %228 = vector.shape_cast %227 : vector<1x16x32xbf16> to vector<16x32xbf16>
    %cst_200 = arith.constant dense<0.000000e+00> : vector<252x32xf32>
    %229 = tpu.matmul %226, %228, %cst_200 {dimension_numbers = #tpu.dot_dimension_numbers<[1], [0], [0], [1], [0, 0, 1, 1], [], []>} : vector<252x16xbf16>, vector<16x32xbf16>, vector<252x32xf32> -> vector<252x32xf32>
    %230 = arith.addf %224, %229 : vector<252x32xf32>
    %c39 = arith.constant 39 : index
    %c0_201 = arith.constant 0 : index
    %231 = vector.load %arg10[%c39, %c0_201] : memref<342x16xf32, #tpu.memory_space<vmem>>, vector<252x16xf32>
    %232 = arith.truncf %231 : vector<252x16xf32> to vector<252x16xbf16>
    %c13 = arith.constant 13 : index
    %c0_202 = arith.constant 0 : index
    %c0_203 = arith.constant 0 : index
    %233 = vector.load %arg4[%c13, %c0_202, %c0_203] : memref<25x16x32xbf16, #tpu.memory_space<vmem>>, vector<1x16x32xbf16>
    %234 = vector.shape_cast %233 : vector<1x16x32xbf16> to vector<16x32xbf16>
    %cst_204 = arith.constant dense<0.000000e+00> : vector<252x32xf32>
    %235 = tpu.matmul %232, %234, %cst_204 {dimension_numbers = #tpu.dot_dimension_numbers<[1], [0], [0], [1], [0, 0, 1, 1], [], []>} : vector<252x16xbf16>, vector<16x32xbf16>, vector<252x32xf32> -> vector<252x32xf32>
    %236 = arith.addf %230, %235 : vector<252x32xf32>
    %c40 = arith.constant 40 : index
    %c0_205 = arith.constant 0 : index
    %237 = vector.load %arg10[%c40, %c0_205] : memref<342x16xf32, #tpu.memory_space<vmem>>, vector<252x16xf32>
    %238 = arith.truncf %237 : vector<252x16xf32> to vector<252x16xbf16>
    %c14 = arith.constant 14 : index
    %c0_206 = arith.constant 0 : index
    %c0_207 = arith.constant 0 : index
    %239 = vector.load %arg4[%c14, %c0_206, %c0_207] : memref<25x16x32xbf16, #tpu.memory_space<vmem>>, vector<1x16x32xbf16>
    %240 = vector.shape_cast %239 : vector<1x16x32xbf16> to vector<16x32xbf16>
    %cst_208 = arith.constant dense<0.000000e+00> : vector<252x32xf32>
    %241 = tpu.matmul %238, %240, %cst_208 {dimension_numbers = #tpu.dot_dimension_numbers<[1], [0], [0], [1], [0, 0, 1, 1], [], []>} : vector<252x16xbf16>, vector<16x32xbf16>, vector<252x32xf32> -> vector<252x32xf32>
    %242 = arith.addf %236, %241 : vector<252x32xf32>
    %c54 = arith.constant 54 : index
    %c0_209 = arith.constant 0 : index
    %243 = vector.load %arg10[%c54, %c0_209] : memref<342x16xf32, #tpu.memory_space<vmem>>, vector<252x16xf32>
    %244 = arith.truncf %243 : vector<252x16xf32> to vector<252x16xbf16>
    %c15 = arith.constant 15 : index
    %c0_210 = arith.constant 0 : index
    %c0_211 = arith.constant 0 : index
    %245 = vector.load %arg4[%c15, %c0_210, %c0_211] : memref<25x16x32xbf16, #tpu.memory_space<vmem>>, vector<1x16x32xbf16>
    %246 = vector.shape_cast %245 : vector<1x16x32xbf16> to vector<16x32xbf16>
    %cst_212 = arith.constant dense<0.000000e+00> : vector<252x32xf32>
    %247 = tpu.matmul %244, %246, %cst_212 {dimension_numbers = #tpu.dot_dimension_numbers<[1], [0], [0], [1], [0, 0, 1, 1], [], []>} : vector<252x16xbf16>, vector<16x32xbf16>, vector<252x32xf32> -> vector<252x32xf32>
    %248 = arith.addf %242, %247 : vector<252x32xf32>
    %c55 = arith.constant 55 : index
    %c0_213 = arith.constant 0 : index
    %249 = vector.load %arg10[%c55, %c0_213] : memref<342x16xf32, #tpu.memory_space<vmem>>, vector<252x16xf32>
    %250 = arith.truncf %249 : vector<252x16xf32> to vector<252x16xbf16>
    %c16 = arith.constant 16 : index
    %c0_214 = arith.constant 0 : index
    %c0_215 = arith.constant 0 : index
    %251 = vector.load %arg4[%c16, %c0_214, %c0_215] : memref<25x16x32xbf16, #tpu.memory_space<vmem>>, vector<1x16x32xbf16>
    %252 = vector.shape_cast %251 : vector<1x16x32xbf16> to vector<16x32xbf16>
    %cst_216 = arith.constant dense<0.000000e+00> : vector<252x32xf32>
    %253 = tpu.matmul %250, %252, %cst_216 {dimension_numbers = #tpu.dot_dimension_numbers<[1], [0], [0], [1], [0, 0, 1, 1], [], []>} : vector<252x16xbf16>, vector<16x32xbf16>, vector<252x32xf32> -> vector<252x32xf32>
    %254 = arith.addf %248, %253 : vector<252x32xf32>
    %c56_217 = arith.constant 56 : index
    %c0_218 = arith.constant 0 : index
    %255 = vector.load %arg10[%c56_217, %c0_218] : memref<342x16xf32, #tpu.memory_space<vmem>>, vector<252x16xf32>
    %256 = arith.truncf %255 : vector<252x16xf32> to vector<252x16xbf16>
    %c17 = arith.constant 17 : index
    %c0_219 = arith.constant 0 : index
    %c0_220 = arith.constant 0 : index
    %257 = vector.load %arg4[%c17, %c0_219, %c0_220] : memref<25x16x32xbf16, #tpu.memory_space<vmem>>, vector<1x16x32xbf16>
    %258 = vector.shape_cast %257 : vector<1x16x32xbf16> to vector<16x32xbf16>
    %cst_221 = arith.constant dense<0.000000e+00> : vector<252x32xf32>
    %259 = tpu.matmul %256, %258, %cst_221 {dimension_numbers = #tpu.dot_dimension_numbers<[1], [0], [0], [1], [0, 0, 1, 1], [], []>} : vector<252x16xbf16>, vector<16x32xbf16>, vector<252x32xf32> -> vector<252x32xf32>
    %260 = arith.addf %254, %259 : vector<252x32xf32>
    %c57_222 = arith.constant 57 : index
    %c0_223 = arith.constant 0 : index
    %261 = vector.load %arg10[%c57_222, %c0_223] : memref<342x16xf32, #tpu.memory_space<vmem>>, vector<252x16xf32>
    %262 = arith.truncf %261 : vector<252x16xf32> to vector<252x16xbf16>
    %c18_224 = arith.constant 18 : index
    %c0_225 = arith.constant 0 : index
    %c0_226 = arith.constant 0 : index
    %263 = vector.load %arg4[%c18_224, %c0_225, %c0_226] : memref<25x16x32xbf16, #tpu.memory_space<vmem>>, vector<1x16x32xbf16>
    %264 = vector.shape_cast %263 : vector<1x16x32xbf16> to vector<16x32xbf16>
    %cst_227 = arith.constant dense<0.000000e+00> : vector<252x32xf32>
    %265 = tpu.matmul %262, %264, %cst_227 {dimension_numbers = #tpu.dot_dimension_numbers<[1], [0], [0], [1], [0, 0, 1, 1], [], []>} : vector<252x16xbf16>, vector<16x32xbf16>, vector<252x32xf32> -> vector<252x32xf32>
    %266 = arith.addf %260, %265 : vector<252x32xf32>
    %c58 = arith.constant 58 : index
    %c0_228 = arith.constant 0 : index
    %267 = vector.load %arg10[%c58, %c0_228] : memref<342x16xf32, #tpu.memory_space<vmem>>, vector<252x16xf32>
    %268 = arith.truncf %267 : vector<252x16xf32> to vector<252x16xbf16>
    %c19_229 = arith.constant 19 : index
    %c0_230 = arith.constant 0 : index
    %c0_231 = arith.constant 0 : index
    %269 = vector.load %arg4[%c19_229, %c0_230, %c0_231] : memref<25x16x32xbf16, #tpu.memory_space<vmem>>, vector<1x16x32xbf16>
    %270 = vector.shape_cast %269 : vector<1x16x32xbf16> to vector<16x32xbf16>
    %cst_232 = arith.constant dense<0.000000e+00> : vector<252x32xf32>
    %271 = tpu.matmul %268, %270, %cst_232 {dimension_numbers = #tpu.dot_dimension_numbers<[1], [0], [0], [1], [0, 0, 1, 1], [], []>} : vector<252x16xbf16>, vector<16x32xbf16>, vector<252x32xf32> -> vector<252x32xf32>
    %272 = arith.addf %266, %271 : vector<252x32xf32>
    %c72 = arith.constant 72 : index
    %c0_233 = arith.constant 0 : index
    %273 = vector.load %arg10[%c72, %c0_233] : memref<342x16xf32, #tpu.memory_space<vmem>>, vector<252x16xf32>
    %274 = arith.truncf %273 : vector<252x16xf32> to vector<252x16xbf16>
    %c20_234 = arith.constant 20 : index
    %c0_235 = arith.constant 0 : index
    %c0_236 = arith.constant 0 : index
    %275 = vector.load %arg4[%c20_234, %c0_235, %c0_236] : memref<25x16x32xbf16, #tpu.memory_space<vmem>>, vector<1x16x32xbf16>
    %276 = vector.shape_cast %275 : vector<1x16x32xbf16> to vector<16x32xbf16>
    %cst_237 = arith.constant dense<0.000000e+00> : vector<252x32xf32>
    %277 = tpu.matmul %274, %276, %cst_237 {dimension_numbers = #tpu.dot_dimension_numbers<[1], [0], [0], [1], [0, 0, 1, 1], [], []>} : vector<252x16xbf16>, vector<16x32xbf16>, vector<252x32xf32> -> vector<252x32xf32>
    %278 = arith.addf %272, %277 : vector<252x32xf32>
    %c73 = arith.constant 73 : index
    %c0_238 = arith.constant 0 : index
    %279 = vector.load %arg10[%c73, %c0_238] : memref<342x16xf32, #tpu.memory_space<vmem>>, vector<252x16xf32>
    %280 = arith.truncf %279 : vector<252x16xf32> to vector<252x16xbf16>
    %c21_239 = arith.constant 21 : index
    %c0_240 = arith.constant 0 : index
    %c0_241 = arith.constant 0 : index
    %281 = vector.load %arg4[%c21_239, %c0_240, %c0_241] : memref<25x16x32xbf16, #tpu.memory_space<vmem>>, vector<1x16x32xbf16>
    %282 = vector.shape_cast %281 : vector<1x16x32xbf16> to vector<16x32xbf16>
    %cst_242 = arith.constant dense<0.000000e+00> : vector<252x32xf32>
    %283 = tpu.matmul %280, %282, %cst_242 {dimension_numbers = #tpu.dot_dimension_numbers<[1], [0], [0], [1], [0, 0, 1, 1], [], []>} : vector<252x16xbf16>, vector<16x32xbf16>, vector<252x32xf32> -> vector<252x32xf32>
    %284 = arith.addf %278, %283 : vector<252x32xf32>
    %c74_243 = arith.constant 74 : index
    %c0_244 = arith.constant 0 : index
    %285 = vector.load %arg10[%c74_243, %c0_244] : memref<342x16xf32, #tpu.memory_space<vmem>>, vector<252x16xf32>
    %286 = arith.truncf %285 : vector<252x16xf32> to vector<252x16xbf16>
    %c22_245 = arith.constant 22 : index
    %c0_246 = arith.constant 0 : index
    %c0_247 = arith.constant 0 : index
    %287 = vector.load %arg4[%c22_245, %c0_246, %c0_247] : memref<25x16x32xbf16, #tpu.memory_space<vmem>>, vector<1x16x32xbf16>
    %288 = vector.shape_cast %287 : vector<1x16x32xbf16> to vector<16x32xbf16>
    %cst_248 = arith.constant dense<0.000000e+00> : vector<252x32xf32>
    %289 = tpu.matmul %286, %288, %cst_248 {dimension_numbers = #tpu.dot_dimension_numbers<[1], [0], [0], [1], [0, 0, 1, 1], [], []>} : vector<252x16xbf16>, vector<16x32xbf16>, vector<252x32xf32> -> vector<252x32xf32>
    %290 = arith.addf %284, %289 : vector<252x32xf32>
    %c75 = arith.constant 75 : index
    %c0_249 = arith.constant 0 : index
    %291 = vector.load %arg10[%c75, %c0_249] : memref<342x16xf32, #tpu.memory_space<vmem>>, vector<252x16xf32>
    %292 = arith.truncf %291 : vector<252x16xf32> to vector<252x16xbf16>
    %c23 = arith.constant 23 : index
    %c0_250 = arith.constant 0 : index
    %c0_251 = arith.constant 0 : index
    %293 = vector.load %arg4[%c23, %c0_250, %c0_251] : memref<25x16x32xbf16, #tpu.memory_space<vmem>>, vector<1x16x32xbf16>
    %294 = vector.shape_cast %293 : vector<1x16x32xbf16> to vector<16x32xbf16>
    %cst_252 = arith.constant dense<0.000000e+00> : vector<252x32xf32>
    %295 = tpu.matmul %292, %294, %cst_252 {dimension_numbers = #tpu.dot_dimension_numbers<[1], [0], [0], [1], [0, 0, 1, 1], [], []>} : vector<252x16xbf16>, vector<16x32xbf16>, vector<252x32xf32> -> vector<252x32xf32>
    %296 = arith.addf %290, %295 : vector<252x32xf32>
    %c76 = arith.constant 76 : index
    %c0_253 = arith.constant 0 : index
    %297 = vector.load %arg10[%c76, %c0_253] : memref<342x16xf32, #tpu.memory_space<vmem>>, vector<252x16xf32>
    %298 = arith.truncf %297 : vector<252x16xf32> to vector<252x16xbf16>
    %c24 = arith.constant 24 : index
    %c0_254 = arith.constant 0 : index
    %c0_255 = arith.constant 0 : index
    %299 = vector.load %arg4[%c24, %c0_254, %c0_255] : memref<25x16x32xbf16, #tpu.memory_space<vmem>>, vector<1x16x32xbf16>
    %300 = vector.shape_cast %299 : vector<1x16x32xbf16> to vector<16x32xbf16>
    %cst_256 = arith.constant dense<0.000000e+00> : vector<252x32xf32>
    %301 = tpu.matmul %298, %300, %cst_256 {dimension_numbers = #tpu.dot_dimension_numbers<[1], [0], [0], [1], [0, 0, 1, 1], [], []>} : vector<252x16xbf16>, vector<16x32xbf16>, vector<252x32xf32> -> vector<252x32xf32>
    %302 = arith.addf %296, %301 : vector<252x32xf32>
    %c0_257 = arith.constant 0 : index
    %c0_258 = arith.constant 0 : index
    %303 = vector.load %arg5[%c0_257, %c0_258] : memref<1x32xf32, #tpu.memory_space<vmem>>, vector<1x32xf32>
    %304 = vector.broadcast %303 : vector<1x32xf32> to vector<252x32xf32>
    %305 = arith.addf %302, %304 : vector<252x32xf32>
    %cst_259 = arith.constant 0.000000e+00 : f32
    %306 = vector.broadcast %cst_259 : f32 to vector<252x32xf32>
    %307 = arith.maximumf %305, %306 : vector<252x32xf32>
    %c0_260 = arith.constant 0 : index
    %c0_261 = arith.constant 0 : index
    %308 = vector.load %arg11[%c0_260, %c0_261] : memref<252x32xf32, #tpu.memory_space<vmem>>, vector<252x32xf32>
    tpu.vector_store %arg11[%c0_260, %c0_261], %307 {strides = array<i32>} : memref<252x32xf32, #tpu.memory_space<vmem>>, vector<252x32xf32>,
    %c0_262 = arith.constant 0 : index
    %c0_263 = arith.constant 0 : index
    %309 = vector.load %arg11[%c0_262, %c0_263] : memref<252x32xf32, #tpu.memory_space<vmem>>, vector<13x32xf32>
    %c1_264 = arith.constant 1 : index
    %c0_265 = arith.constant 0 : index
    %310 = vector.load %arg11[%c1_264, %c0_265] : memref<252x32xf32, #tpu.memory_space<vmem>>, vector<13x32xf32>
    %311 = arith.maximumf %309, %310 : vector<13x32xf32>
    %c18_266 = arith.constant 18 : index
    %c0_267 = arith.constant 0 : index
    %312 = vector.load %arg11[%c18_266, %c0_267] : memref<252x32xf32, #tpu.memory_space<vmem>>, vector<13x32xf32>
    %c19_268 = arith.constant 19 : index
    %c0_269 = arith.constant 0 : index
    %313 = vector.load %arg11[%c19_268, %c0_269] : memref<252x32xf32, #tpu.memory_space<vmem>>, vector<13x32xf32>
    %314 = arith.maximumf %312, %313 : vector<13x32xf32>
    %315 = arith.maximumf %311, %314 : vector<13x32xf32>
    %c0_270 = arith.constant 0 : index
    %c0_271 = arith.constant 0 : index
    %316 = vector.load %arg11[%c0_270, %c0_271] : memref<252x32xf32, #tpu.memory_space<vmem>>, vector<13x32xf32>
    tpu.vector_store %arg11[%c0_270, %c0_271], %315 {strides = array<i32>} : memref<252x32xf32, #tpu.memory_space<vmem>>, vector<13x32xf32>,
    %c0_272 = arith.constant 0 : index
    %c0_273 = arith.constant 0 : index
    %317 = tpu.strided_load %arg11[%c0_272, %c0_273] {strides = array<i32: 2, 1>} : memref<252x32xf32, #tpu.memory_space<vmem>>, vector<7x32xf32>
    %c0_274 = arith.constant 0 : index
    %c0_275 = arith.constant 0 : index
    %c0_276 = arith.constant 0 : index
    %318 = vector.load %arg12[%c0_274, %c0_275, %c0_276] : memref<49x1x32xf32, #tpu.memory_space<vmem>>, vector<7x1x32xf32>
    %319 = vector.shape_cast %318 : vector<7x1x32xf32> to vector<7x32xf32>
    %320 = vector.shape_cast %317 : vector<7x32xf32> to vector<7x1x32xf32>
    tpu.vector_store %arg12[%c0_274, %c0_275, %c0_276], %320 {strides = array<i32>} : memref<49x1x32xf32, #tpu.memory_space<vmem>>, vector<7x1x32xf32>,
    %c36_277 = arith.constant 36 : index
    %c0_278 = arith.constant 0 : index
    %321 = vector.load %arg11[%c36_277, %c0_278] : memref<252x32xf32, #tpu.memory_space<vmem>>, vector<13x32xf32>
    %c37_279 = arith.constant 37 : index
    %c0_280 = arith.constant 0 : index
    %322 = vector.load %arg11[%c37_279, %c0_280] : memref<252x32xf32, #tpu.memory_space<vmem>>, vector<13x32xf32>
    %323 = arith.maximumf %321, %322 : vector<13x32xf32>
    %c54_281 = arith.constant 54 : index
    %c0_282 = arith.constant 0 : index
    %324 = vector.load %arg11[%c54_281, %c0_282] : memref<252x32xf32, #tpu.memory_space<vmem>>, vector<13x32xf32>
    %c55_283 = arith.constant 55 : index
    %c0_284 = arith.constant 0 : index
    %325 = vector.load %arg11[%c55_283, %c0_284] : memref<252x32xf32, #tpu.memory_space<vmem>>, vector<13x32xf32>
    %326 = arith.maximumf %324, %325 : vector<13x32xf32>
    %327 = arith.maximumf %323, %326 : vector<13x32xf32>
    %c36_285 = arith.constant 36 : index
    %c0_286 = arith.constant 0 : index
    %328 = vector.load %arg11[%c36_285, %c0_286] : memref<252x32xf32, #tpu.memory_space<vmem>>, vector<13x32xf32>
    tpu.vector_store %arg11[%c36_285, %c0_286], %327 {strides = array<i32>} : memref<252x32xf32, #tpu.memory_space<vmem>>, vector<13x32xf32>,
    %c36_287 = arith.constant 36 : index
    %c0_288 = arith.constant 0 : index
    %329 = tpu.strided_load %arg11[%c36_287, %c0_288] {strides = array<i32: 2, 1>} : memref<252x32xf32, #tpu.memory_space<vmem>>, vector<7x32xf32>
    %c7_289 = arith.constant 7 : index
    %c0_290 = arith.constant 0 : index
    %c0_291 = arith.constant 0 : index
    %330 = vector.load %arg12[%c7_289, %c0_290, %c0_291] : memref<49x1x32xf32, #tpu.memory_space<vmem>>, vector<7x1x32xf32>
    %331 = vector.shape_cast %330 : vector<7x1x32xf32> to vector<7x32xf32>
    %332 = vector.shape_cast %329 : vector<7x32xf32> to vector<7x1x32xf32>
    tpu.vector_store %arg12[%c7_289, %c0_290, %c0_291], %332 {strides = array<i32>} : memref<49x1x32xf32, #tpu.memory_space<vmem>>, vector<7x1x32xf32>,
    %c72_292 = arith.constant 72 : index
    %c0_293 = arith.constant 0 : index
    %333 = vector.load %arg11[%c72_292, %c0_293] : memref<252x32xf32, #tpu.memory_space<vmem>>, vector<13x32xf32>
    %c73_294 = arith.constant 73 : index
    %c0_295 = arith.constant 0 : index
    %334 = vector.load %arg11[%c73_294, %c0_295] : memref<252x32xf32, #tpu.memory_space<vmem>>, vector<13x32xf32>
    %335 = arith.maximumf %333, %334 : vector<13x32xf32>
    %c90 = arith.constant 90 : index
    %c0_296 = arith.constant 0 : index
    %336 = vector.load %arg11[%c90, %c0_296] : memref<252x32xf32, #tpu.memory_space<vmem>>, vector<13x32xf32>
    %c91 = arith.constant 91 : index
    %c0_297 = arith.constant 0 : index
    %337 = vector.load %arg11[%c91, %c0_297] : memref<252x32xf32, #tpu.memory_space<vmem>>, vector<13x32xf32>
    %338 = arith.maximumf %336, %337 : vector<13x32xf32>
    %339 = arith.maximumf %335, %338 : vector<13x32xf32>
    %c72_298 = arith.constant 72 : index
    %c0_299 = arith.constant 0 : index
    %340 = vector.load %arg11[%c72_298, %c0_299] : memref<252x32xf32, #tpu.memory_space<vmem>>, vector<13x32xf32>
    tpu.vector_store %arg11[%c72_298, %c0_299], %339 {strides = array<i32>} : memref<252x32xf32, #tpu.memory_space<vmem>>, vector<13x32xf32>,
    %c72_300 = arith.constant 72 : index
    %c0_301 = arith.constant 0 : index
    %341 = tpu.strided_load %arg11[%c72_300, %c0_301] {strides = array<i32: 2, 1>} : memref<252x32xf32, #tpu.memory_space<vmem>>, vector<7x32xf32>
    %c14_302 = arith.constant 14 : index
    %c0_303 = arith.constant 0 : index
    %c0_304 = arith.constant 0 : index
    %342 = vector.load %arg12[%c14_302, %c0_303, %c0_304] : memref<49x1x32xf32, #tpu.memory_space<vmem>>, vector<7x1x32xf32>
    %343 = vector.shape_cast %342 : vector<7x1x32xf32> to vector<7x32xf32>
    %344 = vector.shape_cast %341 : vector<7x32xf32> to vector<7x1x32xf32>
    tpu.vector_store %arg12[%c14_302, %c0_303, %c0_304], %344 {strides = array<i32>} : memref<49x1x32xf32, #tpu.memory_space<vmem>>, vector<7x1x32xf32>,
    %c108 = arith.constant 108 : index
    %c0_305 = arith.constant 0 : index
    %345 = vector.load %arg11[%c108, %c0_305] : memref<252x32xf32, #tpu.memory_space<vmem>>, vector<13x32xf32>
    %c109 = arith.constant 109 : index
    %c0_306 = arith.constant 0 : index
    %346 = vector.load %arg11[%c109, %c0_306] : memref<252x32xf32, #tpu.memory_space<vmem>>, vector<13x32xf32>
    %347 = arith.maximumf %345, %346 : vector<13x32xf32>
    %c126 = arith.constant 126 : index
    %c0_307 = arith.constant 0 : index
    %348 = vector.load %arg11[%c126, %c0_307] : memref<252x32xf32, #tpu.memory_space<vmem>>, vector<13x32xf32>
    %c127 = arith.constant 127 : index
    %c0_308 = arith.constant 0 : index
    %349 = vector.load %arg11[%c127, %c0_308] : memref<252x32xf32, #tpu.memory_space<vmem>>, vector<13x32xf32>
    %350 = arith.maximumf %348, %349 : vector<13x32xf32>
    %351 = arith.maximumf %347, %350 : vector<13x32xf32>
    %c108_309 = arith.constant 108 : index
    %c0_310 = arith.constant 0 : index
    %352 = vector.load %arg11[%c108_309, %c0_310] : memref<252x32xf32, #tpu.memory_space<vmem>>, vector<13x32xf32>
    tpu.vector_store %arg11[%c108_309, %c0_310], %351 {strides = array<i32>} : memref<252x32xf32, #tpu.memory_space<vmem>>, vector<13x32xf32>,
    %c108_311 = arith.constant 108 : index
    %c0_312 = arith.constant 0 : index
    %353 = tpu.strided_load %arg11[%c108_311, %c0_312] {strides = array<i32: 2, 1>} : memref<252x32xf32, #tpu.memory_space<vmem>>, vector<7x32xf32>
    %c21_313 = arith.constant 21 : index
    %c0_314 = arith.constant 0 : index
    %c0_315 = arith.constant 0 : index
    %354 = vector.load %arg12[%c21_313, %c0_314, %c0_315] : memref<49x1x32xf32, #tpu.memory_space<vmem>>, vector<7x1x32xf32>
    %355 = vector.shape_cast %354 : vector<7x1x32xf32> to vector<7x32xf32>
    %356 = vector.shape_cast %353 : vector<7x32xf32> to vector<7x1x32xf32>
    tpu.vector_store %arg12[%c21_313, %c0_314, %c0_315], %356 {strides = array<i32>} : memref<49x1x32xf32, #tpu.memory_space<vmem>>, vector<7x1x32xf32>,
    %c144 = arith.constant 144 : index
    %c0_316 = arith.constant 0 : index
    %357 = vector.load %arg11[%c144, %c0_316] : memref<252x32xf32, #tpu.memory_space<vmem>>, vector<13x32xf32>
    %c145 = arith.constant 145 : index
    %c0_317 = arith.constant 0 : index
    %358 = vector.load %arg11[%c145, %c0_317] : memref<252x32xf32, #tpu.memory_space<vmem>>, vector<13x32xf32>
    %359 = arith.maximumf %357, %358 : vector<13x32xf32>
    %c162 = arith.constant 162 : index
    %c0_318 = arith.constant 0 : index
    %360 = vector.load %arg11[%c162, %c0_318] : memref<252x32xf32, #tpu.memory_space<vmem>>, vector<13x32xf32>
    %c163 = arith.constant 163 : index
    %c0_319 = arith.constant 0 : index
    %361 = vector.load %arg11[%c163, %c0_319] : memref<252x32xf32, #tpu.memory_space<vmem>>, vector<13x32xf32>
    %362 = arith.maximumf %360, %361 : vector<13x32xf32>
    %363 = arith.maximumf %359, %362 : vector<13x32xf32>
    %c144_320 = arith.constant 144 : index
    %c0_321 = arith.constant 0 : index
    %364 = vector.load %arg11[%c144_320, %c0_321] : memref<252x32xf32, #tpu.memory_space<vmem>>, vector<13x32xf32>
    tpu.vector_store %arg11[%c144_320, %c0_321], %363 {strides = array<i32>} : memref<252x32xf32, #tpu.memory_space<vmem>>, vector<13x32xf32>,
    %c144_322 = arith.constant 144 : index
    %c0_323 = arith.constant 0 : index
    %365 = tpu.strided_load %arg11[%c144_322, %c0_323] {strides = array<i32: 2, 1>} : memref<252x32xf32, #tpu.memory_space<vmem>>, vector<7x32xf32>
    %c28_324 = arith.constant 28 : index
    %c0_325 = arith.constant 0 : index
    %c0_326 = arith.constant 0 : index
    %366 = vector.load %arg12[%c28_324, %c0_325, %c0_326] : memref<49x1x32xf32, #tpu.memory_space<vmem>>, vector<7x1x32xf32>
    %367 = vector.shape_cast %366 : vector<7x1x32xf32> to vector<7x32xf32>
    %368 = vector.shape_cast %365 : vector<7x32xf32> to vector<7x1x32xf32>
    tpu.vector_store %arg12[%c28_324, %c0_325, %c0_326], %368 {strides = array<i32>} : memref<49x1x32xf32, #tpu.memory_space<vmem>>, vector<7x1x32xf32>,
    %c180 = arith.constant 180 : index
    %c0_327 = arith.constant 0 : index
    %369 = vector.load %arg11[%c180, %c0_327] : memref<252x32xf32, #tpu.memory_space<vmem>>, vector<13x32xf32>
    %c181 = arith.constant 181 : index
    %c0_328 = arith.constant 0 : index
    %370 = vector.load %arg11[%c181, %c0_328] : memref<252x32xf32, #tpu.memory_space<vmem>>, vector<13x32xf32>
    %371 = arith.maximumf %369, %370 : vector<13x32xf32>
    %c198 = arith.constant 198 : index
    %c0_329 = arith.constant 0 : index
    %372 = vector.load %arg11[%c198, %c0_329] : memref<252x32xf32, #tpu.memory_space<vmem>>, vector<13x32xf32>
    %c199 = arith.constant 199 : index
    %c0_330 = arith.constant 0 : index
    %373 = vector.load %arg11[%c199, %c0_330] : memref<252x32xf32, #tpu.memory_space<vmem>>, vector<13x32xf32>
    %374 = arith.maximumf %372, %373 : vector<13x32xf32>
    %375 = arith.maximumf %371, %374 : vector<13x32xf32>
    %c180_331 = arith.constant 180 : index
    %c0_332 = arith.constant 0 : index
    %376 = vector.load %arg11[%c180_331, %c0_332] : memref<252x32xf32, #tpu.memory_space<vmem>>, vector<13x32xf32>
    tpu.vector_store %arg11[%c180_331, %c0_332], %375 {strides = array<i32>} : memref<252x32xf32, #tpu.memory_space<vmem>>, vector<13x32xf32>,
    %c180_333 = arith.constant 180 : index
    %c0_334 = arith.constant 0 : index
    %377 = tpu.strided_load %arg11[%c180_333, %c0_334] {strides = array<i32: 2, 1>} : memref<252x32xf32, #tpu.memory_space<vmem>>, vector<7x32xf32>
    %c35 = arith.constant 35 : index
    %c0_335 = arith.constant 0 : index
    %c0_336 = arith.constant 0 : index
    %378 = vector.load %arg12[%c35, %c0_335, %c0_336] : memref<49x1x32xf32, #tpu.memory_space<vmem>>, vector<7x1x32xf32>
    %379 = vector.shape_cast %378 : vector<7x1x32xf32> to vector<7x32xf32>
    %380 = vector.shape_cast %377 : vector<7x32xf32> to vector<7x1x32xf32>
    tpu.vector_store %arg12[%c35, %c0_335, %c0_336], %380 {strides = array<i32>} : memref<49x1x32xf32, #tpu.memory_space<vmem>>, vector<7x1x32xf32>,
    %c216 = arith.constant 216 : index
    %c0_337 = arith.constant 0 : index
    %381 = vector.load %arg11[%c216, %c0_337] : memref<252x32xf32, #tpu.memory_space<vmem>>, vector<13x32xf32>
    %c217 = arith.constant 217 : index
    %c0_338 = arith.constant 0 : index
    %382 = vector.load %arg11[%c217, %c0_338] : memref<252x32xf32, #tpu.memory_space<vmem>>, vector<13x32xf32>
    %383 = arith.maximumf %381, %382 : vector<13x32xf32>
    %c234 = arith.constant 234 : index
    %c0_339 = arith.constant 0 : index
    %384 = vector.load %arg11[%c234, %c0_339] : memref<252x32xf32, #tpu.memory_space<vmem>>, vector<13x32xf32>
    %c235 = arith.constant 235 : index
    %c0_340 = arith.constant 0 : index
    %385 = vector.load %arg11[%c235, %c0_340] : memref<252x32xf32, #tpu.memory_space<vmem>>, vector<13x32xf32>
    %386 = arith.maximumf %384, %385 : vector<13x32xf32>
    %387 = arith.maximumf %383, %386 : vector<13x32xf32>
    %c216_341 = arith.constant 216 : index
    %c0_342 = arith.constant 0 : index
    %388 = vector.load %arg11[%c216_341, %c0_342] : memref<252x32xf32, #tpu.memory_space<vmem>>, vector<13x32xf32>
    tpu.vector_store %arg11[%c216_341, %c0_342], %387 {strides = array<i32>} : memref<252x32xf32, #tpu.memory_space<vmem>>, vector<13x32xf32>,
    %c216_343 = arith.constant 216 : index
    %c0_344 = arith.constant 0 : index
    %389 = tpu.strided_load %arg11[%c216_343, %c0_344] {strides = array<i32: 2, 1>} : memref<252x32xf32, #tpu.memory_space<vmem>>, vector<7x32xf32>
    %c42 = arith.constant 42 : index
    %c0_345 = arith.constant 0 : index
    %c0_346 = arith.constant 0 : index
    %390 = vector.load %arg12[%c42, %c0_345, %c0_346] : memref<49x1x32xf32, #tpu.memory_space<vmem>>, vector<7x1x32xf32>
    %391 = vector.shape_cast %390 : vector<7x1x32xf32> to vector<7x32xf32>
    %392 = vector.shape_cast %389 : vector<7x32xf32> to vector<7x1x32xf32>
    tpu.vector_store %arg12[%c42, %c0_345, %c0_346], %392 {strides = array<i32>} : memref<49x1x32xf32, #tpu.memory_space<vmem>>, vector<7x1x32xf32>,
    %c0_347 = arith.constant 0 : index
    %c0_348 = arith.constant 0 : index
    %393 = vector.load %arg7[%c0_347, %c0_348] : memref<1x128xf32, #tpu.memory_space<vmem>>, vector<1x128xf32>
    %c0_349 = arith.constant 0 : index
    %c0_350 = arith.constant 0 : index
    %c0_351 = arith.constant 0 : index
    %394 = vector.load %arg12[%c0_349, %c0_350, %c0_351] : memref<49x1x32xf32, #tpu.memory_space<vmem>>, vector<1x1x32xf32>
    %395 = vector.shape_cast %394 : vector<1x1x32xf32> to vector<1x32xf32>
    %396 = arith.truncf %395 : vector<1x32xf32> to vector<1x32xbf16>
    %c0_352 = arith.constant 0 : index
    %c0_353 = arith.constant 0 : index
    %c0_354 = arith.constant 0 : index
    %397 = vector.load %arg6[%c0_352, %c0_353, %c0_354] : memref<49x32x128xbf16, #tpu.memory_space<vmem>>, vector<1x32x128xbf16>
    %398 = vector.shape_cast %397 : vector<1x32x128xbf16> to vector<32x128xbf16>
    %cst_355 = arith.constant dense<0.000000e+00> : vector<1x128xf32>
    %399 = tpu.matmul %396, %398, %cst_355 {dimension_numbers = #tpu.dot_dimension_numbers<[1], [0], [0], [1], [0, 0, 1, 1], [], []>} : vector<1x32xbf16>, vector<32x128xbf16>, vector<1x128xf32> -> vector<1x128xf32>
    %400 = arith.addf %393, %399 : vector<1x128xf32>
    %c1_356 = arith.constant 1 : index
    %c0_357 = arith.constant 0 : index
    %c0_358 = arith.constant 0 : index
    %401 = vector.load %arg12[%c1_356, %c0_357, %c0_358] : memref<49x1x32xf32, #tpu.memory_space<vmem>>, vector<1x1x32xf32>
    %402 = vector.shape_cast %401 : vector<1x1x32xf32> to vector<1x32xf32>
    %403 = arith.truncf %402 : vector<1x32xf32> to vector<1x32xbf16>
    %c1_359 = arith.constant 1 : index
    %c0_360 = arith.constant 0 : index
    %c0_361 = arith.constant 0 : index
    %404 = vector.load %arg6[%c1_359, %c0_360, %c0_361] : memref<49x32x128xbf16, #tpu.memory_space<vmem>>, vector<1x32x128xbf16>
    %405 = vector.shape_cast %404 : vector<1x32x128xbf16> to vector<32x128xbf16>
    %cst_362 = arith.constant dense<0.000000e+00> : vector<1x128xf32>
    %406 = tpu.matmul %403, %405, %cst_362 {dimension_numbers = #tpu.dot_dimension_numbers<[1], [0], [0], [1], [0, 0, 1, 1], [], []>} : vector<1x32xbf16>, vector<32x128xbf16>, vector<1x128xf32> -> vector<1x128xf32>
    %407 = arith.addf %400, %406 : vector<1x128xf32>
    %c2_363 = arith.constant 2 : index
    %c0_364 = arith.constant 0 : index
    %c0_365 = arith.constant 0 : index
    %408 = vector.load %arg12[%c2_363, %c0_364, %c0_365] : memref<49x1x32xf32, #tpu.memory_space<vmem>>, vector<1x1x32xf32>
    %409 = vector.shape_cast %408 : vector<1x1x32xf32> to vector<1x32xf32>
    %410 = arith.truncf %409 : vector<1x32xf32> to vector<1x32xbf16>
    %c2_366 = arith.constant 2 : index
    %c0_367 = arith.constant 0 : index
    %c0_368 = arith.constant 0 : index
    %411 = vector.load %arg6[%c2_366, %c0_367, %c0_368] : memref<49x32x128xbf16, #tpu.memory_space<vmem>>, vector<1x32x128xbf16>
    %412 = vector.shape_cast %411 : vector<1x32x128xbf16> to vector<32x128xbf16>
    %cst_369 = arith.constant dense<0.000000e+00> : vector<1x128xf32>
    %413 = tpu.matmul %410, %412, %cst_369 {dimension_numbers = #tpu.dot_dimension_numbers<[1], [0], [0], [1], [0, 0, 1, 1], [], []>} : vector<1x32xbf16>, vector<32x128xbf16>, vector<1x128xf32> -> vector<1x128xf32>
    %414 = arith.addf %407, %413 : vector<1x128xf32>
    %c3_370 = arith.constant 3 : index
    %c0_371 = arith.constant 0 : index
    %c0_372 = arith.constant 0 : index
    %415 = vector.load %arg12[%c3_370, %c0_371, %c0_372] : memref<49x1x32xf32, #tpu.memory_space<vmem>>, vector<1x1x32xf32>
    %416 = vector.shape_cast %415 : vector<1x1x32xf32> to vector<1x32xf32>
    %417 = arith.truncf %416 : vector<1x32xf32> to vector<1x32xbf16>
    %c3_373 = arith.constant 3 : index
    %c0_374 = arith.constant 0 : index
    %c0_375 = arith.constant 0 : index
    %418 = vector.load %arg6[%c3_373, %c0_374, %c0_375] : memref<49x32x128xbf16, #tpu.memory_space<vmem>>, vector<1x32x128xbf16>
    %419 = vector.shape_cast %418 : vector<1x32x128xbf16> to vector<32x128xbf16>
    %cst_376 = arith.constant dense<0.000000e+00> : vector<1x128xf32>
    %420 = tpu.matmul %417, %419, %cst_376 {dimension_numbers = #tpu.dot_dimension_numbers<[1], [0], [0], [1], [0, 0, 1, 1], [], []>} : vector<1x32xbf16>, vector<32x128xbf16>, vector<1x128xf32> -> vector<1x128xf32>
    %421 = arith.addf %414, %420 : vector<1x128xf32>
    %c4_377 = arith.constant 4 : index
    %c0_378 = arith.constant 0 : index
    %c0_379 = arith.constant 0 : index
    %422 = vector.load %arg12[%c4_377, %c0_378, %c0_379] : memref<49x1x32xf32, #tpu.memory_space<vmem>>, vector<1x1x32xf32>
    %423 = vector.shape_cast %422 : vector<1x1x32xf32> to vector<1x32xf32>
    %424 = arith.truncf %423 : vector<1x32xf32> to vector<1x32xbf16>
    %c4_380 = arith.constant 4 : index
    %c0_381 = arith.constant 0 : index
    %c0_382 = arith.constant 0 : index
    %425 = vector.load %arg6[%c4_380, %c0_381, %c0_382] : memref<49x32x128xbf16, #tpu.memory_space<vmem>>, vector<1x32x128xbf16>
    %426 = vector.shape_cast %425 : vector<1x32x128xbf16> to vector<32x128xbf16>
    %cst_383 = arith.constant dense<0.000000e+00> : vector<1x128xf32>
    %427 = tpu.matmul %424, %426, %cst_383 {dimension_numbers = #tpu.dot_dimension_numbers<[1], [0], [0], [1], [0, 0, 1, 1], [], []>} : vector<1x32xbf16>, vector<32x128xbf16>, vector<1x128xf32> -> vector<1x128xf32>
    %428 = arith.addf %421, %427 : vector<1x128xf32>
    %c5_384 = arith.constant 5 : index
    %c0_385 = arith.constant 0 : index
    %c0_386 = arith.constant 0 : index
    %429 = vector.load %arg12[%c5_384, %c0_385, %c0_386] : memref<49x1x32xf32, #tpu.memory_space<vmem>>, vector<1x1x32xf32>
    %430 = vector.shape_cast %429 : vector<1x1x32xf32> to vector<1x32xf32>
    %431 = arith.truncf %430 : vector<1x32xf32> to vector<1x32xbf16>
    %c5_387 = arith.constant 5 : index
    %c0_388 = arith.constant 0 : index
    %c0_389 = arith.constant 0 : index
    %432 = vector.load %arg6[%c5_387, %c0_388, %c0_389] : memref<49x32x128xbf16, #tpu.memory_space<vmem>>, vector<1x32x128xbf16>
    %433 = vector.shape_cast %432 : vector<1x32x128xbf16> to vector<32x128xbf16>
    %cst_390 = arith.constant dense<0.000000e+00> : vector<1x128xf32>
    %434 = tpu.matmul %431, %433, %cst_390 {dimension_numbers = #tpu.dot_dimension_numbers<[1], [0], [0], [1], [0, 0, 1, 1], [], []>} : vector<1x32xbf16>, vector<32x128xbf16>, vector<1x128xf32> -> vector<1x128xf32>
    %435 = arith.addf %428, %434 : vector<1x128xf32>
    %c6_391 = arith.constant 6 : index
    %c0_392 = arith.constant 0 : index
    %c0_393 = arith.constant 0 : index
    %436 = vector.load %arg12[%c6_391, %c0_392, %c0_393] : memref<49x1x32xf32, #tpu.memory_space<vmem>>, vector<1x1x32xf32>
    %437 = vector.shape_cast %436 : vector<1x1x32xf32> to vector<1x32xf32>
    %438 = arith.truncf %437 : vector<1x32xf32> to vector<1x32xbf16>
    %c6_394 = arith.constant 6 : index
    %c0_395 = arith.constant 0 : index
    %c0_396 = arith.constant 0 : index
    %439 = vector.load %arg6[%c6_394, %c0_395, %c0_396] : memref<49x32x128xbf16, #tpu.memory_space<vmem>>, vector<1x32x128xbf16>
    %440 = vector.shape_cast %439 : vector<1x32x128xbf16> to vector<32x128xbf16>
    %cst_397 = arith.constant dense<0.000000e+00> : vector<1x128xf32>
    %441 = tpu.matmul %438, %440, %cst_397 {dimension_numbers = #tpu.dot_dimension_numbers<[1], [0], [0], [1], [0, 0, 1, 1], [], []>} : vector<1x32xbf16>, vector<32x128xbf16>, vector<1x128xf32> -> vector<1x128xf32>
    %442 = arith.addf %435, %441 : vector<1x128xf32>
    %c7_398 = arith.constant 7 : index
    %c0_399 = arith.constant 0 : index
    %c0_400 = arith.constant 0 : index
    %443 = vector.load %arg12[%c7_398, %c0_399, %c0_400] : memref<49x1x32xf32, #tpu.memory_space<vmem>>, vector<1x1x32xf32>
    %444 = vector.shape_cast %443 : vector<1x1x32xf32> to vector<1x32xf32>
    %445 = arith.truncf %444 : vector<1x32xf32> to vector<1x32xbf16>
    %c7_401 = arith.constant 7 : index
    %c0_402 = arith.constant 0 : index
    %c0_403 = arith.constant 0 : index
    %446 = vector.load %arg6[%c7_401, %c0_402, %c0_403] : memref<49x32x128xbf16, #tpu.memory_space<vmem>>, vector<1x32x128xbf16>
    %447 = vector.shape_cast %446 : vector<1x32x128xbf16> to vector<32x128xbf16>
    %cst_404 = arith.constant dense<0.000000e+00> : vector<1x128xf32>
    %448 = tpu.matmul %445, %447, %cst_404 {dimension_numbers = #tpu.dot_dimension_numbers<[1], [0], [0], [1], [0, 0, 1, 1], [], []>} : vector<1x32xbf16>, vector<32x128xbf16>, vector<1x128xf32> -> vector<1x128xf32>
    %449 = arith.addf %442, %448 : vector<1x128xf32>
    %c8_405 = arith.constant 8 : index
    %c0_406 = arith.constant 0 : index
    %c0_407 = arith.constant 0 : index
    %450 = vector.load %arg12[%c8_405, %c0_406, %c0_407] : memref<49x1x32xf32, #tpu.memory_space<vmem>>, vector<1x1x32xf32>
    %451 = vector.shape_cast %450 : vector<1x1x32xf32> to vector<1x32xf32>
    %452 = arith.truncf %451 : vector<1x32xf32> to vector<1x32xbf16>
    %c8_408 = arith.constant 8 : index
    %c0_409 = arith.constant 0 : index
    %c0_410 = arith.constant 0 : index
    %453 = vector.load %arg6[%c8_408, %c0_409, %c0_410] : memref<49x32x128xbf16, #tpu.memory_space<vmem>>, vector<1x32x128xbf16>
    %454 = vector.shape_cast %453 : vector<1x32x128xbf16> to vector<32x128xbf16>
    %cst_411 = arith.constant dense<0.000000e+00> : vector<1x128xf32>
    %455 = tpu.matmul %452, %454, %cst_411 {dimension_numbers = #tpu.dot_dimension_numbers<[1], [0], [0], [1], [0, 0, 1, 1], [], []>} : vector<1x32xbf16>, vector<32x128xbf16>, vector<1x128xf32> -> vector<1x128xf32>
    %456 = arith.addf %449, %455 : vector<1x128xf32>
    %c9_412 = arith.constant 9 : index
    %c0_413 = arith.constant 0 : index
    %c0_414 = arith.constant 0 : index
    %457 = vector.load %arg12[%c9_412, %c0_413, %c0_414] : memref<49x1x32xf32, #tpu.memory_space<vmem>>, vector<1x1x32xf32>
    %458 = vector.shape_cast %457 : vector<1x1x32xf32> to vector<1x32xf32>
    %459 = arith.truncf %458 : vector<1x32xf32> to vector<1x32xbf16>
    %c9_415 = arith.constant 9 : index
    %c0_416 = arith.constant 0 : index
    %c0_417 = arith.constant 0 : index
    %460 = vector.load %arg6[%c9_415, %c0_416, %c0_417] : memref<49x32x128xbf16, #tpu.memory_space<vmem>>, vector<1x32x128xbf16>
    %461 = vector.shape_cast %460 : vector<1x32x128xbf16> to vector<32x128xbf16>
    %cst_418 = arith.constant dense<0.000000e+00> : vector<1x128xf32>
    %462 = tpu.matmul %459, %461, %cst_418 {dimension_numbers = #tpu.dot_dimension_numbers<[1], [0], [0], [1], [0, 0, 1, 1], [], []>} : vector<1x32xbf16>, vector<32x128xbf16>, vector<1x128xf32> -> vector<1x128xf32>
    %463 = arith.addf %456, %462 : vector<1x128xf32>
    %c10_419 = arith.constant 10 : index
    %c0_420 = arith.constant 0 : index
    %c0_421 = arith.constant 0 : index
    %464 = vector.load %arg12[%c10_419, %c0_420, %c0_421] : memref<49x1x32xf32, #tpu.memory_space<vmem>>, vector<1x1x32xf32>
    %465 = vector.shape_cast %464 : vector<1x1x32xf32> to vector<1x32xf32>
    %466 = arith.truncf %465 : vector<1x32xf32> to vector<1x32xbf16>
    %c10_422 = arith.constant 10 : index
    %c0_423 = arith.constant 0 : index
    %c0_424 = arith.constant 0 : index
    %467 = vector.load %arg6[%c10_422, %c0_423, %c0_424] : memref<49x32x128xbf16, #tpu.memory_space<vmem>>, vector<1x32x128xbf16>
    %468 = vector.shape_cast %467 : vector<1x32x128xbf16> to vector<32x128xbf16>
    %cst_425 = arith.constant dense<0.000000e+00> : vector<1x128xf32>
    %469 = tpu.matmul %466, %468, %cst_425 {dimension_numbers = #tpu.dot_dimension_numbers<[1], [0], [0], [1], [0, 0, 1, 1], [], []>} : vector<1x32xbf16>, vector<32x128xbf16>, vector<1x128xf32> -> vector<1x128xf32>
    %470 = arith.addf %463, %469 : vector<1x128xf32>
    %c11_426 = arith.constant 11 : index
    %c0_427 = arith.constant 0 : index
    %c0_428 = arith.constant 0 : index
    %471 = vector.load %arg12[%c11_426, %c0_427, %c0_428] : memref<49x1x32xf32, #tpu.memory_space<vmem>>, vector<1x1x32xf32>
    %472 = vector.shape_cast %471 : vector<1x1x32xf32> to vector<1x32xf32>
    %473 = arith.truncf %472 : vector<1x32xf32> to vector<1x32xbf16>
    %c11_429 = arith.constant 11 : index
    %c0_430 = arith.constant 0 : index
    %c0_431 = arith.constant 0 : index
    %474 = vector.load %arg6[%c11_429, %c0_430, %c0_431] : memref<49x32x128xbf16, #tpu.memory_space<vmem>>, vector<1x32x128xbf16>
    %475 = vector.shape_cast %474 : vector<1x32x128xbf16> to vector<32x128xbf16>
    %cst_432 = arith.constant dense<0.000000e+00> : vector<1x128xf32>
    %476 = tpu.matmul %473, %475, %cst_432 {dimension_numbers = #tpu.dot_dimension_numbers<[1], [0], [0], [1], [0, 0, 1, 1], [], []>} : vector<1x32xbf16>, vector<32x128xbf16>, vector<1x128xf32> -> vector<1x128xf32>
    %477 = arith.addf %470, %476 : vector<1x128xf32>
    %c12_433 = arith.constant 12 : index
    %c0_434 = arith.constant 0 : index
    %c0_435 = arith.constant 0 : index
    %478 = vector.load %arg12[%c12_433, %c0_434, %c0_435] : memref<49x1x32xf32, #tpu.memory_space<vmem>>, vector<1x1x32xf32>
    %479 = vector.shape_cast %478 : vector<1x1x32xf32> to vector<1x32xf32>
    %480 = arith.truncf %479 : vector<1x32xf32> to vector<1x32xbf16>
    %c12_436 = arith.constant 12 : index
    %c0_437 = arith.constant 0 : index
    %c0_438 = arith.constant 0 : index
    %481 = vector.load %arg6[%c12_436, %c0_437, %c0_438] : memref<49x32x128xbf16, #tpu.memory_space<vmem>>, vector<1x32x128xbf16>
    %482 = vector.shape_cast %481 : vector<1x32x128xbf16> to vector<32x128xbf16>
    %cst_439 = arith.constant dense<0.000000e+00> : vector<1x128xf32>
    %483 = tpu.matmul %480, %482, %cst_439 {dimension_numbers = #tpu.dot_dimension_numbers<[1], [0], [0], [1], [0, 0, 1, 1], [], []>} : vector<1x32xbf16>, vector<32x128xbf16>, vector<1x128xf32> -> vector<1x128xf32>
    %484 = arith.addf %477, %483 : vector<1x128xf32>
    %c13_440 = arith.constant 13 : index
    %c0_441 = arith.constant 0 : index
    %c0_442 = arith.constant 0 : index
    %485 = vector.load %arg12[%c13_440, %c0_441, %c0_442] : memref<49x1x32xf32, #tpu.memory_space<vmem>>, vector<1x1x32xf32>
    %486 = vector.shape_cast %485 : vector<1x1x32xf32> to vector<1x32xf32>
    %487 = arith.truncf %486 : vector<1x32xf32> to vector<1x32xbf16>
    %c13_443 = arith.constant 13 : index
    %c0_444 = arith.constant 0 : index
    %c0_445 = arith.constant 0 : index
    %488 = vector.load %arg6[%c13_443, %c0_444, %c0_445] : memref<49x32x128xbf16, #tpu.memory_space<vmem>>, vector<1x32x128xbf16>
    %489 = vector.shape_cast %488 : vector<1x32x128xbf16> to vector<32x128xbf16>
    %cst_446 = arith.constant dense<0.000000e+00> : vector<1x128xf32>
    %490 = tpu.matmul %487, %489, %cst_446 {dimension_numbers = #tpu.dot_dimension_numbers<[1], [0], [0], [1], [0, 0, 1, 1], [], []>} : vector<1x32xbf16>, vector<32x128xbf16>, vector<1x128xf32> -> vector<1x128xf32>
    %491 = arith.addf %484, %490 : vector<1x128xf32>
    %c14_447 = arith.constant 14 : index
    %c0_448 = arith.constant 0 : index
    %c0_449 = arith.constant 0 : index
    %492 = vector.load %arg12[%c14_447, %c0_448, %c0_449] : memref<49x1x32xf32, #tpu.memory_space<vmem>>, vector<1x1x32xf32>
    %493 = vector.shape_cast %492 : vector<1x1x32xf32> to vector<1x32xf32>
    %494 = arith.truncf %493 : vector<1x32xf32> to vector<1x32xbf16>
    %c14_450 = arith.constant 14 : index
    %c0_451 = arith.constant 0 : index
    %c0_452 = arith.constant 0 : index
    %495 = vector.load %arg6[%c14_450, %c0_451, %c0_452] : memref<49x32x128xbf16, #tpu.memory_space<vmem>>, vector<1x32x128xbf16>
    %496 = vector.shape_cast %495 : vector<1x32x128xbf16> to vector<32x128xbf16>
    %cst_453 = arith.constant dense<0.000000e+00> : vector<1x128xf32>
    %497 = tpu.matmul %494, %496, %cst_453 {dimension_numbers = #tpu.dot_dimension_numbers<[1], [0], [0], [1], [0, 0, 1, 1], [], []>} : vector<1x32xbf16>, vector<32x128xbf16>, vector<1x128xf32> -> vector<1x128xf32>
    %498 = arith.addf %491, %497 : vector<1x128xf32>
    %c15_454 = arith.constant 15 : index
    %c0_455 = arith.constant 0 : index
    %c0_456 = arith.constant 0 : index
    %499 = vector.load %arg12[%c15_454, %c0_455, %c0_456] : memref<49x1x32xf32, #tpu.memory_space<vmem>>, vector<1x1x32xf32>
    %500 = vector.shape_cast %499 : vector<1x1x32xf32> to vector<1x32xf32>
    %501 = arith.truncf %500 : vector<1x32xf32> to vector<1x32xbf16>
    %c15_457 = arith.constant 15 : index
    %c0_458 = arith.constant 0 : index
    %c0_459 = arith.constant 0 : index
    %502 = vector.load %arg6[%c15_457, %c0_458, %c0_459] : memref<49x32x128xbf16, #tpu.memory_space<vmem>>, vector<1x32x128xbf16>
    %503 = vector.shape_cast %502 : vector<1x32x128xbf16> to vector<32x128xbf16>
    %cst_460 = arith.constant dense<0.000000e+00> : vector<1x128xf32>
    %504 = tpu.matmul %501, %503, %cst_460 {dimension_numbers = #tpu.dot_dimension_numbers<[1], [0], [0], [1], [0, 0, 1, 1], [], []>} : vector<1x32xbf16>, vector<32x128xbf16>, vector<1x128xf32> -> vector<1x128xf32>
    %505 = arith.addf %498, %504 : vector<1x128xf32>
    %c16_461 = arith.constant 16 : index
    %c0_462 = arith.constant 0 : index
    %c0_463 = arith.constant 0 : index
    %506 = vector.load %arg12[%c16_461, %c0_462, %c0_463] : memref<49x1x32xf32, #tpu.memory_space<vmem>>, vector<1x1x32xf32>
    %507 = vector.shape_cast %506 : vector<1x1x32xf32> to vector<1x32xf32>
    %508 = arith.truncf %507 : vector<1x32xf32> to vector<1x32xbf16>
    %c16_464 = arith.constant 16 : index
    %c0_465 = arith.constant 0 : index
    %c0_466 = arith.constant 0 : index
    %509 = vector.load %arg6[%c16_464, %c0_465, %c0_466] : memref<49x32x128xbf16, #tpu.memory_space<vmem>>, vector<1x32x128xbf16>
    %510 = vector.shape_cast %509 : vector<1x32x128xbf16> to vector<32x128xbf16>
    %cst_467 = arith.constant dense<0.000000e+00> : vector<1x128xf32>
    %511 = tpu.matmul %508, %510, %cst_467 {dimension_numbers = #tpu.dot_dimension_numbers<[1], [0], [0], [1], [0, 0, 1, 1], [], []>} : vector<1x32xbf16>, vector<32x128xbf16>, vector<1x128xf32> -> vector<1x128xf32>
    %512 = arith.addf %505, %511 : vector<1x128xf32>
    %c17_468 = arith.constant 17 : index
    %c0_469 = arith.constant 0 : index
    %c0_470 = arith.constant 0 : index
    %513 = vector.load %arg12[%c17_468, %c0_469, %c0_470] : memref<49x1x32xf32, #tpu.memory_space<vmem>>, vector<1x1x32xf32>
    %514 = vector.shape_cast %513 : vector<1x1x32xf32> to vector<1x32xf32>
    %515 = arith.truncf %514 : vector<1x32xf32> to vector<1x32xbf16>
    %c17_471 = arith.constant 17 : index
    %c0_472 = arith.constant 0 : index
    %c0_473 = arith.constant 0 : index
    %516 = vector.load %arg6[%c17_471, %c0_472, %c0_473] : memref<49x32x128xbf16, #tpu.memory_space<vmem>>, vector<1x32x128xbf16>
    %517 = vector.shape_cast %516 : vector<1x32x128xbf16> to vector<32x128xbf16>
    %cst_474 = arith.constant dense<0.000000e+00> : vector<1x128xf32>
    %518 = tpu.matmul %515, %517, %cst_474 {dimension_numbers = #tpu.dot_dimension_numbers<[1], [0], [0], [1], [0, 0, 1, 1], [], []>} : vector<1x32xbf16>, vector<32x128xbf16>, vector<1x128xf32> -> vector<1x128xf32>
    %519 = arith.addf %512, %518 : vector<1x128xf32>
    %c18_475 = arith.constant 18 : index
    %c0_476 = arith.constant 0 : index
    %c0_477 = arith.constant 0 : index
    %520 = vector.load %arg12[%c18_475, %c0_476, %c0_477] : memref<49x1x32xf32, #tpu.memory_space<vmem>>, vector<1x1x32xf32>
    %521 = vector.shape_cast %520 : vector<1x1x32xf32> to vector<1x32xf32>
    %522 = arith.truncf %521 : vector<1x32xf32> to vector<1x32xbf16>
    %c18_478 = arith.constant 18 : index
    %c0_479 = arith.constant 0 : index
    %c0_480 = arith.constant 0 : index
    %523 = vector.load %arg6[%c18_478, %c0_479, %c0_480] : memref<49x32x128xbf16, #tpu.memory_space<vmem>>, vector<1x32x128xbf16>
    %524 = vector.shape_cast %523 : vector<1x32x128xbf16> to vector<32x128xbf16>
    %cst_481 = arith.constant dense<0.000000e+00> : vector<1x128xf32>
    %525 = tpu.matmul %522, %524, %cst_481 {dimension_numbers = #tpu.dot_dimension_numbers<[1], [0], [0], [1], [0, 0, 1, 1], [], []>} : vector<1x32xbf16>, vector<32x128xbf16>, vector<1x128xf32> -> vector<1x128xf32>
    %526 = arith.addf %519, %525 : vector<1x128xf32>
    %c19_482 = arith.constant 19 : index
    %c0_483 = arith.constant 0 : index
    %c0_484 = arith.constant 0 : index
    %527 = vector.load %arg12[%c19_482, %c0_483, %c0_484] : memref<49x1x32xf32, #tpu.memory_space<vmem>>, vector<1x1x32xf32>
    %528 = vector.shape_cast %527 : vector<1x1x32xf32> to vector<1x32xf32>
    %529 = arith.truncf %528 : vector<1x32xf32> to vector<1x32xbf16>
    %c19_485 = arith.constant 19 : index
    %c0_486 = arith.constant 0 : index
    %c0_487 = arith.constant 0 : index
    %530 = vector.load %arg6[%c19_485, %c0_486, %c0_487] : memref<49x32x128xbf16, #tpu.memory_space<vmem>>, vector<1x32x128xbf16>
    %531 = vector.shape_cast %530 : vector<1x32x128xbf16> to vector<32x128xbf16>
    %cst_488 = arith.constant dense<0.000000e+00> : vector<1x128xf32>
    %532 = tpu.matmul %529, %531, %cst_488 {dimension_numbers = #tpu.dot_dimension_numbers<[1], [0], [0], [1], [0, 0, 1, 1], [], []>} : vector<1x32xbf16>, vector<32x128xbf16>, vector<1x128xf32> -> vector<1x128xf32>
    %533 = arith.addf %526, %532 : vector<1x128xf32>
    %c20_489 = arith.constant 20 : index
    %c0_490 = arith.constant 0 : index
    %c0_491 = arith.constant 0 : index
    %534 = vector.load %arg12[%c20_489, %c0_490, %c0_491] : memref<49x1x32xf32, #tpu.memory_space<vmem>>, vector<1x1x32xf32>
    %535 = vector.shape_cast %534 : vector<1x1x32xf32> to vector<1x32xf32>
    %536 = arith.truncf %535 : vector<1x32xf32> to vector<1x32xbf16>
    %c20_492 = arith.constant 20 : index
    %c0_493 = arith.constant 0 : index
    %c0_494 = arith.constant 0 : index
    %537 = vector.load %arg6[%c20_492, %c0_493, %c0_494] : memref<49x32x128xbf16, #tpu.memory_space<vmem>>, vector<1x32x128xbf16>
    %538 = vector.shape_cast %537 : vector<1x32x128xbf16> to vector<32x128xbf16>
    %cst_495 = arith.constant dense<0.000000e+00> : vector<1x128xf32>
    %539 = tpu.matmul %536, %538, %cst_495 {dimension_numbers = #tpu.dot_dimension_numbers<[1], [0], [0], [1], [0, 0, 1, 1], [], []>} : vector<1x32xbf16>, vector<32x128xbf16>, vector<1x128xf32> -> vector<1x128xf32>
    %540 = arith.addf %533, %539 : vector<1x128xf32>
    %c21_496 = arith.constant 21 : index
    %c0_497 = arith.constant 0 : index
    %c0_498 = arith.constant 0 : index
    %541 = vector.load %arg12[%c21_496, %c0_497, %c0_498] : memref<49x1x32xf32, #tpu.memory_space<vmem>>, vector<1x1x32xf32>
    %542 = vector.shape_cast %541 : vector<1x1x32xf32> to vector<1x32xf32>
    %543 = arith.truncf %542 : vector<1x32xf32> to vector<1x32xbf16>
    %c21_499 = arith.constant 21 : index
    %c0_500 = arith.constant 0 : index
    %c0_501 = arith.constant 0 : index
    %544 = vector.load %arg6[%c21_499, %c0_500, %c0_501] : memref<49x32x128xbf16, #tpu.memory_space<vmem>>, vector<1x32x128xbf16>
    %545 = vector.shape_cast %544 : vector<1x32x128xbf16> to vector<32x128xbf16>
    %cst_502 = arith.constant dense<0.000000e+00> : vector<1x128xf32>
    %546 = tpu.matmul %543, %545, %cst_502 {dimension_numbers = #tpu.dot_dimension_numbers<[1], [0], [0], [1], [0, 0, 1, 1], [], []>} : vector<1x32xbf16>, vector<32x128xbf16>, vector<1x128xf32> -> vector<1x128xf32>
    %547 = arith.addf %540, %546 : vector<1x128xf32>
    %c22_503 = arith.constant 22 : index
    %c0_504 = arith.constant 0 : index
    %c0_505 = arith.constant 0 : index
    %548 = vector.load %arg12[%c22_503, %c0_504, %c0_505] : memref<49x1x32xf32, #tpu.memory_space<vmem>>, vector<1x1x32xf32>
    %549 = vector.shape_cast %548 : vector<1x1x32xf32> to vector<1x32xf32>
    %550 = arith.truncf %549 : vector<1x32xf32> to vector<1x32xbf16>
    %c22_506 = arith.constant 22 : index
    %c0_507 = arith.constant 0 : index
    %c0_508 = arith.constant 0 : index
    %551 = vector.load %arg6[%c22_506, %c0_507, %c0_508] : memref<49x32x128xbf16, #tpu.memory_space<vmem>>, vector<1x32x128xbf16>
    %552 = vector.shape_cast %551 : vector<1x32x128xbf16> to vector<32x128xbf16>
    %cst_509 = arith.constant dense<0.000000e+00> : vector<1x128xf32>
    %553 = tpu.matmul %550, %552, %cst_509 {dimension_numbers = #tpu.dot_dimension_numbers<[1], [0], [0], [1], [0, 0, 1, 1], [], []>} : vector<1x32xbf16>, vector<32x128xbf16>, vector<1x128xf32> -> vector<1x128xf32>
    %554 = arith.addf %547, %553 : vector<1x128xf32>
    %c23_510 = arith.constant 23 : index
    %c0_511 = arith.constant 0 : index
    %c0_512 = arith.constant 0 : index
    %555 = vector.load %arg12[%c23_510, %c0_511, %c0_512] : memref<49x1x32xf32, #tpu.memory_space<vmem>>, vector<1x1x32xf32>
    %556 = vector.shape_cast %555 : vector<1x1x32xf32> to vector<1x32xf32>
    %557 = arith.truncf %556 : vector<1x32xf32> to vector<1x32xbf16>
    %c23_513 = arith.constant 23 : index
    %c0_514 = arith.constant 0 : index
    %c0_515 = arith.constant 0 : index
    %558 = vector.load %arg6[%c23_513, %c0_514, %c0_515] : memref<49x32x128xbf16, #tpu.memory_space<vmem>>, vector<1x32x128xbf16>
    %559 = vector.shape_cast %558 : vector<1x32x128xbf16> to vector<32x128xbf16>
    %cst_516 = arith.constant dense<0.000000e+00> : vector<1x128xf32>
    %560 = tpu.matmul %557, %559, %cst_516 {dimension_numbers = #tpu.dot_dimension_numbers<[1], [0], [0], [1], [0, 0, 1, 1], [], []>} : vector<1x32xbf16>, vector<32x128xbf16>, vector<1x128xf32> -> vector<1x128xf32>
    %561 = arith.addf %554, %560 : vector<1x128xf32>
    %c24_517 = arith.constant 24 : index
    %c0_518 = arith.constant 0 : index
    %c0_519 = arith.constant 0 : index
    %562 = vector.load %arg12[%c24_517, %c0_518, %c0_519] : memref<49x1x32xf32, #tpu.memory_space<vmem>>, vector<1x1x32xf32>
    %563 = vector.shape_cast %562 : vector<1x1x32xf32> to vector<1x32xf32>
    %564 = arith.truncf %563 : vector<1x32xf32> to vector<1x32xbf16>
    %c24_520 = arith.constant 24 : index
    %c0_521 = arith.constant 0 : index
    %c0_522 = arith.constant 0 : index
    %565 = vector.load %arg6[%c24_520, %c0_521, %c0_522] : memref<49x32x128xbf16, #tpu.memory_space<vmem>>, vector<1x32x128xbf16>
    %566 = vector.shape_cast %565 : vector<1x32x128xbf16> to vector<32x128xbf16>
    %cst_523 = arith.constant dense<0.000000e+00> : vector<1x128xf32>
    %567 = tpu.matmul %564, %566, %cst_523 {dimension_numbers = #tpu.dot_dimension_numbers<[1], [0], [0], [1], [0, 0, 1, 1], [], []>} : vector<1x32xbf16>, vector<32x128xbf16>, vector<1x128xf32> -> vector<1x128xf32>
    %568 = arith.addf %561, %567 : vector<1x128xf32>
    %c25 = arith.constant 25 : index
    %c0_524 = arith.constant 0 : index
    %c0_525 = arith.constant 0 : index
    %569 = vector.load %arg12[%c25, %c0_524, %c0_525] : memref<49x1x32xf32, #tpu.memory_space<vmem>>, vector<1x1x32xf32>
    %570 = vector.shape_cast %569 : vector<1x1x32xf32> to vector<1x32xf32>
    %571 = arith.truncf %570 : vector<1x32xf32> to vector<1x32xbf16>
    %c25_526 = arith.constant 25 : index
    %c0_527 = arith.constant 0 : index
    %c0_528 = arith.constant 0 : index
    %572 = vector.load %arg6[%c25_526, %c0_527, %c0_528] : memref<49x32x128xbf16, #tpu.memory_space<vmem>>, vector<1x32x128xbf16>
    %573 = vector.shape_cast %572 : vector<1x32x128xbf16> to vector<32x128xbf16>
    %cst_529 = arith.constant dense<0.000000e+00> : vector<1x128xf32>
    %574 = tpu.matmul %571, %573, %cst_529 {dimension_numbers = #tpu.dot_dimension_numbers<[1], [0], [0], [1], [0, 0, 1, 1], [], []>} : vector<1x32xbf16>, vector<32x128xbf16>, vector<1x128xf32> -> vector<1x128xf32>
    %575 = arith.addf %568, %574 : vector<1x128xf32>
    %c26 = arith.constant 26 : index
    %c0_530 = arith.constant 0 : index
    %c0_531 = arith.constant 0 : index
    %576 = vector.load %arg12[%c26, %c0_530, %c0_531] : memref<49x1x32xf32, #tpu.memory_space<vmem>>, vector<1x1x32xf32>
    %577 = vector.shape_cast %576 : vector<1x1x32xf32> to vector<1x32xf32>
    %578 = arith.truncf %577 : vector<1x32xf32> to vector<1x32xbf16>
    %c26_532 = arith.constant 26 : index
    %c0_533 = arith.constant 0 : index
    %c0_534 = arith.constant 0 : index
    %579 = vector.load %arg6[%c26_532, %c0_533, %c0_534] : memref<49x32x128xbf16, #tpu.memory_space<vmem>>, vector<1x32x128xbf16>
    %580 = vector.shape_cast %579 : vector<1x32x128xbf16> to vector<32x128xbf16>
    %cst_535 = arith.constant dense<0.000000e+00> : vector<1x128xf32>
    %581 = tpu.matmul %578, %580, %cst_535 {dimension_numbers = #tpu.dot_dimension_numbers<[1], [0], [0], [1], [0, 0, 1, 1], [], []>} : vector<1x32xbf16>, vector<32x128xbf16>, vector<1x128xf32> -> vector<1x128xf32>
    %582 = arith.addf %575, %581 : vector<1x128xf32>
    %c27 = arith.constant 27 : index
    %c0_536 = arith.constant 0 : index
    %c0_537 = arith.constant 0 : index
    %583 = vector.load %arg12[%c27, %c0_536, %c0_537] : memref<49x1x32xf32, #tpu.memory_space<vmem>>, vector<1x1x32xf32>
    %584 = vector.shape_cast %583 : vector<1x1x32xf32> to vector<1x32xf32>
    %585 = arith.truncf %584 : vector<1x32xf32> to vector<1x32xbf16>
    %c27_538 = arith.constant 27 : index
    %c0_539 = arith.constant 0 : index
    %c0_540 = arith.constant 0 : index
    %586 = vector.load %arg6[%c27_538, %c0_539, %c0_540] : memref<49x32x128xbf16, #tpu.memory_space<vmem>>, vector<1x32x128xbf16>
    %587 = vector.shape_cast %586 : vector<1x32x128xbf16> to vector<32x128xbf16>
    %cst_541 = arith.constant dense<0.000000e+00> : vector<1x128xf32>
    %588 = tpu.matmul %585, %587, %cst_541 {dimension_numbers = #tpu.dot_dimension_numbers<[1], [0], [0], [1], [0, 0, 1, 1], [], []>} : vector<1x32xbf16>, vector<32x128xbf16>, vector<1x128xf32> -> vector<1x128xf32>
    %589 = arith.addf %582, %588 : vector<1x128xf32>
    %c28_542 = arith.constant 28 : index
    %c0_543 = arith.constant 0 : index
    %c0_544 = arith.constant 0 : index
    %590 = vector.load %arg12[%c28_542, %c0_543, %c0_544] : memref<49x1x32xf32, #tpu.memory_space<vmem>>, vector<1x1x32xf32>
    %591 = vector.shape_cast %590 : vector<1x1x32xf32> to vector<1x32xf32>
    %592 = arith.truncf %591 : vector<1x32xf32> to vector<1x32xbf16>
    %c28_545 = arith.constant 28 : index
    %c0_546 = arith.constant 0 : index
    %c0_547 = arith.constant 0 : index
    %593 = vector.load %arg6[%c28_545, %c0_546, %c0_547] : memref<49x32x128xbf16, #tpu.memory_space<vmem>>, vector<1x32x128xbf16>
    %594 = vector.shape_cast %593 : vector<1x32x128xbf16> to vector<32x128xbf16>
    %cst_548 = arith.constant dense<0.000000e+00> : vector<1x128xf32>
    %595 = tpu.matmul %592, %594, %cst_548 {dimension_numbers = #tpu.dot_dimension_numbers<[1], [0], [0], [1], [0, 0, 1, 1], [], []>} : vector<1x32xbf16>, vector<32x128xbf16>, vector<1x128xf32> -> vector<1x128xf32>
    %596 = arith.addf %589, %595 : vector<1x128xf32>
    %c29_549 = arith.constant 29 : index
    %c0_550 = arith.constant 0 : index
    %c0_551 = arith.constant 0 : index
    %597 = vector.load %arg12[%c29_549, %c0_550, %c0_551] : memref<49x1x32xf32, #tpu.memory_space<vmem>>, vector<1x1x32xf32>
    %598 = vector.shape_cast %597 : vector<1x1x32xf32> to vector<1x32xf32>
    %599 = arith.truncf %598 : vector<1x32xf32> to vector<1x32xbf16>
    %c29_552 = arith.constant 29 : index
    %c0_553 = arith.constant 0 : index
    %c0_554 = arith.constant 0 : index
    %600 = vector.load %arg6[%c29_552, %c0_553, %c0_554] : memref<49x32x128xbf16, #tpu.memory_space<vmem>>, vector<1x32x128xbf16>
    %601 = vector.shape_cast %600 : vector<1x32x128xbf16> to vector<32x128xbf16>
    %cst_555 = arith.constant dense<0.000000e+00> : vector<1x128xf32>
    %602 = tpu.matmul %599, %601, %cst_555 {dimension_numbers = #tpu.dot_dimension_numbers<[1], [0], [0], [1], [0, 0, 1, 1], [], []>} : vector<1x32xbf16>, vector<32x128xbf16>, vector<1x128xf32> -> vector<1x128xf32>
    %603 = arith.addf %596, %602 : vector<1x128xf32>
    %c30 = arith.constant 30 : index
    %c0_556 = arith.constant 0 : index
    %c0_557 = arith.constant 0 : index
    %604 = vector.load %arg12[%c30, %c0_556, %c0_557] : memref<49x1x32xf32, #tpu.memory_space<vmem>>, vector<1x1x32xf32>
    %605 = vector.shape_cast %604 : vector<1x1x32xf32> to vector<1x32xf32>
    %606 = arith.truncf %605 : vector<1x32xf32> to vector<1x32xbf16>
    %c30_558 = arith.constant 30 : index
    %c0_559 = arith.constant 0 : index
    %c0_560 = arith.constant 0 : index
    %607 = vector.load %arg6[%c30_558, %c0_559, %c0_560] : memref<49x32x128xbf16, #tpu.memory_space<vmem>>, vector<1x32x128xbf16>
    %608 = vector.shape_cast %607 : vector<1x32x128xbf16> to vector<32x128xbf16>
    %cst_561 = arith.constant dense<0.000000e+00> : vector<1x128xf32>
    %609 = tpu.matmul %606, %608, %cst_561 {dimension_numbers = #tpu.dot_dimension_numbers<[1], [0], [0], [1], [0, 0, 1, 1], [], []>} : vector<1x32xbf16>, vector<32x128xbf16>, vector<1x128xf32> -> vector<1x128xf32>
    %610 = arith.addf %603, %609 : vector<1x128xf32>
    %c31 = arith.constant 31 : index
    %c0_562 = arith.constant 0 : index
    %c0_563 = arith.constant 0 : index
    %611 = vector.load %arg12[%c31, %c0_562, %c0_563] : memref<49x1x32xf32, #tpu.memory_space<vmem>>, vector<1x1x32xf32>
    %612 = vector.shape_cast %611 : vector<1x1x32xf32> to vector<1x32xf32>
    %613 = arith.truncf %612 : vector<1x32xf32> to vector<1x32xbf16>
    %c31_564 = arith.constant 31 : index
    %c0_565 = arith.constant 0 : index
    %c0_566 = arith.constant 0 : index
    %614 = vector.load %arg6[%c31_564, %c0_565, %c0_566] : memref<49x32x128xbf16, #tpu.memory_space<vmem>>, vector<1x32x128xbf16>
    %615 = vector.shape_cast %614 : vector<1x32x128xbf16> to vector<32x128xbf16>
    %cst_567 = arith.constant dense<0.000000e+00> : vector<1x128xf32>
    %616 = tpu.matmul %613, %615, %cst_567 {dimension_numbers = #tpu.dot_dimension_numbers<[1], [0], [0], [1], [0, 0, 1, 1], [], []>} : vector<1x32xbf16>, vector<32x128xbf16>, vector<1x128xf32> -> vector<1x128xf32>
    %617 = arith.addf %610, %616 : vector<1x128xf32>
    %c32 = arith.constant 32 : index
    %c0_568 = arith.constant 0 : index
    %c0_569 = arith.constant 0 : index
    %618 = vector.load %arg12[%c32, %c0_568, %c0_569] : memref<49x1x32xf32, #tpu.memory_space<vmem>>, vector<1x1x32xf32>
    %619 = vector.shape_cast %618 : vector<1x1x32xf32> to vector<1x32xf32>
    %620 = arith.truncf %619 : vector<1x32xf32> to vector<1x32xbf16>
    %c32_570 = arith.constant 32 : index
    %c0_571 = arith.constant 0 : index
    %c0_572 = arith.constant 0 : index
    %621 = vector.load %arg6[%c32_570, %c0_571, %c0_572] : memref<49x32x128xbf16, #tpu.memory_space<vmem>>, vector<1x32x128xbf16>
    %622 = vector.shape_cast %621 : vector<1x32x128xbf16> to vector<32x128xbf16>
    %cst_573 = arith.constant dense<0.000000e+00> : vector<1x128xf32>
    %623 = tpu.matmul %620, %622, %cst_573 {dimension_numbers = #tpu.dot_dimension_numbers<[1], [0], [0], [1], [0, 0, 1, 1], [], []>} : vector<1x32xbf16>, vector<32x128xbf16>, vector<1x128xf32> -> vector<1x128xf32>
    %624 = arith.addf %617, %623 : vector<1x128xf32>
    %c33 = arith.constant 33 : index
    %c0_574 = arith.constant 0 : index
    %c0_575 = arith.constant 0 : index
    %625 = vector.load %arg12[%c33, %c0_574, %c0_575] : memref<49x1x32xf32, #tpu.memory_space<vmem>>, vector<1x1x32xf32>
    %626 = vector.shape_cast %625 : vector<1x1x32xf32> to vector<1x32xf32>
    %627 = arith.truncf %626 : vector<1x32xf32> to vector<1x32xbf16>
    %c33_576 = arith.constant 33 : index
    %c0_577 = arith.constant 0 : index
    %c0_578 = arith.constant 0 : index
    %628 = vector.load %arg6[%c33_576, %c0_577, %c0_578] : memref<49x32x128xbf16, #tpu.memory_space<vmem>>, vector<1x32x128xbf16>
    %629 = vector.shape_cast %628 : vector<1x32x128xbf16> to vector<32x128xbf16>
    %cst_579 = arith.constant dense<0.000000e+00> : vector<1x128xf32>
    %630 = tpu.matmul %627, %629, %cst_579 {dimension_numbers = #tpu.dot_dimension_numbers<[1], [0], [0], [1], [0, 0, 1, 1], [], []>} : vector<1x32xbf16>, vector<32x128xbf16>, vector<1x128xf32> -> vector<1x128xf32>
    %631 = arith.addf %624, %630 : vector<1x128xf32>
    %c34 = arith.constant 34 : index
    %c0_580 = arith.constant 0 : index
    %c0_581 = arith.constant 0 : index
    %632 = vector.load %arg12[%c34, %c0_580, %c0_581] : memref<49x1x32xf32, #tpu.memory_space<vmem>>, vector<1x1x32xf32>
    %633 = vector.shape_cast %632 : vector<1x1x32xf32> to vector<1x32xf32>
    %634 = arith.truncf %633 : vector<1x32xf32> to vector<1x32xbf16>
    %c34_582 = arith.constant 34 : index
    %c0_583 = arith.constant 0 : index
    %c0_584 = arith.constant 0 : index
    %635 = vector.load %arg6[%c34_582, %c0_583, %c0_584] : memref<49x32x128xbf16, #tpu.memory_space<vmem>>, vector<1x32x128xbf16>
    %636 = vector.shape_cast %635 : vector<1x32x128xbf16> to vector<32x128xbf16>
    %cst_585 = arith.constant dense<0.000000e+00> : vector<1x128xf32>
    %637 = tpu.matmul %634, %636, %cst_585 {dimension_numbers = #tpu.dot_dimension_numbers<[1], [0], [0], [1], [0, 0, 1, 1], [], []>} : vector<1x32xbf16>, vector<32x128xbf16>, vector<1x128xf32> -> vector<1x128xf32>
    %638 = arith.addf %631, %637 : vector<1x128xf32>
    %c35_586 = arith.constant 35 : index
    %c0_587 = arith.constant 0 : index
    %c0_588 = arith.constant 0 : index
    %639 = vector.load %arg12[%c35_586, %c0_587, %c0_588] : memref<49x1x32xf32, #tpu.memory_space<vmem>>, vector<1x1x32xf32>
    %640 = vector.shape_cast %639 : vector<1x1x32xf32> to vector<1x32xf32>
    %641 = arith.truncf %640 : vector<1x32xf32> to vector<1x32xbf16>
    %c35_589 = arith.constant 35 : index
    %c0_590 = arith.constant 0 : index
    %c0_591 = arith.constant 0 : index
    %642 = vector.load %arg6[%c35_589, %c0_590, %c0_591] : memref<49x32x128xbf16, #tpu.memory_space<vmem>>, vector<1x32x128xbf16>
    %643 = vector.shape_cast %642 : vector<1x32x128xbf16> to vector<32x128xbf16>
    %cst_592 = arith.constant dense<0.000000e+00> : vector<1x128xf32>
    %644 = tpu.matmul %641, %643, %cst_592 {dimension_numbers = #tpu.dot_dimension_numbers<[1], [0], [0], [1], [0, 0, 1, 1], [], []>} : vector<1x32xbf16>, vector<32x128xbf16>, vector<1x128xf32> -> vector<1x128xf32>
    %645 = arith.addf %638, %644 : vector<1x128xf32>
    %c36_593 = arith.constant 36 : index
    %c0_594 = arith.constant 0 : index
    %c0_595 = arith.constant 0 : index
    %646 = vector.load %arg12[%c36_593, %c0_594, %c0_595] : memref<49x1x32xf32, #tpu.memory_space<vmem>>, vector<1x1x32xf32>
    %647 = vector.shape_cast %646 : vector<1x1x32xf32> to vector<1x32xf32>
    %648 = arith.truncf %647 : vector<1x32xf32> to vector<1x32xbf16>
    %c36_596 = arith.constant 36 : index
    %c0_597 = arith.constant 0 : index
    %c0_598 = arith.constant 0 : index
    %649 = vector.load %arg6[%c36_596, %c0_597, %c0_598] : memref<49x32x128xbf16, #tpu.memory_space<vmem>>, vector<1x32x128xbf16>
    %650 = vector.shape_cast %649 : vector<1x32x128xbf16> to vector<32x128xbf16>
    %cst_599 = arith.constant dense<0.000000e+00> : vector<1x128xf32>
    %651 = tpu.matmul %648, %650, %cst_599 {dimension_numbers = #tpu.dot_dimension_numbers<[1], [0], [0], [1], [0, 0, 1, 1], [], []>} : vector<1x32xbf16>, vector<32x128xbf16>, vector<1x128xf32> -> vector<1x128xf32>
    %652 = arith.addf %645, %651 : vector<1x128xf32>
    %c37_600 = arith.constant 37 : index
    %c0_601 = arith.constant 0 : index
    %c0_602 = arith.constant 0 : index
    %653 = vector.load %arg12[%c37_600, %c0_601, %c0_602] : memref<49x1x32xf32, #tpu.memory_space<vmem>>, vector<1x1x32xf32>
    %654 = vector.shape_cast %653 : vector<1x1x32xf32> to vector<1x32xf32>
    %655 = arith.truncf %654 : vector<1x32xf32> to vector<1x32xbf16>
    %c37_603 = arith.constant 37 : index
    %c0_604 = arith.constant 0 : index
    %c0_605 = arith.constant 0 : index
    %656 = vector.load %arg6[%c37_603, %c0_604, %c0_605] : memref<49x32x128xbf16, #tpu.memory_space<vmem>>, vector<1x32x128xbf16>
    %657 = vector.shape_cast %656 : vector<1x32x128xbf16> to vector<32x128xbf16>
    %cst_606 = arith.constant dense<0.000000e+00> : vector<1x128xf32>
    %658 = tpu.matmul %655, %657, %cst_606 {dimension_numbers = #tpu.dot_dimension_numbers<[1], [0], [0], [1], [0, 0, 1, 1], [], []>} : vector<1x32xbf16>, vector<32x128xbf16>, vector<1x128xf32> -> vector<1x128xf32>
    %659 = arith.addf %652, %658 : vector<1x128xf32>
    %c38_607 = arith.constant 38 : index
    %c0_608 = arith.constant 0 : index
    %c0_609 = arith.constant 0 : index
    %660 = vector.load %arg12[%c38_607, %c0_608, %c0_609] : memref<49x1x32xf32, #tpu.memory_space<vmem>>, vector<1x1x32xf32>
    %661 = vector.shape_cast %660 : vector<1x1x32xf32> to vector<1x32xf32>
    %662 = arith.truncf %661 : vector<1x32xf32> to vector<1x32xbf16>
    %c38_610 = arith.constant 38 : index
    %c0_611 = arith.constant 0 : index
    %c0_612 = arith.constant 0 : index
    %663 = vector.load %arg6[%c38_610, %c0_611, %c0_612] : memref<49x32x128xbf16, #tpu.memory_space<vmem>>, vector<1x32x128xbf16>
    %664 = vector.shape_cast %663 : vector<1x32x128xbf16> to vector<32x128xbf16>
    %cst_613 = arith.constant dense<0.000000e+00> : vector<1x128xf32>
    %665 = tpu.matmul %662, %664, %cst_613 {dimension_numbers = #tpu.dot_dimension_numbers<[1], [0], [0], [1], [0, 0, 1, 1], [], []>} : vector<1x32xbf16>, vector<32x128xbf16>, vector<1x128xf32> -> vector<1x128xf32>
    %666 = arith.addf %659, %665 : vector<1x128xf32>
    %c39_614 = arith.constant 39 : index
    %c0_615 = arith.constant 0 : index
    %c0_616 = arith.constant 0 : index
    %667 = vector.load %arg12[%c39_614, %c0_615, %c0_616] : memref<49x1x32xf32, #tpu.memory_space<vmem>>, vector<1x1x32xf32>
    %668 = vector.shape_cast %667 : vector<1x1x32xf32> to vector<1x32xf32>
    %669 = arith.truncf %668 : vector<1x32xf32> to vector<1x32xbf16>
    %c39_617 = arith.constant 39 : index
    %c0_618 = arith.constant 0 : index
    %c0_619 = arith.constant 0 : index
    %670 = vector.load %arg6[%c39_617, %c0_618, %c0_619] : memref<49x32x128xbf16, #tpu.memory_space<vmem>>, vector<1x32x128xbf16>
    %671 = vector.shape_cast %670 : vector<1x32x128xbf16> to vector<32x128xbf16>
    %cst_620 = arith.constant dense<0.000000e+00> : vector<1x128xf32>
    %672 = tpu.matmul %669, %671, %cst_620 {dimension_numbers = #tpu.dot_dimension_numbers<[1], [0], [0], [1], [0, 0, 1, 1], [], []>} : vector<1x32xbf16>, vector<32x128xbf16>, vector<1x128xf32> -> vector<1x128xf32>
    %673 = arith.addf %666, %672 : vector<1x128xf32>
    %c40_621 = arith.constant 40 : index
    %c0_622 = arith.constant 0 : index
    %c0_623 = arith.constant 0 : index
    %674 = vector.load %arg12[%c40_621, %c0_622, %c0_623] : memref<49x1x32xf32, #tpu.memory_space<vmem>>, vector<1x1x32xf32>
    %675 = vector.shape_cast %674 : vector<1x1x32xf32> to vector<1x32xf32>
    %676 = arith.truncf %675 : vector<1x32xf32> to vector<1x32xbf16>
    %c40_624 = arith.constant 40 : index
    %c0_625 = arith.constant 0 : index
    %c0_626 = arith.constant 0 : index
    %677 = vector.load %arg6[%c40_624, %c0_625, %c0_626] : memref<49x32x128xbf16, #tpu.memory_space<vmem>>, vector<1x32x128xbf16>
    %678 = vector.shape_cast %677 : vector<1x32x128xbf16> to vector<32x128xbf16>
    %cst_627 = arith.constant dense<0.000000e+00> : vector<1x128xf32>
    %679 = tpu.matmul %676, %678, %cst_627 {dimension_numbers = #tpu.dot_dimension_numbers<[1], [0], [0], [1], [0, 0, 1, 1], [], []>} : vector<1x32xbf16>, vector<32x128xbf16>, vector<1x128xf32> -> vector<1x128xf32>
    %680 = arith.addf %673, %679 : vector<1x128xf32>
    %c41 = arith.constant 41 : index
    %c0_628 = arith.constant 0 : index
    %c0_629 = arith.constant 0 : index
    %681 = vector.load %arg12[%c41, %c0_628, %c0_629] : memref<49x1x32xf32, #tpu.memory_space<vmem>>, vector<1x1x32xf32>
    %682 = vector.shape_cast %681 : vector<1x1x32xf32> to vector<1x32xf32>
    %683 = arith.truncf %682 : vector<1x32xf32> to vector<1x32xbf16>
    %c41_630 = arith.constant 41 : index
    %c0_631 = arith.constant 0 : index
    %c0_632 = arith.constant 0 : index
    %684 = vector.load %arg6[%c41_630, %c0_631, %c0_632] : memref<49x32x128xbf16, #tpu.memory_space<vmem>>, vector<1x32x128xbf16>
    %685 = vector.shape_cast %684 : vector<1x32x128xbf16> to vector<32x128xbf16>
    %cst_633 = arith.constant dense<0.000000e+00> : vector<1x128xf32>
    %686 = tpu.matmul %683, %685, %cst_633 {dimension_numbers = #tpu.dot_dimension_numbers<[1], [0], [0], [1], [0, 0, 1, 1], [], []>} : vector<1x32xbf16>, vector<32x128xbf16>, vector<1x128xf32> -> vector<1x128xf32>
    %687 = arith.addf %680, %686 : vector<1x128xf32>
    %c42_634 = arith.constant 42 : index
    %c0_635 = arith.constant 0 : index
    %c0_636 = arith.constant 0 : index
    %688 = vector.load %arg12[%c42_634, %c0_635, %c0_636] : memref<49x1x32xf32, #tpu.memory_space<vmem>>, vector<1x1x32xf32>
    %689 = vector.shape_cast %688 : vector<1x1x32xf32> to vector<1x32xf32>
    %690 = arith.truncf %689 : vector<1x32xf32> to vector<1x32xbf16>
    %c42_637 = arith.constant 42 : index
    %c0_638 = arith.constant 0 : index
    %c0_639 = arith.constant 0 : index
    %691 = vector.load %arg6[%c42_637, %c0_638, %c0_639] : memref<49x32x128xbf16, #tpu.memory_space<vmem>>, vector<1x32x128xbf16>
    %692 = vector.shape_cast %691 : vector<1x32x128xbf16> to vector<32x128xbf16>
    %cst_640 = arith.constant dense<0.000000e+00> : vector<1x128xf32>
    %693 = tpu.matmul %690, %692, %cst_640 {dimension_numbers = #tpu.dot_dimension_numbers<[1], [0], [0], [1], [0, 0, 1, 1], [], []>} : vector<1x32xbf16>, vector<32x128xbf16>, vector<1x128xf32> -> vector<1x128xf32>
    %694 = arith.addf %687, %693 : vector<1x128xf32>
    %c43 = arith.constant 43 : index
    %c0_641 = arith.constant 0 : index
    %c0_642 = arith.constant 0 : index
    %695 = vector.load %arg12[%c43, %c0_641, %c0_642] : memref<49x1x32xf32, #tpu.memory_space<vmem>>, vector<1x1x32xf32>
    %696 = vector.shape_cast %695 : vector<1x1x32xf32> to vector<1x32xf32>
    %697 = arith.truncf %696 : vector<1x32xf32> to vector<1x32xbf16>
    %c43_643 = arith.constant 43 : index
    %c0_644 = arith.constant 0 : index
    %c0_645 = arith.constant 0 : index
    %698 = vector.load %arg6[%c43_643, %c0_644, %c0_645] : memref<49x32x128xbf16, #tpu.memory_space<vmem>>, vector<1x32x128xbf16>
    %699 = vector.shape_cast %698 : vector<1x32x128xbf16> to vector<32x128xbf16>
    %cst_646 = arith.constant dense<0.000000e+00> : vector<1x128xf32>
    %700 = tpu.matmul %697, %699, %cst_646 {dimension_numbers = #tpu.dot_dimension_numbers<[1], [0], [0], [1], [0, 0, 1, 1], [], []>} : vector<1x32xbf16>, vector<32x128xbf16>, vector<1x128xf32> -> vector<1x128xf32>
    %701 = arith.addf %694, %700 : vector<1x128xf32>
    %c44 = arith.constant 44 : index
    %c0_647 = arith.constant 0 : index
    %c0_648 = arith.constant 0 : index
    %702 = vector.load %arg12[%c44, %c0_647, %c0_648] : memref<49x1x32xf32, #tpu.memory_space<vmem>>, vector<1x1x32xf32>
    %703 = vector.shape_cast %702 : vector<1x1x32xf32> to vector<1x32xf32>
    %704 = arith.truncf %703 : vector<1x32xf32> to vector<1x32xbf16>
    %c44_649 = arith.constant 44 : index
    %c0_650 = arith.constant 0 : index
    %c0_651 = arith.constant 0 : index
    %705 = vector.load %arg6[%c44_649, %c0_650, %c0_651] : memref<49x32x128xbf16, #tpu.memory_space<vmem>>, vector<1x32x128xbf16>
    %706 = vector.shape_cast %705 : vector<1x32x128xbf16> to vector<32x128xbf16>
    %cst_652 = arith.constant dense<0.000000e+00> : vector<1x128xf32>
    %707 = tpu.matmul %704, %706, %cst_652 {dimension_numbers = #tpu.dot_dimension_numbers<[1], [0], [0], [1], [0, 0, 1, 1], [], []>} : vector<1x32xbf16>, vector<32x128xbf16>, vector<1x128xf32> -> vector<1x128xf32>
    %708 = arith.addf %701, %707 : vector<1x128xf32>
    %c45 = arith.constant 45 : index
    %c0_653 = arith.constant 0 : index
    %c0_654 = arith.constant 0 : index
    %709 = vector.load %arg12[%c45, %c0_653, %c0_654] : memref<49x1x32xf32, #tpu.memory_space<vmem>>, vector<1x1x32xf32>
    %710 = vector.shape_cast %709 : vector<1x1x32xf32> to vector<1x32xf32>
    %711 = arith.truncf %710 : vector<1x32xf32> to vector<1x32xbf16>
    %c45_655 = arith.constant 45 : index
    %c0_656 = arith.constant 0 : index
    %c0_657 = arith.constant 0 : index
    %712 = vector.load %arg6[%c45_655, %c0_656, %c0_657] : memref<49x32x128xbf16, #tpu.memory_space<vmem>>, vector<1x32x128xbf16>
    %713 = vector.shape_cast %712 : vector<1x32x128xbf16> to vector<32x128xbf16>
    %cst_658 = arith.constant dense<0.000000e+00> : vector<1x128xf32>
    %714 = tpu.matmul %711, %713, %cst_658 {dimension_numbers = #tpu.dot_dimension_numbers<[1], [0], [0], [1], [0, 0, 1, 1], [], []>} : vector<1x32xbf16>, vector<32x128xbf16>, vector<1x128xf32> -> vector<1x128xf32>
    %715 = arith.addf %708, %714 : vector<1x128xf32>
    %c46 = arith.constant 46 : index
    %c0_659 = arith.constant 0 : index
    %c0_660 = arith.constant 0 : index
    %716 = vector.load %arg12[%c46, %c0_659, %c0_660] : memref<49x1x32xf32, #tpu.memory_space<vmem>>, vector<1x1x32xf32>
    %717 = vector.shape_cast %716 : vector<1x1x32xf32> to vector<1x32xf32>
    %718 = arith.truncf %717 : vector<1x32xf32> to vector<1x32xbf16>
    %c46_661 = arith.constant 46 : index
    %c0_662 = arith.constant 0 : index
    %c0_663 = arith.constant 0 : index
    %719 = vector.load %arg6[%c46_661, %c0_662, %c0_663] : memref<49x32x128xbf16, #tpu.memory_space<vmem>>, vector<1x32x128xbf16>
    %720 = vector.shape_cast %719 : vector<1x32x128xbf16> to vector<32x128xbf16>
    %cst_664 = arith.constant dense<0.000000e+00> : vector<1x128xf32>
    %721 = tpu.matmul %718, %720, %cst_664 {dimension_numbers = #tpu.dot_dimension_numbers<[1], [0], [0], [1], [0, 0, 1, 1], [], []>} : vector<1x32xbf16>, vector<32x128xbf16>, vector<1x128xf32> -> vector<1x128xf32>
    %722 = arith.addf %715, %721 : vector<1x128xf32>
    %c47 = arith.constant 47 : index
    %c0_665 = arith.constant 0 : index
    %c0_666 = arith.constant 0 : index
    %723 = vector.load %arg12[%c47, %c0_665, %c0_666] : memref<49x1x32xf32, #tpu.memory_space<vmem>>, vector<1x1x32xf32>
    %724 = vector.shape_cast %723 : vector<1x1x32xf32> to vector<1x32xf32>
    %725 = arith.truncf %724 : vector<1x32xf32> to vector<1x32xbf16>
    %c47_667 = arith.constant 47 : index
    %c0_668 = arith.constant 0 : index
    %c0_669 = arith.constant 0 : index
    %726 = vector.load %arg6[%c47_667, %c0_668, %c0_669] : memref<49x32x128xbf16, #tpu.memory_space<vmem>>, vector<1x32x128xbf16>
    %727 = vector.shape_cast %726 : vector<1x32x128xbf16> to vector<32x128xbf16>
    %cst_670 = arith.constant dense<0.000000e+00> : vector<1x128xf32>
    %728 = tpu.matmul %725, %727, %cst_670 {dimension_numbers = #tpu.dot_dimension_numbers<[1], [0], [0], [1], [0, 0, 1, 1], [], []>} : vector<1x32xbf16>, vector<32x128xbf16>, vector<1x128xf32> -> vector<1x128xf32>
    %729 = arith.addf %722, %728 : vector<1x128xf32>
    %c48 = arith.constant 48 : index
    %c0_671 = arith.constant 0 : index
    %c0_672 = arith.constant 0 : index
    %730 = vector.load %arg12[%c48, %c0_671, %c0_672] : memref<49x1x32xf32, #tpu.memory_space<vmem>>, vector<1x1x32xf32>
    %731 = vector.shape_cast %730 : vector<1x1x32xf32> to vector<1x32xf32>
    %732 = arith.truncf %731 : vector<1x32xf32> to vector<1x32xbf16>
    %c48_673 = arith.constant 48 : index
    %c0_674 = arith.constant 0 : index
    %c0_675 = arith.constant 0 : index
    %733 = vector.load %arg6[%c48_673, %c0_674, %c0_675] : memref<49x32x128xbf16, #tpu.memory_space<vmem>>, vector<1x32x128xbf16>
    %734 = vector.shape_cast %733 : vector<1x32x128xbf16> to vector<32x128xbf16>
    %cst_676 = arith.constant dense<0.000000e+00> : vector<1x128xf32>
    %735 = tpu.matmul %732, %734, %cst_676 {dimension_numbers = #tpu.dot_dimension_numbers<[1], [0], [0], [1], [0, 0, 1, 1], [], []>} : vector<1x32xbf16>, vector<32x128xbf16>, vector<1x128xf32> -> vector<1x128xf32>
    %736 = arith.addf %729, %735 : vector<1x128xf32>
    %c0_677 = arith.constant 0 : index
    %c0_678 = arith.constant 0 : index
    %c0_679 = arith.constant 0 : index
    %737 = vector.load %arg8[%c0_677, %c0_678, %c0_679] : memref<1x1x128xf32, #tpu.memory_space<vmem>>, vector<1x1x128xf32>
    %738 = vector.shape_cast %737 : vector<1x1x128xf32> to vector<1x128xf32>
    %739 = vector.shape_cast %736 : vector<1x128xf32> to vector<1x1x128xf32>
    tpu.vector_store %arg8[%c0_677, %c0_678, %c0_679], %739 {strides = array<i32>} : memref<1x1x128xf32, #tpu.memory_space<vmem>>, vector<1x1x128xf32>,
    return
  }
  func.func @transform_0(%arg0: i32) -> (i32, i32, i32) {
    %c0_i32 = arith.constant 0 : i32
    %c0_i32_0 = arith.constant 0 : i32
    %c0_i32_1 = arith.constant 0 : i32
    return %arg0, %c0_i32, %c0_i32_0 : i32, i32, i32
  }
  func.func @transform_1(%arg0: i32) -> (i32, i32) {
    %c0_i32 = arith.constant 0 : i32
    %c0_i32_0 = arith.constant 0 : i32
    %c0_i32_1 = arith.constant 0 : i32
    return %c0_i32, %c0_i32_0 : i32, i32
  }
  func.func @transform_2(%arg0: i32) -> (i32, i32) {
    %c0_i32 = arith.constant 0 : i32
    %c0_i32_0 = arith.constant 0 : i32
    %c0_i32_1 = arith.constant 0 : i32
    return %c0_i32, %c0_i32_0 : i32, i32
  }
  func.func @transform_3(%arg0: i32) -> (i32, i32, i32) {
    %c0_i32 = arith.constant 0 : i32
    %c0_i32_0 = arith.constant 0 : i32
    %c0_i32_1 = arith.constant 0 : i32
    %c0_i32_2 = arith.constant 0 : i32
    return %c0_i32, %c0_i32_0, %c0_i32_1 : i32, i32, i32
  }
  func.func @transform_4(%arg0: i32) -> (i32, i32) {
    %c0_i32 = arith.constant 0 : i32
    %c0_i32_0 = arith.constant 0 : i32
    %c0_i32_1 = arith.constant 0 : i32
    return %c0_i32, %c0_i32_0 : i32, i32
  }
  func.func @transform_5(%arg0: i32) -> (i32, i32, i32) {
    %c0_i32 = arith.constant 0 : i32
    %c0_i32_0 = arith.constant 0 : i32
    %c0_i32_1 = arith.constant 0 : i32
    %c0_i32_2 = arith.constant 0 : i32
    return %c0_i32, %c0_i32_0, %c0_i32_1 : i32, i32, i32
  }
  func.func @transform_6(%arg0: i32) -> (i32, i32) {
    %c0_i32 = arith.constant 0 : i32
    %c0_i32_0 = arith.constant 0 : i32
    %c0_i32_1 = arith.constant 0 : i32
    return %c0_i32, %c0_i32_0 : i32, i32
  }
  func.func @transform_7(%arg0: i32) -> (i32, i32, i32) {
    %c0_i32 = arith.constant 0 : i32
    %c0_i32_0 = arith.constant 0 : i32
    %c0_i32_1 = arith.constant 0 : i32
    return %arg0, %c0_i32, %c0_i32_0 : i32, i32, i32
  }
}

</mosaic_0001>

<bundles_post_ra>
// kernel: cnn_forward.1
= control target key start
LH: loop header
LB: loop body
LE: loop exit
PB: predicated region body
PF: predicated region fallthrough
CT: control target
= control target key end

     0   :  { %12 = vsyncpa [#allocation7], 0  ;;  %s14533_s0 = inlined_call_operand.vmem [shape: bf16[2,784,25], index: 0, kind: input, shape index: {}]   ;;  %s14534_s1 = inlined_call_operand.vmem [shape: bf16[25,16], index: 1, kind: input, shape index: {}]   ;;  %s14535_s2 = inlined_call_operand.vmem [shape: f32[1,16], index: 2, kind: input, shape index: {}]   ;;  %s14536_s3 = inlined_call_operand.vmem [shape: bf16[25,16,32], index: 3, kind: input, shape index: {}]   ;;  %s14537_s4 = inlined_call_operand.vmem [shape: f32[1,32], index: 4, kind: input, shape index: {}]   ;;  %s14538_s5 = inlined_call_operand.vmem [shape: bf16[49,32,128], index: 5, kind: input, shape index: {}]   ;;  %s14539_s6 = inlined_call_operand.vmem [shape: f32[1,128], index: 6, kind: input, shape index: {}]   ;;  %s14540_s7 = inlined_call_operand.hbm [shape: f32[2,1,128], index: 7, kind: output, shape index: {}]  }
   0x1   :  { %14 = vsyncpa [#allocation7 + $0x1], 0  ;;  %s11448_s24 = smov 0   ;;  %s11450_s25 = smov 0  }
   0x2   :  { %s11452_s26 = smov 0   ;;  %s11454_s27 = smov 0  }
   0x3 LB: > { %s11469_s28 = sadd.s32 4294967295, %s11404_s27   ;;  %s9656_s29 = sadd.s32 4294967294, %s11404_s27   ;;  %s11404_s27 = sphi %s11454_s27, %s14940_s27   ;;  %s11400_s26 = sphi %s11452_s26, %s14939_s26   ;;  %s11396_s25 = sphi %s11450_s25, %s14938_s25   ;;  %s11392_s24 = sphi %s11448_s24, %s14937_s24  }
   0x4   : > { %s11473_s30 = sadd.s32 1, %s11404_s27   ;;  %s179_s8 = sadd.s32 1, %s11400_s26 }
   0x5   : > { %s176_s9 = ssub.s32 %s11404_s27, %s11473_s30  ;;  %p189_p0 = scmp.ne.s32.totalorder %s11400_s26, %s11396_s25 }
   0x6   : > { %p177_p1 = scmp.eq.s32.totalorder %s176_s9, 0  ;;  %p190_p2 = scmp.eq.s32.totalorder %s11469_s28, 1 }
   0x7   : > { %p195_p3 = scmp.ne.s32.totalorder %s11396_s25, %s11392_s24  ;;  %p196_p4 = scmp.eq.s32.totalorder %s9656_s29, 1 }
   0x8   : > { %s11484_s10 = scalar_select %p177_p1, %s11400_s26, %s179_s8  }
   0x9   : > { %p11486_p5 = por %p190_p2, %p189_p0  ;;  %p11490_p6 = por %p196_p4, %p195_p3 }
   0xa   : > { %p9659_p7 = scmp.ge.s32.totalorder %s11404_s27, 1  ;;  %p240_p8 = scmp.lt.s32.totalorder %s11404_s27, 3 }
   0xc   : > { %p241_p9 = pnand %p9659_p7, %p240_p8 }
   0xe   : > { %244 = sbr.rel (%p241_p9) target bundleno = 2752 (0xac0), region = 48 }
  0x13   : > { %v9863_v0 = vld [vmem:[%s14534_s1 + $0x8] sm:$0xf]  ;;  %v11147_v1 = vld [vmem:[%s14534_s1 + $0x8] sm:$0x10]  ;;  %vm832_vm0 = vcmask 1043456   ;;  %vm833_vm1 = vcmask 1044480   ;;  %s9597_s19 = scalar_lea.hbm %s14540_s7, %s11469_s28 }
  0x14   : > { %v9864_v2 = vor.u32 %v11147_v1, %v9863_v0  ;;  %p271_p10 = scmp.lt.s32.totalorder %s11469_s28, 1  ;;  %v11406_v3 = vmov 65535   ;;  %v11146_v7 = vld [vmem:[%s14534_s1] sm:$0xff]  ;;  %vm684_vm2 = vcmask 203776   ;;  %vm277_vm3 = vcmask 130048   ;;  %v11149_v26 = vld [vmem:[%s14536_s3 + $0x8] sm:$0xff] }
  0x15   : > { %v834_v4 = vsel %vm832_vm0, 4294967295, %v11406_v3  ;;  %v11531_v16 = vld [vmem:[%s14535_s2] ss:$0 sm:$0xff]  ;;  %v11407_v23 = vmov 0.0   ;;  %v11150_v28 = vld [vmem:[%s14536_s3 + $0x10] sm:$0xff]  ;;  %1983 = vmatpush.bf16.msra.mxu1 %v11149_v26  ;;  %vm320_vm4 = vcmask 128000  }
  0x16   : > { %v835_v5 = vsel %vm833_vm1, %v834_v4, 0  ;;  %s272_s17 = scalar_select %p271_p10, %s11469_s28, 1  ;;  %278 = vst.msk [vmem:[#allocation3] sm:$0xff] %vm277_vm3, %v11407_v23  ;;  %v11148_v27 = vld [vmem:[%s14536_s3] sm:$0xff]  ;;  %2320 = vmatpush.bf16.msra.mxu3 %v11150_v28  ;;  %vm1320_vm5 = vcmask 124928   ;;  %vm7474_vm6 = vcmask 261120  }
  0x17   : > { %v837_v6 = vand.u32 %v9864_v2, %v835_v5  ;;  %279 = vst.msk [vmem:[#allocation3 + $0x8] sm:$0xff] %vm277_vm3, %v11407_v23  ;;  %2126 = vmatpush.bf16.msra.mxu2 %v11148_v27  ;;  %vm7523_vm7 = vcmask 258048   ;;  %vm7539_vm8 = vcmask 253952   ;;  %s9601_s22 = sshll.u32 %s9597_s19, 4  ;;  %s11362_s14 = scalar_lea.hbm %s14540_s7, 2  ;;  %s9602_s22 = int_to_ptr.hbm [resolvable:$true] %s9601_s22 }
  0x18   : > { %s11271_s18 = smul.u32 392, %s272_s17  ;;  %280 = vst.msk [vmem:[#allocation3 + $0x10] sm:$0xff] %vm277_vm3, %v11407_v23  ;;  %s11356_s8 = sshra.s32 %s9602_s22, 4  ;;  %s11357_s8 = int_to_ptr.hbm [resolvable:$true] %s11356_s8 }
  0x19   : > { %845 = vmatpush.bf16.msra.mxu0 %v837_v6  ;;  %281 = vst.msk [vmem:[#allocation3 + $0x18] sm:$0xff] %vm277_vm3, %v11407_v23  ;;  %s11358_s9 = scalar_lea.hbm %s11357_s8, 1  ;;  %p11363_p0 = scmp.lt.s32.totalorder %s11357_s8, %s14540_s7 }
  0x1a   : > { %s11510_s23 = scalar_lea.vmem %s14533_s0, %s11271_s18  ;;  %282 = vst.msk [vmem:[#allocation3 + $0x20] sm:$0xff] %vm277_vm3, %v11407_v23  ;;  %p11359_p11 = scmp.ne.s32.totalorder %s11357_s8, %s11358_s9 }
  0x1b   : > { %v11097_v8 = vld [vmem:[%s11510_s23] sm:$0xff]  ;;  %v11098_v9 = vld [vmem:[%s11510_s23 + $0x8] sm:$0xff]  ;;  %v11099_v10 = vld [vmem:[%s11510_s23 + $0x10] sm:$0xff]  ;;  %283 = vst.msk [vmem:[#allocation3 + $0x28] sm:$0xff] %vm277_vm3, %v11407_v23  ;;  %p11364_p1 = scmp.lt.s32.totalorder %s11362_s14, %s11358_s9 }
  0x1c   : > { %v11100_v11 = vld [vmem:[%s11510_s23 + $0x18] sm:$0xff]  ;;  %v11101_v12 = vld [vmem:[%s11510_s23 + $0x20] sm:$0xff]  ;;  %v11102_v13 = vld [vmem:[%s11510_s23 + $0x28] sm:$0xff]  ;;  %284 = vst.msk [vmem:[#allocation3 + $0x30] sm:$0xff] %vm277_vm3, %v11407_v23  ;;  %p11360_p12 = pnand %p11359_p11, %p11486_p5 }
  0x1d   : > { %846 = vmatpush.bf16.msra.mxu0 %v11146_v7  ;;  %v11103_v14 = vld [vmem:[%s11510_s23 + $0x30] sm:$0xff]  ;;  %v11104_v15 = vld [vmem:[%s11510_s23 + $0x38] sm:$0xff]  ;;  %v11105_v17 = vld [vmem:[%s11510_s23 + $0x40] sm:$0xff]  ;;  %285 = vst.msk [vmem:[#allocation3 + $0x38] sm:$0xff] %vm277_vm3, %v11407_v23  ;;  %p11365_p2 = por %p11364_p1, %p11363_p0 }
  0x1e   : > { %v11106_v25 = vld [vmem:[%s11510_s23 + $0x48] sm:$0xff]  ;;  %v1821_v31 = vld [vmem:[#allocation3] sm:$0xff]  ;;  %v1822_v33 = vld [vmem:[#allocation3 + $0x8] sm:$0xff]  ;;  %286 = vst.msk [vmem:[#allocation3 + $0x40] sm:$0xff] %vm277_vm3, %v11407_v23  ;;  %p11361_p13 = pneg %p11360_p12 }
  0x1f   : > { %v1871_v32 = vld [vmem:[#allocation3 + $0x1] sm:$0xff]  ;;  %v1872_v35 = vld [vmem:[#allocation3 + $0x9] sm:$0xff]  ;;  %v1853_v36 = vpack.c.bf16 %v1822_v33, %v1821_v31  ;;  %287 = vst.msk [vmem:[#allocation3 + $0x48] sm:$0xff] %vm277_vm3, %v11407_v23 }
  0x20   : > { %9865 = vmatmul.msk.bf16.vlgmr.msra.gmra.mxu0 %vm684_vm2, %v11097_v8  ;;  %v2208_v37 = vld [vmem:[#allocation3 + $0x2] sm:$0xff]  ;;  %v2209_v38 = vld [vmem:[#allocation3 + $0xa] sm:$0xff]  ;;  %v1903_v39 = vpack.c.bf16 %v1872_v35, %v1871_v32  ;;  %288 = vst.msk [vmem:[#allocation3 + $0x50] sm:$0xff] %vm277_vm3, %v11407_v23  ;;  %v1824_v51 = vld [vmem:[#allocation3 + $0x18] sm:$0xff]  ;;  %p11366_p3 = pnand %p11365_p2, %p11361_p13 }
  0x21   : > { %v2240_v40 = vpack.c.bf16 %v2209_v38, %v2208_v37  ;;  %9940 = vmatmul.msk.bf16.vlgmr.msra.gmra.mxu2 %vm277_vm3, %v1853_v36  ;;  %289 = vst.msk [vmem:[#allocation3 + $0x58] sm:$0xff] %vm277_vm3, %v11407_v23  ;;  %v11107_v44 = vld [vmem:[%s11510_s23 + $0x50] sm:$0xff]  ;;  %v1873_v47 = vld [vmem:[#allocation3 + $0x11] sm:$0xff]  ;;  %v11108_v3 = vld [vmem:[%s11510_s23 + $0x58] sm:$0xff] }
  0x22   : > { %9920 = vmatmul.msk.bf16.vlgmr.msra.gmra.mxu1 %vm277_vm3, %v1903_v39  ;;  %290 = vst.msk [vmem:[#allocation3 + $0x60] sm:$0xff] %vm277_vm3, %v11407_v23  ;;  %v1874_v48 = vld [vmem:[#allocation3 + $0x19] sm:$0xff]  ;;  %v1823_v49 = vld [vmem:[#allocation3 + $0x10] sm:$0xff] }
  0x23   : > { %9962 = vmatmul.msk.bf16.vlgmr.msra.gmra.mxu3 %vm277_vm3, %v2240_v40  ;;  %291 = vst.msk [vmem:[#allocation3 + $0x68] sm:$0xff] %vm277_vm3, %v11407_v23  ;;  %v1904_v50 = vpack.c.bf16 %v1874_v48, %v1873_v47  ;;  %v2210_v52 = vld [vmem:[#allocation3 + $0x12] sm:$0xff]  ;;  %v1854_v54 = vpack.c.bf16 %v1824_v51, %v1823_v49  ;;  %v2211_v55 = vld [vmem:[#allocation3 + $0x1a] sm:$0xff] }
  0x24   : > { %292 = vst.msk [vmem:[#allocation3 + $0x70] sm:$0xff] %vm277_vm3, %v11407_v23  ;;  %v2241_v56 = vpack.c.bf16 %v2211_v55, %v2210_v52  ;;  %v11109_v32 = vld [vmem:[%s11510_s23 + $0x60] sm:$0xff] }
  0x25   : > { %293 = vst.msk [vmem:[#allocation3 + $0x78] sm:$0xff] %vm277_vm3, %v11407_v23 }
  0x26   : > { %294 = vst.msk [vmem:[#allocation3 + $0x80] sm:$0xff] %vm277_vm3, %v11407_v23 }
  0x27   : > { %295 = vst.msk [vmem:[#allocation3 + $0x88] sm:$0xff] %vm277_vm3, %v11407_v23 }
  0x28   : > { %296 = vst.msk [vmem:[#allocation3 + $0x90] sm:$0xff] %vm277_vm3, %v11407_v23 }
  0x29   : > { %297 = vst.msk [vmem:[#allocation3 + $0x98] sm:$0xff] %vm277_vm3, %v11407_v23 }
  0x2a   : > { %298 = vst.msk [vmem:[#allocation3 + $0xa0] sm:$0xff] %vm277_vm3, %v11407_v23 }
  0x2b   : > { %299 = vst.msk [vmem:[#allocation3 + $0xa8] sm:$0xff] %vm277_vm3, %v11407_v23 }
  0x2c   : > { %300 = vst.msk [vmem:[#allocation3 + $0xb0] sm:$0xff] %vm277_vm3, %v11407_v23 }
  0x2d   : > { %301 = vst.msk [vmem:[#allocation3 + $0xb8] sm:$0xff] %vm277_vm3, %v11407_v23 }
  0x2e   : > { %302 = vst.msk [vmem:[#allocation3 + $0xc0] sm:$0xff] %vm277_vm3, %v11407_v23 }
  0x2f   : > { %303 = vst.msk [vmem:[#allocation3 + $0xc8] sm:$0xff] %vm277_vm3, %v11407_v23 }
  0x30   : > { %9866 = vmatmul.msk.bf16.gmra.mxu0 %vm684_vm2, %v11098_v9  ;;  %304 = vst.msk [vmem:[#allocation3 + $0xd0] sm:$0xff] %vm277_vm3, %v11407_v23 }
  0x31   : > { %9941 = vmatmul.msk.bf16.gmra.mxu2 %vm277_vm3, %v1854_v54  ;;  %305 = vst.msk [vmem:[#allocation3 + $0xd8] sm:$0xff] %vm277_vm3, %v11407_v23 }
  0x32   : > { %9921 = vmatmul.msk.bf16.gmra.mxu1 %vm277_vm3, %v1904_v50  ;;  %306 = vst.msk [vmem:[#allocation3 + $0xe0] sm:$0xff] %vm277_vm3, %v11407_v23 }
  0x33   : > { %9963 = vmatmul.msk.bf16.gmra.mxu3 %vm277_vm3, %v2241_v56  ;;  %307 = vst.msk [vmem:[#allocation3 + $0xe8] sm:$0xff] %vm277_vm3, %v11407_v23 }
  0x34   : > { %308 = vst.msk [vmem:[#allocation3 + $0xf0] sm:$0xff] %vm277_vm3, %v11407_v23 }
  0x35   : > { %309 = vst.msk [vmem:[#allocation3 + $0xf8] sm:$0xff] %vm277_vm3, %v11407_v23 }
  0x36   : > { %310 = vst.msk [vmem:[#allocation3 + $0x100] sm:$0xff] %vm277_vm3, %v11407_v23 }
  0x37   : > { %311 = vst.msk [vmem:[#allocation3 + $0x108] sm:$0xff] %vm277_vm3, %v11407_v23 }
  0x38   : > { %312 = vst.msk [vmem:[#allocation3 + $0x110] sm:$0xff] %vm277_vm3, %v11407_v23 }
  0x39   : > { %313 = vst.msk [vmem:[#allocation3 + $0x118] sm:$0xff] %vm277_vm3, %v11407_v23 }
  0x3a   : > { %314 = vst.msk [vmem:[#allocation3 + $0x120] sm:$0xff] %vm277_vm3, %v11407_v23 }
  0x3b   : > { %315 = vst.msk [vmem:[#allocation3 + $0x128] sm:$0xff] %vm277_vm3, %v11407_v23 }
  0x3c   : > { %316 = vst.msk [vmem:[#allocation3 + $0x130] sm:$0xff] %vm277_vm3, %v11407_v23 }
  0x3d   : > { %317 = vst.msk [vmem:[#allocation3 + $0x138] sm:$0xff] %vm277_vm3, %v11407_v23 }
  0x3e   : > { %318 = vst.msk [vmem:[#allocation3 + $0x140] sm:$0xff] %vm277_vm3, %v11407_v23 }
  0x40   : > { %9867 = vmatmul.msk.bf16.gmra.mxu0 %vm684_vm2, %v11099_v10 }
  0x50   : > { %9868 = vmatmul.msk.bf16.gmra.mxu0 %vm684_vm2, %v11100_v11 }
  0x60   : > { %9869 = vmatmul.msk.bf16.gmra.mxu0 %vm684_vm2, %v11101_v12 }
  0x70   : > { %9870 = vmatmul.msk.bf16.gmra.mxu0 %vm684_vm2, %v11102_v13 }
  0x80   : > { %9871 = vmatmul.msk.bf16.gmra.mxu0 %vm684_vm2, %v11103_v14 }
  0x90   : > { %9872 = vmatmul.msk.bf16.gmra.mxu0 %vm684_vm2, %v11104_v15 }
  0x9d   : > { %v848_v18 = vpop.f32.mrf.mxu0 }
  0x9e   : > { %v849_v19 = vadd.f32 %v11531_v16, %v848_v18 }
  0xa0   : > { %v1093_v20 = vmax.f32 %v849_v19, 0.0  ;;  %9873 = vmatmul.msk.bf16.gmra.mxu0 %vm684_vm2, %v11105_v17 }
  0xa2   : > { %1191 = vst.msk [vmem:[#allocation2] sm:$0xff] %vm277_vm3, %v1093_v20 }
  0xa5   : > { %v850_v21 = vpop.f32.mrf.mxu0 }
  0xa6   : > { %v851_v22 = vadd.f32 %v11531_v16, %v850_v21 }
  0xa8   : > { %v1094_v24 = vmax.f32 %v851_v22, 0.0 }
  0xa9   : > { %v1289_v61 = vld [vmem:[#allocation2] sm:$0xff] }
  0xaa   : > { %1192 = vst.msk [vmem:[#allocation2 + $0x8] sm:$0xff] %vm277_vm3, %v1094_v24 }
  0xad   : > { %v853_v29 = vpop.f32.mrf.mxu0 }
  0xae   : > { %v854_v30 = vadd.f32 %v11531_v16, %v853_v29 }
  0xb0   : > { %v1095_v34 = vmax.f32 %v854_v30, 0.0  ;;  %9874 = vmatmul.msk.bf16.gmra.mxu0 %vm684_vm2, %v11106_v25 }
  0xb1   : > { %v1293_v59 = vld [vmem:[#allocation2 + $0x1] sm:$0xff] }
  0xb2   : > { %1193 = vst.msk [vmem:[#allocation2 + $0x10] sm:$0xff] %vm277_vm3, %v1095_v34  ;;  %v1297_v0 = vmax.f32 %v1289_v61, %v1293_v59  ;;  %v1290_v8 = vld [vmem:[#allocation2 + $0x8] sm:$0xff] }
  0xb5   : > { %v855_v41 = vpop.f32.mrf.mxu0 }
  0xb6   : > { %v856_v42 = vadd.f32 %v11531_v16, %v855_v41  ;;  %v11110_v41 = vld [vmem:[%s11510_s23 + $0x68] sm:$0xff] }
  0xb8   : > { %v1096_v43 = vmax.f32 %v856_v42, 0.0 }
  0xb9   : > { %v1294_v6 = vld [vmem:[#allocation2 + $0x9] sm:$0xff] }
  0xba   : > { %1194 = vst.msk [vmem:[#allocation2 + $0x18] sm:$0xff] %vm277_vm3, %v1096_v43  ;;  %v1298_v11 = vmax.f32 %v1290_v8, %v1294_v6  ;;  %v1291_v19 = vld [vmem:[#allocation2 + $0x10] sm:$0xff] }
  0xbd   : > { %v858_v45 = vpop.f32.mrf.mxu0 }
  0xbe   : > { %v859_v46 = vadd.f32 %v11531_v16, %v858_v45 }
  0xc0   : > { %v1097_v53 = vmax.f32 %v859_v46, 0.0  ;;  %9875 = vmatmul.msk.bf16.gmra.mxu0 %vm684_vm2, %v11107_v44 }
  0xc1   : > { %v1292_v17 = vld [vmem:[#allocation2 + $0x18] sm:$0x7] }
  0xc2   : > { %1195 = vst.msk [vmem:[#allocation2 + $0x20] sm:$0xff] %vm277_vm3, %v1097_v53  ;;  %v1295_v18 = vld [vmem:[#allocation2 + $0x11] sm:$0xff]  ;;  %v1296_v20 = vld [vmem:[#allocation2 + $0x19] sm:$0x7] }
  0xc3   : > { %v1299_v26 = vmax.f32 %v1291_v19, %v1295_v18  ;;  %v1300_v29 = vmax.f32 %v1292_v17, %v1296_v20 }
  0xc5   : > { %v860_v57 = vpop.f32.mrf.mxu0 }
  0xc6   : > { %v861_v58 = vadd.f32 %v11531_v16, %v860_v57  ;;  %v11111_v57 = vld [vmem:[%s11510_s23 + $0x70] sm:$0xff] }
  0xc8   : > { %v1098_v60 = vmax.f32 %v861_v58, 0.0 }
  0xc9   : > { %v1301_v62 = vld [vmem:[#allocation2 + $0x1c] sm:$0xff] }
  0xca   : > { %v1305_v63 = vld [vmem:[#allocation2 + $0x1d] sm:$0xff]  ;;  %1196 = vst.msk [vmem:[#allocation2 + $0x28] sm:$0xff] %vm277_vm3, %v1098_v60 }
  0xcb   : > { %v1309_v1 = vmax.f32 %v1301_v62, %v1305_v63 }
  0xcd   : > { %v1313_v2 = vmax.f32 %v1297_v0, %v1309_v1  ;;  %v863_v4 = vpop.f32.mrf.mxu0 }
  0xce   : > { %v864_v5 = vadd.f32 %v11531_v16, %v863_v4 }
  0xcf   : > { %1317 = vst.msk [vmem:[#allocation2] sm:$0xff] %vm277_vm3, %v1313_v2 }
  0xd0   : > { %v1099_v7 = vmax.f32 %v864_v5, 0.0  ;;  %9876 = vmatmul.msk.bf16.gmra.mxu0 %vm684_vm2, %v11108_v3 }
  0xd1   : > { %v1302_v9 = vld [vmem:[#allocation2 + $0x24] sm:$0xff] }
  0xd2   : > { %v1306_v10 = vld [vmem:[#allocation2 + $0x25] sm:$0xff]  ;;  %1197 = vst.msk [vmem:[#allocation2 + $0x30] sm:$0xff] %vm277_vm3, %v1099_v7 }
  0xd3   : > { %v1310_v12 = vmax.f32 %v1302_v9, %v1306_v10 }
  0xd5   : > { %v1314_v13 = vmax.f32 %v1298_v11, %v1310_v12  ;;  %v865_v14 = vpop.f32.mrf.mxu0 }
  0xd6   : > { %v866_v15 = vadd.f32 %v11531_v16, %v865_v14  ;;  %v11112_v14 = vld [vmem:[%s11510_s23 + $0x78] sm:$0xff] }
  0xd7   : > { %1318 = vst.msk [vmem:[#allocation2 + $0x8] sm:$0xff] %vm277_vm3, %v1314_v13 }
  0xd8   : > { %v1100_v21 = vmax.f32 %v866_v15, 0.0 }
  0xd9   : > { %v1303_v22 = vld [vmem:[#allocation2 + $0x2c] sm:$0xff]  ;;  %v1304_v24 = vld [vmem:[#allocation2 + $0x34] sm:$0x7] }
  0xda   : > { %v1307_v25 = vld [vmem:[#allocation2 + $0x2d] sm:$0xff]  ;;  %v1308_v27 = vld [vmem:[#allocation2 + $0x35] sm:$0x7]  ;;  %1198 = vst.msk [vmem:[#allocation2 + $0x38] sm:$0xff] %vm277_vm3, %v1100_v21 }
  0xdb   : > { %v1311_v28 = vmax.f32 %v1303_v22, %v1307_v25  ;;  %v1312_v30 = vmax.f32 %v1304_v24, %v1308_v27 }
  0xdd   : > { %v1315_v31 = vmax.f32 %v1299_v26, %v1311_v28  ;;  %v1316_v33 = vmax.f32 %v1300_v29, %v1312_v30  ;;  %v868_v23 = vpop.f32.mrf.mxu0 }
  0xde   : > { %v1322_v34 = vld [vmem:[#allocation2] ss:$2 sm:$0xff]  ;;  %v869_v35 = vadd.f32 %v11531_v16, %v868_v23 }
  0xdf   : > { %1319 = vst.msk [vmem:[#allocation2 + $0x10] sm:$0xff] %vm277_vm3, %v1315_v31 }
  0xe0   : > { %1321 = vst.msk [vmem:[#allocation2 + $0x18] sm:$0x7] %vm1320_vm5, %v1316_v33  ;;  %v1101_v36 = vmax.f32 %v869_v35, 0.0  ;;  %9877 = vmatmul.msk.bf16.gmra.mxu0 %vm684_vm2, %v11109_v32 }
  0xe1   : > { %1325 = vst.msk [vmem:[#allocation3 + $0x26] sm:$0xff] %vm277_vm3, %v1322_v34  ;;  %v1327_v62 = vld [vmem:[#allocation2 + $0x38] sm:$0xff] }
  0xe2   : > { %1199 = vst.msk [vmem:[#allocation2 + $0x40] sm:$0xff] %vm277_vm3, %v1101_v36 }
  0xe5   : > { %v870_v37 = vpop.f32.mrf.mxu0 }
  0xe6   : > { %v871_v38 = vadd.f32 %v11531_v16, %v870_v37  ;;  %v11113_v37 = vld [vmem:[%s11510_s23 + $0x80] sm:$0xff] }
  0xe7   : > { %v1324_v39 = vld [vmem:[#allocation2 + $0x10] ss:$2 sm:$0x3f] }
  0xe8   : > { %1326 = vst.msk [vmem:[#allocation3 + $0x2e] sm:$0x3f] %vm320_vm4, %v1324_v39  ;;  %v1102_v40 = vmax.f32 %v871_v38, 0.0  ;;  %v1875_v43 = vld [vmem:[#allocation3 + $0x21] sm:$0xff] }
  0xe9   : > { %v1825_v44 = vld [vmem:[#allocation3 + $0x20] sm:$0xff]  ;;  %v1331_v60 = vld [vmem:[#allocation2 + $0x39] sm:$0xff] }
  0xea   : > { %1200 = vst.msk [vmem:[#allocation2 + $0x48] sm:$0xff] %vm277_vm3, %v1102_v40  ;;  %v2212_v45 = vld [vmem:[#allocation3 + $0x22] sm:$0xff]  ;;  %v1335_v1 = vmax.f32 %v1327_v62, %v1331_v60  ;;  %v1328_v8 = vld [vmem:[#allocation2 + $0x40] sm:$0xff]  ;;  %v2128_v60 = vpop.f32.mrf.mxu2 }
  0xed   : > { %v873_v42 = vpop.f32.mrf.mxu0 }
  0xee   : > { %v874_v46 = vadd.f32 %v11531_v16, %v873_v42 }
  0xef   : > { %v1876_v47 = vld [vmem:[#allocation3 + $0x29] sm:$0xff] }
  0xf0   : > { %v1826_v48 = vld [vmem:[#allocation3 + $0x28] sm:$0xff]  ;;  %v1905_v50 = vpack.c.bf16 %v1876_v47, %v1875_v43  ;;  %v1103_v53 = vmax.f32 %v874_v46, 0.0  ;;  %9878 = vmatmul.msk.bf16.gmra.mxu0 %vm684_vm2, %v11110_v41  ;;  %v1827_v41 = vld [vmem:[#allocation3 + $0x30] sm:$0xff] }
  0xf1   : > { %v2213_v49 = vld [vmem:[#allocation3 + $0x2a] sm:$0xff]  ;;  %v1855_v51 = vpack.c.bf16 %v1826_v48, %v1825_v44  ;;  %v1329_v19 = vld [vmem:[#allocation2 + $0x48] sm:$0xff] }
  0xf2   : > { %v2242_v52 = vpack.c.bf16 %v2213_v49, %v2212_v45  ;;  %9922 = vmatmul.msk.bf16.gmra.mxu1 %vm277_vm3, %v1905_v50  ;;  %1201 = vst.msk [vmem:[#allocation2 + $0x50] sm:$0xff] %vm277_vm3, %v1103_v53  ;;  %v1332_v6 = vld [vmem:[#allocation2 + $0x41] sm:$0xff] }
  0xf3   : > { %9942 = vmatmul.msk.bf16.gmra.mxu2 %vm277_vm3, %v1855_v51  ;;  %v1336_v11 = vmax.f32 %v1328_v8, %v1332_v6  ;;  %v11115_v8 = vld [vmem:[%s11510_s23 + $0x90] sm:$0xff] }
  0xf4   : > { %9964 = vmatmul.msk.bf16.gmra.mxu3 %vm277_vm3, %v2242_v52 }
  0xf5   : > { %v875_v54 = vpop.f32.mrf.mxu0 }
  0xf6   : > { %v876_v55 = vadd.f32 %v11531_v16, %v875_v54  ;;  %v11114_v54 = vld [vmem:[%s11510_s23 + $0x88] sm:$0xff] }
  0xf8   : > { %v1104_v56 = vmax.f32 %v876_v55, 0.0 }
  0xf9   : > { %v1333_v18 = vld [vmem:[#allocation2 + $0x49] sm:$0xff]  ;;  %v1334_v21 = vld [vmem:[#allocation2 + $0x51] sm:$0x7] }
  0xfa   : > { %1202 = vst.msk [vmem:[#allocation2 + $0x58] sm:$0xff] %vm277_vm3, %v1104_v56  ;;  %v1330_v20 = vld [vmem:[#allocation2 + $0x50] sm:$0x7]  ;;  %v1337_v27 = vmax.f32 %v1329_v19, %v1333_v18 }
  0xfb   : > { %v1338_v30 = vmax.f32 %v1330_v20, %v1334_v21 }
  0xfd   : > { %v878_v58 = vpop.f32.mrf.mxu0 }
  0xfe   : > { %v879_v59 = vadd.f32 %v11531_v16, %v878_v58  ;;  %v1985_v58 = vpop.f32.mrf.mxu1 }
  0xff   : > { %v2129_v6 = vadd.f32 %v2128_v60, %v1985_v58 }
 0x100   : > { %v1105_v61 = vmax.f32 %v879_v59, 0.0  ;;  %9879 = vmatmul.msk.bf16.gmra.mxu0 %vm684_vm2, %v11111_v57 }
 0x101   : > { %v1339_v63 = vld [vmem:[#allocation2 + $0x54] sm:$0xff] }
 0x102   : > { %v1343_v0 = vld [vmem:[#allocation2 + $0x55] sm:$0xff]  ;;  %1203 = vst.msk [vmem:[#allocation2 + $0x60] sm:$0xff] %vm277_vm3, %v1105_v61 }
 0x103   : > { %v1347_v2 = vmax.f32 %v1339_v63, %v1343_v0  ;;  %v2322_v63 = vpop.f32.mrf.mxu3 }
 0x105   : > { %v1351_v3 = vmax.f32 %v1335_v1, %v1347_v2  ;;  %v880_v4 = vpop.f32.mrf.mxu0 }
 0x106   : > { %v881_v5 = vadd.f32 %v11531_v16, %v880_v4 }
 0x107   : > { %1355 = vst.msk [vmem:[#allocation2 + $0x38] sm:$0xff] %vm277_vm3, %v1351_v3 }
 0x108   : > { %v1106_v7 = vmax.f32 %v881_v5, 0.0 }
 0x109   : > { %v1340_v9 = vld [vmem:[#allocation2 + $0x5c] sm:$0xff] }
 0x10a   : > { %v1344_v10 = vld [vmem:[#allocation2 + $0x5d] sm:$0xff]  ;;  %1204 = vst.msk [vmem:[#allocation2 + $0x68] sm:$0xff] %vm277_vm3, %v1106_v7 }
 0x10b   : > { %v1348_v12 = vmax.f32 %v1340_v9, %v1344_v10  ;;  %v11709_v9 = vadd.f32 %v2322_v63, %v2129_v6  ;;  %v11718_v20 = vpop.f32.mrf.mxu3 }
 0x10d   : > { %v1352_v13 = vmax.f32 %v1336_v11, %v1348_v12  ;;  %v883_v15 = vpop.f32.mrf.mxu0 }
 0x10e   : > { %v884_v17 = vadd.f32 %v11531_v16, %v883_v15 }
 0x10f   : > { %1356 = vst.msk [vmem:[#allocation2 + $0x40] sm:$0xff] %vm277_vm3, %v1352_v13  ;;  %v11713_v13 = vpop.f32.mrf.mxu1 }
 0x110   : > { %v1107_v22 = vmax.f32 %v884_v17, 0.0  ;;  %9880 = vmatmul.msk.bf16.gmra.mxu0 %vm684_vm2, %v11112_v14  ;;  %v11715_v14 = vpop.f32.mrf.mxu2 }
 0x111   : > { %v1341_v24 = vld [vmem:[#allocation2 + $0x64] sm:$0xff]  ;;  %v1342_v25 = vld [vmem:[#allocation2 + $0x6c] sm:$0x7] }
 0x112   : > { %v1345_v26 = vld [vmem:[#allocation2 + $0x65] sm:$0xff]  ;;  %v1346_v28 = vld [vmem:[#allocation2 + $0x6d] sm:$0x7]  ;;  %1205 = vst.msk [vmem:[#allocation2 + $0x70] sm:$0xff] %vm277_vm3, %v1107_v22 }
 0x113   : > { %v1349_v29 = vmax.f32 %v1341_v24, %v1345_v26  ;;  %v1350_v31 = vmax.f32 %v1342_v25, %v1346_v28 }
 0x115   : > { %v1353_v32 = vmax.f32 %v1337_v27, %v1349_v29  ;;  %v1354_v33 = vmax.f32 %v1338_v30, %v1350_v31  ;;  %v885_v23 = vpop.f32.mrf.mxu0 }
 0x116   : > { %v1360_v34 = vld [vmem:[#allocation2 + $0x38] ss:$2 sm:$0xff]  ;;  %v886_v35 = vadd.f32 %v11531_v16, %v885_v23 }
 0x117   : > { %1357 = vst.msk [vmem:[#allocation2 + $0x48] sm:$0xff] %vm277_vm3, %v1353_v32 }
 0x118   : > { %1358 = vst.msk [vmem:[#allocation2 + $0x50] sm:$0x7] %vm1320_vm5, %v1354_v33  ;;  %v1108_v36 = vmax.f32 %v886_v35, 0.0  ;;  %v2133_v35 = vpop.f32.mrf.mxu2 }
 0x119   : > { %1363 = vst.msk [vmem:[#allocation3 + $0x38] sm:$0xff] %vm277_vm3, %v1360_v34  ;;  %v1365_v1 = vld [vmem:[#allocation2 + $0x70] sm:$0xff]  ;;  %v1990_v34 = vpop.f32.mrf.mxu1 }
 0x11a   : > { %1206 = vst.msk [vmem:[#allocation2 + $0x78] sm:$0xff] %vm277_vm3, %v1108_v36 }
 0x11d   : > { %v888_v38 = vpop.f32.mrf.mxu0 }
 0x11e   : > { %v889_v39 = vadd.f32 %v11531_v16, %v888_v38 }
 0x11f   : > { %v1362_v40 = vld [vmem:[#allocation2 + $0x48] ss:$2 sm:$0x3f] }
 0x120   : > { %v1828_v42 = vld [vmem:[#allocation3 + $0x38] sm:$0xff]  ;;  %1364 = vst.msk [vmem:[#allocation3 + $0x40] sm:$0x3f] %vm320_vm4, %v1362_v40  ;;  %v1109_v43 = vmax.f32 %v889_v39, 0.0  ;;  %9881 = vmatmul.msk.bf16.gmra.mxu0 %vm684_vm2, %v11113_v37  ;;  %v2134_v39 = vadd.f32 %v2133_v35, %v1990_v34 }
 0x121   : > { %v1856_v44 = vpack.c.bf16 %v1828_v42, %v1827_v41  ;;  %v1877_v46 = vld [vmem:[#allocation3 + $0x31] sm:$0xff]  ;;  %v1369_v62 = vld [vmem:[#allocation2 + $0x71] sm:$0xff]  ;;  %v2327_v42 = vpop.f32.mrf.mxu3 }
 0x122   : > { %1207 = vst.msk [vmem:[#allocation2 + $0x80] sm:$0xff] %vm277_vm3, %v1109_v43  ;;  %v2214_v49 = vld [vmem:[#allocation3 + $0x32] sm:$0xff]  ;;  %v1373_v4 = vmax.f32 %v1365_v1, %v1369_v62  ;;  %v1366_v17 = vld [vmem:[#allocation2 + $0x78] sm:$0xff] }
 0x123   : > { %9943 = vmatmul.msk.bf16.gmra.mxu2 %vm277_vm3, %v1856_v44  ;;  %v11116_v44 = vld [vmem:[%s11510_s23 + $0x98] sm:$0xff] }
 0x125   : > { %v890_v45 = vpop.f32.mrf.mxu0 }
 0x126   : > { %v891_v47 = vadd.f32 %v11531_v16, %v890_v45  ;;  %v11725_v45 = vadd.f32 %v2327_v42, %v2134_v39 }
 0x127   : > { %v1878_v48 = vld [vmem:[#allocation3 + $0x39] sm:$0xff] }
 0x128   : > { %v2215_v50 = vld [vmem:[#allocation3 + $0x3a] sm:$0xff]  ;;  %v1906_v51 = vpack.c.bf16 %v1878_v48, %v1877_v46  ;;  %v1110_v53 = vmax.f32 %v891_v47, 0.0 }
 0x129   : > { %v2243_v52 = vpack.c.bf16 %v2215_v50, %v2214_v49  ;;  %v1370_v12 = vld [vmem:[#allocation2 + $0x79] sm:$0xff] }
 0x12a   : > { %9923 = vmatmul.msk.bf16.gmra.mxu1 %vm277_vm3, %v1906_v51  ;;  %1208 = vst.msk [vmem:[#allocation2 + $0x88] sm:$0xff] %vm277_vm3, %v1110_v53  ;;  %v1374_v21 = vmax.f32 %v1366_v17, %v1370_v12  ;;  %v1367_v28 = vld [vmem:[#allocation2 + $0x80] sm:$0xff]  ;;  %v11753_v12 = vpop.f32.mrf.mxu2  ;;  %v11118_v17 = vld [vmem:[%s11510_s23 + $0xa8] sm:$0xff] }
 0x12b   : > { %9965 = vmatmul.msk.bf16.gmra.mxu3 %vm277_vm3, %v2243_v52  ;;  %v1879_v52 = vld [vmem:[#allocation3 + $0x41] sm:$0xff] }
 0x12d   : > { %v893_v55 = vpop.f32.mrf.mxu0 }
 0x12e   : > { %v894_v56 = vadd.f32 %v11531_v16, %v893_v55  ;;  %v2216_v55 = vld [vmem:[#allocation3 + $0x42] sm:$0xff] }
 0x130   : > { %v1111_v57 = vmax.f32 %v894_v56, 0.0  ;;  %9882 = vmatmul.msk.bf16.gmra.mxu0 %vm684_vm2, %v11114_v54  ;;  %v1829_v54 = vld [vmem:[#allocation3 + $0x40] sm:$0xff] }
 0x131   : > { %v1371_v27 = vld [vmem:[#allocation2 + $0x81] sm:$0xff]  ;;  %v1372_v30 = vld [vmem:[#allocation2 + $0x89] sm:$0x7] }
 0x132   : > { %1209 = vst.msk [vmem:[#allocation2 + $0x90] sm:$0xff] %vm277_vm3, %v1111_v57  ;;  %v1368_v29 = vld [vmem:[#allocation2 + $0x88] sm:$0x7]  ;;  %v1375_v36 = vmax.f32 %v1367_v28, %v1371_v27 }
 0x133   : > { %v1376_v40 = vmax.f32 %v1368_v29, %v1372_v30 }
 0x135   : > { %v895_v59 = vpop.f32.mrf.mxu0 }
 0x136   : > { %v896_v61 = vadd.f32 %v11531_v16, %v895_v59 }
 0x138   : > { %v1112_v0 = vmax.f32 %v896_v61, 0.0 }
 0x139   : > { %v1377_v2 = vld [vmem:[#allocation2 + $0x8c] sm:$0xff] }
 0x13a   : > { %v1381_v3 = vld [vmem:[#allocation2 + $0x8d] sm:$0xff]  ;;  %1210 = vst.msk [vmem:[#allocation2 + $0x98] sm:$0xff] %vm277_vm3, %v1112_v0  ;;  %v11117_v0 = vld [vmem:[%s11510_s23 + $0xa0] sm:$0xff] }
 0x13b   : > { %v1385_v5 = vmax.f32 %v1377_v2, %v1381_v3 }
 0x13d   : > { %v1389_v7 = vmax.f32 %v1373_v4, %v1385_v5  ;;  %v898_v10 = vpop.f32.mrf.mxu0 }
 0x13e   : > { %v899_v11 = vadd.f32 %v11531_v16, %v898_v10 }
 0x13f   : > { %1393 = vst.msk [vmem:[#allocation2 + $0x70] sm:$0xff] %vm277_vm3, %v1389_v7 }
 0x140   : > { %v1113_v15 = vmax.f32 %v899_v11, 0.0  ;;  %9883 = vmatmul.msk.bf16.gmra.mxu0 %vm684_vm2, %v11115_v8  ;;  %v11751_v11 = vpop.f32.mrf.mxu1 }
 0x141   : > { %v1378_v18 = vld [vmem:[#allocation2 + $0x94] sm:$0xff] }
 0x142   : > { %v1382_v19 = vld [vmem:[#allocation2 + $0x95] sm:$0xff]  ;;  %1211 = vst.msk [vmem:[#allocation2 + $0xa0] sm:$0xff] %vm277_vm3, %v1113_v15  ;;  %v11755_v15 = vpop.f32.mrf.mxu3 }
 0x143   : > { %v1386_v22 = vmax.f32 %v1378_v18, %v1382_v19 }
 0x145   : > { %v1390_v24 = vmax.f32 %v1374_v21, %v1386_v22  ;;  %v900_v25 = vpop.f32.mrf.mxu0 }
 0x146   : > { %v901_v26 = vadd.f32 %v11531_v16, %v900_v25 }
 0x147   : > { %1394 = vst.msk [vmem:[#allocation2 + $0x78] sm:$0xff] %vm277_vm3, %v1390_v24 }
 0x148   : > { %v1114_v31 = vmax.f32 %v901_v26, 0.0 }
 0x149   : > { %v1379_v32 = vld [vmem:[#allocation2 + $0x9c] sm:$0xff]  ;;  %v1380_v33 = vld [vmem:[#allocation2 + $0xa4] sm:$0x7] }
 0x14a   : > { %v1383_v23 = vld [vmem:[#allocation2 + $0x9d] sm:$0xff]  ;;  %v1384_v37 = vld [vmem:[#allocation2 + $0xa5] sm:$0x7]  ;;  %1212 = vst.msk [vmem:[#allocation2 + $0xa8] sm:$0xff] %vm277_vm3, %v1114_v31 }
 0x14b   : > { %v1387_v38 = vmax.f32 %v1379_v32, %v1383_v23  ;;  %v1388_v41 = vmax.f32 %v1380_v33, %v1384_v37 }
 0x14d   : > { %v1391_v43 = vmax.f32 %v1375_v36, %v1387_v38  ;;  %v1392_v46 = vmax.f32 %v1376_v40, %v1388_v41  ;;  %v903_v47 = vpop.f32.mrf.mxu0 }
 0x14e   : > { %v1398_v48 = vld [vmem:[#allocation2 + $0x70] ss:$2 sm:$0xff]  ;;  %v904_v49 = vadd.f32 %v11531_v16, %v903_v47 }
 0x14f   : > { %1395 = vst.msk [vmem:[#allocation2 + $0x80] sm:$0xff] %vm277_vm3, %v1391_v43 }
 0x150   : > { %1396 = vst.msk [vmem:[#allocation2 + $0x88] sm:$0x7] %vm1320_vm5, %v1392_v46  ;;  %v1115_v50 = vmax.f32 %v904_v49, 0.0  ;;  %9884 = vmatmul.msk.bf16.gmra.mxu0 %vm684_vm2, %v11116_v44  ;;  %v11119_v44 = vld [vmem:[%s11510_s23 + $0xb0] sm:$0xff] }
 0x151   : > { %1401 = vst.msk [vmem:[#allocation3 + $0x4a] sm:$0xff] %vm277_vm3, %v1398_v48  ;;  %v1403_v24 = vld [vmem:[#allocation2 + $0xa8] sm:$0xff] }
 0x152   : > { %1213 = vst.msk [vmem:[#allocation2 + $0xb0] sm:$0xff] %vm277_vm3, %v1115_v50 }
 0x155   : > { %v905_v51 = vpop.f32.mrf.mxu0 }
 0x156   : > { %v906_v53 = vadd.f32 %v11531_v16, %v905_v51 }
 0x157   : > { %v1400_v56 = vld [vmem:[#allocation2 + $0x80] ss:$2 sm:$0x3f] }
 0x158   : > { %v1880_v57 = vld [vmem:[#allocation3 + $0x49] sm:$0xff]  ;;  %1402 = vst.msk [vmem:[#allocation3 + $0x52] sm:$0x3f] %vm320_vm4, %v1400_v56  ;;  %v1116_v60 = vmax.f32 %v906_v53, 0.0 }
 0x159   : > { %v1830_v58 = vld [vmem:[#allocation3 + $0x48] sm:$0xff]  ;;  %v1907_v61 = vpack.c.bf16 %v1880_v57, %v1879_v52  ;;  %v1407_v21 = vld [vmem:[#allocation2 + $0xa9] sm:$0xff] }
 0x15a   : > { %v2217_v59 = vld [vmem:[#allocation3 + $0x4a] sm:$0xff]  ;;  %v1857_v62 = vpack.c.bf16 %v1830_v58, %v1829_v54  ;;  %1214 = vst.msk [vmem:[#allocation2 + $0xb8] sm:$0xff] %vm277_vm3, %v1116_v60  ;;  %v1411_v27 = vmax.f32 %v1403_v24, %v1407_v21  ;;  %v1404_v38 = vld [vmem:[#allocation2 + $0xb0] sm:$0xff] }
 0x15b   : > { %v2244_v63 = vpack.c.bf16 %v2217_v59, %v2216_v55  ;;  %9924 = vmatmul.msk.bf16.gmra.mxu1 %vm277_vm3, %v1907_v61 }
 0x15c   : > { %9944 = vmatmul.msk.bf16.gmra.mxu2 %vm277_vm3, %v1857_v62 }
 0x15d   : > { %9966 = vmatmul.msk.bf16.gmra.mxu3 %vm277_vm3, %v2244_v63  ;;  %v908_v1 = vpop.f32.mrf.mxu0 }
 0x15e   : > { %v909_v2 = vadd.f32 %v11531_v16, %v908_v1 }
 0x15f   : > { %v11743_v4 = vld [vmem:[#allocation3 + $0x4c] sm:$0xff]  ;;  %v11745_v5 = vld [vmem:[#allocation3 + $0x54] sm:$0xff] }
 0x160   : > { %v1117_v3 = vmax.f32 %v909_v2, 0.0  ;;  %9885 = vmatmul.msk.bf16.gmra.mxu0 %vm684_vm2, %v11117_v0  ;;  %14579 = vst [vmem:[#allocation9_spill] sm:$0xff] %v11743_v4 }
 0x161   : > { %14580 = vst [vmem:[#allocation10_spill] sm:$0xff] %v11745_v5  ;;  %v1408_v35 = vld [vmem:[#allocation2 + $0xb1] sm:$0xff] }
 0x162   : > { %1215 = vst.msk [vmem:[#allocation2 + $0xc0] sm:$0xff] %vm277_vm3, %v1117_v3  ;;  %v1412_v41 = vmax.f32 %v1404_v38, %v1408_v35  ;;  %v1405_v49 = vld [vmem:[#allocation2 + $0xb8] sm:$0xff] }
 0x163   : > { %v11120_v3 = vld [vmem:[%s11510_s23 + $0xb8] sm:$0xff] }
 0x165   : > { %v910_v7 = vpop.f32.mrf.mxu0 }
 0x166   : > { %v911_v8 = vadd.f32 %v11531_v16, %v910_v7 }
 0x168   : > { %v1118_v10 = vmax.f32 %v911_v8, 0.0  ;;  %v1881_v8 = vld [vmem:[#allocation3 + $0x51] sm:$0xff] }
 0x169   : > { %v1409_v48 = vld [vmem:[#allocation2 + $0xb9] sm:$0xff]  ;;  %v1410_v51 = vld [vmem:[#allocation2 + $0xc1] sm:$0x7] }
 0x16a   : > { %1216 = vst.msk [vmem:[#allocation2 + $0xc8] sm:$0xff] %vm277_vm3, %v1118_v10  ;;  %v1406_v50 = vld [vmem:[#allocation2 + $0xc0] sm:$0x7]  ;;  %v1413_v56 = vmax.f32 %v1405_v49, %v1409_v48 }
 0x16b   : > { %v1414_v59 = vmax.f32 %v1406_v50, %v1410_v51 }
 0x16d   : > { %v913_v18 = vpop.f32.mrf.mxu0 }
 0x16e   : > { %v914_v19 = vadd.f32 %v11531_v16, %v913_v18  ;;  %v2218_v18 = vld [vmem:[#allocation3 + $0x52] sm:$0xff] }
 0x16f   : > { %v1995_v30 = vpop.f32.mrf.mxu1 }
 0x170   : > { %v1119_v22 = vmax.f32 %v914_v19, 0.0  ;;  %9886 = vmatmul.msk.bf16.gmra.mxu0 %vm684_vm2, %v11118_v17  ;;  %v1831_v17 = vld [vmem:[#allocation3 + $0x50] sm:$0xff] }
 0x171   : > { %v1415_v25 = vld [vmem:[#allocation2 + $0xc4] sm:$0xff] }
 0x172   : > { %v1419_v26 = vld [vmem:[#allocation2 + $0xc5] sm:$0xff]  ;;  %1217 = vst.msk [vmem:[#allocation2 + $0xd0] sm:$0xff] %vm277_vm3, %v1119_v22 }
 0x173   : > { %v1423_v28 = vmax.f32 %v1415_v25, %v1419_v26 }
 0x175   : > { %v1427_v29 = vmax.f32 %v1411_v27, %v1423_v28  ;;  %v915_v33 = vpop.f32.mrf.mxu0 }
 0x176   : > { %v2138_v31 = vpop.f32.mrf.mxu2  ;;  %v916_v34 = vadd.f32 %v11531_v16, %v915_v33 }
 0x177   : > { %v2139_v32 = vadd.f32 %v2138_v31, %v1995_v30  ;;  %1431 = vst.msk [vmem:[#allocation2 + $0xa8] sm:$0xff] %vm277_vm3, %v1427_v29  ;;  %v2332_v23 = vpop.f32.mrf.mxu3 }
 0x178   : > { %v1120_v37 = vmax.f32 %v916_v34, 0.0 }
 0x179   : > { %v11763_v36 = vadd.f32 %v2332_v23, %v2139_v32  ;;  %v1416_v39 = vld [vmem:[#allocation2 + $0xcc] sm:$0xff]  ;;  %v11121_v23 = vld [vmem:[%s11510_s23 + $0xc0] sm:$0xff] }
 0x17a   : > { %v1420_v40 = vld [vmem:[#allocation2 + $0xcd] sm:$0xff]  ;;  %1218 = vst.msk [vmem:[#allocation2 + $0xd8] sm:$0xff] %vm277_vm3, %v1120_v37  ;;  %v11793_v37 = vpop.f32.mrf.mxu1 }
 0x17b   : > { %v1424_v42 = vmax.f32 %v1416_v39, %v1420_v40 }
 0x17d   : > { %v1428_v43 = vmax.f32 %v1412_v41, %v1424_v42  ;;  %v918_v46 = vpop.f32.mrf.mxu0 }
 0x17e   : > { %v919_v47 = vadd.f32 %v11531_v16, %v918_v46  ;;  %v11795_v38 = vpop.f32.mrf.mxu2 }
 0x17f   : > { %1432 = vst.msk [vmem:[#allocation2 + $0xb0] sm:$0xff] %vm277_vm3, %v1428_v43  ;;  %v11800_v41 = vpop.f32.mrf.mxu3 }
 0x180   : > { %v1121_v52 = vmax.f32 %v919_v47, 0.0  ;;  %9887 = vmatmul.msk.bf16.gmra.mxu0 %vm684_vm2, %v11119_v44 }
 0x181   : > { %v1417_v53 = vld [vmem:[#allocation2 + $0xd4] sm:$0xff]  ;;  %v1418_v54 = vld [vmem:[#allocation2 + $0xdc] sm:$0x7] }
 0x182   : > { %v1421_v55 = vld [vmem:[#allocation2 + $0xd5] sm:$0xff]  ;;  %v1422_v57 = vld [vmem:[#allocation2 + $0xdd] sm:$0x7]  ;;  %1219 = vst.msk [vmem:[#allocation2 + $0xe0] sm:$0xff] %vm277_vm3, %v1121_v52 }
 0x183   : > { %v1425_v58 = vmax.f32 %v1417_v53, %v1421_v55  ;;  %v1426_v60 = vmax.f32 %v1418_v54, %v1422_v57  ;;  %v11122_v57 = vld [vmem:[%s11510_s23 + $0xc8] sm:$0xff] }
 0x185   : > { %v1429_v61 = vmax.f32 %v1413_v56, %v1425_v58  ;;  %v1430_v62 = vmax.f32 %v1414_v59, %v1426_v60  ;;  %v920_v63 = vpop.f32.mrf.mxu0 }
 0x186   : > { %v1436_v0 = vld [vmem:[#allocation2 + $0xa8] ss:$2 sm:$0xff]  ;;  %v921_v1 = vadd.f32 %v11531_v16, %v920_v63 }
 0x187   : > { %1433 = vst.msk [vmem:[#allocation2 + $0xb8] sm:$0xff] %vm277_vm3, %v1429_v61 }
 0x188   : > { %1434 = vst.msk [vmem:[#allocation2 + $0xc0] sm:$0x7] %vm1320_vm5, %v1430_v62  ;;  %v1122_v2 = vmax.f32 %v921_v1, 0.0 }
 0x189   : > { %1439 = vst.msk [vmem:[#allocation3 + $0x5c] sm:$0xff] %vm277_vm3, %v1436_v0  ;;  %v1441_v50 = vld [vmem:[#allocation2 + $0xe0] sm:$0xff] }
 0x18a   : > { %1220 = vst.msk [vmem:[#allocation2 + $0xe8] sm:$0xff] %vm277_vm3, %v1122_v2 }
 0x18d   : > { %v923_v7 = vpop.f32.mrf.mxu0 }
 0x18e   : > { %v924_v10 = vadd.f32 %v11531_v16, %v923_v7 }
 0x18f   : > { %v1438_v19 = vld [vmem:[#allocation2 + $0xb8] ss:$2 sm:$0x3f] }
 0x190   : > { %v1882_v21 = vld [vmem:[#allocation3 + $0x59] sm:$0xff]  ;;  %1440 = vst.msk [vmem:[#allocation3 + $0x64] sm:$0x3f] %vm320_vm4, %v1438_v19  ;;  %v1123_v25 = vmax.f32 %v924_v10, 0.0  ;;  %9888 = vmatmul.msk.bf16.gmra.mxu0 %vm684_vm2, %v11120_v3 }
 0x191   : > { %v1832_v22 = vld [vmem:[#allocation3 + $0x58] sm:$0xff]  ;;  %v1908_v26 = vpack.c.bf16 %v1882_v21, %v1881_v8 }
 0x192   : > { %v2219_v24 = vld [vmem:[#allocation3 + $0x5a] sm:$0xff]  ;;  %v1858_v27 = vpack.c.bf16 %v1832_v22, %v1831_v17  ;;  %1221 = vst.msk [vmem:[#allocation2 + $0xf0] sm:$0xff] %vm277_vm3, %v1123_v25  ;;  %v1445_v47 = vld [vmem:[#allocation2 + $0xe1] sm:$0xff] }
 0x193   : > { %v2245_v28 = vpack.c.bf16 %v2219_v24, %v2218_v18  ;;  %9925 = vmatmul.msk.bf16.gmra.mxu1 %vm277_vm3, %v1908_v26  ;;  %v11786_v32 = vld [vmem:[#allocation3 + $0x5c] sm:$0xff]  ;;  %v1449_v53 = vmax.f32 %v1441_v50, %v1445_v47 }
 0x194   : > { %9945 = vmatmul.msk.bf16.gmra.mxu2 %vm277_vm3, %v1858_v27  ;;  %14581 = vst [vmem:[#allocation11_spill] sm:$0xff] %v11786_v32  ;;  %v1442_v63 = vld [vmem:[#allocation2 + $0xe8] sm:$0xff] }
 0x195   : > { %9967 = vmatmul.msk.bf16.gmra.mxu3 %vm277_vm3, %v2245_v28  ;;  %v925_v29 = vpop.f32.mrf.mxu0 }
 0x196   : > { %v926_v30 = vadd.f32 %v11531_v16, %v925_v29 }
 0x197   : > { %v11788_v33 = vld [vmem:[#allocation3 + $0x64] sm:$0xff] }
 0x198   : > { %v1124_v31 = vmax.f32 %v926_v30, 0.0  ;;  %14582 = vst [vmem:[#allocation12_spill] sm:$0xff] %v11788_v33  ;;  %v1883_v47 = vld [vmem:[#allocation3 + $0x61] sm:$0xff] }
 0x199   : > { %v1446_v61 = vld [vmem:[#allocation2 + $0xe9] sm:$0xff]  ;;  %v2220_v50 = vld [vmem:[#allocation3 + $0x62] sm:$0xff] }
 0x19a   : > { %1222 = vst.msk [vmem:[#allocation2 + $0xf8] sm:$0xff] %vm277_vm3, %v1124_v31  ;;  %v1450_v2 = vmax.f32 %v1442_v63, %v1446_v61  ;;  %v1443_v18 = vld [vmem:[#allocation2 + $0xf0] sm:$0xff] }
 0x19d   : > { %v928_v35 = vpop.f32.mrf.mxu0 }
 0x19e   : > { %v929_v39 = vadd.f32 %v11531_v16, %v928_v35  ;;  %v11123_v35 = vld [vmem:[%s11510_s23 + $0xd0] sm:$0xff] }
 0x1a0   : > { %v1125_v40 = vmax.f32 %v929_v39, 0.0  ;;  %9889 = vmatmul.msk.bf16.gmra.mxu0 %vm684_vm2, %v11121_v23 }
 0x1a1   : > { %v1447_v17 = vld [vmem:[#allocation2 + $0xf1] sm:$0xff]  ;;  %v1448_v21 = vld [vmem:[#allocation2 + $0xf9] sm:$0x7] }
 0x1a2   : > { %1223 = vst.msk [vmem:[#allocation2 + $0x100] sm:$0xff] %vm277_vm3, %v1125_v40  ;;  %v1444_v19 = vld [vmem:[#allocation2 + $0xf8] sm:$0x7]  ;;  %v1451_v27 = vmax.f32 %v1443_v18, %v1447_v17 }
 0x1a3   : > { %v1452_v30 = vmax.f32 %v1444_v19, %v1448_v21 }
 0x1a5   : > { %v930_v42 = vpop.f32.mrf.mxu0 }
 0x1a6   : > { %v2143_v43 = vpop.f32.mrf.mxu2  ;;  %v931_v44 = vadd.f32 %v11531_v16, %v930_v42  ;;  %v11819_v42 = vld [vmem:[%s14535_s2] ss:$0 sm:$0xff] }
 0x1a7   : > { %v2000_v46 = vpop.f32.mrf.mxu1 }
 0x1a8   : > { %v2144_v48 = vadd.f32 %v2143_v43, %v2000_v46  ;;  %v1126_v49 = vmax.f32 %v931_v44, 0.0 }
 0x1a9   : > { %v1453_v51 = vld [vmem:[#allocation2 + $0xfc] sm:$0xff] }
 0x1aa   : > { %v1457_v52 = vld [vmem:[#allocation2 + $0xfd] sm:$0xff]  ;;  %1224 = vst.msk [vmem:[#allocation2 + $0x108] sm:$0xff] %vm277_vm3, %v1126_v49  ;;  %v1833_v49 = vld [vmem:[#allocation3 + $0x60] sm:$0xff] }
 0x1ab   : > { %v1461_v54 = vmax.f32 %v1453_v51, %v1457_v52 }
 0x1ad   : > { %v1465_v55 = vmax.f32 %v1449_v53, %v1461_v54  ;;  %v933_v59 = vpop.f32.mrf.mxu0 }
 0x1ae   : > { %v2337_v56 = vpop.f32.mrf.mxu3  ;;  %v934_v60 = vadd.f32 %v11531_v16, %v933_v59 }
 0x1af   : > { %v11805_v58 = vadd.f32 %v2337_v56, %v2144_v48  ;;  %1469 = vst.msk [vmem:[#allocation2 + $0xe0] sm:$0xff] %vm277_vm3, %v1465_v55 }
 0x1b0   : > { %v1127_v62 = vmax.f32 %v934_v60, 0.0  ;;  %9890 = vmatmul.msk.bf16.gmra.mxu0 %vm684_vm2, %v11122_v57  ;;  %v11124_v60 = vld [vmem:[%s11510_s23 + $0xd8] sm:$0xff] }
 0x1b1   : > { %v1454_v0 = vld [vmem:[#allocation2 + $0x104] sm:$0xff] }
 0x1b2   : > { %v1458_v1 = vld [vmem:[#allocation2 + $0x105] sm:$0xff]  ;;  %1225 = vst.msk [vmem:[#allocation2 + $0x110] sm:$0xff] %vm277_vm3, %v1127_v62 }
 0x1b3   : > { %v1462_v3 = vmax.f32 %v1454_v0, %v1458_v1 }
 0x1b5   : > { %v1466_v7 = vmax.f32 %v1450_v2, %v1462_v3  ;;  %v935_v8 = vpop.f32.mrf.mxu0  ;;  %v11840_v2 = vpop.f32.mrf.mxu1 }
 0x1b6   : > { %v936_v10 = vadd.f32 %v11531_v16, %v935_v8  ;;  %v11847_v19 = vpop.f32.mrf.mxu3 }
 0x1b7   : > { %1470 = vst.msk [vmem:[#allocation2 + $0xe8] sm:$0xff] %vm277_vm3, %v1466_v7  ;;  %v11844_v7 = vpop.f32.mrf.mxu2 }
 0x1b8   : > { %v1128_v22 = vmax.f32 %v936_v10, 0.0 }
 0x1b9   : > { %v1455_v24 = vld [vmem:[#allocation2 + $0x10c] sm:$0xff]  ;;  %v1456_v25 = vld [vmem:[#allocation2 + $0x114] sm:$0x7] }
 0x1ba   : > { %v1459_v26 = vld [vmem:[#allocation2 + $0x10d] sm:$0xff]  ;;  %v1460_v28 = vld [vmem:[#allocation2 + $0x115] sm:$0x7]  ;;  %1226 = vst.msk [vmem:[#allocation2 + $0x118] sm:$0xff] %vm277_vm3, %v1128_v22 }
 0x1bb   : > { %v1463_v29 = vmax.f32 %v1455_v24, %v1459_v26  ;;  %v1464_v31 = vmax.f32 %v1456_v25, %v1460_v28  ;;  %v11125_v25 = vld [vmem:[%s11510_s23 + $0xe0] sm:$0xff] }
 0x1bd   : > { %v1467_v23 = vmax.f32 %v1451_v27, %v1463_v29  ;;  %v1468_v39 = vmax.f32 %v1452_v30, %v1464_v31  ;;  %v938_v16 = vpop.f32.mrf.mxu0 }
 0x1be   : > { %v1474_v40 = vld [vmem:[#allocation2 + $0xe0] ss:$2 sm:$0xff]  ;;  %v939_v43 = vadd.f32 %v11819_v42, %v938_v16 }
 0x1bf   : > { %1471 = vst.msk [vmem:[#allocation2 + $0xf0] sm:$0xff] %vm277_vm3, %v1467_v23 }
 0x1c0   : > { %1472 = vst.msk [vmem:[#allocation2 + $0xf8] sm:$0x7] %vm1320_vm5, %v1468_v39  ;;  %v1129_v44 = vmax.f32 %v939_v43, 0.0  ;;  %9891 = vmatmul.msk.bf16.gmra.mxu0 %vm684_vm2, %v11123_v35 }
 0x1c1   : > { %1477 = vst.msk [vmem:[#allocation3 + $0x6e] sm:$0xff] %vm277_vm3, %v1474_v40  ;;  %v1479_v39 = vld [vmem:[#allocation2 + $0x118] sm:$0xff] }
 0x1c2   : > { %1227 = vst.msk [vmem:[#allocation2 + $0x120] sm:$0xff] %vm277_vm3, %v1129_v44 }
 0x1c5   : > { %v940_v46 = vpop.f32.mrf.mxu0 }
 0x1c6   : > { %v941_v48 = vadd.f32 %v11819_v42, %v940_v46 }
 0x1c7   : > { %v1476_v51 = vld [vmem:[#allocation2 + $0xf0] ss:$2 sm:$0x3f] }
 0x1c8   : > { %v1884_v52 = vld [vmem:[#allocation3 + $0x69] sm:$0xff]  ;;  %1478 = vst.msk [vmem:[#allocation3 + $0x76] sm:$0x3f] %vm320_vm4, %v1476_v51  ;;  %v1130_v55 = vmax.f32 %v941_v48, 0.0 }
 0x1c9   : > { %v1834_v53 = vld [vmem:[#allocation3 + $0x68] sm:$0xff]  ;;  %v1909_v56 = vpack.c.bf16 %v1884_v52, %v1883_v47  ;;  %v1480_v51 = vld [vmem:[#allocation2 + $0x120] sm:$0xff] }
 0x1ca   : > { %v2221_v54 = vld [vmem:[#allocation3 + $0x6a] sm:$0xff]  ;;  %v1859_v57 = vpack.c.bf16 %v1834_v53, %v1833_v49  ;;  %1228 = vst.msk [vmem:[#allocation2 + $0x128] sm:$0xff] %vm277_vm3, %v1130_v55 }
 0x1cb   : > { %v2246_v59 = vpack.c.bf16 %v2221_v54, %v2220_v50  ;;  %9926 = vmatmul.msk.bf16.gmra.mxu1 %vm277_vm3, %v1909_v56  ;;  %v11836_v0 = vld [vmem:[#allocation3 + $0x6c] sm:$0xff] }
 0x1cc   : > { %9946 = vmatmul.msk.bf16.gmra.mxu2 %vm277_vm3, %v1859_v57  ;;  %14583 = vst [vmem:[#allocation13_spill] sm:$0xff] %v11836_v0  ;;  %v1483_v30 = vld [vmem:[#allocation2 + $0x119] sm:$0xff]  ;;  %v11126_v57 = vld [vmem:[%s11510_s23 + $0xe8] sm:$0xff] }
 0x1cd   : > { %9968 = vmatmul.msk.bf16.gmra.mxu3 %vm277_vm3, %v2246_v59  ;;  %v943_v61 = vpop.f32.mrf.mxu0  ;;  %v1487_v43 = vmax.f32 %v1479_v39, %v1483_v30 }
 0x1ce   : > { %v944_v62 = vadd.f32 %v11819_v42, %v943_v61 }
 0x1cf   : > { %v11838_v1 = vld [vmem:[#allocation3 + $0x74] sm:$0xff] }
 0x1d0   : > { %v1131_v63 = vmax.f32 %v944_v62, 0.0  ;;  %9892 = vmatmul.msk.bf16.gmra.mxu0 %vm684_vm2, %v11124_v60  ;;  %14584 = vst [vmem:[#allocation14_spill] sm:$0xff] %v11838_v1  ;;  %v1835_v10 = vld [vmem:[#allocation3 + $0x70] sm:$0xff]  ;;  %v1836_v17 = vld [vmem:[#allocation3 + $0x78] sm:$0xff] }
 0x1d1   : > { %v1860_v22 = vpack.c.bf16 %v1836_v17, %v1835_v10  ;;  %v1484_v49 = vld [vmem:[#allocation2 + $0x121] sm:$0xff] }
 0x1d2   : > { %1229 = vst.msk [vmem:[#allocation2 + $0x130] sm:$0xff] %vm277_vm3, %v1131_v63  ;;  %v1488_v54 = vmax.f32 %v1480_v51, %v1484_v49  ;;  %v1481_v62 = vld [vmem:[#allocation2 + $0x128] sm:$0xff] }
 0x1d5   : > { %v945_v8 = vpop.f32.mrf.mxu0 }
 0x1d6   : > { %v946_v18 = vadd.f32 %v11819_v42, %v945_v8 }
 0x1d8   : > { %v1132_v21 = vmax.f32 %v946_v18, 0.0  ;;  %v2005_v24 = vpop.f32.mrf.mxu1 }
 0x1d9   : > { %v1485_v61 = vld [vmem:[#allocation2 + $0x129] sm:$0xff]  ;;  %v1486_v8 = vld [vmem:[#allocation2 + $0x131] sm:$0x7] }
 0x1da   : > { %1230 = vst.msk [vmem:[#allocation2 + $0x138] sm:$0xff] %vm277_vm3, %v1132_v21  ;;  %v1482_v63 = vld [vmem:[#allocation2 + $0x130] sm:$0x7] }
 0x1dc   : > { %9947 = vmatmul.msk.bf16.gmra.mxu2 %vm277_vm3, %v1860_v22  ;;  %v1489_v22 = vmax.f32 %v1481_v62, %v1485_v61 }
 0x1dd   : > { %v948_v27 = vpop.f32.mrf.mxu0 }
 0x1de   : > { %v949_v29 = vadd.f32 %v11819_v42, %v948_v27 }
 0x1df   : > { %v2148_v26 = vpop.f32.mrf.mxu2 }
 0x1e0   : > { %v2149_v28 = vadd.f32 %v2148_v26, %v2005_v24  ;;  %v2342_v31 = vpop.f32.mrf.mxu3  ;;  %v1133_v35 = vmax.f32 %v949_v29, 0.0  ;;  %9893 = vmatmul.msk.bf16.gmra.mxu0 %vm684_vm2, %v11125_v25  ;;  %v1490_v26 = vmax.f32 %v1482_v63, %v1486_v8  ;;  %v11884_v62 = vpop.f32.mrf.mxu1  ;;  %v11128_v63 = vld [vmem:[%s11510_s23 + $0xf8] sm:$0xff] }
 0x1e1   : > { %v1491_v16 = vld [vmem:[#allocation2 + $0x134] sm:$0xff] }
 0x1e2   : > { %v11853_v23 = vadd.f32 %v2342_v31, %v2149_v28  ;;  %v1495_v40 = vld [vmem:[#allocation2 + $0x135] sm:$0xff]  ;;  %1231 = vst.msk [vmem:[#allocation2 + $0x140] sm:$0xff] %vm277_vm3, %v1133_v35 }
 0x1e3   : > { %v1499_v44 = vmax.f32 %v1491_v16, %v1495_v40  ;;  %v11127_v16 = vld [vmem:[%s11510_s23 + $0xf0] sm:$0xff] }
 0x1e5   : > { %v1503_v46 = vmax.f32 %v1487_v43, %v1499_v44  ;;  %v950_v47 = vpop.f32.mrf.mxu0  ;;  %v1885_v44 = vld [vmem:[#allocation3 + $0x71] sm:$0xff] }
 0x1e6   : > { %v951_v48 = vadd.f32 %v11819_v42, %v950_v47 }
 0x1e7   : > { %1507 = vst.msk [vmem:[#allocation2 + $0x118] sm:$0xff] %vm277_vm3, %v1503_v46 }
 0x1e8   : > { %v1134_v50 = vmax.f32 %v951_v48, 0.0  ;;  %v2222_v48 = vld [vmem:[#allocation3 + $0x72] sm:$0xff] }
 0x1e9   : > { %v1492_v52 = vld [vmem:[#allocation2 + $0x13c] sm:$0xff] }
 0x1ea   : > { %v1496_v53 = vld [vmem:[#allocation2 + $0x13d] sm:$0xff]  ;;  %1232 = vst.msk [vmem:[#allocation2 + $0x148] sm:$0xff] %vm277_vm3, %v1134_v50 }
 0x1eb   : > { %v1500_v55 = vmax.f32 %v1492_v52, %v1496_v53 }
 0x1ed   : > { %v1504_v56 = vmax.f32 %v1488_v54, %v1500_v55  ;;  %v953_v59 = vpop.f32.mrf.mxu0 }
 0x1ee   : > { %v954_v60 = vadd.f32 %v11819_v42, %v953_v59 }
 0x1ef   : > { %1508 = vst.msk [vmem:[#allocation2 + $0x120] sm:$0xff] %vm277_vm3, %v1504_v56 }
 0x1f0   : > { %v1135_v10 = vmax.f32 %v954_v60, 0.0  ;;  %9894 = vmatmul.msk.bf16.gmra.mxu0 %vm684_vm2, %v11126_v57 }
 0x1f1   : > { %v1493_v17 = vld [vmem:[#allocation2 + $0x144] sm:$0xff]  ;;  %v1494_v18 = vld [vmem:[#allocation2 + $0x14c] sm:$0x7] }
 0x1f2   : > { %v1497_v21 = vld [vmem:[#allocation2 + $0x145] sm:$0xff]  ;;  %v1498_v24 = vld [vmem:[#allocation2 + $0x14d] sm:$0x7]  ;;  %1233 = vst.msk [vmem:[#allocation2 + $0x150] sm:$0xff] %vm277_vm3, %v1135_v10 }
 0x1f3   : > { %v1501_v25 = vmax.f32 %v1493_v17, %v1497_v21  ;;  %v1502_v27 = vmax.f32 %v1494_v18, %v1498_v24  ;;  %v11889_v17 = vpop.f32.mrf.mxu2 }
 0x1f5   : > { %v1505_v28 = vmax.f32 %v1489_v22, %v1501_v25  ;;  %v1506_v29 = vmax.f32 %v1490_v26, %v1502_v27  ;;  %v955_v30 = vpop.f32.mrf.mxu0  ;;  %v11892_v26 = vpop.f32.mrf.mxu3 }
 0x1f6   : > { %v1512_v31 = vld [vmem:[#allocation2 + $0x118] ss:$2 sm:$0xff]  ;;  %v956_v35 = vadd.f32 %v11819_v42, %v955_v30 }
 0x1f7   : > { %1509 = vst.msk [vmem:[#allocation2 + $0x128] sm:$0xff] %vm277_vm3, %v1505_v28 }
 0x1f8   : > { %1510 = vst.msk [vmem:[#allocation2 + $0x130] sm:$0x7] %vm1320_vm5, %v1506_v29  ;;  %v1136_v39 = vmax.f32 %v956_v35, 0.0 }
 0x1f9   : > { %1515 = vst.msk [vmem:[#allocation3 + $0x80] sm:$0xff] %vm277_vm3, %v1512_v31 }
 0x1fa   : > { %1234 = vst.msk [vmem:[#allocation2 + $0x158] sm:$0xff] %vm277_vm3, %v1136_v39 }
 0x1fd   : > { %v958_v40 = vpop.f32.mrf.mxu0 }
 0x1fe   : > { %v959_v43 = vadd.f32 %v11819_v42, %v958_v40 }
 0x1ff   : > { %v1514_v46 = vld [vmem:[#allocation2 + $0x128] ss:$2 sm:$0x3f] }
 0x200   : > { %v1886_v47 = vld [vmem:[#allocation3 + $0x79] sm:$0xff]  ;;  %1516 = vst.msk [vmem:[#allocation3 + $0x88] sm:$0x3f] %vm320_vm4, %v1514_v46  ;;  %v1137_v50 = vmax.f32 %v959_v43, 0.0  ;;  %9895 = vmatmul.msk.bf16.gmra.mxu0 %vm684_vm2, %v11127_v16 }
 0x201   : > { %v2223_v49 = vld [vmem:[#allocation3 + $0x7a] sm:$0xff]  ;;  %v1910_v51 = vpack.c.bf16 %v1886_v47, %v1885_v44 }
 0x202   : > { %v2247_v52 = vpack.c.bf16 %v2223_v49, %v2222_v48  ;;  %1235 = vst.msk [vmem:[#allocation2 + $0x160] sm:$0xff] %vm277_vm3, %v1137_v50  ;;  %v1837_v55 = vld [vmem:[#allocation3 + $0x80] sm:$0xff] }
 0x203   : > { %9927 = vmatmul.msk.bf16.gmra.mxu1 %vm277_vm3, %v1910_v51  ;;  %v11880_v60 = vld [vmem:[#allocation3 + $0x7c] sm:$0xff] }
 0x204   : > { %9969 = vmatmul.msk.bf16.gmra.mxu3 %vm277_vm3, %v2247_v52  ;;  %14585 = vst [vmem:[#allocation15_spill] sm:$0xff] %v11880_v60  ;;  %v1521_v40 = vld [vmem:[#allocation2 + $0x151] sm:$0xff] }
 0x205   : > { %v960_v53 = vpop.f32.mrf.mxu0  ;;  %v1517_v47 = vld [vmem:[#allocation2 + $0x150] sm:$0xff] }
 0x206   : > { %v961_v54 = vadd.f32 %v11819_v42, %v960_v53  ;;  %v1525_v50 = vmax.f32 %v1517_v47, %v1521_v40  ;;  %v11129_v53 = vld [vmem:[%s11510_s23 + $0x100] sm:$0xff] }
 0x207   : > { %v1838_v56 = vld [vmem:[#allocation3 + $0x88] sm:$0xff] }
 0x208   : > { %v1861_v57 = vpack.c.bf16 %v1838_v56, %v1837_v55  ;;  %v1138_v59 = vmax.f32 %v961_v54, 0.0  ;;  %v11882_v61 = vld [vmem:[#allocation3 + $0x84] sm:$0xff] }
 0x209   : > { %14586 = vst [vmem:[#allocation16_spill] sm:$0xff] %v11882_v61  ;;  %v1887_v8 = vld [vmem:[#allocation3 + $0x81] sm:$0xff]  ;;  %v1888_v21 = vld [vmem:[#allocation3 + $0x89] sm:$0xff] }
 0x20a   : > { %9948 = vmatmul.msk.bf16.gmra.mxu2 %vm277_vm3, %v1861_v57  ;;  %1236 = vst.msk [vmem:[#allocation2 + $0x168] sm:$0xff] %vm277_vm3, %v1138_v59  ;;  %v2224_v22 = vld [vmem:[#allocation3 + $0x82] sm:$0xff]  ;;  %v2225_v24 = vld [vmem:[#allocation3 + $0x8a] sm:$0xff]  ;;  %v1911_v28 = vpack.c.bf16 %v1888_v21, %v1887_v8 }
 0x20b   : > { %v2248_v29 = vpack.c.bf16 %v2225_v24, %v2224_v22  ;;  %v1522_v56 = vld [vmem:[#allocation2 + $0x159] sm:$0xff] }
 0x20c   : > { %v1518_v59 = vld [vmem:[#allocation2 + $0x158] sm:$0xff] }
 0x20d   : > { %v963_v18 = vpop.f32.mrf.mxu0 }
 0x20e   : > { %v964_v25 = vadd.f32 %v11819_v42, %v963_v18  ;;  %v1526_v18 = vmax.f32 %v1518_v59, %v1522_v56 }
 0x210   : > { %v1139_v27 = vmax.f32 %v964_v25, 0.0  ;;  %9896 = vmatmul.msk.bf16.gmra.mxu0 %vm684_vm2, %v11128_v63  ;;  %v2010_v30 = vpop.f32.mrf.mxu1 }
 0x212   : > { %1237 = vst.msk [vmem:[#allocation2 + $0x170] sm:$0xff] %vm277_vm3, %v1139_v27  ;;  %v1523_v27 = vld [vmem:[#allocation2 + $0x161] sm:$0xff] }
 0x213   : > { %9928 = vmatmul.msk.bf16.gmra.mxu1 %vm277_vm3, %v1911_v28  ;;  %v1519_v28 = vld [vmem:[#allocation2 + $0x160] sm:$0xff] }
 0x214   : > { %9970 = vmatmul.msk.bf16.gmra.mxu3 %vm277_vm3, %v2248_v29  ;;  %v1520_v29 = vld [vmem:[#allocation2 + $0x168] sm:$0x7]  ;;  %v1527_v40 = vmax.f32 %v1519_v28, %v1523_v27 }
 0x215   : > { %v965_v35 = vpop.f32.mrf.mxu0 }
 0x216   : > { %v966_v16 = vadd.f32 %v11819_v42, %v965_v35 }
 0x217   : > { %v2153_v31 = vpop.f32.mrf.mxu2 }
 0x218   : > { %v2154_v39 = vadd.f32 %v2153_v31, %v2010_v30  ;;  %v2347_v43 = vpop.f32.mrf.mxu3  ;;  %v1140_v46 = vmax.f32 %v966_v16, 0.0  ;;  %v1524_v30 = vld [vmem:[#allocation2 + $0x169] sm:$0x7] }
 0x219   : > { %v1529_v48 = vld [vmem:[#allocation2 + $0x16c] sm:$0xff]  ;;  %v1528_v47 = vmax.f32 %v1520_v29, %v1524_v30 }
 0x21a   : > { %v11899_v44 = vadd.f32 %v2347_v43, %v2154_v39  ;;  %v1533_v49 = vld [vmem:[#allocation2 + $0x16d] sm:$0xff]  ;;  %1238 = vst.msk [vmem:[#allocation2 + $0x178] sm:$0xff] %vm277_vm3, %v1140_v46 }
 0x21b   : > { %v1537_v51 = vmax.f32 %v1529_v48, %v1533_v49 }
 0x21d   : > { %v1541_v52 = vmax.f32 %v1525_v50, %v1537_v51  ;;  %v968_v54 = vpop.f32.mrf.mxu0  ;;  %v11130_v50 = vld [vmem:[%s11510_s23 + $0x108] sm:$0xff] }
 0x21e   : > { %v969_v55 = vadd.f32 %v11819_v42, %v968_v54 }
 0x21f   : > { %1545 = vst.msk [vmem:[#allocation2 + $0x150] sm:$0xff] %vm277_vm3, %v1541_v52 }
 0x220   : > { %v1141_v57 = vmax.f32 %v969_v55, 0.0  ;;  %9897 = vmatmul.msk.bf16.gmra.mxu0 %vm684_vm2, %v11129_v53 }
 0x221   : > { %v1530_v63 = vld [vmem:[#allocation2 + $0x174] sm:$0xff] }
 0x222   : > { %v1534_v8 = vld [vmem:[#allocation2 + $0x175] sm:$0xff]  ;;  %1239 = vst.msk [vmem:[#allocation2 + $0x180] sm:$0xff] %vm277_vm3, %v1141_v57 }
 0x223   : > { %v1538_v21 = vmax.f32 %v1530_v63, %v1534_v8  ;;  %v11131_v8 = vld [vmem:[%s11510_s23 + $0x110] sm:$0xff] }
 0x225   : > { %v1542_v22 = vmax.f32 %v1526_v18, %v1538_v21  ;;  %v970_v24 = vpop.f32.mrf.mxu0 }
 0x226   : > { %v971_v25 = vadd.f32 %v11819_v42, %v970_v24 }
 0x227   : > { %1546 = vst.msk [vmem:[#allocation2 + $0x158] sm:$0xff] %vm277_vm3, %v1542_v22 }
 0x228   : > { %v1142_v31 = vmax.f32 %v971_v25, 0.0 }
 0x229   : > { %v1531_v35 = vld [vmem:[#allocation2 + $0x17c] sm:$0xff]  ;;  %v1532_v39 = vld [vmem:[#allocation2 + $0x184] sm:$0x7] }
 0x22a   : > { %v1535_v16 = vld [vmem:[#allocation2 + $0x17d] sm:$0xff]  ;;  %v1536_v43 = vld [vmem:[#allocation2 + $0x185] sm:$0x7]  ;;  %1240 = vst.msk [vmem:[#allocation2 + $0x188] sm:$0xff] %vm277_vm3, %v1142_v31 }
 0x22b   : > { %v1539_v46 = vmax.f32 %v1531_v35, %v1535_v16  ;;  %v1540_v48 = vmax.f32 %v1532_v39, %v1536_v43  ;;  %v11931_v43 = vpop.f32.mrf.mxu1 }
 0x22d   : > { %v1543_v49 = vmax.f32 %v1527_v40, %v1539_v46  ;;  %v1544_v51 = vmax.f32 %v1528_v47, %v1540_v48  ;;  %v973_v52 = vpop.f32.mrf.mxu0  ;;  %v11935_v47 = vpop.f32.mrf.mxu2 }
 0x22e   : > { %v1550_v53 = vld [vmem:[#allocation2 + $0x150] ss:$2 sm:$0xff]  ;;  %v974_v54 = vadd.f32 %v11819_v42, %v973_v52 }
 0x22f   : > { %1547 = vst.msk [vmem:[#allocation2 + $0x160] sm:$0xff] %vm277_vm3, %v1543_v49 }
 0x230   : > { %1548 = vst.msk [vmem:[#allocation2 + $0x168] sm:$0x7] %vm1320_vm5, %v1544_v51  ;;  %v1143_v55 = vmax.f32 %v974_v54, 0.0  ;;  %9898 = vmatmul.msk.bf16.gmra.mxu0 %vm684_vm2, %v11130_v50  ;;  %v11938_v50 = vpop.f32.mrf.mxu3 }
 0x231   : > { %1553 = vst.msk [vmem:[#allocation3 + $0x92] sm:$0xff] %vm277_vm3, %v1550_v53  ;;  %v11132_v53 = vld [vmem:[%s11510_s23 + $0x118] sm:$0xff] }
 0x232   : > { %1241 = vst.msk [vmem:[#allocation2 + $0x190] sm:$0xff] %vm277_vm3, %v1143_v55 }
 0x235   : > { %v975_v56 = vpop.f32.mrf.mxu0 }
 0x236   : > { %v976_v57 = vadd.f32 %v11819_v42, %v975_v56 }
 0x237   : > { %v1552_v59 = vld [vmem:[#allocation2 + $0x160] ss:$2 sm:$0x3f] }
 0x238   : > { %1554 = vst.msk [vmem:[#allocation3 + $0x9a] sm:$0x3f] %vm320_vm4, %v1552_v59  ;;  %v1144_v63 = vmax.f32 %v976_v57, 0.0  ;;  %v1889_v21 = vld [vmem:[#allocation3 + $0x91] sm:$0xff] }
 0x239   : > { %v1839_v22 = vld [vmem:[#allocation3 + $0x90] sm:$0xff]  ;;  %v1559_v59 = vld [vmem:[#allocation2 + $0x189] sm:$0xff] }
 0x23a   : > { %1242 = vst.msk [vmem:[#allocation2 + $0x198] sm:$0xff] %vm277_vm3, %v1144_v63  ;;  %v2226_v24 = vld [vmem:[#allocation3 + $0x92] sm:$0xff] }
 0x23b   : > { %v11927_v16 = vld [vmem:[#allocation3 + $0x8c] sm:$0xff] }
 0x23c   : > { %14587 = vst [vmem:[#allocation17_spill] sm:$0xff] %v11927_v16 }
 0x23d   : > { %v978_v18 = vpop.f32.mrf.mxu0 }
 0x23e   : > { %v979_v25 = vadd.f32 %v11819_v42, %v978_v18 }
 0x23f   : > { %v1890_v27 = vld [vmem:[#allocation3 + $0x99] sm:$0xff] }
 0x240   : > { %v1840_v28 = vld [vmem:[#allocation3 + $0x98] sm:$0xff]  ;;  %v1912_v30 = vpack.c.bf16 %v1890_v27, %v1889_v21  ;;  %v1145_v39 = vmax.f32 %v979_v25, 0.0  ;;  %9899 = vmatmul.msk.bf16.gmra.mxu0 %vm684_vm2, %v11131_v8 }
 0x241   : > { %v2227_v29 = vld [vmem:[#allocation3 + $0x9a] sm:$0xff]  ;;  %v1862_v31 = vpack.c.bf16 %v1840_v28, %v1839_v22 }
 0x242   : > { %v2249_v35 = vpack.c.bf16 %v2227_v29, %v2226_v24  ;;  %9929 = vmatmul.msk.bf16.gmra.mxu1 %vm277_vm3, %v1912_v30  ;;  %1243 = vst.msk [vmem:[#allocation2 + $0x1a0] sm:$0xff] %vm277_vm3, %v1145_v39  ;;  %v11929_v40 = vld [vmem:[#allocation3 + $0x94] sm:$0xff]  ;;  %v1556_v39 = vld [vmem:[#allocation2 + $0x190] sm:$0xff] }
 0x243   : > { %9949 = vmatmul.msk.bf16.gmra.mxu2 %vm277_vm3, %v1862_v31  ;;  %14588 = vst [vmem:[#allocation18_spill] sm:$0xff] %v11929_v40  ;;  %v1555_v21 = vld [vmem:[#allocation2 + $0x188] sm:$0xff]  ;;  %v1560_v31 = vld [vmem:[#allocation2 + $0x191] sm:$0xff] }
 0x244   : > { %9971 = vmatmul.msk.bf16.gmra.mxu3 %vm277_vm3, %v2249_v35  ;;  %v1563_v25 = vmax.f32 %v1555_v21, %v1559_v59 }
 0x245   : > { %v980_v48 = vpop.f32.mrf.mxu0 }
 0x246   : > { %v981_v49 = vadd.f32 %v11819_v42, %v980_v48 }
 0x248   : > { %v1146_v51 = vmax.f32 %v981_v49, 0.0  ;;  %v2015_v52 = vpop.f32.mrf.mxu1 }
 0x249   : > { %v1561_v59 = vld [vmem:[#allocation2 + $0x199] sm:$0xff]  ;;  %v1562_v21 = vld [vmem:[#allocation2 + $0x1a1] sm:$0x7] }
 0x24a   : > { %1244 = vst.msk [vmem:[#allocation2 + $0x1a8] sm:$0xff] %vm277_vm3, %v1146_v51  ;;  %v1564_v51 = vmax.f32 %v1556_v39, %v1560_v31  ;;  %v11151_v31 = vld [vmem:[%s14536_s3 + $0x18] sm:$0xff] }
 0x24b   : > { %2546 = vmatpush.bf16.msrb.mxu1 %v11151_v31 }
 0x24d   : > { %v983_v55 = vpop.f32.mrf.mxu0 }
 0x24e   : > { %v984_v57 = vadd.f32 %v11819_v42, %v983_v55  ;;  %v11133_v55 = vld [vmem:[%s11510_s23 + $0x120] sm:$0xff] }
 0x24f   : > { %v2158_v54 = vpop.f32.mrf.mxu2 }
 0x250   : > { %v2159_v56 = vadd.f32 %v2158_v54, %v2015_v52  ;;  %v2352_v63 = vpop.f32.mrf.mxu3  ;;  %v1147_v18 = vmax.f32 %v984_v57, 0.0  ;;  %9900 = vmatmul.msk.bf16.gmra.mxu0 %vm684_vm2, %v11132_v53  ;;  %v11152_v53 = vld [vmem:[%s14536_s3 + $0x20] sm:$0xff] }
 0x251   : > { %v1567_v22 = vld [vmem:[#allocation2 + $0x1a4] sm:$0xff]  ;;  %2772 = vmatpush.bf16.msrb.mxu2 %v11152_v53 }
 0x252   : > { %v11943_v8 = vadd.f32 %v2352_v63, %v2159_v56  ;;  %v1571_v24 = vld [vmem:[#allocation2 + $0x1a5] sm:$0xff]  ;;  %1245 = vst.msk [vmem:[#allocation2 + $0x1b0] sm:$0xff] %vm277_vm3, %v1147_v18  ;;  %v1557_v63 = vld [vmem:[#allocation2 + $0x198] sm:$0xff]  ;;  %v1558_v18 = vld [vmem:[#allocation2 + $0x1a0] sm:$0x7] }
 0x253   : > { %v1575_v27 = vmax.f32 %v1567_v22, %v1571_v24  ;;  %v1566_v39 = vmax.f32 %v1558_v18, %v1562_v21  ;;  %v11153_v18 = vld [vmem:[%s14536_s3 + $0x28] sm:$0xff] }
 0x254   : > { %2998 = vmatpush.bf16.msrb.mxu3 %v11153_v18 }
 0x255   : > { %v1579_v28 = vmax.f32 %v1563_v25, %v1575_v27  ;;  %v985_v29 = vpop.f32.mrf.mxu0 }
 0x256   : > { %v986_v30 = vadd.f32 %v11819_v42, %v985_v29 }
 0x257   : > { %1583 = vst.msk [vmem:[#allocation2 + $0x188] sm:$0xff] %vm277_vm3, %v1579_v28  ;;  %v1565_v28 = vmax.f32 %v1557_v63, %v1561_v59 }
 0x258   : > { %v1148_v35 = vmax.f32 %v986_v30, 0.0 }
 0x259   : > { %v1568_v48 = vld [vmem:[#allocation2 + $0x1ac] sm:$0xff] }
 0x25a   : > { %v1572_v49 = vld [vmem:[#allocation2 + $0x1ad] sm:$0xff]  ;;  %1246 = vst.msk [vmem:[#allocation2 + $0x1b8] sm:$0xff] %vm277_vm3, %v1148_v35  ;;  %v11160_v35 = vld [vmem:[%s14536_s3 + $0x60] sm:$0xff] }
 0x25b   : > { %v1576_v52 = vmax.f32 %v1568_v48, %v1572_v49  ;;  %4580 = vmatpush.bf16.msrb.mxu0 %v11160_v35 }
 0x25d   : > { %v1580_v54 = vmax.f32 %v1564_v51, %v1576_v52  ;;  %v988_v56 = vpop.f32.mrf.mxu0 }
 0x25e   : > { %v989_v57 = vadd.f32 %v11819_v42, %v988_v56  ;;  %v11134_v56 = vld [vmem:[%s11510_s23 + $0x128] sm:$0xff] }
 0x25f   : > { %1584 = vst.msk [vmem:[#allocation2 + $0x190] sm:$0xff] %vm277_vm3, %v1580_v54 }
 0x260   : > { %v1149_v22 = vmax.f32 %v989_v57, 0.0  ;;  %9901 = vmatmul.msk.bf16.gmra.mxu0 %vm684_vm2, %v11133_v55 }
 0x261   : > { %v1569_v24 = vld [vmem:[#allocation2 + $0x1b4] sm:$0xff]  ;;  %v1570_v25 = vld [vmem:[#allocation2 + $0x1bc] sm:$0x7] }
 0x262   : > { %v1573_v27 = vld [vmem:[#allocation2 + $0x1b5] sm:$0xff]  ;;  %v1574_v29 = vld [vmem:[#allocation2 + $0x1bd] sm:$0x7]  ;;  %1247 = vst.msk [vmem:[#allocation2 + $0x1c0] sm:$0xff] %vm277_vm3, %v1149_v22  ;;  %v11977_v22 = vpop.f32.mrf.mxu2 }
 0x263   : > { %v1577_v30 = vmax.f32 %v1569_v24, %v1573_v27  ;;  %v1578_v48 = vmax.f32 %v1570_v25, %v1574_v29  ;;  %v11979_v24 = vld [vmem:[#allocation3 + $0x9c] sm:$0xff] }
 0x264   : > { %14589 = vst [vmem:[#allocation19_spill] sm:$0xff] %v11979_v24 }
 0x265   : > { %v1581_v49 = vmax.f32 %v1565_v28, %v1577_v30  ;;  %v1582_v51 = vmax.f32 %v1566_v39, %v1578_v48  ;;  %v990_v52 = vpop.f32.mrf.mxu0 }
 0x266   : > { %v1588_v53 = vld [vmem:[#allocation2 + $0x188] ss:$2 sm:$0xff]  ;;  %v991_v54 = vadd.f32 %v11819_v42, %v990_v52 }
 0x267   : > { %1585 = vst.msk [vmem:[#allocation2 + $0x198] sm:$0xff] %vm277_vm3, %v1581_v49 }
 0x268   : > { %1586 = vst.msk [vmem:[#allocation2 + $0x1a0] sm:$0x7] %vm1320_vm5, %v1582_v51  ;;  %v1150_v55 = vmax.f32 %v991_v54, 0.0  ;;  %v11986_v51 = vpop.f32.mrf.mxu1 }
 0x269   : > { %1591 = vst.msk [vmem:[#allocation3 + $0xa4] sm:$0xff] %vm277_vm3, %v1588_v53 }
 0x26a   : > { %1248 = vst.msk [vmem:[#allocation2 + $0x1c8] sm:$0xff] %vm277_vm3, %v1150_v55 }
 0x26d   : > { %v993_v57 = vpop.f32.mrf.mxu0 }
 0x26e   : > { %v994_v59 = vadd.f32 %v11819_v42, %v993_v57  ;;  %v11135_v57 = vld [vmem:[%s11510_s23 + $0x130] sm:$0xff] }
 0x26f   : > { %v1590_v63 = vld [vmem:[#allocation2 + $0x198] ss:$2 sm:$0x3f] }
 0x270   : > { %1592 = vst.msk [vmem:[#allocation3 + $0xac] sm:$0x3f] %vm320_vm4, %v1590_v63  ;;  %v1151_v21 = vmax.f32 %v994_v59, 0.0  ;;  %9902 = vmatmul.msk.bf16.gmra.mxu0 %vm684_vm2, %v11134_v56  ;;  %v11981_v25 = vld [vmem:[#allocation3 + $0xa4] sm:$0xff]  ;;  %v11992_v56 = vpop.f32.mrf.mxu3  ;;  %v2163_v59 = vpop.f32.mrf.mxu2 }
 0x271   : > { %14590 = vst [vmem:[#allocation20_spill] sm:$0xff] %v11981_v25  ;;  %v1891_v29 = vld [vmem:[#allocation3 + $0xa1] sm:$0xff] }
 0x272   : > { %1249 = vst.msk [vmem:[#allocation2 + $0x1d0] sm:$0xff] %vm277_vm3, %v1151_v21  ;;  %v1841_v30 = vld [vmem:[#allocation3 + $0xa0] sm:$0xff] }
 0x273   : > { %v2228_v31 = vld [vmem:[#allocation3 + $0xa2] sm:$0xff] }
 0x275   : > { %v995_v28 = vpop.f32.mrf.mxu0 }
 0x276   : > { %v996_v35 = vadd.f32 %v11819_v42, %v995_v28 }
 0x277   : > { %v1892_v39 = vld [vmem:[#allocation3 + $0xa9] sm:$0xff] }
 0x278   : > { %v1842_v48 = vld [vmem:[#allocation3 + $0xa8] sm:$0xff]  ;;  %v1913_v52 = vpack.c.bf16 %v1892_v39, %v1891_v29  ;;  %v1152_v55 = vmax.f32 %v996_v35, 0.0 }
 0x279   : > { %v2229_v49 = vld [vmem:[#allocation3 + $0xaa] sm:$0xff]  ;;  %v1863_v53 = vpack.c.bf16 %v1842_v48, %v1841_v30  ;;  %v12001_v48 = vpop.f32.mrf.mxu2 }
 0x27a   : > { %v2250_v54 = vpack.c.bf16 %v2229_v49, %v2228_v31  ;;  %9930 = vmatmul.msk.bf16.gmra.mxu1 %vm277_vm3, %v1913_v52  ;;  %1250 = vst.msk [vmem:[#allocation2 + $0x1d8] sm:$0xff] %vm277_vm3, %v1152_v55  ;;  %v1597_v49 = vld [vmem:[#allocation2 + $0x1c1] sm:$0xff] }
 0x27b   : > { %9950 = vmatmul.msk.bf16.gmra.mxu2 %vm277_vm3, %v1863_v53 }
 0x27c   : > { %9972 = vmatmul.msk.bf16.gmra.mxu3 %vm277_vm3, %v2250_v54  ;;  %v1593_v54 = vld [vmem:[#allocation2 + $0x1c0] sm:$0xff] }
 0x27d   : > { %v998_v63 = vpop.f32.mrf.mxu0 }
 0x27e   : > { %v999_v18 = vadd.f32 %v11819_v42, %v998_v63  ;;  %v1601_v63 = vmax.f32 %v1593_v54, %v1597_v49  ;;  %v1594_v49 = vld [vmem:[#allocation2 + $0x1c8] sm:$0xff] }
 0x280   : > { %v2020_v21 = vpop.f32.mrf.mxu1  ;;  %v1153_v28 = vmax.f32 %v999_v18, 0.0  ;;  %9903 = vmatmul.msk.bf16.gmra.mxu0 %vm684_vm2, %v11135_v57 }
 0x281   : > { %v2164_v29 = vadd.f32 %v2163_v59, %v2020_v21  ;;  %v11136_v21 = vld [vmem:[%s11510_s23 + $0x138] sm:$0xff] }
 0x282   : > { %1251 = vst.msk [vmem:[#allocation2 + $0x1e0] sm:$0xff] %vm277_vm3, %v1153_v28 }
 0x285   : > { %v1000_v31 = vpop.f32.mrf.mxu0 }
 0x286   : > { %v1001_v39 = vadd.f32 %v11819_v42, %v1000_v31  ;;  %v1598_v31 = vld [vmem:[#allocation2 + $0x1c9] sm:$0xff] }
 0x287   : > { %v2357_v30 = vpop.f32.mrf.mxu3 }
 0x288   : > { %v11998_v35 = vadd.f32 %v2357_v30, %v2164_v29  ;;  %v12003_v52 = vpop.f32.mrf.mxu1  ;;  %v1154_v53 = vmax.f32 %v1001_v39, 0.0 }
 0x289   : > { %v1605_v55 = vld [vmem:[#allocation2 + $0x1dc] sm:$0xff] }
 0x28a   : > { %v1609_v59 = vld [vmem:[#allocation2 + $0x1dd] sm:$0xff]  ;;  %1252 = vst.msk [vmem:[#allocation2 + $0x1e8] sm:$0xff] %vm277_vm3, %v1154_v53  ;;  %v1602_v53 = vmax.f32 %v1594_v49, %v1598_v31 }
 0x28b   : > { %v1613_v57 = vmax.f32 %v1605_v55, %v1609_v59 }
 0x28d   : > { %v1617_v18 = vmax.f32 %v1601_v63, %v1613_v57  ;;  %v1003_v29 = vpop.f32.mrf.mxu0  ;;  %v2168_v27 = vpop.f32.mrf.mxu2 }
 0x28e   : > { %v1004_v30 = vadd.f32 %v11819_v42, %v1003_v29 }
 0x28f   : > { %v12007_v28 = vpop.f32.mrf.mxu3  ;;  %1621 = vst.msk [vmem:[#allocation2 + $0x1c0] sm:$0xff] %vm277_vm3, %v1617_v18 }
 0x290   : > { %v2025_v46 = vpop.f32.mrf.mxu1  ;;  %v1155_v39 = vmax.f32 %v1004_v30, 0.0  ;;  %9904 = vmatmul.msk.bf16.gmra.mxu0 %vm684_vm2, %v11136_v21  ;;  %v1596_v21 = vld [vmem:[#allocation2 + $0x1d8] sm:$0x7] }
 0x291   : > { %v2169_v10 = vadd.f32 %v2168_v27, %v2025_v46  ;;  %v1606_v54 = vld [vmem:[#allocation2 + $0x1e4] sm:$0xff]  ;;  %v1599_v46 = vld [vmem:[#allocation2 + $0x1d1] sm:$0xff]  ;;  %v1600_v30 = vld [vmem:[#allocation2 + $0x1d9] sm:$0x7] }
 0x292   : > { %v1610_v55 = vld [vmem:[#allocation2 + $0x1e5] sm:$0xff]  ;;  %1253 = vst.msk [vmem:[#allocation2 + $0x1f0] sm:$0xff] %vm277_vm3, %v1155_v39  ;;  %v1595_v27 = vld [vmem:[#allocation2 + $0x1d0] sm:$0xff] }
 0x293   : > { %v1614_v59 = vmax.f32 %v1606_v54, %v1610_v55  ;;  %v1603_v54 = vmax.f32 %v1595_v27, %v1599_v46 }
 0x295   : > { %v1618_v63 = vmax.f32 %v1602_v53, %v1614_v59  ;;  %v1005_v3 = vpop.f32.mrf.mxu0  ;;  %v1604_v53 = vmax.f32 %v1596_v21, %v1600_v30  ;;  %v12028_v21 = vld [vmem:[#allocation3 + $0xac] sm:$0xff] }
 0x296   : > { %v1006_v29 = vadd.f32 %v11819_v42, %v1005_v3  ;;  %14591 = vst [vmem:[#allocation21_spill] sm:$0xff] %v12028_v21 }
 0x297   : > { %v2362_v57 = vpop.f32.mrf.mxu3  ;;  %1622 = vst.msk [vmem:[#allocation2 + $0x1c8] sm:$0xff] %vm277_vm3, %v1618_v63  ;;  %v11137_v63 = vld [vmem:[%s11510_s23 + $0x140] sm:$0xff] }
 0x298   : > { %v12014_v18 = vadd.f32 %v2362_v57, %v2169_v10  ;;  %v1156_v34 = vmax.f32 %v1006_v29, 0.0 }
 0x299   : > { %v1607_v6 = vld [vmem:[#allocation2 + $0x1ec] sm:$0xff]  ;;  %v1608_v31 = vld [vmem:[#allocation2 + $0x1f4] sm:$0x7] }
 0x29a   : > { %v1611_v49 = vld [vmem:[#allocation2 + $0x1ed] sm:$0xff]  ;;  %v1612_v39 = vld [vmem:[#allocation2 + $0x1f5] sm:$0x7]  ;;  %1254 = vst.msk [vmem:[#allocation2 + $0x1f8] sm:$0xff] %vm277_vm3, %v1156_v34 }
 0x29b   : > { %v1615_v55 = vmax.f32 %v1607_v6, %v1611_v49  ;;  %v1616_v59 = vmax.f32 %v1608_v31, %v1612_v39  ;;  %v11138_v31 = vld [vmem:[%s11510_s23 + $0x148] sm:$0xff] }
 0x29d   : > { %v1619_v10 = vmax.f32 %v1603_v54, %v1615_v55  ;;  %v1620_v57 = vmax.f32 %v1604_v53, %v1616_v59  ;;  %v1008_v3 = vpop.f32.mrf.mxu0 }
 0x29e   : > { %v1626_v24 = vld [vmem:[#allocation2 + $0x1c0] ss:$2 sm:$0xff]  ;;  %v1009_v29 = vadd.f32 %v11819_v42, %v1008_v3 }
 0x29f   : > { %1623 = vst.msk [vmem:[#allocation2 + $0x1d0] sm:$0xff] %vm277_vm3, %v1619_v10 }
 0x2a0   : > { %1624 = vst.msk [vmem:[#allocation2 + $0x1d8] sm:$0x7] %vm1320_vm5, %v1620_v57  ;;  %v1157_v25 = vmax.f32 %v1009_v29, 0.0  ;;  %9905 = vmatmul.msk.bf16.gmra.mxu0 %vm684_vm2, %v11137_v63 }
 0x2a1   : > { %1629 = vst.msk [vmem:[#allocation3 + $0xb6] sm:$0xff] %vm277_vm3, %v1626_v24 }
 0x2a2   : > { %1255 = vst.msk [vmem:[#allocation2 + $0x200] sm:$0xff] %vm277_vm3, %v1157_v25 }
 0x2a5   : > { %v1010_v6 = vpop.f32.mrf.mxu0 }
 0x2a6   : > { %v1011_v34 = vadd.f32 %v11819_v42, %v1010_v6 }
 0x2a7   : > { %v1628_v46 = vld [vmem:[#allocation2 + $0x1d0] ss:$2 sm:$0x3f] }
 0x2a8   : > { %1630 = vst.msk [vmem:[#allocation3 + $0xbe] sm:$0x3f] %vm320_vm4, %v1628_v46  ;;  %v1158_v27 = vmax.f32 %v1011_v34, 0.0  ;;  %v12030_v30 = vld [vmem:[#allocation3 + $0xb4] sm:$0xff] }
 0x2a9   : > { %14592 = vst [vmem:[#allocation22_spill] sm:$0xff] %v12030_v30  ;;  %v1893_v54 = vld [vmem:[#allocation3 + $0xb1] sm:$0xff] }
 0x2aa   : > { %1256 = vst.msk [vmem:[#allocation2 + $0x208] sm:$0xff] %vm277_vm3, %v1158_v27  ;;  %v1843_v25 = vld [vmem:[#allocation3 + $0xb0] sm:$0xff]  ;;  %v12043_v27 = vpop.f32.mrf.mxu2 }
 0x2ab   : > { %v2230_v39 = vld [vmem:[#allocation3 + $0xb2] sm:$0xff] }
 0x2ac   : > { %v1632_v16 = vld [vmem:[#allocation2 + $0x200] sm:$0xff] }
 0x2ad   : > { %v1013_v24 = vpop.f32.mrf.mxu0 }
 0x2ae   : > { %v1014_v55 = vadd.f32 %v11819_v42, %v1013_v24  ;;  %v12045_v24 = vpop.f32.mrf.mxu1 }
 0x2af   : > { %v1894_v53 = vld [vmem:[#allocation3 + $0xb9] sm:$0xff] }
 0x2b0   : > { %v1844_v59 = vld [vmem:[#allocation3 + $0xb8] sm:$0xff]  ;;  %v1914_v63 = vpack.c.bf16 %v1894_v53, %v1893_v54  ;;  %v1159_v29 = vmax.f32 %v1014_v55, 0.0  ;;  %9906 = vmatmul.msk.bf16.gmra.mxu0 %vm684_vm2, %v11138_v31  ;;  %v11139_v54 = vld [vmem:[%s11510_s23 + $0x150] sm:$0xff]  ;;  %v1635_v55 = vld [vmem:[#allocation2 + $0x1f9] sm:$0xff] }
 0x2b1   : > { %v2231_v10 = vld [vmem:[#allocation3 + $0xba] sm:$0xff]  ;;  %v1864_v57 = vpack.c.bf16 %v1844_v59, %v1843_v25  ;;  %v12048_v25 = vpop.f32.mrf.mxu3  ;;  %v1631_v59 = vld [vmem:[#allocation2 + $0x1f8] sm:$0xff]  ;;  %v1636_v21 = vld [vmem:[#allocation2 + $0x201] sm:$0xff] }
 0x2b2   : > { %v2251_v3 = vpack.c.bf16 %v2231_v10, %v2230_v39  ;;  %9931 = vmatmul.msk.bf16.gmra.mxu1 %vm277_vm3, %v1914_v63  ;;  %1257 = vst.msk [vmem:[#allocation2 + $0x210] sm:$0xff] %vm277_vm3, %v1159_v29 }
 0x2b3   : > { %9951 = vmatmul.msk.bf16.gmra.mxu2 %vm277_vm3, %v1864_v57  ;;  %v1639_v57 = vmax.f32 %v1631_v59, %v1635_v55 }
 0x2b4   : > { %9973 = vmatmul.msk.bf16.gmra.mxu3 %vm277_vm3, %v2251_v3 }
 0x2b5   : > { %v1015_v6 = vpop.f32.mrf.mxu0 }
 0x2b6   : > { %v1016_v34 = vadd.f32 %v11819_v42, %v1015_v6 }
 0x2b8   : > { %v1160_v46 = vmax.f32 %v1016_v34, 0.0 }
 0x2ba   : > { %1258 = vst.msk [vmem:[#allocation2 + $0x218] sm:$0xff] %vm277_vm3, %v1160_v46 }
 0x2bd   : > { %v1018_v31 = vpop.f32.mrf.mxu0 }
 0x2be   : > { %v1019_v39 = vadd.f32 %v11819_v42, %v1018_v31 }
 0x2bf   : > { %v2030_v6 = vpop.f32.mrf.mxu1 }
 0x2c0   : > { %v1161_v53 = vmax.f32 %v1019_v39, 0.0  ;;  %9907 = vmatmul.msk.bf16.gmra.mxu0 %vm684_vm2, %v11139_v54 }
 0x2c1   : > { %v1643_v10 = vld [vmem:[#allocation2 + $0x214] sm:$0xff] }
 0x2c2   : > { %v1647_v63 = vld [vmem:[#allocation2 + $0x215] sm:$0xff]  ;;  %1259 = vst.msk [vmem:[#allocation2 + $0x220] sm:$0xff] %vm277_vm3, %v1161_v53 }
 0x2c3   : > { %v1651_v3 = vmax.f32 %v1643_v10, %v1647_v63  ;;  %v1640_v10 = vmax.f32 %v1632_v16, %v1636_v21 }
 0x2c5   : > { %v1655_v29 = vmax.f32 %v1639_v57, %v1651_v3  ;;  %v1020_v49 = vpop.f32.mrf.mxu0  ;;  %v11140_v57 = vld [vmem:[%s11510_s23 + $0x158] sm:$0xff] }
 0x2c6   : > { %v2173_v34 = vpop.f32.mrf.mxu2  ;;  %v1021_v39 = vadd.f32 %v11819_v42, %v1020_v49  ;;  %v1633_v49 = vld [vmem:[#allocation2 + $0x208] sm:$0xff] }
 0x2c7   : > { %v2174_v46 = vadd.f32 %v2173_v34, %v2030_v6  ;;  %1659 = vst.msk [vmem:[#allocation2 + $0x1f8] sm:$0xff] %vm277_vm3, %v1655_v29  ;;  %v2367_v31 = vpop.f32.mrf.mxu3  ;;  %v1637_v6 = vld [vmem:[#allocation2 + $0x209] sm:$0xff] }
 0x2c8   : > { %v1162_v30 = vmax.f32 %v1021_v39, 0.0  ;;  %v1634_v34 = vld [vmem:[#allocation2 + $0x210] sm:$0x7]  ;;  %v1641_v21 = vmax.f32 %v1633_v49, %v1637_v6  ;;  %v11141_v6 = vld [vmem:[%s11510_s23 + $0x160] sm:$0xff] }
 0x2c9   : > { %v12055_v54 = vadd.f32 %v2367_v31, %v2174_v46  ;;  %v1644_v55 = vld [vmem:[#allocation2 + $0x21c] sm:$0xff]  ;;  %v1638_v46 = vld [vmem:[#allocation2 + $0x211] sm:$0x7] }
 0x2ca   : > { %v1648_v59 = vld [vmem:[#allocation2 + $0x21d] sm:$0xff]  ;;  %1260 = vst.msk [vmem:[#allocation2 + $0x228] sm:$0xff] %vm277_vm3, %v1162_v30 }
 0x2cb   : > { %14593 = vst [vmem:[#allocation23_spill] sm:$0xff] %v12055_v54  ;;  %v1652_v53 = vmax.f32 %v1644_v55, %v1648_v59  ;;  %v1642_v59 = vmax.f32 %v1634_v34, %v1638_v46  ;;  %v1845_v46 = vld [vmem:[#allocation3 + $0xc0] sm:$0xff] }
 0x2cd   : > { %v1656_v63 = vmax.f32 %v1640_v10, %v1652_v53  ;;  %v1023_v3 = vpop.f32.mrf.mxu0 }
 0x2ce   : > { %v1024_v29 = vadd.f32 %v11819_v42, %v1023_v3 }
 0x2cf   : > { %1660 = vst.msk [vmem:[#allocation2 + $0x200] sm:$0xff] %vm277_vm3, %v1656_v63 }
 0x2d0   : > { %v1163_v31 = vmax.f32 %v1024_v29, 0.0  ;;  %9908 = vmatmul.msk.bf16.gmra.mxu0 %vm684_vm2, %v11140_v57 }
 0x2d1   : > { %v1645_v39 = vld [vmem:[#allocation2 + $0x224] sm:$0xff]  ;;  %v1646_v40 = vld [vmem:[#allocation2 + $0x22c] sm:$0x7] }
 0x2d2   : > { %v1649_v16 = vld [vmem:[#allocation2 + $0x225] sm:$0xff]  ;;  %v1650_v30 = vld [vmem:[#allocation2 + $0x22d] sm:$0x7]  ;;  %1261 = vst.msk [vmem:[#allocation2 + $0x230] sm:$0xff] %vm277_vm3, %v1163_v31 }
 0x2d3   : > { %v1653_v55 = vmax.f32 %v1645_v39, %v1649_v16  ;;  %v1654_v10 = vmax.f32 %v1646_v40, %v1650_v30 }
 0x2d5   : > { %v1657_v53 = vmax.f32 %v1641_v21, %v1653_v55  ;;  %v1658_v63 = vmax.f32 %v1642_v59, %v1654_v10  ;;  %v1025_v3 = vpop.f32.mrf.mxu0  ;;  %v12083_v59 = vld [vmem:[%s14535_s2] ss:$0 sm:$0xff] }
 0x2d6   : > { %v1664_v60 = vld [vmem:[#allocation2 + $0x1f8] ss:$2 sm:$0xff]  ;;  %v1026_v29 = vadd.f32 %v11819_v42, %v1025_v3 }
 0x2d7   : > { %1661 = vst.msk [vmem:[#allocation2 + $0x208] sm:$0xff] %vm277_vm3, %v1657_v53 }
 0x2d8   : > { %1662 = vst.msk [vmem:[#allocation2 + $0x210] sm:$0x7] %vm1320_vm5, %v1658_v63  ;;  %v1164_v57 = vmax.f32 %v1026_v29, 0.0 }
 0x2d9   : > { %1667 = vst.msk [vmem:[#allocation3 + $0xc8] sm:$0xff] %vm277_vm3, %v1664_v60  ;;  %v12074_v60 = vld [vmem:[#allocation3 + $0xbc] sm:$0xff] }
 0x2da   : > { %1262 = vst.msk [vmem:[#allocation2 + $0x238] sm:$0xff] %vm277_vm3, %v1164_v57 }
 0x2db   : > { %14594 = vst [vmem:[#allocation24_spill] sm:$0xff] %v12074_v60 }
 0x2dd   : > { %v1028_v49 = vpop.f32.mrf.mxu0 }
 0x2de   : > { %v1029_v34 = vadd.f32 %v11819_v42, %v1028_v49  ;;  %v11142_v49 = vld [vmem:[%s11510_s23 + $0x168] sm:$0xff] }
 0x2df   : > { %v1666_v40 = vld [vmem:[#allocation2 + $0x208] ss:$2 sm:$0x3f] }
 0x2e0   : > { %v1846_v31 = vld [vmem:[#allocation3 + $0xc8] sm:$0xff]  ;;  %1668 = vst.msk [vmem:[#allocation3 + $0xd0] sm:$0x3f] %vm320_vm4, %v1666_v40  ;;  %v1165_v39 = vmax.f32 %v1029_v34, 0.0  ;;  %9909 = vmatmul.msk.bf16.gmra.mxu0 %vm684_vm2, %v11141_v6 }
 0x2e1   : > { %v1865_v16 = vpack.c.bf16 %v1846_v31, %v1845_v46  ;;  %v12076_v21 = vld [vmem:[#allocation3 + $0xc4] sm:$0xff]  ;;  %v12093_v31 = vpop.f32.mrf.mxu1 }
 0x2e2   : > { %1263 = vst.msk [vmem:[#allocation2 + $0x240] sm:$0xff] %vm277_vm3, %v1165_v39  ;;  %v1895_v55 = vld [vmem:[#allocation3 + $0xc1] sm:$0xff]  ;;  %v12095_v39 = vpop.f32.mrf.mxu2 }
 0x2e3   : > { %9952 = vmatmul.msk.bf16.gmra.mxu2 %vm277_vm3, %v1865_v16  ;;  %14595 = vst [vmem:[#allocation25_spill] sm:$0xff] %v12076_v21  ;;  %v2232_v63 = vld [vmem:[#allocation3 + $0xc2] sm:$0xff] }
 0x2e4   : > { %14596 = vst [vmem:[#allocation26_spill] sm:$0xff] %v12093_v31 }
 0x2e5   : > { %v1030_v30 = vpop.f32.mrf.mxu0  ;;  %14597 = vst [vmem:[#allocation27_spill] sm:$0xff] %v12095_v39 }
 0x2e6   : > { %v1031_v10 = vadd.f32 %v12083_v59, %v1030_v30  ;;  %v12097_v30 = vpop.f32.mrf.mxu3 }
 0x2e7   : > { %v1896_v53 = vld [vmem:[#allocation3 + $0xc9] sm:$0xff]  ;;  %14598 = vst [vmem:[#allocation28_spill] sm:$0xff] %v12097_v30 }
 0x2e8   : > { %v2233_v3 = vld [vmem:[#allocation3 + $0xca] sm:$0xff]  ;;  %v1915_v29 = vpack.c.bf16 %v1896_v53, %v1895_v55  ;;  %v1166_v6 = vmax.f32 %v1031_v10, 0.0  ;;  %v1673_v10 = vld [vmem:[#allocation2 + $0x231] sm:$0xff] }
 0x2e9   : > { %v2252_v57 = vpack.c.bf16 %v2233_v3, %v2232_v63  ;;  %v1669_v63 = vld [vmem:[#allocation2 + $0x230] sm:$0xff]  ;;  %v1674_v61 = vld [vmem:[#allocation2 + $0x239] sm:$0xff] }
 0x2ea   : > { %9932 = vmatmul.msk.bf16.gmra.mxu1 %vm277_vm3, %v1915_v29  ;;  %1264 = vst.msk [vmem:[#allocation2 + $0x248] sm:$0xff] %vm277_vm3, %v1166_v6 }
 0x2eb   : > { %9974 = vmatmul.msk.bf16.gmra.mxu3 %vm277_vm3, %v2252_v57  ;;  %v1677_v57 = vmax.f32 %v1669_v63, %v1673_v10  ;;  %v1670_v10 = vld [vmem:[#allocation2 + $0x238] sm:$0xff] }
 0x2ed   : > { %v1033_v34 = vpop.f32.mrf.mxu0 }
 0x2ee   : > { %v1034_v40 = vadd.f32 %v12083_v59, %v1033_v34 }
 0x2f0   : > { %v1167_v46 = vmax.f32 %v1034_v40, 0.0  ;;  %9910 = vmatmul.msk.bf16.gmra.mxu0 %vm684_vm2, %v11142_v49 }
 0x2f2   : > { %1265 = vst.msk [vmem:[#allocation2 + $0x250] sm:$0xff] %vm277_vm3, %v1167_v46  ;;  %v11143_v46 = vld [vmem:[%s11510_s23 + $0x170] sm:$0xff] }
 0x2f5   : > { %v1035_v16 = vpop.f32.mrf.mxu0 }
 0x2f6   : > { %v1036_v55 = vadd.f32 %v12083_v59, %v1035_v16 }
 0x2f7   : > { %v2035_v34 = vpop.f32.mrf.mxu1 }
 0x2f8   : > { %v1168_v53 = vmax.f32 %v1036_v55, 0.0 }
 0x2f9   : > { %v1681_v3 = vld [vmem:[#allocation2 + $0x24c] sm:$0xff] }
 0x2fa   : > { %v1685_v29 = vld [vmem:[#allocation2 + $0x24d] sm:$0xff]  ;;  %1266 = vst.msk [vmem:[#allocation2 + $0x258] sm:$0xff] %vm277_vm3, %v1168_v53 }
 0x2fb   : > { %v1689_v6 = vmax.f32 %v1681_v3, %v1685_v29  ;;  %v1678_v3 = vmax.f32 %v1670_v10, %v1674_v61 }
 0x2fd   : > { %v1693_v49 = vmax.f32 %v1677_v57, %v1689_v6  ;;  %v1038_v60 = vpop.f32.mrf.mxu0 }
 0x2fe   : > { %v2178_v40 = vpop.f32.mrf.mxu2  ;;  %v1039_v16 = vadd.f32 %v12083_v59, %v1038_v60  ;;  %v1675_v60 = vld [vmem:[#allocation2 + $0x241] sm:$0xff] }
 0x2ff   : > { %v2179_v42 = vadd.f32 %v2178_v40, %v2035_v34  ;;  %1697 = vst.msk [vmem:[#allocation2 + $0x230] sm:$0xff] %vm277_vm3, %v1693_v49  ;;  %v2372_v21 = vpop.f32.mrf.mxu3  ;;  %v1676_v34 = vld [vmem:[#allocation2 + $0x249] sm:$0x7] }
 0x300   : > { %v1169_v0 = vmax.f32 %v1039_v16, 0.0  ;;  %9911 = vmatmul.msk.bf16.gmra.mxu0 %vm684_vm2, %v11143_v46 }
 0x301   : > { %v12104_v55 = vadd.f32 %v2372_v21, %v2179_v42  ;;  %v1682_v63 = vld [vmem:[#allocation2 + $0x254] sm:$0xff]  ;;  %v1671_v21 = vld [vmem:[#allocation2 + $0x240] sm:$0xff]  ;;  %v1672_v42 = vld [vmem:[#allocation2 + $0x248] sm:$0x7] }
 0x302   : > { %v1686_v53 = vld [vmem:[#allocation2 + $0x255] sm:$0xff]  ;;  %1267 = vst.msk [vmem:[#allocation2 + $0x260] sm:$0xff] %vm277_vm3, %v1169_v0  ;;  %v1679_v32 = vmax.f32 %v1671_v21, %v1675_v60  ;;  %v1680_v0 = vmax.f32 %v1672_v42, %v1676_v34  ;;  %v1897_v60 = vld [vmem:[#allocation3 + $0xd1] sm:$0xff] }
 0x303   : > { %14599 = vst [vmem:[#allocation29_spill] sm:$0xff] %v12104_v55  ;;  %v1690_v29 = vmax.f32 %v1682_v63, %v1686_v53  ;;  %v1847_v21 = vld [vmem:[#allocation3 + $0xd0] sm:$0xff] }
 0x304   : > { %v2234_v42 = vld [vmem:[#allocation3 + $0xd2] sm:$0xff] }
 0x305   : > { %v1694_v57 = vmax.f32 %v1678_v3, %v1690_v29  ;;  %v1040_v6 = vpop.f32.mrf.mxu0  ;;  %v11144_v3 = vld [vmem:[%s11510_s23 + $0x178] sm:$0xff] }
 0x306   : > { %v1041_v49 = vadd.f32 %v12083_v59, %v1040_v6 }
 0x307   : > { %1698 = vst.msk [vmem:[#allocation2 + $0x238] sm:$0xff] %vm277_vm3, %v1694_v57 }
 0x308   : > { %v1170_v40 = vmax.f32 %v1041_v49, 0.0 }
 0x309   : > { %v1683_v46 = vld [vmem:[#allocation2 + $0x25c] sm:$0xff]  ;;  %v1684_v16 = vld [vmem:[#allocation2 + $0x264] sm:$0x7] }
 0x30a   : > { %v1687_v1 = vld [vmem:[#allocation2 + $0x25d] sm:$0xff]  ;;  %v1688_v61 = vld [vmem:[#allocation2 + $0x265] sm:$0x7]  ;;  %1268 = vst.msk [vmem:[#allocation2 + $0x268] sm:$0xff] %vm277_vm3, %v1170_v40 }
 0x30b   : > { %v1691_v10 = vmax.f32 %v1683_v46, %v1687_v1  ;;  %v1692_v63 = vmax.f32 %v1684_v16, %v1688_v61 }
 0x30d   : > { %v1695_v53 = vmax.f32 %v1679_v32, %v1691_v10  ;;  %v1696_v29 = vmax.f32 %v1680_v0, %v1692_v63  ;;  %v1043_v57 = vpop.f32.mrf.mxu0  ;;  %v12124_v63 = vld [vmem:[#allocation3 + $0xcc] sm:$0xff] }
 0x30e   : > { %v1702_v6 = vld [vmem:[#allocation2 + $0x230] ss:$2 sm:$0xff]  ;;  %v1044_v33 = vadd.f32 %v12083_v59, %v1043_v57  ;;  %14600 = vst [vmem:[#allocation30_spill] sm:$0xff] %v12124_v63 }
 0x30f   : > { %1699 = vst.msk [vmem:[#allocation2 + $0x240] sm:$0xff] %vm277_vm3, %v1695_v53 }
 0x310   : > { %1700 = vst.msk [vmem:[#allocation2 + $0x248] sm:$0x7] %vm1320_vm5, %v1696_v29  ;;  %v1171_v49 = vmax.f32 %v1044_v33, 0.0  ;;  %9912 = vmatmul.msk.bf16.gmra.mxu0 %vm684_vm2, %v11144_v3  ;;  %v11145_v3 = vld [vmem:[%s11510_s23 + $0x180] sm:$0xff]  ;;  %s269_s23 = sand.u32 1, %s11396_s25  }
 0x311   : > { %1705 = vst.msk [vmem:[#allocation3 + $0xda] sm:$0xff] %vm277_vm3, %v1702_v6  ;;  %s270_s20 = scalar_lea.vmem [#allocation6], %s269_s23  ;;  %s9589_s29 = scalar_lea.sflag [#allocation7], %s269_s23 }
 0x312   : > { %1269 = vst.msk [vmem:[#allocation2 + $0x270] sm:$0xff] %vm277_vm3, %v1171_v49  ;;  %s9599_s21 = sshll.u32 %s270_s20, 4  ;;  %s9600_s21 = int_to_ptr.vmem [resolvable:$true] %s9599_s21 }
 0x315   : > { %v1045_v1 = vpop.f32.mrf.mxu0 }
 0x316   : > { %v1046_v32 = vadd.f32 %v12083_v59, %v1045_v1 }
 0x317   : > { %v1704_v34 = vld [vmem:[#allocation2 + $0x240] ss:$2 sm:$0x3f] }
 0x318   : > { %v1898_v40 = vld [vmem:[#allocation3 + $0xd9] sm:$0xff]  ;;  %1706 = vst.msk [vmem:[#allocation3 + $0xe2] sm:$0x3f] %vm320_vm4, %v1704_v34  ;;  %v1172_v33 = vmax.f32 %v1046_v32, 0.0 }
 0x319   : > { %v1848_v46 = vld [vmem:[#allocation3 + $0xd8] sm:$0xff]  ;;  %v1916_v61 = vpack.c.bf16 %v1898_v40, %v1897_v60  ;;  %v4469_v40 = vld [vmem:[#allocation3 + $0x2e] sm:$0xff]  ;;  %v1708_v4 = vld [vmem:[#allocation2 + $0x270] sm:$0xff] }
 0x31a   : > { %v2235_v16 = vld [vmem:[#allocation3 + $0xda] sm:$0xff]  ;;  %v1866_v10 = vpack.c.bf16 %v1848_v46, %v1847_v21  ;;  %1270 = vst.msk [vmem:[#allocation2 + $0x278] sm:$0xff] %vm277_vm3, %v1172_v33  ;;  %v12142_v46 = vpop.f32.mrf.mxu1 }
 0x31b   : > { %v2253_v0 = vpack.c.bf16 %v2235_v16, %v2234_v42  ;;  %9933 = vmatmul.msk.bf16.gmra.mxu1 %vm277_vm3, %v1916_v61  ;;  %v12126_v53 = vld [vmem:[#allocation3 + $0xd4] sm:$0xff]  ;;  %14604 = vst [vmem:[#allocation34_spill] sm:$0xff] %v12142_v46  ;;  %v12144_v16 = vpop.f32.mrf.mxu2  ;;  %v4468_v61 = vld [vmem:[#allocation3 + $0x26] sm:$0xff] }
 0x31c   : > { %9953 = vmatmul.msk.bf16.gmra.mxu2 %vm277_vm3, %v1866_v10  ;;  %14601 = vst [vmem:[#allocation31_spill] sm:$0xff] %v12126_v53  ;;  %v12146_v10 = vpop.f32.mrf.mxu3  ;;  %v2886_v46 = vld [vmem:[#allocation3 + $0x12] sm:$0xff] }
 0x31d   : > { %9975 = vmatmul.msk.bf16.gmra.mxu3 %vm277_vm3, %v2253_v0  ;;  %v1048_v57 = vpop.f32.mrf.mxu0  ;;  %14605 = vst [vmem:[#allocation35_spill] sm:$0xff] %v12144_v16 }
 0x31e   : > { %v1049_v6 = vadd.f32 %v12083_v59, %v1048_v57  ;;  %14606 = vst [vmem:[#allocation36_spill] sm:$0xff] %v12146_v10  ;;  %v1711_v57 = vld [vmem:[#allocation2 + $0x269] sm:$0xff]  ;;  %v2661_v10 = vld [vmem:[#allocation3 + $0xc] sm:$0xff] }
 0x31f   : > { %v12134_v1 = vld [vmem:[#allocation3 + $0xdc] sm:$0xff]  ;;  %v12136_v60 = vld [vmem:[#allocation3 + $0xe4] sm:$0xff] }
 0x320   : > { %v1173_v49 = vmax.f32 %v1049_v6, 0.0  ;;  %9913 = vmatmul.msk.bf16.gmra.mxu0 %vm684_vm2, %v11145_v3  ;;  %14602 = vst [vmem:[#allocation32_spill] sm:$0xff] %v12134_v1  ;;  %v4500_v3 = vpack.c.bf16 %v4469_v40, %v4468_v61 }
 0x321   : > { %14603 = vst [vmem:[#allocation33_spill] sm:$0xff] %v12136_v60  ;;  %v1712_v61 = vld [vmem:[#allocation2 + $0x271] sm:$0xff] }
 0x322   : > { %1271 = vst.msk [vmem:[#allocation2 + $0x280] sm:$0xff] %vm277_vm3, %v1173_v49  ;;  %v1707_v49 = vld [vmem:[#allocation2 + $0x268] sm:$0xff] }
 0x325   : > { %v1050_v21 = vpop.f32.mrf.mxu0 }
 0x326   : > { %v1051_v42 = vadd.f32 %v12083_v59, %v1050_v21 }
 0x328   : > { %v1174_v34 = vmax.f32 %v1051_v42, 0.0 }
 0x32a   : > { %1272 = vst.msk [vmem:[#allocation2 + $0x288] sm:$0xff] %vm277_vm3, %v1174_v34  ;;  %v1715_v34 = vmax.f32 %v1707_v49, %v1711_v57  ;;  %v1716_v49 = vmax.f32 %v1708_v4, %v1712_v61 }
 0x32d   : > { %v1053_v33 = vpop.f32.mrf.mxu0 }
 0x32e   : > { %v1054_v0 = vadd.f32 %v12083_v59, %v1053_v33 }
 0x32f   : > { %v2040_v1 = vpop.f32.mrf.mxu1 }
 0x330   : > { %v1175_v6 = vmax.f32 %v1054_v0, 0.0  ;;  %10182 = vmatmul.msk.bf16.vlgmr.msrb.gmra.mxu0 %vm277_vm3, %v4500_v3 }
 0x331   : > { %v1719_v21 = vld [vmem:[#allocation2 + $0x284] sm:$0xff] }
 0x332   : > { %v1723_v42 = vld [vmem:[#allocation2 + $0x285] sm:$0xff]  ;;  %1273 = vst.msk [vmem:[#allocation2 + $0x290] sm:$0xff] %vm277_vm3, %v1175_v6 }
 0x333   : > { %v1727_v32 = vmax.f32 %v1719_v21, %v1723_v42  ;;  %v1713_v42 = vld [vmem:[#allocation2 + $0x279] sm:$0xff] }
 0x335   : > { %v1731_v29 = vmax.f32 %v1715_v34, %v1727_v32  ;;  %v1055_v53 = vpop.f32.mrf.mxu0  ;;  %v4471_v32 = vld [vmem:[#allocation3 + $0x3e] sm:$0xff]  ;;  %v1710_v34 = vld [vmem:[#allocation2 + $0x280] sm:$0x7] }
 0x336   : > { %v2183_v60 = vpop.f32.mrf.mxu2  ;;  %v1056_v40 = vadd.f32 %v12083_v59, %v1055_v53 }
 0x337   : > { %v2184_v63 = vadd.f32 %v2183_v60, %v2040_v1  ;;  %1735 = vst.msk [vmem:[#allocation2 + $0x268] sm:$0xff] %vm277_vm3, %v1731_v29  ;;  %v2377_v33 = vpop.f32.mrf.mxu3  ;;  %v4470_v60 = vld [vmem:[#allocation3 + $0x36] sm:$0xff] }
 0x338   : > { %v1176_v3 = vmax.f32 %v1056_v40, 0.0  ;;  %v4501_v53 = vpack.c.bf16 %v4471_v32, %v4470_v60 }
 0x339   : > { %v12153_v0 = vadd.f32 %v2377_v33, %v2184_v63  ;;  %v1720_v5 = vld [vmem:[#allocation2 + $0x28c] sm:$0xff]  ;;  %v1709_v63 = vld [vmem:[#allocation2 + $0x278] sm:$0xff]  ;;  %v1714_v33 = vld [vmem:[#allocation2 + $0x281] sm:$0x7] }
 0x33a   : > { %v1724_v57 = vld [vmem:[#allocation2 + $0x28d] sm:$0xff]  ;;  %1274 = vst.msk [vmem:[#allocation2 + $0x298] sm:$0xff] %vm277_vm3, %v1176_v3  ;;  %v1717_v3 = vmax.f32 %v1709_v63, %v1713_v42  ;;  %v4473_v42 = vld [vmem:[#allocation3 + $0x4e] sm:$0xff] }
 0x33b   : > { %14607 = vst [vmem:[#allocation37_spill] sm:$0xff] %v12153_v0  ;;  %v1728_v21 = vmax.f32 %v1720_v5, %v1724_v57 }
 0x33d   : > { %v1732_v6 = vmax.f32 %v1716_v49, %v1728_v21  ;;  %v1058_v1 = vpop.f32.mrf.mxu0  ;;  %v1718_v21 = vmax.f32 %v1710_v34, %v1714_v33  ;;  %v4472_v34 = vld [vmem:[#allocation3 + $0x46] sm:$0xff] }
 0x33e   : > { %v1059_v29 = vadd.f32 %v12083_v59, %v1058_v1 }
 0x33f   : > { %1736 = vst.msk [vmem:[#allocation2 + $0x270] sm:$0xff] %vm277_vm3, %v1732_v6 }
 0x340   : > { %v1177_v40 = vmax.f32 %v1059_v29, 0.0  ;;  %10183 = vmatmul.msk.bf16.gmra.mxu0 %vm277_vm3, %v4501_v53 }
 0x341   : > { %v1721_v4 = vld [vmem:[#allocation2 + $0x294] sm:$0xff]  ;;  %v1722_v5 = vld [vmem:[#allocation2 + $0x29c] sm:$0x7] }
 0x342   : > { %v1725_v61 = vld [vmem:[#allocation2 + $0x295] sm:$0xff]  ;;  %v1726_v57 = vld [vmem:[#allocation2 + $0x29d] sm:$0x7]  ;;  %1275 = vst.msk [vmem:[#allocation2 + $0x2a0] sm:$0xff] %vm277_vm3, %v1177_v40 }
 0x343   : > { %v1729_v49 = vmax.f32 %v1721_v4, %v1725_v61  ;;  %v1730_v6 = vmax.f32 %v1722_v5, %v1726_v57  ;;  %v1899_v40 = vld [vmem:[#allocation3 + $0xe1] sm:$0xff]  ;;  %v4502_v61 = vpack.c.bf16 %v4473_v42, %v4472_v34 }
 0x344   : > { %v1849_v4 = vld [vmem:[#allocation3 + $0xe0] sm:$0xff] }
 0x345   : > { %v1733_v0 = vmax.f32 %v1717_v3, %v1729_v49  ;;  %v1734_v1 = vmax.f32 %v1718_v21, %v1730_v6  ;;  %v1060_v32 = vpop.f32.mrf.mxu0  ;;  %v2236_v5 = vld [vmem:[#allocation3 + $0xe2] sm:$0xff] }
 0x346   : > { %v1740_v60 = vld [vmem:[#allocation2 + $0x268] ss:$2 sm:$0xff]  ;;  %v1061_v29 = vadd.f32 %v12083_v59, %v1060_v32 }
 0x347   : > { %1737 = vst.msk [vmem:[#allocation2 + $0x278] sm:$0xff] %vm277_vm3, %v1733_v0  ;;  %v4475_v42 = vld [vmem:[#allocation3 + $0x5e] sm:$0xff] }
 0x348   : > { %1738 = vst.msk [vmem:[#allocation2 + $0x280] sm:$0x7] %vm1320_vm5, %v1734_v1  ;;  %v1178_v53 = vmax.f32 %v1061_v29, 0.0 }
 0x349   : > { %1743 = vst.msk [vmem:[#allocation3 + $0xec] sm:$0xff] %vm277_vm3, %v1740_v60 }
 0x34a   : > { %1276 = vst.msk [vmem:[#allocation2 + $0x2a8] sm:$0xff] %vm277_vm3, %v1178_v53 }
 0x34d   : > { %v1063_v63 = vpop.f32.mrf.mxu0 }
 0x34e   : > { %v1064_v33 = vadd.f32 %v12083_v59, %v1063_v63 }
 0x34f   : > { %v1742_v3 = vld [vmem:[#allocation2 + $0x278] ss:$2 sm:$0x3f] }
 0x350   : > { %v1900_v0 = vld [vmem:[#allocation3 + $0xe9] sm:$0xff]  ;;  %1744 = vst.msk [vmem:[#allocation3 + $0xf4] sm:$0x3f] %vm320_vm4, %v1742_v3  ;;  %v1179_v21 = vmax.f32 %v1064_v33, 0.0  ;;  %10184 = vmatmul.msk.bf16.gmra.mxu0 %vm277_vm3, %v4502_v61  ;;  %v4474_v33 = vld [vmem:[#allocation3 + $0x56] sm:$0xff] }
 0x351   : > { %v1850_v57 = vld [vmem:[#allocation3 + $0xe8] sm:$0xff]  ;;  %v1917_v6 = vpack.c.bf16 %v1900_v0, %v1899_v40 }
 0x352   : > { %v2237_v49 = vld [vmem:[#allocation3 + $0xea] sm:$0xff]  ;;  %v1867_v1 = vpack.c.bf16 %v1850_v57, %v1849_v4  ;;  %1277 = vst.msk [vmem:[#allocation2 + $0x2b0] sm:$0xff] %vm277_vm3, %v1179_v21  ;;  %v12183_v57 = vpop.f32.mrf.mxu1 }
 0x353   : > { %v12167_v32 = vpack.c.bf16 %v2237_v49, %v2236_v5  ;;  %9934 = vmatmul.msk.bf16.gmra.mxu1 %vm277_vm3, %v1917_v6  ;;  %v12177_v63 = vld [vmem:[#allocation3 + $0xec] sm:$0xff]  ;;  %14610 = vst [vmem:[#allocation40_spill] sm:$0xff] %v12183_v57  ;;  %v12185_v49 = vpop.f32.mrf.mxu2  ;;  %v2660_v57 = vld [vmem:[#allocation3 + $0x4] sm:$0xff] }
 0x354   : > { %9954 = vmatmul.msk.bf16.gmra.mxu2 %vm277_vm3, %v1867_v1  ;;  %14608 = vst [vmem:[#allocation38_spill] sm:$0xff] %v12177_v63  ;;  %v2239_v1 = vld [vmem:[#allocation3 + $0xfa] sm:$0xf]  ;;  %v2692_v55 = vpack.c.bf16 %v2661_v10, %v2660_v57 }
 0x355   : > { %9976 = vmatmul.msk.bf16.gmra.mxu3 %vm277_vm3, %v12167_v32  ;;  %v1065_v60 = vpop.f32.mrf.mxu0  ;;  %14611 = vst [vmem:[#allocation41_spill] sm:$0xff] %v12185_v49  ;;  %v2434_v49 = vld [vmem:[#allocation3 + $0x3] sm:$0xff] }
 0x356   : > { %v1066_v29 = vadd.f32 %v12083_v59, %v1065_v60  ;;  %v4503_v60 = vpack.c.bf16 %v4475_v42, %v4474_v33  ;;  %v11154_v42 = vld [vmem:[%s14536_s3 + $0x30] sm:$0xff]  ;;  %v12202_v33 = vpop.f32.mrf.mxu3 }
 0x357   : > { %v12179_v40 = vld [vmem:[#allocation3 + $0xf4] sm:$0xff]  ;;  %14612 = vst [vmem:[#allocation42_spill] sm:$0xff] %v12202_v33  ;;  %3224 = vmatpush.bf16.msra.mxu1 %v11154_v42  ;;  %v2435_v33 = vld [vmem:[#allocation3 + $0xb] sm:$0xff] }
 0x358   : > { %v1180_v53 = vmax.f32 %v1066_v29, 0.0  ;;  %14609 = vst [vmem:[#allocation39_spill] sm:$0xff] %v12179_v40  ;;  %v1901_v34 = vld [vmem:[#allocation3 + $0xf1] sm:$0xff]  ;;  %v1902_v61 = vld [vmem:[#allocation3 + $0xf9] sm:$0xf]  ;;  %v11155_v29 = vld [vmem:[%s14536_s3 + $0x38] sm:$0xff] }
 0x359   : > { %v1851_v3 = vld [vmem:[#allocation3 + $0xf0] sm:$0xff]  ;;  %v1852_v0 = vld [vmem:[#allocation3 + $0xf8] sm:$0xf]  ;;  %v1918_v4 = vpack.c.bf16 %v1902_v61, %v1901_v34  ;;  %3450 = vmatpush.bf16.msra.mxu2 %v11155_v29 }
 0x35a   : > { %1278 = vst.msk [vmem:[#allocation2 + $0x2b8] sm:$0xff] %vm277_vm3, %v1180_v53  ;;  %v12188_v6 = vld [vmem:[#allocation3 + $0xf2] sm:$0xff]  ;;  %v1868_v63 = vpack.c.bf16 %v1852_v0, %v1851_v3 }
 0x35b   : > { %v2255_v40 = vpack.c.bf16 %v2239_v1, %v12188_v6  ;;  %v1745_v34 = vld [vmem:[#allocation2 + $0x2a0] sm:$0xff] }
 0x35c   : > { %v11156_v42 = vld [vmem:[%s14536_s3 + $0x40] sm:$0xff] }
 0x35d   : > { %v1068_v5 = vpop.f32.mrf.mxu0  ;;  %3676 = vmatpush.bf16.msra.mxu3 %v11156_v42 }
 0x35e   : > { %v1069_v21 = vadd.f32 %v12083_v59, %v1068_v5  ;;  %v1749_v5 = vld [vmem:[#allocation2 + $0x2a1] sm:$0xff] }
 0x360   : > { %v1181_v53 = vmax.f32 %v1069_v21, 0.0  ;;  %10185 = vmatmul.msk.bf16.gmra.mxu0 %vm277_vm3, %v4503_v60 }
 0x361   : > { %v1751_v10 = vld [vmem:[#allocation2 + $0x2b1] sm:$0xff] }
 0x362   : > { %1279 = vst.msk [vmem:[#allocation2 + $0x2c0] sm:$0xff] %vm277_vm3, %v1181_v53 }
 0x363   : > { %9935 = vmatmul.msk.bf16.gmra.mxu1 %vm277_vm3, %v1918_v4  ;;  %v1753_v4 = vmax.f32 %v1745_v34, %v1749_v5  ;;  %v1746_v34 = vld [vmem:[#allocation2 + $0x2a8] sm:$0xff] }
 0x364   : > { %9955 = vmatmul.msk.bf16.gmra.mxu2 %vm277_vm3, %v1868_v63  ;;  %v1750_v5 = vld [vmem:[#allocation2 + $0x2a9] sm:$0xff] }
 0x365   : > { %9977 = vmatmul.msk.bf16.gmra.mxu3 %vm277_vm3, %v2255_v40  ;;  %v1070_v61 = vpop.f32.mrf.mxu0  ;;  %v4477_v40 = vld [vmem:[#allocation3 + $0x6e] sm:$0xff]  ;;  %v1754_v31 = vmax.f32 %v1746_v34, %v1750_v5 }
 0x366   : > { %v2188_v3 = vpop.f32.mrf.mxu2  ;;  %v1071_v0 = vadd.f32 %v12083_v59, %v1070_v61 }
 0x367   : > { %v2045_v21 = vpop.f32.mrf.mxu1 }
 0x368   : > { %v2189_v1 = vadd.f32 %v2188_v3, %v2045_v21  ;;  %v1182_v60 = vmax.f32 %v1071_v0, 0.0  ;;  %v2887_v3 = vld [vmem:[#allocation3 + $0x1a] sm:$0xff] }
 0x369   : > { %v1757_v63 = vld [vmem:[#allocation2 + $0x2bc] sm:$0xff]  ;;  %v2918_v39 = vpack.c.bf16 %v2887_v3, %v2886_v46  ;;  %v1748_v46 = vld [vmem:[#allocation2 + $0x2b8] sm:$0x7] }
 0x36a   : > { %v1761_v29 = vld [vmem:[#allocation2 + $0x2bd] sm:$0xff]  ;;  %1280 = vst.msk [vmem:[#allocation2 + $0x2c8] sm:$0xff] %vm277_vm3, %v1182_v60 }
 0x36b   : > { %v1765_v53 = vmax.f32 %v1757_v63, %v1761_v29  ;;  %v4476_v60 = vld [vmem:[#allocation3 + $0x66] sm:$0xff]  ;;  %v2466_v29 = vpack.c.bf16 %v2435_v33, %v2434_v49 }
 0x36c   : > { %v4504_v30 = vpack.c.bf16 %v4477_v40, %v4476_v60  ;;  %v1747_v49 = vld [vmem:[#allocation2 + $0x2b0] sm:$0xff]  ;;  %v1752_v33 = vld [vmem:[#allocation2 + $0x2b9] sm:$0x7] }
 0x36d   : > { %v1769_v16 = vmax.f32 %v1753_v4, %v1765_v53  ;;  %v1073_v21 = vpop.f32.mrf.mxu0  ;;  %v2437_v60 = vld [vmem:[#allocation3 + $0x1b] sm:$0xff] }
 0x36e   : > { %v2382_v61 = vpop.f32.mrf.mxu3  ;;  %v1074_v63 = vadd.f32 %v12083_v59, %v1073_v21 }
 0x36f   : > { %v12209_v0 = vadd.f32 %v2382_v61, %v2189_v1  ;;  %1773 = vst.msk [vmem:[#allocation2 + $0x2a0] sm:$0xff] %vm277_vm3, %v1769_v16  ;;  %v1755_v1 = vmax.f32 %v1747_v49, %v1751_v10  ;;  %v1756_v61 = vmax.f32 %v1748_v46, %v1752_v33  ;;  %v2889_v33 = vld [vmem:[#allocation3 + $0x2a] sm:$0xff] }
 0x370   : > { %v1183_v4 = vmax.f32 %v1074_v63, 0.0  ;;  %10186 = vmatmul.msk.bf16.gmra.mxu0 %vm277_vm3, %v4504_v30  ;;  %v2662_v63 = vld [vmem:[#allocation3 + $0x14] sm:$0xff] }
 0x371   : > { %14613 = vst [vmem:[#allocation43_spill] sm:$0xff] %v12209_v0  ;;  %v1758_v53 = vld [vmem:[#allocation2 + $0x2c4] sm:$0xff] }
 0x372   : > { %v1762_v42 = vld [vmem:[#allocation2 + $0x2c5] sm:$0xff]  ;;  %1281 = vst.msk [vmem:[#allocation2 + $0x2d0] sm:$0xff] %vm277_vm3, %v1183_v4 }
 0x373   : > { %v1766_v54 = vmax.f32 %v1758_v53, %v1762_v42  ;;  %9984 = vmatmul.msk.bf16.vlgmr.msrb.gmra.mxu1 %vm277_vm3, %v2466_v29  ;;  %v2663_v29 = vld [vmem:[#allocation3 + $0x1c] sm:$0xff] }
 0x374   : > { %10006 = vmatmul.msk.bf16.vlgmr.msrb.gmra.mxu2 %vm277_vm3, %v2692_v55  ;;  %v12225_v46 = vpack.c.bf16 %v2663_v29, %v2662_v63  ;;  %v2891_v29 = vld [vmem:[#allocation3 + $0x3a] sm:$0xff] }
 0x375   : > { %10028 = vmatmul.msk.bf16.vlgmr.msrb.gmra.mxu3 %vm277_vm3, %v2918_v39  ;;  %v1770_v16 = vmax.f32 %v1754_v31, %v1766_v54  ;;  %v1075_v57 = vpop.f32.mrf.mxu0  ;;  %v2436_v54 = vld [vmem:[#allocation3 + $0x13] sm:$0xff]  ;;  %v4479_v31 = vld [vmem:[#allocation3 + $0x7e] sm:$0xff] }
 0x376   : > { %v1076_v30 = vadd.f32 %v12083_v59, %v1075_v57  ;;  %v12223_v57 = vpack.c.bf16 %v2437_v60, %v2436_v54  ;;  %v4480_v60 = vld [vmem:[#allocation3 + $0x86] sm:$0xff] }
 0x377   : > { %1774 = vst.msk [vmem:[#allocation2 + $0x2a8] sm:$0xff] %vm277_vm3, %v1770_v16  ;;  %v4478_v16 = vld [vmem:[#allocation3 + $0x76] sm:$0xff] }
 0x378   : > { %v1184_v40 = vmax.f32 %v1076_v30, 0.0  ;;  %v4505_v30 = vpack.c.bf16 %v4479_v31, %v4478_v16  ;;  %v2439_v31 = vld [vmem:[#allocation3 + $0x2b] sm:$0xff] }
 0x379   : > { %v1759_v3 = vld [vmem:[#allocation2 + $0x2cc] sm:$0xff]  ;;  %v1760_v34 = vld [vmem:[#allocation2 + $0x2d4] sm:$0x7] }
 0x37a   : > { %v1763_v5 = vld [vmem:[#allocation2 + $0x2cd] sm:$0xff]  ;;  %v1764_v21 = vld [vmem:[#allocation2 + $0x2d5] sm:$0x7]  ;;  %1282 = vst.msk [vmem:[#allocation2 + $0x2d8] sm:$0xff] %vm277_vm3, %v1184_v40 }
 0x37b   : > { %v1767_v55 = vmax.f32 %v1759_v3, %v1763_v5  ;;  %v1768_v39 = vmax.f32 %v1760_v34, %v1764_v21  ;;  %v2888_v3 = vld [vmem:[#allocation3 + $0x22] sm:$0xff] }
 0x37d   : > { %v1771_v4 = vmax.f32 %v1755_v1, %v1767_v55  ;;  %v1772_v53 = vmax.f32 %v1756_v61, %v1768_v39  ;;  %v1078_v42 = vpop.f32.mrf.mxu0  ;;  %v2919_v1 = vpack.c.bf16 %v2889_v33, %v2888_v3  ;;  %v4481_v55 = vld [vmem:[#allocation3 + $0x8e] sm:$0xff]  ;;  %v12253_v3 = vpop.f32.mrf.mxu2 }
 0x37e   : > { %v1778_v49 = vld [vmem:[#allocation2 + $0x2a0] ss:$2 sm:$0xff]  ;;  %v1079_v10 = vadd.f32 %v12083_v59, %v1078_v42  ;;  %v2664_v42 = vld [vmem:[#allocation3 + $0x24] sm:$0xff]  ;;  %14617 = vst [vmem:[#allocation47_spill] sm:$0xff] %v12253_v3 }
 0x37f   : > { %1775 = vst.msk [vmem:[#allocation2 + $0x2b0] sm:$0xff] %vm277_vm3, %v1771_v4  ;;  %v2665_v39 = vld [vmem:[#allocation3 + $0x2c] sm:$0xff]  ;;  %v4506_v4 = vpack.c.bf16 %v4481_v55, %v4480_v60 }
 0x380   : > { %1776 = vst.msk [vmem:[#allocation2 + $0x2b8] sm:$0x7] %vm1320_vm5, %v1772_v53  ;;  %v1185_v40 = vmax.f32 %v1079_v10, 0.0  ;;  %10187 = vmatmul.msk.bf16.gmra.mxu0 %vm277_vm3, %v4505_v30  ;;  %v2438_v53 = vld [vmem:[#allocation3 + $0x23] sm:$0xff]  ;;  %v12242_v10 = vpack.c.bf16 %v2665_v39, %v2664_v42  ;;  %v2890_v33 = vld [vmem:[#allocation3 + $0x32] sm:$0xff] }
 0x381   : > { %1781 = vst.msk [vmem:[#allocation3 + $0xfe] sm:$0xff] %vm277_vm3, %v1778_v49  ;;  %v12240_v49 = vpack.c.bf16 %v2439_v31, %v2438_v53  ;;  %v2920_v30 = vpack.c.bf16 %v2891_v29, %v2890_v33  ;;  %v2667_v31 = vld [vmem:[#allocation3 + $0x3c] sm:$0xff]  ;;  %v1783_v39 = vld [vmem:[#allocation2 + $0x2d8] sm:$0xff] }
 0x382   : > { %1283 = vst.msk [vmem:[#allocation2 + $0x2e0] sm:$0xff] %vm277_vm3, %v1185_v40  ;;  %v12251_v40 = vpop.f32.mrf.mxu1  ;;  %v2893_v33 = vld [vmem:[#allocation3 + $0x4a] sm:$0xff] }
 0x383   : > { %9985 = vmatmul.msk.bf16.gmra.mxu1 %vm277_vm3, %v12223_v57  ;;  %14614 = vst [vmem:[#allocation44_spill] sm:$0xff] %v12240_v49 }
 0x384   : > { %10007 = vmatmul.msk.bf16.gmra.mxu2 %vm277_vm3, %v12225_v46  ;;  %14615 = vst [vmem:[#allocation45_spill] sm:$0xff] %v12242_v10 }
 0x385   : > { %10029 = vmatmul.msk.bf16.gmra.mxu3 %vm277_vm3, %v2919_v1  ;;  %v1080_v61 = vpop.f32.mrf.mxu0  ;;  %14616 = vst [vmem:[#allocation46_spill] sm:$0xff] %v12251_v40 }
 0x386   : > { %v1081_v34 = vadd.f32 %v12083_v59, %v1080_v61 }
 0x387   : > { %v1780_v5 = vld [vmem:[#allocation2 + $0x2b0] ss:$2 sm:$0x3f] }
 0x388   : > { %1782 = vst.msk [vmem:[#allocation3 + $0x106] sm:$0x3f] %vm320_vm4, %v1780_v5  ;;  %v1186_v21 = vmax.f32 %v1081_v34, 0.0  ;;  %v12256_v34 = vpop.f32.mrf.mxu3 }
 0x389   : > { %14618 = vst [vmem:[#allocation48_spill] sm:$0xff] %v12256_v34  ;;  %v1787_v60 = vld [vmem:[#allocation2 + $0x2d9] sm:$0xff] }
 0x38a   : > { %1284 = vst.msk [vmem:[#allocation2 + $0x2e8] sm:$0xff] %vm277_vm3, %v1186_v21  ;;  %v4483_v21 = vld [vmem:[#allocation3 + $0x9e] sm:$0xff] }
 0x38d   : > { %v1083_v54 = vpop.f32.mrf.mxu0 }
 0x38e   : > { %v1084_v63 = vadd.f32 %v12083_v59, %v1083_v54  ;;  %v2441_v54 = vld [vmem:[#allocation3 + $0x3b] sm:$0xff] }
 0x390   : > { %v1187_v16 = vmax.f32 %v1084_v63, 0.0  ;;  %10188 = vmatmul.msk.bf16.gmra.mxu0 %vm277_vm3, %v4506_v4  ;;  %v4482_v4 = vld [vmem:[#allocation3 + $0x96] sm:$0xff] }
 0x392   : > { %1285 = vst.msk [vmem:[#allocation2 + $0x2f0] sm:$0xff] %vm277_vm3, %v1187_v16  ;;  %v2440_v16 = vld [vmem:[#allocation3 + $0x33] sm:$0xff] }
 0x393   : > { %9986 = vmatmul.msk.bf16.gmra.mxu1 %vm277_vm3, %v12240_v49  ;;  %v12260_v34 = vpack.c.bf16 %v2441_v54, %v2440_v16  ;;  %v1784_v54 = vld [vmem:[#allocation2 + $0x2e0] sm:$0xff] }
 0x394   : > { %10008 = vmatmul.msk.bf16.gmra.mxu2 %vm277_vm3, %v12242_v10  ;;  %v2892_v10 = vld [vmem:[#allocation3 + $0x42] sm:$0xff]  ;;  %v4485_v16 = vld [vmem:[#allocation3 + $0xae] sm:$0xff] }
 0x395   : > { %10030 = vmatmul.msk.bf16.gmra.mxu3 %vm277_vm3, %v2920_v30  ;;  %v1085_v1 = vpop.f32.mrf.mxu0  ;;  %v4507_v30 = vpack.c.bf16 %v4483_v21, %v4482_v4  ;;  %14619 = vst [vmem:[#allocation49_spill] sm:$0xff] %v12260_v34 }
 0x396   : > { %v1086_v61 = vadd.f32 %v12083_v59, %v1085_v1 }
 0x398   : > { %v1188_v5 = vmax.f32 %v1086_v61, 0.0  ;;  %v2050_v55 = vpop.f32.mrf.mxu1  ;;  %v2666_v61 = vld [vmem:[#allocation3 + $0x34] sm:$0xff] }
 0x399   : > { %v12264_v0 = vpack.c.bf16 %v2667_v31, %v2666_v61  ;;  %v1788_v31 = vld [vmem:[#allocation2 + $0x2e1] sm:$0xff]  ;;  %v1789_v61 = vld [vmem:[#allocation2 + $0x2e9] sm:$0xff] }
 0x39a   : > { %1286 = vst.msk [vmem:[#allocation2 + $0x2f8] sm:$0xff] %vm277_vm3, %v1188_v5  ;;  %v1791_v5 = vmax.f32 %v1783_v39, %v1787_v60 }
 0x39b   : > { %14621 = vst [vmem:[#allocation51_spill] sm:$0xff] %v12264_v0 }
 0x39d   : > { %v1088_v29 = vpop.f32.mrf.mxu0 }
 0x39e   : > { %v1089_v42 = vadd.f32 %v12083_v59, %v1088_v29 }
 0x39f   : > { %v2193_v63 = vpop.f32.mrf.mxu2 }
 0x3a0   : > { %v2194_v53 = vadd.f32 %v2193_v63, %v2050_v55  ;;  %v2387_v1 = vpop.f32.mrf.mxu3  ;;  %v1189_v40 = vmax.f32 %v1089_v42, 0.0  ;;  %10189 = vmatmul.msk.bf16.gmra.mxu0 %vm277_vm3, %v4507_v30  ;;  %v2921_v63 = vpack.c.bf16 %v2893_v33, %v2892_v10  ;;  %v1792_v10 = vmax.f32 %v1784_v54, %v1788_v31  ;;  %v4484_v42 = vld [vmem:[#allocation3 + $0xa6] sm:$0xff] }
 0x3a1   : > { %v1795_v49 = vld [vmem:[#allocation2 + $0x2f4] sm:$0xff] }
 0x3a2   : > { %v12262_v3 = vadd.f32 %v2387_v1, %v2194_v53  ;;  %v1799_v55 = vld [vmem:[#allocation2 + $0x2f5] sm:$0xff]  ;;  %1287 = vst.msk [vmem:[#allocation2 + $0x300] sm:$0xff] %vm277_vm3, %v1189_v40  ;;  %v1785_v1 = vld [vmem:[#allocation2 + $0x2e8] sm:$0xff] }
 0x3a3   : > { %v1803_v29 = vmax.f32 %v1795_v49, %v1799_v55  ;;  %9987 = vmatmul.msk.bf16.gmra.mxu1 %vm277_vm3, %v12260_v34  ;;  %v2443_v30 = vld [vmem:[#allocation3 + $0x4b] sm:$0xff]  ;;  %v2442_v54 = vld [vmem:[#allocation3 + $0x43] sm:$0xff] }
 0x3a4   : > { %14620 = vst [vmem:[#allocation50_spill] sm:$0xff] %v12262_v3  ;;  %10009 = vmatmul.msk.bf16.gmra.mxu2 %vm277_vm3, %v12264_v0  ;;  %v2669_v55 = vld [vmem:[#allocation3 + $0x4c] sm:$0xff]  ;;  %v2668_v31 = vld [vmem:[#allocation3 + $0x44] sm:$0xff] }
 0x3a5   : > { %10031 = vmatmul.msk.bf16.gmra.mxu3 %vm277_vm3, %v2921_v63  ;;  %v1807_v21 = vmax.f32 %v1791_v5, %v1803_v29  ;;  %v1090_v39 = vpop.f32.mrf.mxu0  ;;  %v1786_v63 = vld [vmem:[#allocation2 + $0x2f0] sm:$0x7] }
 0x3a6   : > { %v1091_v60 = vadd.f32 %v12083_v59, %v1090_v39  ;;  %v1790_v29 = vld [vmem:[#allocation2 + $0x2f1] sm:$0x7]  ;;  %v1793_v39 = vmax.f32 %v1785_v1, %v1789_v61 }
 0x3a7   : > { %1811 = vst.msk [vmem:[#allocation2 + $0x2d8] sm:$0xff] %vm277_vm3, %v1807_v21  ;;  %v2895_v59 = vld [vmem:[#allocation3 + $0x5a] sm:$0xff]  ;;  %v4508_v21 = vpack.c.bf16 %v4485_v16, %v4484_v42 }
 0x3a8   : > { %v1190_v49 = vmax.f32 %v1091_v60, 0.0  ;;  %v12279_v60 = vpack.c.bf16 %v2443_v30, %v2442_v54  ;;  %v4487_v1 = vld [vmem:[#allocation3 + $0xbe] sm:$0xff] }
 0x3a9   : > { %v1796_v4 = vld [vmem:[#allocation2 + $0x2fc] sm:$0xff] }
 0x3aa   : > { %v1800_v40 = vld [vmem:[#allocation2 + $0x2fd] sm:$0xff]  ;;  %1288 = vst.msk [vmem:[#allocation2 + $0x308] sm:$0xff] %vm277_vm3, %v1190_v49  ;;  %v12281_v49 = vpack.c.bf16 %v2669_v55, %v2668_v31  ;;  %v2671_v55 = vld [vmem:[#allocation3 + $0x5c] sm:$0xff] }
 0x3ab   : > { %v1804_v53 = vmax.f32 %v1796_v4, %v1800_v40  ;;  %v1794_v4 = vmax.f32 %v1786_v63, %v1790_v29  ;;  %v4486_v63 = vld [vmem:[#allocation3 + $0xb6] sm:$0xff]  ;;  %v2897_v29 = vld [vmem:[#allocation3 + $0x6a] sm:$0xff] }
 0x3ad   : > { %v1808_v33 = vmax.f32 %v1792_v10, %v1804_v53  ;;  %v12276_v5 = vpop.f32.mrf.mxu0  ;;  %v2894_v10 = vld [vmem:[#allocation3 + $0x52] sm:$0xff] }
 0x3ae   : > { %14622 = vst [vmem:[#allocation52_spill] sm:$0xff] %v12276_v5  ;;  %v2922_v3 = vpack.c.bf16 %v2895_v59, %v2894_v10  ;;  %v4509_v59 = vpack.c.bf16 %v4487_v1, %v4486_v63  ;;  %v12307_v10 = vpop.f32.mrf.mxu1  ;;  %v12313_v1 = vpop.f32.mrf.mxu3 }
 0x3af   : > { %1812 = vst.msk [vmem:[#allocation2 + $0x2e0] sm:$0xff] %vm277_vm3, %v1808_v33 }
 0x3b0   : > { %10190 = vmatmul.msk.bf16.gmra.mxu0 %vm277_vm3, %v4508_v21  ;;  %v2444_v21 = vld [vmem:[#allocation3 + $0x53] sm:$0xff]  ;;  %14626 = vst [vmem:[#allocation56_spill] sm:$0xff] %v12307_v10  ;;  %v2901_v10 = vld [vmem:[#allocation3 + $0x8a] sm:$0xff] }
 0x3b1   : > { %v1797_v40 = vld [vmem:[#allocation2 + $0x304] sm:$0xff]  ;;  %v1798_v53 = vld [vmem:[#allocation2 + $0x30c] sm:$0x7]  ;;  %14629 = vst [vmem:[#allocation59_spill] sm:$0xff] %v12313_v1 }
 0x3b2   : > { %v1801_v5 = vld [vmem:[#allocation2 + $0x305] sm:$0xff]  ;;  %v1802_v0 = vld [vmem:[#allocation2 + $0x30d] sm:$0x7] }
 0x3b3   : > { %v1805_v34 = vmax.f32 %v1797_v40, %v1801_v5  ;;  %9988 = vmatmul.msk.bf16.gmra.mxu1 %vm277_vm3, %v12279_v60  ;;  %v1806_v42 = vmax.f32 %v1798_v53, %v1802_v0  ;;  %v2445_v5 = vld [vmem:[#allocation3 + $0x5b] sm:$0xff]  ;;  %v12309_v40 = vpop.f32.mrf.mxu2 }
 0x3b4   : > { %10010 = vmatmul.msk.bf16.gmra.mxu2 %vm277_vm3, %v12281_v49  ;;  %v2670_v0 = vld [vmem:[#allocation3 + $0x54] sm:$0xff]  ;;  %v12295_v54 = vpack.c.bf16 %v2445_v5, %v2444_v21  ;;  %14627 = vst [vmem:[#allocation57_spill] sm:$0xff] %v12309_v40  ;;  %v2900_v40 = vld [vmem:[#allocation3 + $0x82] sm:$0xff] }
 0x3b5   : > { %10032 = vmatmul.msk.bf16.gmra.mxu3 %vm277_vm3, %v2922_v3  ;;  %v1809_v16 = vmax.f32 %v1793_v39, %v1805_v34  ;;  %v1810_v33 = vmax.f32 %v1794_v4, %v1806_v42  ;;  %v12289_v30 = vpop.f32.mrf.mxu0  ;;  %v12297_v3 = vpack.c.bf16 %v2671_v55, %v2670_v0  ;;  %v2896_v34 = vld [vmem:[#allocation3 + $0x62] sm:$0xff]  ;;  %v4489_v4 = vld [vmem:[#allocation3 + $0xce] sm:$0xff]  ;;  %v2899_v5 = vld [vmem:[#allocation3 + $0x7a] sm:$0xff] }
 0x3b6   : > { %14623 = vst [vmem:[#allocation53_spill] sm:$0xff] %v12289_v30  ;;  %v2923_v31 = vpack.c.bf16 %v2897_v29, %v2896_v34  ;;  %v2447_v42 = vld [vmem:[#allocation3 + $0x6b] sm:$0xff]  ;;  %v2446_v29 = vld [vmem:[#allocation3 + $0x63] sm:$0xff] }
 0x3b7   : > { %1813 = vst.msk [vmem:[#allocation2 + $0x2e8] sm:$0xff] %vm277_vm3, %v1809_v16  ;;  %v2673_v16 = vld [vmem:[#allocation3 + $0x6c] sm:$0xff]  ;;  %v12315_v21 = vpack.c.bf16 %v2447_v42, %v2446_v29 }
 0x3b8   : > { %1814 = vst.msk [vmem:[#allocation2 + $0x2f0] sm:$0x7] %vm1320_vm5, %v1810_v33  ;;  %v4488_v33 = vld [vmem:[#allocation3 + $0xc6] sm:$0xff]  ;;  %v2898_v34 = vld [vmem:[#allocation3 + $0x72] sm:$0xff] }
 0x3b9   : > { %v4510_v55 = vpack.c.bf16 %v4489_v4, %v4488_v33  ;;  %14630 = vst [vmem:[#allocation60_spill] sm:$0xff] %v12315_v21 }
 0x3bd   : > { %v12293_v61 = vpop.f32.mrf.mxu0 }
 0x3be   : > { %14624 = vst [vmem:[#allocation54_spill] sm:$0xff] %v12293_v61  ;;  %v4490_v61 = vld [vmem:[#allocation3 + $0xd6] sm:$0xff] }
 0x3c0   : > { %10191 = vmatmul.msk.bf16.gmra.mxu0 %vm277_vm3, %v4509_v59  ;;  %v2672_v59 = vld [vmem:[#allocation3 + $0x64] sm:$0xff] }
 0x3c1   : > { %v12317_v0 = vpack.c.bf16 %v2673_v16, %v2672_v59  ;;  %v4491_v59 = vld [vmem:[#allocation3 + $0xde] sm:$0xff] }
 0x3c3   : > { %9989 = vmatmul.msk.bf16.gmra.mxu1 %vm277_vm3, %v12295_v54  ;;  %14631 = vst [vmem:[#allocation61_spill] sm:$0xff] %v12317_v0 }
 0x3c4   : > { %10011 = vmatmul.msk.bf16.gmra.mxu2 %vm277_vm3, %v12297_v3 }
 0x3c5   : > { %10033 = vmatmul.msk.bf16.gmra.mxu3 %vm277_vm3, %v2923_v31  ;;  %v12305_v39 = vpop.f32.mrf.mxu0  ;;  %v2924_v31 = vpack.c.bf16 %v2899_v5, %v2898_v34  ;;  %v2449_v5 = vld [vmem:[#allocation3 + $0x7b] sm:$0xff] }
 0x3c6   : > { %14625 = vst [vmem:[#allocation55_spill] sm:$0xff] %v12305_v39  ;;  %v2675_v34 = vld [vmem:[#allocation3 + $0x7c] sm:$0xff] }
 0x3cd   : > { %v12311_v53 = vpop.f32.mrf.mxu0 }
 0x3ce   : > { %14628 = vst [vmem:[#allocation58_spill] sm:$0xff] %v12311_v53 }
 0x3d0   : > { %v2055_v63 = vpop.f32.mrf.mxu1  ;;  %10192 = vmatmul.msk.bf16.gmra.mxu0 %vm277_vm3, %v4510_v55 }
 0x3d3   : > { %9990 = vmatmul.msk.bf16.gmra.mxu1 %vm277_vm3, %v12315_v21  ;;  %v2448_v21 = vld [vmem:[#allocation3 + $0x73] sm:$0xff] }
 0x3d4   : > { %10012 = vmatmul.msk.bf16.gmra.mxu2 %vm277_vm3, %v12317_v0 }
 0x3d5   : > { %10034 = vmatmul.msk.bf16.gmra.mxu3 %vm277_vm3, %v2924_v31  ;;  %v12325_v33 = vpop.f32.mrf.mxu0  ;;  %v4511_v31 = vpack.c.bf16 %v4491_v59, %v4490_v61  ;;  %v4493_v59 = vld [vmem:[#allocation3 + $0xee] sm:$0xff] }
 0x3d6   : > { %14632 = vst [vmem:[#allocation62_spill] sm:$0xff] %v12325_v33  ;;  %v2674_v33 = vld [vmem:[#allocation3 + $0x74] sm:$0xff] }
 0x3d7   : > { %v2198_v4 = vpop.f32.mrf.mxu2 }
 0x3d8   : > { %v2199_v53 = vadd.f32 %v2198_v4, %v2055_v63  ;;  %v2392_v42 = vpop.f32.mrf.mxu3  ;;  %v2057_v29 = vpop.f32.mrf.mxu1  ;;  %v12333_v4 = vpack.c.bf16 %v2449_v5, %v2448_v21  ;;  %v2451_v5 = vld [vmem:[#allocation3 + $0x8b] sm:$0xff] }
 0x3da   : > { %v12327_v16 = vadd.f32 %v2392_v42, %v2199_v53  ;;  %v12335_v53 = vpack.c.bf16 %v2675_v34, %v2674_v33  ;;  %v2925_v42 = vpack.c.bf16 %v2901_v10, %v2900_v40  ;;  %v1816_v33 = vld [vmem:[#allocation2 + $0x2d8] ss:$2 sm:$0xff] }
 0x3db   : > { %1819 = vst.msk [vmem:[#allocation3 + $0x110] sm:$0xff] %vm277_vm3, %v1816_v33  ;;  %v2677_v34 = vld [vmem:[#allocation3 + $0x8c] sm:$0xff] }
 0x3dc   : > { %14635 = vst [vmem:[#allocation65_spill] sm:$0xff] %v12335_v53 }
 0x3dd   : > { %v12329_v55 = vpop.f32.mrf.mxu0 }
 0x3de   : > { %14633 = vst [vmem:[#allocation63_spill] sm:$0xff] %v12329_v55 }
 0x3df   : > { %v2200_v39 = vpop.f32.mrf.mxu2 }
 0x3e0   : > { %v2201_v30 = vadd.f32 %v2200_v39, %v2057_v29  ;;  %v2394_v1 = vpop.f32.mrf.mxu3  ;;  %v2060_v0 = vpop.f32.mrf.mxu1  ;;  %10193 = vmatmul.msk.bf16.gmra.mxu0 %vm277_vm3, %v4511_v31  ;;  %v4492_v31 = vld [vmem:[#allocation3 + $0xe6] sm:$0xff] }
 0x3e2   : > { %v12331_v63 = vadd.f32 %v2394_v1, %v2201_v30 }
 0x3e3   : > { %9991 = vmatmul.msk.bf16.gmra.mxu1 %vm277_vm3, %v12333_v4 }
 0x3e4   : > { %14634 = vst [vmem:[#allocation64_spill] sm:$0xff] %v12331_v63  ;;  %10013 = vmatmul.msk.bf16.gmra.mxu2 %vm277_vm3, %v12335_v53  ;;  %v4512_v63 = vpack.c.bf16 %v4493_v59, %v4492_v31  ;;  %v4495_v31 = vld [vmem:[#allocation3 + $0xfe] sm:$0xff] }
 0x3e5   : > { %10035 = vmatmul.msk.bf16.gmra.mxu3 %vm277_vm3, %v2925_v42  ;;  %v12343_v39 = vpop.f32.mrf.mxu0  ;;  %v2903_v42 = vld [vmem:[#allocation3 + $0x9a] sm:$0xff] }
 0x3e6   : > { %14636 = vst [vmem:[#allocation66_spill] sm:$0xff] %v12343_v39  ;;  %v2450_v39 = vld [vmem:[#allocation3 + $0x83] sm:$0xff] }
 0x3e7   : > { %v2203_v61 = vpop.f32.mrf.mxu2 }
 0x3e8   : > { %v2204_v30 = vadd.f32 %v2203_v61, %v2060_v0  ;;  %v2397_v1 = vpop.f32.mrf.mxu3  ;;  %v2062_v21 = vpop.f32.mrf.mxu1  ;;  %v2676_v0 = vld [vmem:[#allocation3 + $0x84] sm:$0xff] }
 0x3e9   : > { %v2902_v21 = vld [vmem:[#allocation3 + $0x92] sm:$0xff] }
 0x3ea   : > { %v12345_v29 = vadd.f32 %v2397_v1, %v2204_v30  ;;  %v12351_v30 = vpack.c.bf16 %v2451_v5, %v2450_v39  ;;  %v12353_v1 = vpack.c.bf16 %v2677_v34, %v2676_v0  ;;  %v2926_v33 = vpack.c.bf16 %v2903_v42, %v2902_v21  ;;  %v1818_v34 = vld [vmem:[#allocation2 + $0x2e8] ss:$2 sm:$0x3f] }
 0x3eb   : > { %1820 = vst.msk [vmem:[#allocation3 + $0x118] sm:$0x3f] %vm320_vm4, %v1818_v34  ;;  %v2452_v0 = vld [vmem:[#allocation3 + $0x93] sm:$0xff]  ;;  %v2453_v21 = vld [vmem:[#allocation3 + $0x9b] sm:$0xff] }
 0x3ec   : > { %14638 = vst [vmem:[#allocation68_spill] sm:$0xff] %v12353_v1 }
 0x3ed   : > { %v12348_v40 = vpop.f32.mrf.mxu0 }
 0x3ee   : > { %14637 = vst [vmem:[#allocation67_spill] sm:$0xff] %v12348_v40 }
 0x3ef   : > { %v2205_v10 = vpop.f32.mrf.mxu2 }
 0x3f0   : > { %v2399_v55 = vpop.f32.mrf.mxu3  ;;  %v2548_v53 = vpop.f32.mrf.mxu1  ;;  %10194 = vmatmul.msk.bf16.gmra.mxu0 %vm277_vm3, %v4512_v63 }
 0x3f1   : > { %v2628_v61 = vadd.f32 %v2548_v53, %v11709_v9  ;;  %v2131_v9 = vadd.f32 %v11715_v14, %v11713_v13  ;;  %v4494_v13 = vld [vmem:[#allocation3 + $0xf6] sm:$0xff] }
 0x3f3   : > { %9992 = vmatmul.msk.bf16.gmra.mxu1 %vm277_vm3, %v12351_v30  ;;  %v2403_v63 = vadd.f32 %v11718_v20, %v2131_v9  ;;  %v12374_v9 = vpack.c.bf16 %v2453_v21, %v2452_v0 }
 0x3f4   : > { %10014 = vmatmul.msk.bf16.gmra.mxu2 %vm277_vm3, %v12353_v1  ;;  %v2679_v1 = vld [vmem:[#allocation3 + $0x9c] sm:$0xff] }
 0x3f5   : > { %10036 = vmatmul.msk.bf16.gmra.mxu3 %vm277_vm3, %v2926_v33  ;;  %v12361_v59 = vpop.f32.mrf.mxu0 }
 0x3f6   : > { %14639 = vst [vmem:[#allocation69_spill] sm:$0xff] %v12361_v59  ;;  %v2678_v59 = vld [vmem:[#allocation3 + $0x94] sm:$0xff] }
 0x3f7   : > { %v2774_v55 = vpop.f32.mrf.mxu2 }
 0x3f8   : > { %v2854_v53 = vadd.f32 %v2774_v55, %v2628_v61  ;;  %v3000_v39 = vpop.f32.mrf.mxu3  ;;  %v2550_v10 = vpop.f32.mrf.mxu1  ;;  %v2905_v55 = vld [vmem:[#allocation3 + $0xaa] sm:$0xff] }
 0x3f9   : > { %v2629_v42 = vadd.f32 %v2550_v10, %v2403_v63  ;;  %v12376_v10 = vpack.c.bf16 %v2679_v1, %v2678_v59  ;;  %v2904_v63 = vld [vmem:[#allocation3 + $0xa2] sm:$0xff] }
 0x3fa   : > { %v12365_v5 = vadd.f32 %v3000_v39, %v2854_v53  ;;  %v4513_v53 = vpack.c.bf16 %v4495_v31, %v4494_v13  ;;  %v2927_v34 = vpack.c.bf16 %v2905_v55, %v2904_v63  ;;  %v4497_v13 = vld [vmem:[#allocation3 + $0x10e] sm:$0xff] }
 0x3fb   : > { %v2455_v63 = vld [vmem:[#allocation3 + $0xab] sm:$0xff] }
 0x3fc   : > { %14640 = vst [vmem:[#allocation70_spill] sm:$0xff] %v12365_v5 }
 0x3fd   : > { %v12369_v40 = vpop.f32.mrf.mxu0 }
 0x3fe   : > { %14641 = vst [vmem:[#allocation71_spill] sm:$0xff] %v12369_v40 }
 0x3ff   : > { %v2776_v33 = vpop.f32.mrf.mxu2 }
 0x400   : > { %v2855_v14 = vadd.f32 %v2776_v33, %v2629_v42  ;;  %v3002_v61 = vpop.f32.mrf.mxu3  ;;  %v2553_v39 = vpop.f32.mrf.mxu1  ;;  %10195 = vmatmul.msk.bf16.gmra.mxu0 %vm277_vm3, %v4513_v53  ;;  %v4496_v33 = vld [vmem:[#allocation3 + $0x106] sm:$0xff] }
 0x401   : > { %v2630_v20 = vadd.f32 %v2553_v39, %v11725_v45  ;;  %v2136_v45 = vadd.f32 %v11753_v12, %v11751_v11  ;;  %v4514_v55 = vpack.c.bf16 %v4497_v13, %v4496_v33  ;;  %v2454_v12 = vld [vmem:[#allocation3 + $0xa3] sm:$0xff] }
 0x402   : > { %v12371_v5 = vadd.f32 %v3002_v61, %v2855_v14 }
 0x403   : > { %9993 = vmatmul.msk.bf16.gmra.mxu1 %vm277_vm3, %v12374_v9  ;;  %v2405_v14 = vadd.f32 %v11755_v15, %v2136_v45  ;;  %v2906_v45 = vld [vmem:[#allocation3 + $0xb2] sm:$0xff] }
 0x404   : > { %14642 = vst [vmem:[#allocation72_spill] sm:$0xff] %v12371_v5  ;;  %10015 = vmatmul.msk.bf16.gmra.mxu2 %vm277_vm3, %v12376_v10  ;;  %v2907_v5 = vld [vmem:[#allocation3 + $0xba] sm:$0xff] }
 0x405   : > { %10037 = vmatmul.msk.bf16.gmra.mxu3 %vm277_vm3, %v2927_v34  ;;  %v12384_v42 = vpop.f32.mrf.mxu0  ;;  %v2681_v34 = vld [vmem:[#allocation3 + $0xac] sm:$0xff]  ;;  %v2928_v33 = vpack.c.bf16 %v2907_v5, %v2906_v45  ;;  %v4498_v5 = vld [vmem:[#allocation3 + $0x116] sm:$0xff] }
 0x406   : > { %14643 = vst [vmem:[#allocation73_spill] sm:$0xff] %v12384_v42  ;;  %v2457_v45 = vld [vmem:[#allocation3 + $0xbb] sm:$0xff] }
 0x407   : > { %v2779_v31 = vpop.f32.mrf.mxu2 }
 0x408   : > { %v2856_v1 = vadd.f32 %v2779_v31, %v2630_v20  ;;  %v3005_v59 = vpop.f32.mrf.mxu3  ;;  %v2555_v0 = vpop.f32.mrf.mxu1  ;;  %v2680_v20 = vld [vmem:[#allocation3 + $0xa4] sm:$0xff] }
 0x409   : > { %v2631_v61 = vadd.f32 %v2555_v0, %v2405_v14  ;;  %v12398_v15 = vpack.c.bf16 %v2681_v34, %v2680_v20  ;;  %v11164_v0 = vld [vmem:[%s14536_s3 + $0x80] sm:$0xff] }
 0x40a   : > { %v12388_v21 = vadd.f32 %v3005_v59, %v2856_v1  ;;  %v12396_v59 = vpack.c.bf16 %v2455_v63, %v2454_v12  ;;  %5484 = vmatpush.bf16.msra.mxu0 %v11164_v0  ;;  %v2683_v0 = vld [vmem:[#allocation3 + $0xbc] sm:$0xff] }
 0x40d   : > { %v12391_v39 = vpop.f32.mrf.mxu0 }
 0x40e   : > { %14644 = vst [vmem:[#allocation74_spill] sm:$0xff] %v12391_v39  ;;  %v2909_v39 = vld [vmem:[#allocation3 + $0xca] sm:$0xff] }
 0x40f   : > { %v2781_v53 = vpop.f32.mrf.mxu2 }
 0x410   : > { %v2857_v42 = vadd.f32 %v2781_v53, %v2631_v61  ;;  %v3007_v40 = vpop.f32.mrf.mxu3  ;;  %v2558_v11 = vpop.f32.mrf.mxu1  ;;  %10196 = vmatmul.msk.bf16.gmra.mxu0 %vm277_vm3, %v4514_v55  ;;  %v4499_v53 = vld [vmem:[#allocation3 + $0x11e] sm:$0xf] }
 0x411   : > { %v2632_v1 = vadd.f32 %v2558_v11, %v11763_v36  ;;  %v4515_v11 = vpack.c.bf16 %v4499_v53, %v4498_v5 }
 0x412   : > { %v12393_v31 = vadd.f32 %v3007_v40, %v2857_v42  ;;  %v2141_v42 = vadd.f32 %v11795_v38, %v11793_v37  ;;  %v2456_v38 = vld [vmem:[#allocation3 + $0xb3] sm:$0xff] }
 0x413   : > { %9994 = vmatmul.msk.bf16.gmra.mxu1 %vm277_vm3, %v12396_v59 }
 0x414   : > { %10016 = vmatmul.msk.bf16.gmra.mxu2 %vm277_vm3, %v12398_v15  ;;  %v2407_v63 = vadd.f32 %v11800_v41, %v2141_v42  ;;  %v2908_v42 = vld [vmem:[#allocation3 + $0xc2] sm:$0xff] }
 0x415   : > { %10038 = vmatmul.msk.bf16.gmra.mxu3 %vm277_vm3, %v2928_v33  ;;  %v12409_v40 = vpop.f32.mrf.mxu0 }
 0x416   : > { %14645 = vst [vmem:[#allocation75_spill] sm:$0xff] %v12409_v40 }
 0x417   : > { %v2784_v36 = vpop.f32.mrf.mxu2 }
 0x418   : > { %v2858_v13 = vadd.f32 %v2784_v36, %v2632_v1  ;;  %v3010_v14 = vpop.f32.mrf.mxu3  ;;  %v2560_v61 = vpop.f32.mrf.mxu1  ;;  %v2682_v1 = vld [vmem:[#allocation3 + $0xb4] sm:$0xff] }
 0x419   : > { %v2633_v34 = vadd.f32 %v2560_v61, %v2407_v63  ;;  %v12423_v41 = vpack.c.bf16 %v2683_v0, %v2682_v1  ;;  %v2929_v61 = vpack.c.bf16 %v2909_v39, %v2908_v42  ;;  %v5372_v1 = vld [vmem:[#allocation3 + $0x37] sm:$0xff] }
 0x41a   : > { %v12413_v55 = vadd.f32 %v3010_v14, %v2858_v13  ;;  %v12421_v14 = vpack.c.bf16 %v2457_v45, %v2456_v38  ;;  %v2685_v38 = vld [vmem:[#allocation3 + $0xcc] sm:$0xff] }
 0x41d   : > { %v12416_v20 = vpop.f32.mrf.mxu0 }
 0x41e   : > { %14646 = vst [vmem:[#allocation76_spill] sm:$0xff] %v12416_v20  ;;  %v2458_v20 = vld [vmem:[#allocation3 + $0xc3] sm:$0xff] }
 0x41f   : > { %v2786_v12 = vpop.f32.mrf.mxu2 }
 0x420   : > { %v2859_v33 = vadd.f32 %v2786_v12, %v2633_v34  ;;  %v3012_v40 = vpop.f32.mrf.mxu3  ;;  %v2563_v37 = vpop.f32.mrf.mxu1  ;;  %10197 = vmatmul.msk.bf16.gmra.mxu0 %vm277_vm3, %v4515_v11  ;;  %v2146_v34 = vadd.f32 %v11844_v7, %v11840_v2  ;;  %v5373_v11 = vld [vmem:[#allocation3 + $0x3f] sm:$0xff] }
 0x421   : > { %v2634_v13 = vadd.f32 %v2563_v37, %v11805_v58  ;;  %v2459_v37 = vld [vmem:[#allocation3 + $0xcb] sm:$0xff] }
 0x422   : > { %v12418_v36 = vadd.f32 %v3012_v40, %v2859_v33  ;;  %v2409_v39 = vadd.f32 %v11847_v19, %v2146_v34  ;;  %v12443_v19 = vpack.c.bf16 %v2459_v37, %v2458_v20 }
 0x423   : > { %9995 = vmatmul.msk.bf16.gmra.mxu1 %vm277_vm3, %v12421_v14 }
 0x424   : > { %14647 = vst [vmem:[#allocation77_spill] sm:$0xff] %v12418_v36  ;;  %10017 = vmatmul.msk.bf16.gmra.mxu2 %vm277_vm3, %v12423_v41  ;;  %v2684_v36 = vld [vmem:[#allocation3 + $0xc4] sm:$0xff] }
 0x425   : > { %10039 = vmatmul.msk.bf16.gmra.mxu3 %vm277_vm3, %v2929_v61  ;;  %v12431_v5 = vpop.f32.mrf.mxu0 }
 0x426   : > { %14648 = vst [vmem:[#allocation78_spill] sm:$0xff] %v12431_v5 }
 0x427   : > { %v2789_v40 = vpop.f32.mrf.mxu2 }
 0x428   : > { %v2860_v58 = vadd.f32 %v2789_v40, %v2634_v13  ;;  %v3015_v53 = vpop.f32.mrf.mxu3  ;;  %v2565_v63 = vpop.f32.mrf.mxu1  ;;  %v2911_v13 = vld [vmem:[#allocation3 + $0xda] sm:$0xff]  ;;  %v5404_v40 = vpack.c.bf16 %v5373_v11, %v5372_v1 }
 0x429   : > { %v2635_v45 = vadd.f32 %v2565_v63, %v2409_v39 }
 0x42a   : > { %v12435_v12 = vadd.f32 %v3015_v53, %v2860_v58  ;;  %v12445_v58 = vpack.c.bf16 %v2685_v38, %v2684_v36  ;;  %v2910_v53 = vld [vmem:[#allocation3 + $0xd2] sm:$0xff] }
 0x42b   : > { %v2930_v63 = vpack.c.bf16 %v2911_v13, %v2910_v53  ;;  %v5374_v13 = vld [vmem:[#allocation3 + $0x47] sm:$0xff] }
 0x42d   : > { %v12438_v33 = vpop.f32.mrf.mxu0 }
 0x42e   : > { %14649 = vst [vmem:[#allocation79_spill] sm:$0xff] %v12438_v33 }
 0x42f   : > { %v2791_v0 = vpop.f32.mrf.mxu2 }
 0x430   : > { %v2861_v42 = vadd.f32 %v2791_v0, %v2635_v45  ;;  %v3017_v61 = vpop.f32.mrf.mxu3  ;;  %v2568_v5 = vpop.f32.mrf.mxu1  ;;  %10270 = vmatmul.msk.bf16.vlgmr.msra.gmra.mxu0 %vm277_vm3, %v5404_v40  ;;  %v5375_v0 = vld [vmem:[#allocation3 + $0x4f] sm:$0xff] }
 0x431   : > { %v2636_v7 = vadd.f32 %v2568_v5, %v11853_v23  ;;  %v2151_v23 = vadd.f32 %v11889_v17, %v11884_v62  ;;  %v2460_v62 = vld [vmem:[#allocation3 + $0xd3] sm:$0xff] }
 0x432   : > { %v12440_v2 = vadd.f32 %v3017_v61, %v2861_v42  ;;  %v2461_v42 = vld [vmem:[#allocation3 + $0xdb] sm:$0xff] }
 0x433   : > { %9996 = vmatmul.msk.bf16.gmra.mxu1 %vm277_vm3, %v12443_v19  ;;  %v2411_v45 = vadd.f32 %v11892_v26, %v2151_v23  ;;  %v2687_v61 = vld [vmem:[#allocation3 + $0xdc] sm:$0xff]  ;;  %v2686_v17 = vld [vmem:[#allocation3 + $0xd4] sm:$0xff] }
 0x434   : > { %10018 = vmatmul.msk.bf16.gmra.mxu2 %vm277_vm3, %v12445_v58  ;;  %v12467_v26 = vpack.c.bf16 %v2687_v61, %v2686_v17  ;;  %v2915_v17 = vld [vmem:[#allocation3 + $0xfa] sm:$0xff] }
 0x435   : > { %10040 = vmatmul.msk.bf16.gmra.mxu3 %vm277_vm3, %v2930_v63  ;;  %v12453_v39 = vpop.f32.mrf.mxu0  ;;  %v5405_v63 = vpack.c.bf16 %v5375_v0, %v5374_v13 }
 0x436   : > { %14650 = vst [vmem:[#allocation80_spill] sm:$0xff] %v12453_v39 }
 0x437   : > { %v2794_v34 = vpop.f32.mrf.mxu2 }
 0x438   : > { %v2862_v20 = vadd.f32 %v2794_v34, %v2636_v7  ;;  %v3020_v36 = vpop.f32.mrf.mxu3  ;;  %v2570_v5 = vpop.f32.mrf.mxu1 }
 0x439   : > { %v2637_v37 = vadd.f32 %v2570_v5, %v2411_v45 }
 0x43a   : > { %v12457_v11 = vadd.f32 %v3020_v36, %v2862_v20  ;;  %v12465_v20 = vpack.c.bf16 %v2461_v42, %v2460_v62 }
 0x43d   : > { %v12460_v1 = vpop.f32.mrf.mxu0 }
 0x43e   : > { %14651 = vst [vmem:[#allocation81_spill] sm:$0xff] %v12460_v1 }
 0x43f   : > { %v2796_v38 = vpop.f32.mrf.mxu2 }
 0x440   : > { %v2863_v40 = vadd.f32 %v2796_v38, %v2637_v37  ;;  %v3022_v53 = vpop.f32.mrf.mxu3  ;;  %v2573_v39 = vpop.f32.mrf.mxu1  ;;  %10271 = vmatmul.msk.bf16.gmra.mxu0 %vm277_vm3, %v5405_v63  ;;  %v5377_v38 = vld [vmem:[#allocation3 + $0x5f] sm:$0xff] }
 0x441   : > { %v2638_v34 = vadd.f32 %v2573_v39, %v11899_v44  ;;  %v2156_v44 = vadd.f32 %v11935_v47, %v11931_v43  ;;  %v2462_v47 = vld [vmem:[#allocation3 + $0xe3] sm:$0xff] }
 0x442   : > { %v12462_v7 = vadd.f32 %v3022_v53, %v2863_v40  ;;  %v2463_v40 = vld [vmem:[#allocation3 + $0xeb] sm:$0xff]  ;;  %v5376_v53 = vld [vmem:[#allocation3 + $0x57] sm:$0xff] }
 0x443   : > { %9997 = vmatmul.msk.bf16.gmra.mxu1 %vm277_vm3, %v12465_v20  ;;  %v2413_v37 = vadd.f32 %v11938_v50, %v2156_v44  ;;  %v12488_v50 = vpack.c.bf16 %v2463_v40, %v2462_v47 }
 0x444   : > { %10019 = vmatmul.msk.bf16.gmra.mxu2 %vm277_vm3, %v12467_v26 }
 0x445   : > { %10041 = vmatmul.msk.bf16.gmra.mxu3 %vm277_vm3, %v12167_v32  ;;  %v12476_v36 = vpop.f32.mrf.mxu0  ;;  %v2689_v32 = vld [vmem:[#allocation3 + $0xec] sm:$0xff] }
 0x446   : > { %14652 = vst [vmem:[#allocation82_spill] sm:$0xff] %v12476_v36  ;;  %v5406_v36 = vpack.c.bf16 %v5377_v38, %v5376_v53 }
 0x447   : > { %v2799_v23 = vpop.f32.mrf.mxu2 }
 0x448   : > { %v2864_v39 = vadd.f32 %v2799_v23, %v2638_v34  ;;  %v3025_v5 = vpop.f32.mrf.mxu3  ;;  %v2575_v45 = vpop.f32.mrf.mxu1  ;;  %v2688_v34 = vld [vmem:[#allocation3 + $0xe4] sm:$0xff] }
 0x449   : > { %v2639_v42 = vadd.f32 %v2575_v45, %v2413_v37  ;;  %v12490_v44 = vpack.c.bf16 %v2689_v32, %v2688_v34  ;;  %v12502_v45 = vld [vmem:[#allocation3 + $0x10c] sm:$0xff]  ;;  %v12504_v37 = vld [vmem:[#allocation3 + $0x114] sm:$0xff] }
 0x44a   : > { %v12480_v0 = vadd.f32 %v3025_v5, %v2864_v39  ;;  %v2932_v5 = vpack.c.bf16 %v2915_v17, %v12188_v6  ;;  %14654 = vst [vmem:[#allocation84_spill] sm:$0xff] %v12502_v45  ;;  %v5379_v17 = vld [vmem:[#allocation3 + $0x6f] sm:$0xff] }
 0x44b   : > { %14655 = vst [vmem:[#allocation85_spill] sm:$0xff] %v12504_v37 }
 0x44d   : > { %v12483_v13 = vpop.f32.mrf.mxu0 }
 0x44e   : > { %14653 = vst [vmem:[#allocation83_spill] sm:$0xff] %v12483_v13  ;;  %v12522_v13 = vld [vmem:[#allocation3 + $0xf4] sm:$0xff] }
 0x44f   : > { %v2801_v61 = vpop.f32.mrf.mxu2 }
 0x450   : > { %v2865_v63 = vadd.f32 %v2801_v61, %v2639_v42  ;;  %v3027_v62 = vpop.f32.mrf.mxu3  ;;  %v2578_v43 = vpop.f32.mrf.mxu1  ;;  %10272 = vmatmul.msk.bf16.gmra.mxu0 %vm277_vm3, %v5406_v36  ;;  %v2161_v42 = vadd.f32 %v11977_v22, %v11986_v51  ;;  %v5378_v22 = vld [vmem:[#allocation3 + $0x67] sm:$0xff] }
 0x451   : > { %v2640_v39 = vadd.f32 %v2578_v43, %v11943_v8  ;;  %v11158_v8 = vld [vmem:[%s14536_s3 + $0x50] sm:$0xff] }
 0x452   : > { %v12485_v23 = vadd.f32 %v3027_v62, %v2865_v63  ;;  %4128 = vmatpush.bf16.msrb.mxu2 %v11158_v8  ;;  %v11157_v63 = vld [vmem:[%s14536_s3 + $0x48] sm:$0xff]  ;;  %v2415_v62 = vadd.f32 %v11992_v56, %v2161_v42 }
 0x453   : > { %9998 = vmatmul.msk.bf16.gmra.mxu1 %vm277_vm3, %v12488_v50  ;;  %v2691_v8 = vld [vmem:[#allocation3 + $0xfc] sm:$0xf] }
 0x454   : > { %10020 = vmatmul.msk.bf16.gmra.mxu2 %vm277_vm3, %v12490_v44  ;;  %3902 = vmatpush.bf16.msrb.mxu1 %v11157_v63  ;;  %v2707_v63 = vpack.c.bf16 %v2691_v8, %v12522_v13  ;;  %v2166_v8 = vadd.f32 %v12001_v48, %v12003_v52 }
 0x455   : > { %10042 = vmatmul.msk.bf16.gmra.mxu3 %vm277_vm3, %v2932_v5  ;;  %v12508_v38 = vpop.f32.mrf.mxu0  ;;  %v2465_v5 = vld [vmem:[#allocation3 + $0xfb] sm:$0xf] }
 0x456   : > { %14656 = vst [vmem:[#allocation86_spill] sm:$0xff] %v12508_v38  ;;  %v12520_v38 = vld [vmem:[#allocation3 + $0xf3] sm:$0xff] }
 0x457   : > { %v2804_v6 = vpop.f32.mrf.mxu2 }
 0x458   : > { %v2866_v61 = vadd.f32 %v2804_v6, %v2640_v39  ;;  %v3030_v40 = vpop.f32.mrf.mxu3  ;;  %v2580_v32 = vpop.f32.mrf.mxu1  ;;  %v2916_v6 = vld [vmem:[#allocation3 + $0x102] sm:$0xff] }
 0x459   : > { %v2641_v43 = vadd.f32 %v2580_v32, %v2415_v62  ;;  %v2481_v32 = vpack.c.bf16 %v2465_v5, %v12520_v38  ;;  %v11159_v62 = vld [vmem:[%s14536_s3 + $0x58] sm:$0xff] }
 0x45a   : > { %v12512_v53 = vadd.f32 %v3030_v40, %v2866_v61  ;;  %v2917_v61 = vld [vmem:[#allocation3 + $0x10a] sm:$0xf]  ;;  %v5407_v40 = vpack.c.bf16 %v5379_v17, %v5378_v22  ;;  %4354 = vmatpush.bf16.msrb.mxu3 %v11159_v62  ;;  %v5380_v62 = vld [vmem:[#allocation3 + $0x77] sm:$0xff] }
 0x45b   : > { %v2933_v17 = vpack.c.bf16 %v2917_v61, %v2916_v6  ;;  %v3564_v61 = vld [vmem:[#allocation3 + $0x15] sm:$0xff] }
 0x45d   : > { %v12518_v34 = vpop.f32.mrf.mxu0 }
 0x45e   : > { %14657 = vst [vmem:[#allocation87_spill] sm:$0xff] %v12518_v34 }
 0x45f   : > { %v2806_v47 = vpop.f32.mrf.mxu2 }
 0x460   : > { %v2867_v51 = vadd.f32 %v2806_v47, %v2641_v43  ;;  %v3032_v39 = vpop.f32.mrf.mxu3  ;;  %v2583_v36 = vpop.f32.mrf.mxu1  ;;  %10273 = vmatmul.msk.bf16.gmra.mxu0 %vm277_vm3, %v5407_v40  ;;  %v3565_v40 = vld [vmem:[#allocation3 + $0x1d] sm:$0xff] }
 0x461   : > { %v2642_v42 = vadd.f32 %v2583_v36, %v11998_v35  ;;  %v3596_v34 = vpack.c.bf16 %v3565_v40, %v3564_v61  ;;  %v3567_v40 = vld [vmem:[#allocation3 + $0x2d] sm:$0xff] }
 0x462   : > { %v12524_v56 = vadd.f32 %v3032_v39, %v2867_v51  ;;  %v2417_v51 = vadd.f32 %v12007_v28, %v2166_v8  ;;  %v5381_v39 = vld [vmem:[#allocation3 + $0x7f] sm:$0xff] }
 0x463   : > { %9999 = vmatmul.msk.bf16.gmra.mxu1 %vm277_vm3, %v2481_v32 }
 0x464   : > { %10021 = vmatmul.msk.bf16.gmra.mxu2 %vm277_vm3, %v2707_v63 }
 0x465   : > { %10043 = vmatmul.msk.bf16.gmra.mxu3 %vm277_vm3, %v2933_v17  ;;  %v12536_v35 = vpop.f32.mrf.mxu0 }
 0x466   : > { %14658 = vst [vmem:[#allocation88_spill] sm:$0xff] %v12536_v35 }
 0x467   : > { %v2809_v43 = vpop.f32.mrf.mxu2 }
 0x468   : > { %v2868_v36 = vadd.f32 %v2809_v43, %v2642_v42  ;;  %v3035_v47 = vpop.f32.mrf.mxu3  ;;  %v2585_v5 = vpop.f32.mrf.mxu1  ;;  %v5408_v42 = vpack.c.bf16 %v5381_v39, %v5380_v62 }
 0x469   : > { %v2643_v6 = vadd.f32 %v2585_v5, %v2417_v51  ;;  %v5383_v51 = vld [vmem:[#allocation3 + $0x8f] sm:$0xff] }
 0x46a   : > { %v12540_v22 = vadd.f32 %v3035_v47, %v2868_v36 }
 0x46d   : > { %v12543_v63 = vpop.f32.mrf.mxu0 }
 0x46e   : > { %14659 = vst [vmem:[#allocation89_spill] sm:$0xff] %v12543_v63  ;;  %v3571_v63 = vld [vmem:[#allocation3 + $0x4d] sm:$0xff] }
 0x46f   : > { %v2811_v32 = vpop.f32.mrf.mxu2 }
 0x470   : > { %v2869_v17 = vadd.f32 %v2811_v32, %v2643_v6  ;;  %v3037_v35 = vpop.f32.mrf.mxu3  ;;  %v2588_v43 = vpop.f32.mrf.mxu1  ;;  %10274 = vmatmul.msk.bf16.gmra.mxu0 %vm277_vm3, %v5408_v42  ;;  %v14662_v42 = vld [vmem:[#allocation23_spill] sm:$0xff] }
 0x471   : > { %v2644_v48 = vadd.f32 %v2588_v43, %v12014_v18 }
 0x472   : > { %v12545_v1 = vadd.f32 %v3037_v35, %v2869_v17  ;;  %v2171_v35 = vadd.f32 %v12043_v27, %v12045_v24  ;;  %v3566_v27 = vld [vmem:[#allocation3 + $0x25] sm:$0xff] }
 0x473   : > { %10050 = vmatmul.msk.bf16.vlgmr.msra.gmra.mxu1 %vm277_vm3, %v12223_v57  ;;  %v12567_v24 = vpack.c.bf16 %v3567_v40, %v3566_v27 }
 0x474   : > { %10072 = vmatmul.msk.bf16.vlgmr.msra.gmra.mxu2 %vm277_vm3, %v12225_v46  ;;  %v2419_v8 = vadd.f32 %v12048_v25, %v2171_v35  ;;  %v5382_v46 = vld [vmem:[#allocation3 + $0x87] sm:$0xff] }
 0x475   : > { %10094 = vmatmul.msk.bf16.vlgmr.msra.gmra.mxu3 %vm277_vm3, %v3596_v34  ;;  %v12554_v28 = vpop.f32.mrf.mxu0  ;;  %v5409_v32 = vpack.c.bf16 %v5383_v51, %v5382_v46  ;;  %v14663_v25 = vld [vmem:[#allocation44_spill] sm:$0xff] }
 0x476   : > { %14660 = vst [vmem:[#allocation90_spill] sm:$0xff] %v12554_v28  ;;  %v14668_v46 = vld [vmem:[#allocation28_spill] sm:$0xff] }
 0x477   : > { %v2814_v52 = vpop.f32.mrf.mxu2 }
 0x478   : > { %v2870_v36 = vadd.f32 %v2814_v52, %v2644_v48  ;;  %v3040_v47 = vpop.f32.mrf.mxu3  ;;  %v2590_v5 = vpop.f32.mrf.mxu1  ;;  %v14664_v48 = vld [vmem:[#allocation45_spill] sm:$0xff] }
 0x479   : > { %v2645_v57 = vadd.f32 %v2590_v5, %v2419_v8  ;;  %v14667_v5 = vld [vmem:[#allocation27_spill] sm:$0xff] }
 0x47a   : > { %v12558_v18 = vadd.f32 %v3040_v47, %v2870_v36  ;;  %v14666_v47 = vld [vmem:[#allocation26_spill] sm:$0xff] }
 0x47b   : > { %v2176_v35 = vadd.f32 %v14667_v5, %v14666_v47  ;;  %v3568_v47 = vld [vmem:[#allocation3 + $0x35] sm:$0xff] }
 0x47d   : > { %v12561_v6 = vpop.f32.mrf.mxu0 }
 0x47e   : > { %14661 = vst [vmem:[#allocation91_spill] sm:$0xff] %v12561_v6 }
 0x47f   : > { %v2816_v39 = vpop.f32.mrf.mxu2 }
 0x480   : > { %v2871_v34 = vadd.f32 %v2816_v39, %v2645_v57  ;;  %v3042_v61 = vpop.f32.mrf.mxu3  ;;  %v2593_v62 = vpop.f32.mrf.mxu1  ;;  %10275 = vmatmul.msk.bf16.gmra.mxu0 %vm277_vm3, %v5409_v32 }
 0x481   : > { %v2646_v43 = vadd.f32 %v2593_v62, %v14662_v42  ;;  %v5384_v42 = vld [vmem:[#allocation3 + $0x97] sm:$0xff] }
 0x482   : > { %v12563_v17 = vadd.f32 %v3042_v61, %v2871_v34  ;;  %v2421_v34 = vadd.f32 %v14668_v46, %v2176_v35  ;;  %v5385_v61 = vld [vmem:[#allocation3 + $0x9f] sm:$0xff]  ;;  %v14671_v35 = vld [vmem:[#allocation49_spill] sm:$0xff]  ;;  %v14674_v46 = vld [vmem:[#allocation34_spill] sm:$0xff] }
 0x483   : > { %10051 = vmatmul.msk.bf16.gmra.mxu1 %vm277_vm3, %v14663_v25 }
 0x484   : > { %10073 = vmatmul.msk.bf16.gmra.mxu2 %vm277_vm3, %v14664_v48  ;;  %v3569_v48 = vld [vmem:[#allocation3 + $0x3d] sm:$0xff] }
 0x485   : > { %10095 = vmatmul.msk.bf16.gmra.mxu3 %vm277_vm3, %v12567_v24  ;;  %v12575_v36 = vpop.f32.mrf.mxu0  ;;  %v12588_v5 = vpack.c.bf16 %v3569_v48, %v3568_v47 }
 0x486   : > { %14665 = vst [vmem:[#allocation23_spill] sm:$0xff] %v12575_v36  ;;  %v5410_v36 = vpack.c.bf16 %v5385_v61, %v5384_v42  ;;  %v14676_v42 = vld [vmem:[#allocation36_spill] sm:$0xff] }
 0x487   : > { %v2819_v52 = vpop.f32.mrf.mxu2 }
 0x488   : > { %v2872_v8 = vadd.f32 %v2819_v52, %v2646_v43  ;;  %v3045_v51 = vpop.f32.mrf.mxu3  ;;  %v2595_v57 = vpop.f32.mrf.mxu1  ;;  %v14670_v43 = vld [vmem:[#allocation29_spill] sm:$0xff] }
 0x489   : > { %v2647_v40 = vadd.f32 %v2595_v57, %v2421_v34  ;;  %v14675_v34 = vld [vmem:[#allocation35_spill] sm:$0xff] }
 0x48a   : > { %v12579_v39 = vadd.f32 %v3045_v51, %v2872_v8  ;;  %v14672_v8 = vld [vmem:[#allocation51_spill] sm:$0xff] }
 0x48d   : > { %v12582_v62 = vpop.f32.mrf.mxu0 }
 0x48e   : > { %14669 = vst [vmem:[#allocation44_spill] sm:$0xff] %v12582_v62 }
 0x48f   : > { %v2821_v32 = vpop.f32.mrf.mxu2 }
 0x490   : > { %v2873_v27 = vadd.f32 %v2821_v32, %v2647_v40  ;;  %v3047_v25 = vpop.f32.mrf.mxu3  ;;  %v2598_v6 = vpop.f32.mrf.mxu1  ;;  %10276 = vmatmul.msk.bf16.gmra.mxu0 %vm277_vm3, %v5410_v36 }
 0x491   : > { %v2648_v52 = vadd.f32 %v2598_v6, %v14670_v43  ;;  %v2181_v6 = vadd.f32 %v14675_v34, %v14674_v46  ;;  %v3570_v46 = vld [vmem:[#allocation3 + $0x45] sm:$0xff] }
 0x492   : > { %v12584_v28 = vadd.f32 %v3047_v25, %v2873_v27  ;;  %v5387_v25 = vld [vmem:[#allocation3 + $0xaf] sm:$0xff]  ;;  %v12609_v34 = vpack.c.bf16 %v3571_v63, %v3570_v46  ;;  %v3573_v46 = vld [vmem:[#allocation3 + $0x5d] sm:$0xff] }
 0x493   : > { %10052 = vmatmul.msk.bf16.gmra.mxu1 %vm277_vm3, %v14671_v35  ;;  %v2423_v27 = vadd.f32 %v14676_v42, %v2181_v6  ;;  %v5386_v35 = vld [vmem:[#allocation3 + $0xa7] sm:$0xff]  ;;  %v14681_v63 = vld [vmem:[#allocation42_spill] sm:$0xff] }
 0x494   : > { %10074 = vmatmul.msk.bf16.gmra.mxu2 %vm277_vm3, %v14672_v8 }
 0x495   : > { %10096 = vmatmul.msk.bf16.gmra.mxu3 %vm277_vm3, %v12588_v5  ;;  %v12596_v57 = vpop.f32.mrf.mxu0 }
 0x496   : > { %14673 = vst [vmem:[#allocation45_spill] sm:$0xff] %v12596_v57  ;;  %v5411_v57 = vpack.c.bf16 %v5387_v25, %v5386_v35 }
 0x497   : > { %v2824_v51 = vpop.f32.mrf.mxu2 }
 0x498   : > { %v2874_v61 = vadd.f32 %v2824_v51, %v2648_v52  ;;  %v3050_v40 = vpop.f32.mrf.mxu3  ;;  %v2600_v36 = vpop.f32.mrf.mxu1  ;;  %v14678_v52 = vld [vmem:[#allocation37_spill] sm:$0xff] }
 0x499   : > { %v2649_v48 = vadd.f32 %v2600_v36, %v2423_v27 }
 0x49a   : > { %v12600_v32 = vadd.f32 %v3050_v40, %v2874_v61  ;;  %v14680_v40 = vld [vmem:[#allocation41_spill] sm:$0xff] }
 0x49d   : > { %v12603_v47 = vpop.f32.mrf.mxu0 }
 0x49e   : > { %14677 = vst [vmem:[#allocation26_spill] sm:$0xff] %v12603_v47 }
 0x49f   : > { %v2826_v43 = vpop.f32.mrf.mxu2 }
 0x4a0   : > { %v2875_v8 = vadd.f32 %v2826_v43, %v2649_v48  ;;  %v3052_v62 = vpop.f32.mrf.mxu3  ;;  %v2603_v33 = vpop.f32.mrf.mxu1  ;;  %10277 = vmatmul.msk.bf16.gmra.mxu0 %vm277_vm3, %v5411_v57  ;;  %v5388_v48 = vld [vmem:[#allocation3 + $0xb7] sm:$0xff] }
 0x4a1   : > { %v2650_v51 = vadd.f32 %v2603_v33, %v14678_v52 }
 0x4a2   : > { %v12605_v45 = vadd.f32 %v3052_v62, %v2875_v8  ;;  %v14679_v62 = vld [vmem:[#allocation40_spill] sm:$0xff] }
 0x4a3   : > { %10053 = vmatmul.msk.bf16.gmra.mxu1 %vm277_vm3, %v12279_v60  ;;  %v2186_v36 = vadd.f32 %v14680_v40, %v14679_v62  ;;  %v5389_v60 = vld [vmem:[#allocation3 + $0xbf] sm:$0xff]  ;;  %v3572_v62 = vld [vmem:[#allocation3 + $0x55] sm:$0xff] }
 0x4a4   : > { %10075 = vmatmul.msk.bf16.gmra.mxu2 %vm277_vm3, %v12281_v49  ;;  %v12628_v40 = vpack.c.bf16 %v3573_v46, %v3572_v62  ;;  %v5390_v46 = vld [vmem:[#allocation3 + $0xc7] sm:$0xff] }
 0x4a5   : > { %10097 = vmatmul.msk.bf16.gmra.mxu3 %vm277_vm3, %v12609_v34  ;;  %v4659_v61 = vpop.f32.mrf.mxu0  ;;  %v2425_v25 = vadd.f32 %v14681_v63, %v2186_v36  ;;  %v14686_v63 = vld [vmem:[#allocation46_spill] sm:$0xff] }
 0x4a6   : > { %v5412_v61 = vpack.c.bf16 %v5389_v60, %v5388_v48  ;;  %v3575_v62 = vld [vmem:[#allocation3 + $0x6d] sm:$0xff] }
 0x4a7   : > { %v2829_v6 = vpop.f32.mrf.mxu2 }
 0x4a8   : > { %v2876_v33 = vadd.f32 %v2829_v6, %v2650_v51  ;;  %v3055_v42 = vpop.f32.mrf.mxu3  ;;  %v2605_v27 = vpop.f32.mrf.mxu1  ;;  %v14684_v51 = vld [vmem:[#allocation43_spill] sm:$0xff] }
 0x4a9   : > { %v2651_v43 = vadd.f32 %v2605_v27, %v2425_v25  ;;  %v14687_v25 = vld [vmem:[#allocation47_spill] sm:$0xff] }
 0x4aa   : > { %v12619_v57 = vadd.f32 %v3055_v42, %v2876_v33  ;;  %v2191_v48 = vadd.f32 %v14687_v25, %v14686_v63  ;;  %v3574_v63 = vld [vmem:[#allocation3 + $0x65] sm:$0xff] }
 0x4ad   : > { %v12622_v49 = vpop.f32.mrf.mxu0 }
 0x4ae   : > { %14682 = vst [vmem:[#allocation27_spill] sm:$0xff] %v12622_v49  ;;  %v14692_v49 = vld [vmem:[#allocation50_spill] sm:$0xff] }
 0x4af   : > { %v2831_v35 = vpop.f32.mrf.mxu2 }
 0x4b0   : > { %v2877_v8 = vadd.f32 %v2831_v35, %v2651_v43  ;;  %v3057_v52 = vpop.f32.mrf.mxu3  ;;  %v2608_v47 = vpop.f32.mrf.mxu1  ;;  %10278 = vmatmul.msk.bf16.gmra.mxu0 %vm277_vm3, %v5412_v61  ;;  %v14689_v43 = vld [vmem:[#allocation48_spill] sm:$0xff] }
 0x4b1   : > { %v2652_v6 = vadd.f32 %v2608_v47, %v14684_v51  ;;  %v2427_v35 = vadd.f32 %v14689_v43, %v2191_v48  ;;  %v14697_v43 = vld [vmem:[#allocation56_spill] sm:$0xff] }
 0x4b2   : > { %v12624_v37 = vadd.f32 %v3057_v52, %v2877_v8 }
 0x4b3   : > { %10054 = vmatmul.msk.bf16.gmra.mxu1 %vm277_vm3, %v12295_v54  ;;  %v5391_v54 = vld [vmem:[#allocation3 + $0xcf] sm:$0xff] }
 0x4b4   : > { %14683 = vst [vmem:[#allocation28_spill] sm:$0xff] %v12624_v37  ;;  %10076 = vmatmul.msk.bf16.gmra.mxu2 %vm277_vm3, %v12297_v3 }
 0x4b5   : > { %10098 = vmatmul.msk.bf16.gmra.mxu3 %vm277_vm3, %v12628_v40  ;;  %v12636_v33 = vpop.f32.mrf.mxu0 }
 0x4b6   : > { %14685 = vst [vmem:[#allocation29_spill] sm:$0xff] %v12636_v33  ;;  %v5413_v33 = vpack.c.bf16 %v5391_v54, %v5390_v46  ;;  %v14699_v46 = vld [vmem:[#allocation59_spill] sm:$0xff] }
 0x4b7   : > { %v2834_v36 = vpop.f32.mrf.mxu2 }
 0x4b8   : > { %v2878_v42 = vadd.f32 %v2834_v36, %v2652_v6  ;;  %v3060_v27 = vpop.f32.mrf.mxu3  ;;  %v2610_v47 = vpop.f32.mrf.mxu1 }
 0x4b9   : > { %v2653_v8 = vadd.f32 %v2610_v47, %v2427_v35  ;;  %v14695_v47 = vld [vmem:[#allocation61_spill] sm:$0xff] }
 0x4ba   : > { %v12640_v60 = vadd.f32 %v3060_v27, %v2878_v42  ;;  %v12649_v42 = vpack.c.bf16 %v3575_v62, %v3574_v63  ;;  %v14694_v27 = vld [vmem:[#allocation60_spill] sm:$0xff]  ;;  %v14698_v35 = vld [vmem:[#allocation57_spill] sm:$0xff] }
 0x4bc   : > { %14688 = vst [vmem:[#allocation49_spill] sm:$0xff] %v12640_v60 }
 0x4bd   : > { %v12643_v3 = vpop.f32.mrf.mxu0  ;;  %14693 = vst [vmem:[#allocation35_spill] sm:$0xff] %v12649_v42 }
 0x4be   : > { %14690 = vst [vmem:[#allocation51_spill] sm:$0xff] %v12643_v3 }
 0x4bf   : > { %v2836_v52 = vpop.f32.mrf.mxu2 }
 0x4c0   : > { %v2879_v61 = vadd.f32 %v2836_v52, %v2653_v8  ;;  %v3062_v51 = vpop.f32.mrf.mxu3  ;;  %v2613_v6 = vpop.f32.mrf.mxu1  ;;  %10279 = vmatmul.msk.bf16.gmra.mxu0 %vm277_vm3, %v5413_v33 }
 0x4c1   : > { %v2654_v37 = vadd.f32 %v2613_v6, %v14692_v49  ;;  %v2196_v49 = vadd.f32 %v14698_v35, %v14697_v43  ;;  %v14701_v35 = vld [vmem:[#allocation65_spill] sm:$0xff] }
 0x4c2   : > { %v12645_v36 = vadd.f32 %v3062_v51, %v2879_v61  ;;  %v5393_v51 = vld [vmem:[#allocation3 + $0xdf] sm:$0xff] }
 0x4c3   : > { %10055 = vmatmul.msk.bf16.gmra.mxu1 %vm277_vm3, %v14694_v27  ;;  %v2429_v61 = vadd.f32 %v14699_v46, %v2196_v49  ;;  %v5392_v27 = vld [vmem:[#allocation3 + $0xd7] sm:$0xff] }
 0x4c4   : > { %14691 = vst [vmem:[#allocation34_spill] sm:$0xff] %v12645_v36  ;;  %10077 = vmatmul.msk.bf16.gmra.mxu2 %vm277_vm3, %v14695_v47  ;;  %v3577_v36 = vld [vmem:[#allocation3 + $0x7d] sm:$0xff] }
 0x4c5   : > { %10099 = vmatmul.msk.bf16.gmra.mxu3 %vm277_vm3, %v12649_v42  ;;  %v12657_v48 = vpop.f32.mrf.mxu0 }
 0x4c6   : > { %14696 = vst [vmem:[#allocation36_spill] sm:$0xff] %v12657_v48  ;;  %v5414_v48 = vpack.c.bf16 %v5393_v51, %v5392_v27 }
 0x4c7   : > { %v2839_v25 = vpop.f32.mrf.mxu2 }
 0x4c8   : > { %v2880_v54 = vadd.f32 %v2839_v25, %v2654_v37  ;;  %v3065_v8 = vpop.f32.mrf.mxu3  ;;  %v2615_v33 = vpop.f32.mrf.mxu1  ;;  %v3576_v25 = vld [vmem:[#allocation3 + $0x75] sm:$0xff] }
 0x4c9   : > { %v2655_v62 = vadd.f32 %v2615_v33, %v2429_v61  ;;  %v12670_v43 = vpack.c.bf16 %v3577_v36, %v3576_v25  ;;  %v5395_v33 = vld [vmem:[#allocation3 + $0xef] sm:$0xff] }
 0x4ca   : > { %v12661_v52 = vadd.f32 %v3065_v8, %v2880_v54 }
 0x4cd   : > { %v12664_v63 = vpop.f32.mrf.mxu0 }
 0x4ce   : > { %14700 = vst [vmem:[#allocation37_spill] sm:$0xff] %v12664_v63 }
 0x4cf   : > { %v2841_v6 = vpop.f32.mrf.mxu2 }
 0x4d0   : > { %v2881_v47 = vadd.f32 %v2841_v6, %v2655_v62  ;;  %v3067_v3 = vpop.f32.mrf.mxu3  ;;  %v2618_v42 = vpop.f32.mrf.mxu1  ;;  %10280 = vmatmul.msk.bf16.gmra.mxu0 %vm277_vm3, %v5414_v48  ;;  %v14703_v48 = vld [vmem:[#allocation64_spill] sm:$0xff]  ;;  %v3579_v6 = vld [vmem:[#allocation3 + $0x8d] sm:$0xff] }
 0x4d1   : > { %v2656_v37 = vadd.f32 %v2618_v42, %v12327_v16 }
 0x4d2   : > { %v12666_v60 = vadd.f32 %v3067_v3, %v2881_v47 }
 0x4d3   : > { %10056 = vmatmul.msk.bf16.gmra.mxu1 %vm277_vm3, %v12333_v4  ;;  %v5394_v4 = vld [vmem:[#allocation3 + $0xe7] sm:$0xff] }
 0x4d4   : > { %10078 = vmatmul.msk.bf16.gmra.mxu2 %vm277_vm3, %v14701_v35  ;;  %v5415_v27 = vpack.c.bf16 %v5395_v33, %v5394_v4  ;;  %v3578_v35 = vld [vmem:[#allocation3 + $0x85] sm:$0xff] }
 0x4d5   : > { %10100 = vmatmul.msk.bf16.gmra.mxu3 %vm277_vm3, %v12670_v43  ;;  %v12678_v54 = vpop.f32.mrf.mxu0 }
 0x4d6   : > { %14702 = vst [vmem:[#allocation40_spill] sm:$0xff] %v12678_v54 }
 0x4d7   : > { %v2844_v49 = vpop.f32.mrf.mxu2 }
 0x4d8   : > { %v2882_v3 = vadd.f32 %v2844_v49, %v2656_v37  ;;  %v3070_v8 = vpop.f32.mrf.mxu3  ;;  %v2620_v16 = vpop.f32.mrf.mxu1  ;;  %v12689_v49 = vpack.c.bf16 %v3579_v6, %v3578_v35  ;;  %v3581_v6 = vld [vmem:[#allocation3 + $0x9d] sm:$0xff]  ;;  %v14708_v35 = vld [vmem:[#allocation70_spill] sm:$0xff] }
 0x4d9   : > { %v2657_v36 = vadd.f32 %v2620_v16, %v14703_v48 }
 0x4da   : > { %v12680_v42 = vadd.f32 %v3070_v8, %v2882_v3  ;;  %v14705_v3 = vld [vmem:[#allocation68_spill] sm:$0xff] }
 0x4dd   : > { %v12683_v61 = vpop.f32.mrf.mxu0 }
 0x4de   : > { %14704 = vst [vmem:[#allocation41_spill] sm:$0xff] %v12683_v61  ;;  %v3580_v61 = vld [vmem:[#allocation3 + $0x95] sm:$0xff] }
 0x4df   : > { %v2846_v46 = vpop.f32.mrf.mxu2 }
 0x4e0   : > { %v2883_v51 = vadd.f32 %v2846_v46, %v2657_v36  ;;  %v3072_v62 = vpop.f32.mrf.mxu3  ;;  %v2623_v47 = vpop.f32.mrf.mxu1  ;;  %10281 = vmatmul.msk.bf16.gmra.mxu0 %vm277_vm3, %v5415_v27  ;;  %v5397_v46 = vld [vmem:[#allocation3 + $0xff] sm:$0xff] }
 0x4e1   : > { %v2658_v37 = vadd.f32 %v2623_v47, %v12345_v29 }
 0x4e2   : > { %v12685_v25 = vadd.f32 %v3072_v62, %v2883_v51  ;;  %v5396_v62 = vld [vmem:[#allocation3 + $0xf7] sm:$0xff] }
 0x4e3   : > { %10057 = vmatmul.msk.bf16.gmra.mxu1 %vm277_vm3, %v12351_v30  ;;  %v5416_v27 = vpack.c.bf16 %v5397_v46, %v5396_v62  ;;  %v5398_v62 = vld [vmem:[#allocation3 + $0x107] sm:$0xff] }
 0x4e4   : > { %10079 = vmatmul.msk.bf16.gmra.mxu2 %vm277_vm3, %v14705_v3 }
 0x4e5   : > { %10101 = vmatmul.msk.bf16.gmra.mxu3 %vm277_vm3, %v12689_v49  ;;  %v12697_v16 = vpop.f32.mrf.mxu0 }
 0x4e6   : > { %14706 = vst [vmem:[#allocation42_spill] sm:$0xff] %v12697_v16  ;;  %v12705_v16 = vpack.c.bf16 %v3581_v6, %v3580_v61 }
 0x4e7   : > { %v2849_v8 = vpop.f32.mrf.mxu2 }
 0x4e8   : > { %v2884_v48 = vadd.f32 %v2849_v8, %v2658_v37  ;;  %v3075_v36 = vpop.f32.mrf.mxu3  ;;  %v2625_v29 = vpop.f32.mrf.mxu1 }
 0x4ea   : > { %v12699_v33 = vadd.f32 %v3075_v36, %v2884_v48 }
 0x4ed   : > { %v12701_v51 = vpop.f32.mrf.mxu0 }
 0x4ee   : > { %14707 = vst [vmem:[#allocation43_spill] sm:$0xff] %v12701_v51 }
 0x4ef   : > { %v2851_v4 = vpop.f32.mrf.mxu2 }
 0x4f0   : > { %v3077_v30 = vpop.f32.mrf.mxu3  ;;  %v3226_v47 = vpop.f32.mrf.mxu1  ;;  %10282 = vmatmul.msk.bf16.gmra.mxu0 %vm277_vm3, %v5416_v27  ;;  %v14710_v4 = vld [vmem:[#allocation72_spill] sm:$0xff] }
 0x4f1   : > { %v3306_v3 = vadd.f32 %v3226_v47, %v14708_v35  ;;  %v5399_v30 = vld [vmem:[#allocation3 + $0x10f] sm:$0xff]  ;;  %v3582_v47 = vld [vmem:[#allocation3 + $0xa5] sm:$0xff] }
 0x4f2   : > { %v3583_v35 = vld [vmem:[#allocation3 + $0xad] sm:$0xff]  ;;  %v5417_v51 = vpack.c.bf16 %v5399_v30, %v5398_v62  ;;  %v5401_v62 = vld [vmem:[#allocation3 + $0x11f] sm:$0xff] }
 0x4f3   : > { %10058 = vmatmul.msk.bf16.gmra.mxu1 %vm277_vm3, %v12374_v9 }
 0x4f4   : > { %10080 = vmatmul.msk.bf16.gmra.mxu2 %vm277_vm3, %v12376_v10 }
 0x4f5   : > { %10102 = vmatmul.msk.bf16.gmra.mxu3 %vm277_vm3, %v12705_v16  ;;  %v12713_v8 = vpop.f32.mrf.mxu0 }
 0x4f6   : > { %14709 = vst [vmem:[#allocation46_spill] sm:$0xff] %v12713_v8 }
 0x4f7   : > { %v3452_v37 = vpop.f32.mrf.mxu2 }
 0x4f8   : > { %v3532_v48 = vadd.f32 %v3452_v37, %v3306_v3  ;;  %v3678_v36 = vpop.f32.mrf.mxu3  ;;  %v3228_v29 = vpop.f32.mrf.mxu1  ;;  %v12724_v37 = vpack.c.bf16 %v3583_v35, %v3582_v47 }
 0x4f9   : > { %v3307_v61 = vadd.f32 %v3228_v29, %v14710_v4 }
 0x4fa   : > { %v12715_v46 = vadd.f32 %v3678_v36, %v3532_v48 }
 0x4fd   : > { %v12718_v9 = vpop.f32.mrf.mxu0 }
 0x4fe   : > { %14711 = vst [vmem:[#allocation47_spill] sm:$0xff] %v12718_v9  ;;  %v3800_v9 = vld [vmem:[#allocation3 + $0x66] sm:$0xff] }
 0x4ff   : > { %v3454_v6 = vpop.f32.mrf.mxu2 }
 0x500   : > { %v3533_v27 = vadd.f32 %v3454_v6, %v3307_v61  ;;  %v3680_v10 = vpop.f32.mrf.mxu3  ;;  %v3231_v54 = vpop.f32.mrf.mxu1  ;;  %10283 = vmatmul.msk.bf16.gmra.mxu0 %vm277_vm3, %v5417_v51  ;;  %v5400_v51 = vld [vmem:[#allocation3 + $0x117] sm:$0xff] }
 0x501   : > { %v3308_v3 = vadd.f32 %v3231_v54, %v12388_v21 }
 0x502   : > { %v12720_v63 = vadd.f32 %v3680_v10, %v3533_v27  ;;  %v3585_v27 = vld [vmem:[#allocation3 + $0xbd] sm:$0xff]  ;;  %v5418_v10 = vpack.c.bf16 %v5401_v62, %v5400_v51 }
 0x503   : > { %10059 = vmatmul.msk.bf16.gmra.mxu1 %vm277_vm3, %v12396_v59 }
 0x504   : > { %10081 = vmatmul.msk.bf16.gmra.mxu2 %vm277_vm3, %v12398_v15 }
 0x505   : > { %10103 = vmatmul.msk.bf16.gmra.mxu3 %vm277_vm3, %v12724_v37  ;;  %v12732_v36 = vpop.f32.mrf.mxu0 }
 0x506   : > { %14712 = vst [vmem:[#allocation48_spill] sm:$0xff] %v12732_v36 }
 0x507   : > { %v3457_v48 = vpop.f32.mrf.mxu2 }
 0x508   : > { %v3534_v29 = vadd.f32 %v3457_v48, %v3308_v3  ;;  %v3683_v4 = vpop.f32.mrf.mxu3  ;;  %v3233_v61 = vpop.f32.mrf.mxu1  ;;  %v3584_v48 = vld [vmem:[#allocation3 + $0xb5] sm:$0xff] }
 0x509   : > { %v3309_v54 = vadd.f32 %v3233_v61, %v12393_v31  ;;  %v11168_v31 = vld [vmem:[%s14536_s3 + $0xa0] sm:$0xff] }
 0x50a   : > { %v12734_v21 = vadd.f32 %v3683_v4, %v3534_v29  ;;  %v12746_v29 = vpack.c.bf16 %v3585_v27, %v3584_v48  ;;  %6388 = vmatpush.bf16.msrb.mxu0 %v11168_v31  ;;  %v5403_v27 = vld [vmem:[#allocation3 + $0x12f] sm:$0xf] }
 0x50d   : > { %v12737_v59 = vpop.f32.mrf.mxu0 }
 0x50e   : > { %14713 = vst [vmem:[#allocation50_spill] sm:$0xff] %v12737_v59  ;;  %v3587_v59 = vld [vmem:[#allocation3 + $0xcd] sm:$0xff] }
 0x50f   : > { %v3459_v30 = vpop.f32.mrf.mxu2 }
 0x510   : > { %v3535_v6 = vadd.f32 %v3459_v30, %v3309_v54  ;;  %v3685_v15 = vpop.f32.mrf.mxu3  ;;  %v3236_v47 = vpop.f32.mrf.mxu1  ;;  %10284 = vmatmul.msk.bf16.gmra.mxu0 %vm277_vm3, %v5418_v10  ;;  %v14715_v30 = vld [vmem:[#allocation77_spill] sm:$0xff] }
 0x511   : > { %v3310_v3 = vadd.f32 %v3236_v47, %v12413_v55 }
 0x512   : > { %v12739_v35 = vadd.f32 %v3685_v15, %v3535_v6  ;;  %v5402_v15 = vld [vmem:[#allocation3 + $0x127] sm:$0xff] }
 0x513   : > { %10060 = vmatmul.msk.bf16.gmra.mxu1 %vm277_vm3, %v12421_v14  ;;  %v5419_v14 = vpack.c.bf16 %v5403_v27, %v5402_v15  ;;  %v6277_v27 = vld [vmem:[#allocation3 + $0x50] sm:$0xff] }
 0x514   : > { %10082 = vmatmul.msk.bf16.gmra.mxu2 %vm277_vm3, %v12423_v41 }
 0x515   : > { %10104 = vmatmul.msk.bf16.gmra.mxu3 %vm277_vm3, %v12746_v29  ;;  %v12754_v4 = vpop.f32.mrf.mxu0 }
 0x516   : > { %14714 = vst [vmem:[#allocation60_spill] sm:$0xff] %v12754_v4 }
 0x517   : > { %v3462_v55 = vpop.f32.mrf.mxu2 }
 0x518   : > { %v3536_v61 = vadd.f32 %v3462_v55, %v3310_v3  ;;  %v3688_v54 = vpop.f32.mrf.mxu3  ;;  %v3238_v51 = vpop.f32.mrf.mxu1  ;;  %v3586_v55 = vld [vmem:[#allocation3 + $0xc5] sm:$0xff] }
 0x519   : > { %v3311_v6 = vadd.f32 %v3238_v51, %v14715_v30 }
 0x51a   : > { %v12756_v62 = vadd.f32 %v3688_v54, %v3536_v61  ;;  %v12765_v61 = vpack.c.bf16 %v3587_v59, %v3586_v55 }
 0x51d   : > { %v12759_v47 = vpop.f32.mrf.mxu0 }
 0x51e   : > { %14716 = vst [vmem:[#allocation61_spill] sm:$0xff] %v12759_v47 }
 0x51f   : > { %v3464_v10 = vpop.f32.mrf.mxu2 }
 0x520   : > { %v3537_v41 = vadd.f32 %v3464_v10, %v3311_v6  ;;  %v3690_v48 = vpop.f32.mrf.mxu3  ;;  %v3241_v31 = vpop.f32.mrf.mxu1  ;;  %10285 = vmatmul.msk.bf16.gmra.mxu0 %vm277_vm3, %v5419_v14 }
 0x521   : > { %v3312_v3 = vadd.f32 %v3241_v31, %v12435_v12 }
 0x522   : > { %v12761_v36 = vadd.f32 %v3690_v48, %v3537_v41  ;;  %v3589_v48 = vld [vmem:[#allocation3 + $0xdd] sm:$0xff] }
 0x523   : > { %10061 = vmatmul.msk.bf16.gmra.mxu1 %vm277_vm3, %v12443_v19  ;;  %v6276_v19 = vld [vmem:[#allocation3 + $0x48] sm:$0xff] }
 0x524   : > { %10083 = vmatmul.msk.bf16.gmra.mxu2 %vm277_vm3, %v12445_v58  ;;  %v6308_v31 = vpack.c.bf16 %v6277_v27, %v6276_v19  ;;  %v6279_v19 = vld [vmem:[#allocation3 + $0x60] sm:$0xff] }
 0x525   : > { %10105 = vmatmul.msk.bf16.gmra.mxu3 %vm277_vm3, %v12765_v61  ;;  %v12773_v51 = vpop.f32.mrf.mxu0 }
 0x526   : > { %14717 = vst [vmem:[#allocation56_spill] sm:$0xff] %v12773_v51 }
 0x527   : > { %v3467_v54 = vpop.f32.mrf.mxu2 }
 0x528   : > { %v3538_v30 = vadd.f32 %v3467_v54, %v3312_v3  ;;  %v3693_v6 = vpop.f32.mrf.mxu3  ;;  %v3243_v12 = vpop.f32.mrf.mxu1  ;;  %v3588_v54 = vld [vmem:[#allocation3 + $0xd5] sm:$0xff] }
 0x529   : > { %v3313_v59 = vadd.f32 %v3243_v12, %v12440_v2 }
 0x52a   : > { %v12775_v15 = vadd.f32 %v3693_v6, %v3538_v30  ;;  %v12784_v30 = vpack.c.bf16 %v3589_v48, %v3588_v54 }
 0x52d   : > { %v12778_v10 = vpop.f32.mrf.mxu0 }
 0x52e   : > { %14718 = vst [vmem:[#allocation57_spill] sm:$0xff] %v12778_v10 }
 0x52f   : > { %v3469_v14 = vpop.f32.mrf.mxu2 }
 0x530   : > { %v3539_v41 = vadd.f32 %v3469_v14, %v3313_v59  ;;  %v3695_v58 = vpop.f32.mrf.mxu3  ;;  %v3246_v55 = vpop.f32.mrf.mxu1  ;;  %10358 = vmatmul.msk.bf16.vlgmr.msrb.gmra.mxu0 %vm277_vm3, %v6308_v31  ;;  %v3591_v31 = vld [vmem:[#allocation3 + $0xed] sm:$0xff] }
 0x531   : > { %v3314_v3 = vadd.f32 %v3246_v55, %v12457_v11 }
 0x532   : > { %v12780_v47 = vadd.f32 %v3695_v58, %v3539_v41 }
 0x533   : > { %10062 = vmatmul.msk.bf16.gmra.mxu1 %vm277_vm3, %v12465_v20  ;;  %v6278_v20 = vld [vmem:[#allocation3 + $0x58] sm:$0xff] }
 0x534   : > { %10084 = vmatmul.msk.bf16.gmra.mxu2 %vm277_vm3, %v12467_v26  ;;  %v6309_v55 = vpack.c.bf16 %v6279_v19, %v6278_v20  ;;  %v6281_v20 = vld [vmem:[#allocation3 + $0x70] sm:$0xff] }
 0x535   : > { %10106 = vmatmul.msk.bf16.gmra.mxu3 %vm277_vm3, %v12784_v30  ;;  %v12792_v6 = vpop.f32.mrf.mxu0 }
 0x536   : > { %14719 = vst [vmem:[#allocation59_spill] sm:$0xff] %v12792_v6 }
 0x537   : > { %v3472_v2 = vpop.f32.mrf.mxu2 }
 0x538   : > { %v3540_v12 = vadd.f32 %v3472_v2, %v3314_v3  ;;  %v3698_v59 = vpop.f32.mrf.mxu3  ;;  %v3248_v11 = vpop.f32.mrf.mxu1  ;;  %v3590_v2 = vld [vmem:[#allocation3 + $0xe5] sm:$0xff] }
 0x539   : > { %v3315_v14 = vadd.f32 %v3248_v11, %v12462_v7 }
 0x53a   : > { %v12794_v27 = vadd.f32 %v3698_v59, %v3540_v12  ;;  %v12803_v12 = vpack.c.bf16 %v3591_v31, %v3590_v2  ;;  %v12818_v31 = vld [vmem:[#allocation3 + $0xfc] sm:$0xff] }
 0x53b   : > { %v3593_v2 = vld [vmem:[#allocation3 + $0xfd] sm:$0xff] }
 0x53d   : > { %v12797_v58 = vpop.f32.mrf.mxu0 }
 0x53e   : > { %14720 = vst [vmem:[#allocation65_spill] sm:$0xff] %v12797_v58 }
 0x53f   : > { %v3474_v41 = vpop.f32.mrf.mxu2 }
 0x540   : > { %v3541_v48 = vadd.f32 %v3474_v41, %v3315_v14  ;;  %v3700_v26 = vpop.f32.mrf.mxu3  ;;  %v3251_v54 = vpop.f32.mrf.mxu1  ;;  %10359 = vmatmul.msk.bf16.gmra.mxu0 %vm277_vm3, %v6309_v55 }
 0x541   : > { %v3316_v3 = vadd.f32 %v3251_v54, %v12480_v0 }
 0x542   : > { %v12799_v10 = vadd.f32 %v3700_v26, %v3541_v48 }
 0x543   : > { %10063 = vmatmul.msk.bf16.gmra.mxu1 %vm277_vm3, %v12488_v50  ;;  %v3141_v50 = vld [vmem:[#allocation3 + $0xfb] sm:$0xff] }
 0x544   : > { %10085 = vmatmul.msk.bf16.gmra.mxu2 %vm277_vm3, %v12490_v44  ;;  %v6280_v44 = vld [vmem:[#allocation3 + $0x68] sm:$0xff] }
 0x545   : > { %10107 = vmatmul.msk.bf16.gmra.mxu3 %vm277_vm3, %v12803_v12  ;;  %v12811_v59 = vpop.f32.mrf.mxu0  ;;  %v6310_v58 = vpack.c.bf16 %v6281_v20, %v6280_v44  ;;  %v6283_v44 = vld [vmem:[#allocation3 + $0x80] sm:$0xff] }
 0x546   : > { %14721 = vst [vmem:[#allocation64_spill] sm:$0xff] %v12811_v59 }
 0x547   : > { %v3477_v7 = vpop.f32.mrf.mxu2 }
 0x548   : > { %v3542_v11 = vadd.f32 %v3477_v7, %v3316_v3  ;;  %v3703_v14 = vpop.f32.mrf.mxu3  ;;  %v3253_v0 = vpop.f32.mrf.mxu1 }
 0x549   : > { %v3317_v41 = vadd.f32 %v3253_v0, %v12485_v23  ;;  %v3384_v23 = vpack.c.bf16 %v12818_v31, %v12522_v13 }
 0x54a   : > { %v12813_v19 = vadd.f32 %v3703_v14, %v3542_v11  ;;  %v3158_v11 = vpack.c.bf16 %v3141_v50, %v12520_v38  ;;  %v3592_v14 = vld [vmem:[#allocation3 + $0xf5] sm:$0xff] }
 0x54b   : > { %v12827_v0 = vpack.c.bf16 %v3593_v2, %v3592_v14  ;;  %v11161_v50 = vld [vmem:[%s14536_s3 + $0x68] sm:$0xff]  ;;  %v12846_v14 = vld [vmem:[#allocation3 + $0x104] sm:$0xff] }
 0x54c   : > { %4806 = vmatpush.bf16.msra.mxu1 %v11161_v50 }
 0x54d   : > { %v12816_v26 = vpop.f32.mrf.mxu0 }
 0x54e   : > { %14722 = vst [vmem:[#allocation68_spill] sm:$0xff] %v12816_v26 }
 0x54f   : > { %v3479_v48 = vpop.f32.mrf.mxu2 }
 0x550   : > { %v3543_v55 = vadd.f32 %v3479_v48, %v3317_v41  ;;  %v3705_v54 = vpop.f32.mrf.mxu3  ;;  %v3256_v59 = vpop.f32.mrf.mxu1  ;;  %10360 = vmatmul.msk.bf16.gmra.mxu0 %vm277_vm3, %v6310_v58 }
 0x551   : > { %v3318_v7 = vadd.f32 %v3256_v59, %v12512_v53  ;;  %v11162_v53 = vld [vmem:[%s14536_s3 + $0x70] sm:$0xff] }
 0x552   : > { %v12820_v3 = vadd.f32 %v3705_v54, %v3543_v55  ;;  %5032 = vmatpush.bf16.msra.mxu2 %v11162_v53  ;;  %v3142_v55 = vld [vmem:[#allocation3 + $0x103] sm:$0xff]  ;;  %v6282_v54 = vld [vmem:[#allocation3 + $0x78] sm:$0xff] }
 0x553   : > { %10064 = vmatmul.msk.bf16.gmra.mxu1 %vm277_vm3, %v3158_v11 }
 0x554   : > { %10086 = vmatmul.msk.bf16.gmra.mxu2 %vm277_vm3, %v3384_v23  ;;  %v3143_v23 = vld [vmem:[#allocation3 + $0x10b] sm:$0xf] }
 0x555   : > { %10108 = vmatmul.msk.bf16.gmra.mxu3 %vm277_vm3, %v12827_v0  ;;  %v12836_v59 = vpop.f32.mrf.mxu0  ;;  %v3159_v26 = vpack.c.bf16 %v3143_v23, %v3142_v55 }
 0x556   : > { %14723 = vst [vmem:[#allocation70_spill] sm:$0xff] %v12836_v59 }
 0x557   : > { %v3482_v38 = vpop.f32.mrf.mxu2 }
 0x558   : > { %v3544_v13 = vadd.f32 %v3482_v38, %v3318_v7  ;;  %v3708_v41 = vpop.f32.mrf.mxu3  ;;  %v3258_v58 = vpop.f32.mrf.mxu1  ;;  %v3369_v7 = vld [vmem:[#allocation3 + $0x10c] sm:$0xf] }
 0x559   : > { %v3319_v48 = vadd.f32 %v3258_v58, %v12524_v56  ;;  %v3595_v56 = vld [vmem:[#allocation3 + $0x10d] sm:$0xf]  ;;  %v3385_v6 = vpack.c.bf16 %v3369_v7, %v12846_v14 }
 0x55a   : > { %v12838_v20 = vadd.f32 %v3708_v41, %v3544_v13  ;;  %v12848_v13 = vld [vmem:[#allocation3 + $0x105] sm:$0xff]  ;;  %v6311_v41 = vpack.c.bf16 %v6283_v44, %v6282_v54 }
 0x55d   : > { %v12844_v11 = vpop.f32.mrf.mxu0 }
 0x55e   : > { %14724 = vst [vmem:[#allocation72_spill] sm:$0xff] %v12844_v11  ;;  %v11163_v11 = vld [vmem:[%s14536_s3 + $0x78] sm:$0xff] }
 0x55f   : > { %v3484_v2 = vpop.f32.mrf.mxu2  ;;  %5258 = vmatpush.bf16.msra.mxu3 %v11163_v11 }
 0x560   : > { %v3545_v53 = vadd.f32 %v3484_v2, %v3319_v48  ;;  %v3710_v38 = vpop.f32.mrf.mxu3  ;;  %v3261_v58 = vpop.f32.mrf.mxu1  ;;  %10361 = vmatmul.msk.bf16.gmra.mxu0 %vm277_vm3, %v6311_v41  ;;  %v3611_v48 = vpack.c.bf16 %v3595_v56, %v12848_v13  ;;  %v6285_v56 = vld [vmem:[#allocation3 + $0x90] sm:$0xff] }
 0x561   : > { %v3320_v50 = vadd.f32 %v3261_v58, %v12540_v22  ;;  %v6284_v58 = vld [vmem:[#allocation3 + $0x88] sm:$0xff] }
 0x562   : > { %v12850_v59 = vadd.f32 %v3710_v38, %v3545_v53  ;;  %v3790_v53 = vld [vmem:[#allocation3 + $0x16] sm:$0xff]  ;;  %v3791_v38 = vld [vmem:[#allocation3 + $0x1e] sm:$0xff]  ;;  %v6312_v4 = vpack.c.bf16 %v6285_v56, %v6284_v58 }
 0x563   : > { %10065 = vmatmul.msk.bf16.gmra.mxu1 %vm277_vm3, %v3159_v26  ;;  %v3822_v51 = vpack.c.bf16 %v3791_v38, %v3790_v53  ;;  %v6286_v58 = vld [vmem:[#allocation3 + $0x98] sm:$0xff] }
 0x564   : > { %10087 = vmatmul.msk.bf16.gmra.mxu2 %vm277_vm3, %v3385_v6  ;;  %v4017_v6 = vld [vmem:[#allocation3 + $0x2c] sm:$0xff] }
 0x565   : > { %10109 = vmatmul.msk.bf16.gmra.mxu3 %vm277_vm3, %v3611_v48  ;;  %v12862_v22 = vpop.f32.mrf.mxu0 }
 0x566   : > { %14725 = vst [vmem:[#allocation77_spill] sm:$0xff] %v12862_v22 }
 0x567   : > { %v3487_v44 = vpop.f32.mrf.mxu2 }
 0x568   : > { %v3546_v55 = vadd.f32 %v3487_v44, %v3320_v50  ;;  %v3713_v54 = vpop.f32.mrf.mxu3  ;;  %v3263_v2 = vpop.f32.mrf.mxu1  ;;  %v4016_v50 = vld [vmem:[#allocation3 + $0x24] sm:$0xff] }
 0x569   : > { %v3321_v7 = vadd.f32 %v3263_v2, %v12545_v1 }
 0x56a   : > { %v12864_v23 = vadd.f32 %v3713_v54, %v3546_v55  ;;  %v4048_v54 = vpack.c.bf16 %v4017_v6, %v4016_v50  ;;  %v4019_v6 = vld [vmem:[#allocation3 + $0x3c] sm:$0xff] }
 0x56d   : > { %v12867_v26 = vpop.f32.mrf.mxu0 }
 0x56e   : > { %14726 = vst [vmem:[#allocation92_spill] sm:$0xff] %v12867_v26 }
 0x56f   : > { %v3489_v41 = vpop.f32.mrf.mxu2 }
 0x570   : > { %v3547_v48 = vadd.f32 %v3489_v41, %v3321_v7  ;;  %v3715_v11 = vpop.f32.mrf.mxu3  ;;  %v3266_v22 = vpop.f32.mrf.mxu1  ;;  %10362 = vmatmul.msk.bf16.gmra.mxu0 %vm277_vm3, %v6312_v4 }
 0x571   : > { %v3322_v55 = vadd.f32 %v3266_v22, %v12558_v18  ;;  %v6287_v22 = vld [vmem:[#allocation3 + $0xa0] sm:$0xff] }
 0x572   : > { %v12869_v44 = vadd.f32 %v3715_v11, %v3547_v48 }
 0x573   : > { %10116 = vmatmul.msk.bf16.vlgmr.msrb.gmra.mxu1 %vm277_vm3, %v3822_v51  ;;  %v3793_v51 = vld [vmem:[#allocation3 + $0x2e] sm:$0xff] }
 0x574   : > { %10138 = vmatmul.msk.bf16.vlgmr.msrb.gmra.mxu2 %vm277_vm3, %v4048_v54  ;;  %v3792_v54 = vld [vmem:[#allocation3 + $0x26] sm:$0xff] }
 0x575   : > { %10160 = vmatmul.msk.bf16.vlgmr.msrb.gmra.mxu3 %vm277_vm3, %v12567_v24  ;;  %v12877_v2 = vpop.f32.mrf.mxu0  ;;  %v6313_v24 = vpack.c.bf16 %v6287_v22, %v6286_v58 }
 0x576   : > { %14727 = vst [vmem:[#allocation93_spill] sm:$0xff] %v12877_v2  ;;  %v4018_v2 = vld [vmem:[#allocation3 + $0x34] sm:$0xff] }
 0x577   : > { %v3492_v1 = vpop.f32.mrf.mxu2 }
 0x578   : > { %v3548_v7 = vadd.f32 %v3492_v1, %v3322_v55  ;;  %v3718_v53 = vpop.f32.mrf.mxu3  ;;  %v3268_v38 = vpop.f32.mrf.mxu1 }
 0x579   : > { %v3323_v18 = vadd.f32 %v3268_v38, %v12563_v17 }
 0x57a   : > { %v12879_v56 = vadd.f32 %v3718_v53, %v3548_v7  ;;  %v3823_v7 = vpack.c.bf16 %v3793_v51, %v3792_v54  ;;  %v4049_v53 = vpack.c.bf16 %v4019_v6, %v4018_v2  ;;  %v6289_v2 = vld [vmem:[#allocation3 + $0xb0] sm:$0xff] }
 0x57d   : > { %v12882_v4 = vpop.f32.mrf.mxu0 }
 0x57e   : > { %14728 = vst [vmem:[#allocation94_spill] sm:$0xff] %v12882_v4 }
 0x57f   : > { %v3494_v41 = vpop.f32.mrf.mxu2 }
 0x580   : > { %v3549_v48 = vadd.f32 %v3494_v41, %v3323_v18  ;;  %v3720_v11 = vpop.f32.mrf.mxu3  ;;  %v3271_v50 = vpop.f32.mrf.mxu1  ;;  %10363 = vmatmul.msk.bf16.gmra.mxu0 %vm277_vm3, %v6313_v24 }
 0x581   : > { %v3324_v1 = vadd.f32 %v3271_v50, %v12579_v39 }
 0x582   : > { %v12884_v55 = vadd.f32 %v3720_v11, %v3549_v48  ;;  %v3795_v48 = vld [vmem:[#allocation3 + $0x3e] sm:$0xff]  ;;  %v6288_v11 = vld [vmem:[#allocation3 + $0xa8] sm:$0xff] }
 0x583   : > { %10117 = vmatmul.msk.bf16.gmra.mxu1 %vm277_vm3, %v3823_v7  ;;  %v6314_v54 = vpack.c.bf16 %v6289_v2, %v6288_v11  ;;  %v3794_v7 = vld [vmem:[#allocation3 + $0x36] sm:$0xff] }
 0x584   : > { %10139 = vmatmul.msk.bf16.gmra.mxu2 %vm277_vm3, %v4049_v53  ;;  %v4020_v53 = vld [vmem:[#allocation3 + $0x44] sm:$0xff]  ;;  %v6290_v11 = vld [vmem:[#allocation3 + $0xb8] sm:$0xff] }
 0x585   : > { %10161 = vmatmul.msk.bf16.gmra.mxu3 %vm277_vm3, %v12588_v5  ;;  %v12892_v38 = vpop.f32.mrf.mxu0 }
 0x586   : > { %14729 = vst [vmem:[#allocation95_spill] sm:$0xff] %v12892_v38 }
 0x587   : > { %v3497_v17 = vpop.f32.mrf.mxu2 }
 0x588   : > { %v3550_v18 = vadd.f32 %v3497_v17, %v3324_v1  ;;  %v3723_v22 = vpop.f32.mrf.mxu3  ;;  %v3273_v41 = vpop.f32.mrf.mxu1  ;;  %v12902_v17 = vpack.c.bf16 %v3795_v48, %v3794_v7 }
 0x589   : > { %v3325_v39 = vadd.f32 %v3273_v41, %v12584_v28 }
 0x58a   : > { %v12894_v58 = vadd.f32 %v3723_v22, %v3550_v18  ;;  %v11317_v18 = vld [vmem:[#allocation3 + $0x4c] sm:$0xff] }
 0x58b   : > { %v4050_v28 = vpack.c.bf16 %v11317_v18, %v4020_v53 }
 0x58d   : > { %v12897_v6 = vpop.f32.mrf.mxu0 }
 0x58e   : > { %14730 = vst [vmem:[#allocation96_spill] sm:$0xff] %v12897_v6 }
 0x58f   : > { %v3499_v51 = vpop.f32.mrf.mxu2 }
 0x590   : > { %v3551_v24 = vadd.f32 %v3499_v51, %v3325_v39  ;;  %v3725_v50 = vpop.f32.mrf.mxu3  ;;  %v3276_v5 = vpop.f32.mrf.mxu1  ;;  %10364 = vmatmul.msk.bf16.gmra.mxu0 %vm277_vm3, %v6314_v54 }
 0x591   : > { %v3326_v1 = vadd.f32 %v3276_v5, %v12600_v32  ;;  %v3797_v5 = vld [vmem:[#allocation3 + $0x4e] sm:$0xff] }
 0x592   : > { %v12899_v38 = vadd.f32 %v3725_v50, %v3551_v24  ;;  %v6291_v24 = vld [vmem:[#allocation3 + $0xc0] sm:$0xff] }
 0x593   : > { %10118 = vmatmul.msk.bf16.gmra.mxu1 %vm277_vm3, %v12902_v17  ;;  %v6315_v18 = vpack.c.bf16 %v6291_v24, %v6290_v11 }
 0x594   : > { %10140 = vmatmul.msk.bf16.gmra.mxu2 %vm277_vm3, %v4050_v28  ;;  %v3796_v28 = vld [vmem:[#allocation3 + $0x46] sm:$0xff] }
 0x595   : > { %10162 = vmatmul.msk.bf16.gmra.mxu3 %vm277_vm3, %v12609_v34  ;;  %v12910_v41 = vpop.f32.mrf.mxu0 }
 0x596   : > { %14731 = vst [vmem:[#allocation97_spill] sm:$0xff] %v12910_v41 }
 0x597   : > { %v3502_v22 = vpop.f32.mrf.mxu2 }
 0x598   : > { %v3552_v39 = vadd.f32 %v3502_v22, %v3326_v1  ;;  %v3728_v2 = vpop.f32.mrf.mxu3  ;;  %v3278_v32 = vpop.f32.mrf.mxu1  ;;  %v12920_v22 = vpack.c.bf16 %v3797_v5, %v3796_v28  ;;  %v14733_v5 = vld [vmem:[#allocation28_spill] sm:$0xff] }
 0x599   : > { %v3327_v48 = vadd.f32 %v3278_v32, %v12605_v45  ;;  %v3799_v28 = vld [vmem:[#allocation3 + $0x5e] sm:$0xff] }
 0x59a   : > { %v12912_v51 = vadd.f32 %v3728_v2, %v3552_v39  ;;  %v11318_v39 = vld [vmem:[#allocation3 + $0x54] sm:$0xff]  ;;  %v11319_v2 = vld [vmem:[#allocation3 + $0x5c] sm:$0xff] }
 0x59b   : > { %v4051_v45 = vpack.c.bf16 %v11319_v2, %v11318_v39  ;;  %v6292_v39 = vld [vmem:[#allocation3 + $0xc8] sm:$0xff] }
 0x59d   : > { %v12915_v54 = vpop.f32.mrf.mxu0 }
 0x59e   : > { %14732 = vst [vmem:[#allocation98_spill] sm:$0xff] %v12915_v54 }
 0x59f   : > { %v3504_v50 = vpop.f32.mrf.mxu2 }
 0x5a0   : > { %v3553_v7 = vadd.f32 %v3504_v50, %v3327_v48  ;;  %v3730_v53 = vpop.f32.mrf.mxu3  ;;  %v3281_v34 = vpop.f32.mrf.mxu1  ;;  %10365 = vmatmul.msk.bf16.gmra.mxu0 %vm277_vm3, %v6315_v18 }
 0x5a1   : > { %v3328_v1 = vadd.f32 %v3281_v34, %v12619_v57 }
 0x5a2   : > { %v12917_v6 = vadd.f32 %v3730_v53, %v3553_v7  ;;  %v6293_v53 = vld [vmem:[#allocation3 + $0xd0] sm:$0xff] }
 0x5a3   : > { %10119 = vmatmul.msk.bf16.gmra.mxu1 %vm277_vm3, %v12920_v22  ;;  %v6316_v54 = vpack.c.bf16 %v6293_v53, %v6292_v39 }
 0x5a4   : > { %10141 = vmatmul.msk.bf16.gmra.mxu2 %vm277_vm3, %v4051_v45 }
 0x5a5   : > { %10163 = vmatmul.msk.bf16.gmra.mxu3 %vm277_vm3, %v12628_v40  ;;  %v5563_v48 = vpop.f32.mrf.mxu0  ;;  %v3798_v40 = vld [vmem:[#allocation3 + $0x56] sm:$0xff] }
 0x5a6   : > { %v12936_v48 = vpack.c.bf16 %v3799_v28, %v3798_v40  ;;  %v6295_v40 = vld [vmem:[#allocation3 + $0xe0] sm:$0xff] }
 0x5a7   : > { %v3507_v32 = vpop.f32.mrf.mxu2 }
 0x5a8   : > { %v3554_v11 = vadd.f32 %v3507_v32, %v3328_v1  ;;  %v3733_v24 = vpop.f32.mrf.mxu3  ;;  %v3283_v57 = vpop.f32.mrf.mxu1  ;;  %v14735_v1 = vld [vmem:[#allocation49_spill] sm:$0xff] }
 0x5a9   : > { %v3329_v7 = vadd.f32 %v3283_v57, %v14733_v5  ;;  %v14736_v5 = vld [vmem:[#allocation35_spill] sm:$0xff] }
 0x5aa   : > { %v12928_v50 = vadd.f32 %v3733_v24, %v3554_v11  ;;  %v11320_v11 = vld [vmem:[#allocation3 + $0x64] sm:$0xff]  ;;  %v11321_v24 = vld [vmem:[#allocation3 + $0x6c] sm:$0xff] }
 0x5ab   : > { %v4052_v57 = vpack.c.bf16 %v11321_v24, %v11320_v11  ;;  %v3801_v11 = vld [vmem:[#allocation3 + $0x6e] sm:$0xff]  ;;  %v6294_v24 = vld [vmem:[#allocation3 + $0xd8] sm:$0xff] }
 0x5ac   : > { %v6317_v26 = vpack.c.bf16 %v6295_v40, %v6294_v24 }
 0x5ad   : > { %v12931_v18 = vpop.f32.mrf.mxu0 }
 0x5ae   : > { %14734 = vst [vmem:[#allocation28_spill] sm:$0xff] %v12931_v18 }
 0x5af   : > { %v3509_v34 = vpop.f32.mrf.mxu2 }
 0x5b0   : > { %v3555_v2 = vadd.f32 %v3509_v34, %v3329_v7  ;;  %v3735_v45 = vpop.f32.mrf.mxu3  ;;  %v3286_v41 = vpop.f32.mrf.mxu1  ;;  %10366 = vmatmul.msk.bf16.gmra.mxu0 %vm277_vm3, %v6316_v54 }
 0x5b1   : > { %v3330_v32 = vadd.f32 %v3286_v41, %v14735_v1 }
 0x5b2   : > { %v12933_v4 = vadd.f32 %v3735_v45, %v3555_v2  ;;  %v14738_v2 = vld [vmem:[#allocation34_spill] sm:$0xff] }
 0x5b3   : > { %10120 = vmatmul.msk.bf16.gmra.mxu1 %vm277_vm3, %v12936_v48 }
 0x5b4   : > { %10142 = vmatmul.msk.bf16.gmra.mxu2 %vm277_vm3, %v4052_v57 }
 0x5b5   : > { %10164 = vmatmul.msk.bf16.gmra.mxu3 %vm277_vm3, %v14736_v5  ;;  %v12944_v53 = vpop.f32.mrf.mxu0 }
 0x5b6   : > { %14737 = vst [vmem:[#allocation49_spill] sm:$0xff] %v12944_v53 }
 0x5b7   : > { %v3512_v7 = vpop.f32.mrf.mxu2 }
 0x5b8   : > { %v3556_v34 = vadd.f32 %v3512_v7, %v3330_v32  ;;  %v3738_v41 = vpop.f32.mrf.mxu3  ;;  %v3288_v28 = vpop.f32.mrf.mxu1  ;;  %v12954_v7 = vpack.c.bf16 %v3801_v11, %v3800_v9  ;;  %v6297_v11 = vld [vmem:[#allocation3 + $0xf0] sm:$0xff] }
 0x5b9   : > { %v3331_v45 = vadd.f32 %v3288_v28, %v14738_v2 }
 0x5ba   : > { %v12946_v39 = vadd.f32 %v3738_v41, %v3556_v34  ;;  %v11322_v34 = vld [vmem:[#allocation3 + $0x74] sm:$0xff]  ;;  %v11323_v41 = vld [vmem:[#allocation3 + $0x7c] sm:$0xff] }
 0x5bb   : > { %v4053_v28 = vpack.c.bf16 %v11323_v41, %v11322_v34 }
 0x5bd   : > { %v12949_v1 = vpop.f32.mrf.mxu0 }
 0x5be   : > { %14739 = vst [vmem:[#allocation35_spill] sm:$0xff] %v12949_v1  ;;  %v3802_v1 = vld [vmem:[#allocation3 + $0x76] sm:$0xff] }
 0x5bf   : > { %v3514_v54 = vpop.f32.mrf.mxu2 }
 0x5c0   : > { %v3557_v57 = vadd.f32 %v3514_v54, %v3331_v45  ;;  %v3740_v18 = vpop.f32.mrf.mxu3  ;;  %v3291_v5 = vpop.f32.mrf.mxu1  ;;  %10367 = vmatmul.msk.bf16.gmra.mxu0 %vm277_vm3, %v6317_v26 }
 0x5c1   : > { %v3332_v32 = vadd.f32 %v3291_v5, %v12661_v52  ;;  %v6296_v5 = vld [vmem:[#allocation3 + $0xe8] sm:$0xff] }
 0x5c2   : > { %v12951_v8 = vadd.f32 %v3740_v18, %v3557_v57  ;;  %v3803_v57 = vld [vmem:[#allocation3 + $0x7e] sm:$0xff] }
 0x5c3   : > { %10121 = vmatmul.msk.bf16.gmra.mxu1 %vm277_vm3, %v12954_v7 }
 0x5c4   : > { %10143 = vmatmul.msk.bf16.gmra.mxu2 %vm277_vm3, %v4053_v28  ;;  %v6318_v28 = vpack.c.bf16 %v6297_v11, %v6296_v5  ;;  %v6299_v5 = vld [vmem:[#allocation3 + $0x100] sm:$0xff] }
 0x5c5   : > { %10165 = vmatmul.msk.bf16.gmra.mxu3 %vm277_vm3, %v12670_v43  ;;  %v12962_v18 = vpop.f32.mrf.mxu0 }
 0x5c6   : > { %14740 = vst [vmem:[#allocation34_spill] sm:$0xff] %v12962_v18 }
 0x5c7   : > { %v3517_v2 = vpop.f32.mrf.mxu2 }
 0x5c8   : > { %v3558_v45 = vadd.f32 %v3517_v2, %v3332_v32  ;;  %v3743_v52 = vpop.f32.mrf.mxu3  ;;  %v3293_v9 = vpop.f32.mrf.mxu1  ;;  %v12972_v2 = vpack.c.bf16 %v3803_v57, %v3802_v1 }
 0x5c9   : > { %v3333_v54 = vadd.f32 %v3293_v9, %v12666_v60 }
 0x5ca   : > { %v12964_v40 = vadd.f32 %v3743_v52, %v3558_v45  ;;  %v11324_v45 = vld [vmem:[#allocation3 + $0x84] sm:$0xff]  ;;  %v11325_v52 = vld [vmem:[#allocation3 + $0x8c] sm:$0xff] }
 0x5cb   : > { %v4054_v60 = vpack.c.bf16 %v11325_v52, %v11324_v45 }
 0x5cd   : > { %v12967_v24 = vpop.f32.mrf.mxu0 }
 0x5ce   : > { %14741 = vst [vmem:[#allocation99_spill] sm:$0xff] %v12967_v24  ;;  %v3804_v24 = vld [vmem:[#allocation3 + $0x86] sm:$0xff] }
 0x5cf   : > { %v3519_v26 = vpop.f32.mrf.mxu2 }
 0x5d0   : > { %v3559_v34 = vadd.f32 %v3519_v26, %v3333_v54  ;;  %v3745_v41 = vpop.f32.mrf.mxu3  ;;  %v3296_v43 = vpop.f32.mrf.mxu1  ;;  %10368 = vmatmul.msk.bf16.gmra.mxu0 %vm277_vm3, %v6318_v28  ;;  %v6298_v28 = vld [vmem:[#allocation3 + $0xf8] sm:$0xff] }
 0x5d1   : > { %v3334_v32 = vadd.f32 %v3296_v43, %v12680_v42 }
 0x5d2   : > { %v12969_v53 = vadd.f32 %v3745_v41, %v3559_v34  ;;  %v3805_v41 = vld [vmem:[#allocation3 + $0x8e] sm:$0xff] }
 0x5d3   : > { %10122 = vmatmul.msk.bf16.gmra.mxu1 %vm277_vm3, %v12972_v2 }
 0x5d4   : > { %10144 = vmatmul.msk.bf16.gmra.mxu2 %vm277_vm3, %v4054_v60  ;;  %v6319_v60 = vpack.c.bf16 %v6299_v5, %v6298_v28  ;;  %v6301_v28 = vld [vmem:[#allocation3 + $0x110] sm:$0xff] }
 0x5d5   : > { %10166 = vmatmul.msk.bf16.gmra.mxu3 %vm277_vm3, %v12689_v49  ;;  %v12980_v54 = vpop.f32.mrf.mxu0 }
 0x5d6   : > { %14742 = vst [vmem:[#allocation100_spill] sm:$0xff] %v12980_v54 }
 0x5d7   : > { %v3522_v9 = vpop.f32.mrf.mxu2 }
 0x5d8   : > { %v3560_v11 = vadd.f32 %v3522_v9, %v3334_v32  ;;  %v3748_v42 = vpop.f32.mrf.mxu3  ;;  %v3298_v1 = vpop.f32.mrf.mxu1  ;;  %v12990_v9 = vpack.c.bf16 %v3805_v41, %v3804_v24  ;;  %v6300_v41 = vld [vmem:[#allocation3 + $0x108] sm:$0xff] }
 0x5d9   : > { %v3335_v57 = vadd.f32 %v3298_v1, %v12685_v25 }
 0x5da   : > { %v12982_v26 = vadd.f32 %v3748_v42, %v3560_v11  ;;  %v11326_v11 = vld [vmem:[#allocation3 + $0x94] sm:$0xff]  ;;  %v11327_v42 = vld [vmem:[#allocation3 + $0x9c] sm:$0xff] }
 0x5db   : > { %v4055_v25 = vpack.c.bf16 %v11327_v42, %v11326_v11  ;;  %v3806_v42 = vld [vmem:[#allocation3 + $0x96] sm:$0xff] }
 0x5dd   : > { %v12985_v52 = vpop.f32.mrf.mxu0 }
 0x5de   : > { %14743 = vst [vmem:[#allocation101_spill] sm:$0xff] %v12985_v52 }
 0x5df   : > { %v3524_v34 = vpop.f32.mrf.mxu2 }
 0x5e0   : > { %v3561_v43 = vadd.f32 %v3524_v34, %v3335_v57  ;;  %v3750_v45 = vpop.f32.mrf.mxu3  ;;  %v3301_v49 = vpop.f32.mrf.mxu1  ;;  %10369 = vmatmul.msk.bf16.gmra.mxu0 %vm277_vm3, %v6319_v60 }
 0x5e1   : > { %v3336_v32 = vadd.f32 %v3301_v49, %v12699_v33  ;;  %v6320_v49 = vpack.c.bf16 %v6301_v28, %v6300_v41 }
 0x5e2   : > { %v12987_v18 = vadd.f32 %v3750_v45, %v3561_v43  ;;  %v3807_v45 = vld [vmem:[#allocation3 + $0x9e] sm:$0xff] }
 0x5e3   : > { %10123 = vmatmul.msk.bf16.gmra.mxu1 %vm277_vm3, %v12990_v9  ;;  %v13003_v52 = vpack.c.bf16 %v3807_v45, %v3806_v42  ;;  %v6302_v45 = vld [vmem:[#allocation3 + $0x118] sm:$0xff]  ;;  %v3808_v42 = vld [vmem:[#allocation3 + $0xa6] sm:$0xff] }
 0x5e4   : > { %10145 = vmatmul.msk.bf16.gmra.mxu2 %vm277_vm3, %v4055_v25 }
 0x5e5   : > { %10167 = vmatmul.msk.bf16.gmra.mxu3 %vm277_vm3, %v12705_v16  ;;  %v13000_v24 = vpop.f32.mrf.mxu0  ;;  %v11328_v16 = vld [vmem:[#allocation3 + $0xa4] sm:$0xff] }
 0x5e6   : > { %14744 = vst [vmem:[#allocation102_spill] sm:$0xff] %v13000_v24 }
 0x5e7   : > { %v3527_v1 = vpop.f32.mrf.mxu2 }
 0x5e8   : > { %v3562_v57 = vadd.f32 %v3527_v1, %v3336_v32  ;;  %v3753_v5 = vpop.f32.mrf.mxu3  ;;  %v3303_v34 = vpop.f32.mrf.mxu1  ;;  %v11329_v32 = vld [vmem:[#allocation3 + $0xac] sm:$0xff] }
 0x5e9   : > { %v4056_v1 = vpack.c.bf16 %v11329_v32, %v11328_v16  ;;  %v3809_v16 = vld [vmem:[#allocation3 + $0xae] sm:$0xff] }
 0x5ea   : > { %v12998_v33 = vadd.f32 %v3753_v5, %v3562_v57 }
 0x5ed   : > { %v13006_v57 = vpop.f32.mrf.mxu0 }
 0x5ee   : > { %14745 = vst [vmem:[#allocation103_spill] sm:$0xff] %v13006_v57 }
 0x5ef   : > { %v3529_v43 = vpop.f32.mrf.mxu2 }
 0x5f0   : > { %v3755_v60 = vpop.f32.mrf.mxu3  ;;  %v3904_v11 = vpop.f32.mrf.mxu1  ;;  %10370 = vmatmul.msk.bf16.gmra.mxu0 %vm277_vm3, %v6320_v49 }
 0x5f1   : > { %v3984_v25 = vadd.f32 %v3904_v11, %v12715_v46  ;;  %v6303_v60 = vld [vmem:[#allocation3 + $0x120] sm:$0xff] }
 0x5f2   : > { %v6321_v57 = vpack.c.bf16 %v6303_v60, %v6302_v45 }
 0x5f3   : > { %10124 = vmatmul.msk.bf16.gmra.mxu1 %vm277_vm3, %v13003_v52 }
 0x5f4   : > { %10146 = vmatmul.msk.bf16.gmra.mxu2 %vm277_vm3, %v4056_v1 }
 0x5f5   : > { %10168 = vmatmul.msk.bf16.gmra.mxu3 %vm277_vm3, %v12724_v37  ;;  %v13016_v49 = vpop.f32.mrf.mxu0 }
 0x5f6   : > { %14746 = vst [vmem:[#allocation104_spill] sm:$0xff] %v13016_v49  ;;  %v3810_v49 = vld [vmem:[#allocation3 + $0xb6] sm:$0xff] }
 0x5f7   : > { %v4130_v5 = vpop.f32.mrf.mxu2 }
 0x5f8   : > { %v4210_v34 = vadd.f32 %v4130_v5, %v3984_v25  ;;  %v4356_v46 = vpop.f32.mrf.mxu3  ;;  %v3906_v41 = vpop.f32.mrf.mxu1  ;;  %v13021_v5 = vpack.c.bf16 %v3809_v16, %v3808_v42  ;;  %v6304_v42 = vld [vmem:[#allocation3 + $0x128] sm:$0xff] }
 0x5f9   : > { %v3985_v43 = vadd.f32 %v3906_v41, %v12720_v63 }
 0x5fa   : > { %v13013_v28 = vadd.f32 %v4356_v46, %v4210_v34  ;;  %v11330_v34 = vld [vmem:[#allocation3 + $0xb4] sm:$0xff]  ;;  %v11331_v46 = vld [vmem:[#allocation3 + $0xbc] sm:$0xff] }
 0x5fb   : > { %v4057_v63 = vpack.c.bf16 %v11331_v46, %v11330_v34 }
 0x5ff   : > { %v4132_v11 = vpop.f32.mrf.mxu2 }
 0x600   : > { %v4211_v32 = vadd.f32 %v4132_v11, %v3985_v43  ;;  %v4358_v1 = vpop.f32.mrf.mxu3  ;;  %v3909_v24 = vpop.f32.mrf.mxu1  ;;  %10371 = vmatmul.msk.bf16.gmra.mxu0 %vm277_vm3, %v6321_v57  ;;  %v6305_v57 = vld [vmem:[#allocation3 + $0x130] sm:$0xff] }
 0x601   : > { %v3986_v25 = vadd.f32 %v3909_v24, %v12734_v21  ;;  %v13029_v43 = vpop.f32.mrf.mxu0  ;;  %v6322_v16 = vpack.c.bf16 %v6305_v57, %v6304_v42 }
 0x602   : > { %v13018_v37 = vadd.f32 %v4358_v1, %v4211_v32  ;;  %14747 = vst [vmem:[#allocation105_spill] sm:$0xff] %v13029_v43  ;;  %v3811_v1 = vld [vmem:[#allocation3 + $0xbe] sm:$0xff] }
 0x603   : > { %10125 = vmatmul.msk.bf16.gmra.mxu1 %vm277_vm3, %v13021_v5 }
 0x604   : > { %10147 = vmatmul.msk.bf16.gmra.mxu2 %vm277_vm3, %v4057_v63 }
 0x605   : > { %10169 = vmatmul.msk.bf16.gmra.mxu3 %vm277_vm3, %v12746_v29 }
 0x607   : > { %v4135_v41 = vpop.f32.mrf.mxu2 }
 0x608   : > { %v4212_v45 = vadd.f32 %v4135_v41, %v3986_v25  ;;  %v4361_v21 = vpop.f32.mrf.mxu3  ;;  %v3911_v24 = vpop.f32.mrf.mxu1  ;;  %v13039_v41 = vpack.c.bf16 %v3811_v1, %v3810_v49  ;;  %v6307_v1 = vld [vmem:[#allocation3 + $0x140] sm:$0xf] }
 0x609   : > { %v3987_v11 = vadd.f32 %v3911_v24, %v12739_v35  ;;  %v13034_v29 = vpop.f32.mrf.mxu0  ;;  %v11172_v24 = vld [vmem:[%s14536_s3 + $0xc0] sm:$0xff] }
 0x60a   : > { %v13031_v60 = vadd.f32 %v4361_v21, %v4212_v45  ;;  %14748 = vst [vmem:[#allocation106_spill] sm:$0xff] %v13034_v29  ;;  %v11332_v45 = vld [vmem:[#allocation3 + $0xc4] sm:$0xff]  ;;  %v11333_v21 = vld [vmem:[#allocation3 + $0xcc] sm:$0xff]  ;;  %7292 = vmatpush.bf16.msra.mxu0 %v11172_v24 }
 0x60b   : > { %v4058_v35 = vpack.c.bf16 %v11333_v21, %v11332_v45  ;;  %v3813_v45 = vld [vmem:[#allocation3 + $0xce] sm:$0xff] }
 0x60f   : > { %v4137_v32 = vpop.f32.mrf.mxu2 }
 0x610   : > { %v4213_v34 = vadd.f32 %v4137_v32, %v3987_v11  ;;  %v4363_v46 = vpop.f32.mrf.mxu3  ;;  %v3914_v63 = vpop.f32.mrf.mxu1  ;;  %10372 = vmatmul.msk.bf16.gmra.mxu0 %vm277_vm3, %v6322_v16  ;;  %v6306_v32 = vld [vmem:[#allocation3 + $0x138] sm:$0xff] }
 0x611   : > { %v3988_v25 = vadd.f32 %v3914_v63, %v12756_v62 }
 0x612   : > { %v13036_v54 = vadd.f32 %v4363_v46, %v4213_v34  ;;  %v13053_v34 = vpop.f32.mrf.mxu0  ;;  %v6323_v46 = vpack.c.bf16 %v6307_v1, %v6306_v32 }
 0x613   : > { %10126 = vmatmul.msk.bf16.gmra.mxu1 %vm277_vm3, %v13039_v41  ;;  %14749 = vst [vmem:[#allocation107_spill] sm:$0xff] %v13053_v34  ;;  %v14753_v34 = vld [vmem:[#allocation9_spill] sm:$0xff] }
 0x614   : > { %10148 = vmatmul.msk.bf16.gmra.mxu2 %vm277_vm3, %v4058_v35 }
 0x615   : > { %10170 = vmatmul.msk.bf16.gmra.mxu3 %vm277_vm3, %v12765_v61  ;;  %v3812_v61 = vld [vmem:[#allocation3 + $0xc6] sm:$0xff] }
 0x617   : > { %v4140_v62 = vpop.f32.mrf.mxu2 }
 0x618   : > { %v4214_v49 = vadd.f32 %v4140_v62, %v3988_v25  ;;  %v4366_v11 = vpop.f32.mrf.mxu3  ;;  %v3916_v42 = vpop.f32.mrf.mxu1  ;;  %v13058_v62 = vpack.c.bf16 %v3813_v45, %v3812_v61 }
 0x619   : > { %v3989_v16 = vadd.f32 %v3916_v42, %v12761_v36 }
 0x61a   : > { %v13050_v57 = vadd.f32 %v4366_v11, %v4214_v49  ;;  %v11334_v49 = vld [vmem:[#allocation3 + $0xd4] sm:$0xff]  ;;  %v11335_v11 = vld [vmem:[#allocation3 + $0xdc] sm:$0xff]  ;;  %v13066_v42 = vpop.f32.mrf.mxu0 }
 0x61b   : > { %v4059_v36 = vpack.c.bf16 %v11335_v11, %v11334_v49  ;;  %14750 = vst [vmem:[#allocation108_spill] sm:$0xff] %v13066_v42  ;;  %v3814_v11 = vld [vmem:[#allocation3 + $0xd6] sm:$0xff] }
 0x61f   : > { %v4142_v63 = vpop.f32.mrf.mxu2 }
 0x620   : > { %v4215_v21 = vadd.f32 %v4142_v63, %v3989_v16  ;;  %v4368_v35 = vpop.f32.mrf.mxu3  ;;  %v3919_v29 = vpop.f32.mrf.mxu1  ;;  %10373 = vmatmul.msk.bf16.gmra.mxu0 %vm277_vm3, %v6323_v46  ;;  %v3815_v46 = vld [vmem:[#allocation3 + $0xde] sm:$0xff] }
 0x621   : > { %v3990_v25 = vadd.f32 %v3919_v29, %v12775_v15  ;;  %v13076_v42 = vpack.c.bf16 %v3815_v46, %v3814_v11 }
 0x622   : > { %v13055_v24 = vadd.f32 %v4368_v35, %v4215_v21  ;;  %v13071_v21 = vpop.f32.mrf.mxu0 }
 0x623   : > { %10127 = vmatmul.msk.bf16.gmra.mxu1 %vm277_vm3, %v13058_v62  ;;  %14751 = vst [vmem:[#allocation109_spill] sm:$0xff] %v13071_v21 }
 0x624   : > { %10149 = vmatmul.msk.bf16.gmra.mxu2 %vm277_vm3, %v4059_v36 }
 0x625   : > { %10171 = vmatmul.msk.bf16.gmra.mxu3 %vm277_vm3, %v12784_v30 }
 0x627   : > { %v4145_v16 = vpop.f32.mrf.mxu2 }
 0x628   : > { %v4216_v32 = vadd.f32 %v4145_v16, %v3990_v25  ;;  %v4371_v15 = vpop.f32.mrf.mxu3  ;;  %v3921_v29 = vpop.f32.mrf.mxu1  ;;  %v11336_v25 = vld [vmem:[#allocation3 + $0xe4] sm:$0xff]  ;;  %v11337_v16 = vld [vmem:[#allocation3 + $0xec] sm:$0xff] }
 0x629   : > { %v3991_v63 = vadd.f32 %v3921_v29, %v12780_v47 }
 0x62a   : > { %v13068_v1 = vadd.f32 %v4371_v15, %v4216_v32  ;;  %v4060_v32 = vpack.c.bf16 %v11337_v16, %v11336_v25  ;;  %v14752_v15 = vld [vmem:[#allocation10_spill] sm:$0xff]  ;;  %v13087_v46 = vpop.f32.mrf.mxu0 }
 0x62b   : > { %v14754_v47 = vpack.c.bf16 %v14752_v15, %v14753_v34  ;;  %14755 = vst [vmem:[#allocation10_spill] sm:$0xff] %v13087_v46  ;;  %v3816_v15 = vld [vmem:[#allocation3 + $0xe6] sm:$0xff] }
 0x62c   : > { %v14756_v46 = vld [vmem:[#allocation12_spill] sm:$0xff] }
 0x62f   : > { %v4147_v45 = vpop.f32.mrf.mxu2 }
 0x630   : > { %v4217_v35 = vadd.f32 %v4147_v45, %v3991_v63  ;;  %v4373_v61 = vpop.f32.mrf.mxu3  ;;  %v3924_v49 = vpop.f32.mrf.mxu1  ;;  %10446 = vmatmul.msk.bf16.vlgmr.msra.gmra.mxu0 %vm277_vm3, %v14754_v47 }
 0x631   : > { %v3992_v30 = vadd.f32 %v3924_v49, %v12794_v27  ;;  %v3817_v49 = vld [vmem:[#allocation3 + $0xee] sm:$0xff] }
 0x632   : > { %v13073_v36 = vadd.f32 %v4373_v61, %v4217_v35  ;;  %v13095_v47 = vpack.c.bf16 %v3817_v49, %v3816_v15 }
 0x633   : > { %10128 = vmatmul.msk.bf16.gmra.mxu1 %vm277_vm3, %v13076_v42 }
 0x634   : > { %10150 = vmatmul.msk.bf16.gmra.mxu2 %vm277_vm3, %v4060_v32 }
 0x635   : > { %10172 = vmatmul.msk.bf16.gmra.mxu3 %vm277_vm3, %v12803_v12 }
 0x637   : > { %v4150_v29 = vpop.f32.mrf.mxu2 }
 0x638   : > { %v4218_v27 = vadd.f32 %v4150_v29, %v3992_v30  ;;  %v4376_v63 = vpop.f32.mrf.mxu3  ;;  %v3926_v45 = vpop.f32.mrf.mxu1  ;;  %v11338_v30 = vld [vmem:[#allocation3 + $0xf4] sm:$0xff] }
 0x639   : > { %v3993_v34 = vadd.f32 %v3926_v45, %v12799_v10  ;;  %v4061_v29 = vpack.c.bf16 %v12818_v31, %v11338_v30  ;;  %v13102_v10 = vpop.f32.mrf.mxu0  ;;  %v4271_v30 = vld [vmem:[#allocation3 + $0x10d] sm:$0xff] }
 0x63a   : > { %v13089_v35 = vadd.f32 %v4376_v63, %v4218_v27  ;;  %v14757_v27 = vld [vmem:[#allocation11_spill] sm:$0xff]  ;;  %14759 = vst [vmem:[#allocation9_spill] sm:$0xff] %v13102_v10 }
 0x63b   : > { %v14758_v63 = vpack.c.bf16 %v14756_v46, %v14757_v27 }
 0x63f   : > { %v4152_v61 = vpop.f32.mrf.mxu2 }
 0x640   : > { %v4219_v11 = vadd.f32 %v4152_v61, %v3993_v34  ;;  %v4378_v25 = vpop.f32.mrf.mxu3  ;;  %v3929_v16 = vpop.f32.mrf.mxu1  ;;  %10447 = vmatmul.msk.bf16.gmra.mxu0 %vm277_vm3, %v14758_v63 }
 0x641   : > { %v3994_v12 = vadd.f32 %v3929_v16, %v12813_v19  ;;  %v13112_v49 = vpop.f32.mrf.mxu0 }
 0x642   : > { %v13092_v32 = vadd.f32 %v4378_v25, %v4219_v11  ;;  %14760 = vst [vmem:[#allocation12_spill] sm:$0xff] %v13112_v49  ;;  %v3819_v25 = vld [vmem:[#allocation3 + $0xfe] sm:$0xff] }
 0x643   : > { %10129 = vmatmul.msk.bf16.gmra.mxu1 %vm277_vm3, %v13095_v47  ;;  %v14767_v49 = vld [vmem:[#allocation15_spill] sm:$0xff] }
 0x644   : > { %10151 = vmatmul.msk.bf16.gmra.mxu2 %vm277_vm3, %v4061_v29  ;;  %v3818_v29 = vld [vmem:[#allocation3 + $0xf6] sm:$0xff] }
 0x645   : > { %10173 = vmatmul.msk.bf16.gmra.mxu3 %vm277_vm3, %v12827_v0 }
 0x647   : > { %v4155_v19 = vpop.f32.mrf.mxu2 }
 0x648   : > { %v4220_v45 = vadd.f32 %v4155_v19, %v3994_v12  ;;  %v4381_v34 = vpop.f32.mrf.mxu3  ;;  %v3931_v61 = vpop.f32.mrf.mxu1  ;;  %v13117_v12 = vpack.c.bf16 %v3819_v25, %v3818_v29  ;;  %v11339_v19 = vld [vmem:[#allocation3 + $0x10c] sm:$0xff] }
 0x649   : > { %v3995_v46 = vadd.f32 %v3931_v61, %v12820_v3  ;;  %v14762_v3 = vld [vmem:[#allocation13_spill] sm:$0xff] }
 0x64a   : > { %v13109_v31 = vadd.f32 %v4381_v34, %v4220_v45  ;;  %v4062_v45 = vpack.c.bf16 %v11339_v19, %v12846_v14  ;;  %v14761_v34 = vld [vmem:[#allocation14_spill] sm:$0xff]  ;;  %v13132_v14 = vpop.f32.mrf.mxu0  ;;  %v13140_v19 = vld [vmem:[#allocation3 + $0x106] sm:$0xff] }
 0x64b   : > { %v14763_v61 = vpack.c.bf16 %v14761_v34, %v14762_v3  ;;  %14764 = vst [vmem:[#allocation11_spill] sm:$0xff] %v13132_v14  ;;  %v4047_v34 = vld [vmem:[#allocation3 + $0x11c] sm:$0xf]  ;;  %v14766_v14 = vld [vmem:[#allocation16_spill] sm:$0xff] }
 0x64c   : > { %v14768_v10 = vpack.c.bf16 %v14766_v14, %v14767_v49  ;;  %v4694_v14 = vld [vmem:[#allocation3 + $0x27] sm:$0xff] }
 0x64f   : > { %v4157_v11 = vpop.f32.mrf.mxu2 }
 0x650   : > { %v4221_v16 = vadd.f32 %v4157_v11, %v3995_v46  ;;  %v4383_v15 = vpop.f32.mrf.mxu3  ;;  %v3934_v27 = vpop.f32.mrf.mxu1  ;;  %10448 = vmatmul.msk.bf16.gmra.mxu0 %vm277_vm3, %v14763_v61  ;;  %v4288_v46 = vpack.c.bf16 %v4271_v30, %v12848_v13  ;;  %v11165_v30 = vld [vmem:[%s14536_s3 + $0x88] sm:$0xff] }
 0x651   : > { %v3996_v0 = vadd.f32 %v3934_v27, %v12838_v20  ;;  %v11166_v20 = vld [vmem:[%s14536_s3 + $0x90] sm:$0xff]  ;;  %5710 = vmatpush.bf16.msrb.mxu1 %v11165_v30 }
 0x652   : > { %v13114_v63 = vadd.f32 %v4383_v15, %v4221_v16  ;;  %5936 = vmatpush.bf16.msrb.mxu2 %v11166_v20 }
 0x653   : > { %10130 = vmatmul.msk.bf16.gmra.mxu1 %vm277_vm3, %v13117_v12 }
 0x654   : > { %10152 = vmatmul.msk.bf16.gmra.mxu2 %vm277_vm3, %v4062_v45  ;;  %v3821_v45 = vld [vmem:[#allocation3 + $0x10e] sm:$0xf] }
 0x655   : > { %10174 = vmatmul.msk.bf16.gmra.mxu3 %vm277_vm3, %v4288_v46  ;;  %v4272_v46 = vld [vmem:[#allocation3 + $0x115] sm:$0xff] }
 0x657   : > { %v4160_v11 = vpop.f32.mrf.mxu2 }
 0x658   : > { %v4222_v25 = vadd.f32 %v4160_v11, %v3996_v0  ;;  %v4386_v16 = vpop.f32.mrf.mxu3  ;;  %v3936_v15 = vpop.f32.mrf.mxu1  ;;  %v4273_v0 = vld [vmem:[#allocation3 + $0x11d] sm:$0xf] }
 0x659   : > { %v3997_v13 = vadd.f32 %v3936_v15, %v12850_v59  ;;  %v13142_v11 = vpop.f32.mrf.mxu0  ;;  %v11340_v15 = vld [vmem:[#allocation3 + $0x114] sm:$0xff] }
 0x65a   : > { %v13134_v27 = vadd.f32 %v4386_v16, %v4222_v25  ;;  %14765 = vst [vmem:[#allocation14_spill] sm:$0xff] %v13142_v11  ;;  %v3837_v16 = vpack.c.bf16 %v3821_v45, %v13140_v19  ;;  %v4063_v30 = vpack.c.bf16 %v4047_v34, %v11340_v15 }
 0x65f   : > { %v4162_v29 = vpop.f32.mrf.mxu2 }
 0x660   : > { %v4223_v3 = vadd.f32 %v4162_v29, %v3997_v13  ;;  %v4388_v61 = vpop.f32.mrf.mxu3  ;;  %v3939_v20 = vpop.f32.mrf.mxu1  ;;  %10449 = vmatmul.msk.bf16.gmra.mxu0 %vm277_vm3, %v14768_v10  ;;  %v11167_v13 = vld [vmem:[%s14536_s3 + $0x98] sm:$0xff]  ;;  %v4289_v29 = vpack.c.bf16 %v4273_v0, %v4272_v46 }
 0x661   : > { %v3998_v59 = vadd.f32 %v3939_v20, %v12864_v23  ;;  %6162 = vmatpush.bf16.msrb.mxu3 %v11167_v13  ;;  %v13161_v49 = vpop.f32.mrf.mxu0  ;;  %v4695_v46 = vld [vmem:[#allocation3 + $0x2f] sm:$0xff] }
 0x662   : > { %v13144_v25 = vadd.f32 %v4388_v61, %v4223_v3  ;;  %14769 = vst [vmem:[#allocation13_spill] sm:$0xff] %v13161_v49  ;;  %v4920_v0 = vld [vmem:[#allocation3 + $0x28] sm:$0xff]  ;;  %v4726_v13 = vpack.c.bf16 %v4695_v46, %v4694_v14 }
 0x663   : > { %10131 = vmatmul.msk.bf16.gmra.mxu1 %vm277_vm3, %v3837_v16  ;;  %v4921_v16 = vld [vmem:[#allocation3 + $0x30] sm:$0xff] }
 0x664   : > { %10153 = vmatmul.msk.bf16.gmra.mxu2 %vm277_vm3, %v4063_v30 }
 0x665   : > { %10175 = vmatmul.msk.bf16.gmra.mxu3 %vm277_vm3, %v4289_v29 }
 0x667   : > { %v4165_v23 = vpop.f32.mrf.mxu2 }
 0x668   : > { %v4224_v45 = vadd.f32 %v4165_v23, %v3998_v59  ;;  %v4391_v34 = vpop.f32.mrf.mxu3  ;;  %v3941_v3 = vpop.f32.mrf.mxu1  ;;  %v4952_v23 = vpack.c.bf16 %v4921_v16, %v4920_v0  ;;  %v4697_v0 = vld [vmem:[#allocation3 + $0x3f] sm:$0xff] }
 0x669   : > { %v3999_v10 = vadd.f32 %v3941_v3, %v12869_v44  ;;  %v13174_v44 = vpop.f32.mrf.mxu0 }
 0x66a   : > { %v13158_v61 = vadd.f32 %v4391_v34, %v4224_v45  ;;  %v14770_v45 = vld [vmem:[#allocation18_spill] sm:$0xff]  ;;  %v14771_v34 = vld [vmem:[#allocation17_spill] sm:$0xff]  ;;  %14773 = vst [vmem:[#allocation16_spill] sm:$0xff] %v13174_v44 }
 0x66b   : > { %v14772_v21 = vpack.c.bf16 %v14770_v45, %v14771_v34  ;;  %v4708_v44 = vld [vmem:[#allocation3 + $0x97] sm:$0xff] }
 0x66f   : > { %v4167_v20 = vpop.f32.mrf.mxu2 }
 0x670   : > { %v4225_v15 = vadd.f32 %v4167_v20, %v3999_v10  ;;  %v4393_v30 = vpop.f32.mrf.mxu3  ;;  %v3944_v11 = vpop.f32.mrf.mxu1  ;;  %10450 = vmatmul.msk.bf16.gmra.mxu0 %vm277_vm3, %v14772_v21  ;;  %v4923_v21 = vld [vmem:[#allocation3 + $0x40] sm:$0xff] }
 0x671   : > { %v4000_v59 = vadd.f32 %v3944_v11, %v12879_v56  ;;  %v13179_v16 = vpop.f32.mrf.mxu0 }
 0x672   : > { %v13163_v29 = vadd.f32 %v4393_v30, %v4225_v15  ;;  %14774 = vst [vmem:[#allocation15_spill] sm:$0xff] %v13179_v16 }
 0x673   : > { %10204 = vmatmul.msk.bf16.vlgmr.msra.gmra.mxu1 %vm277_vm3, %v4726_v13 }
 0x674   : > { %10226 = vmatmul.msk.bf16.vlgmr.msra.gmra.mxu2 %vm277_vm3, %v4952_v23  ;;  %v4696_v23 = vld [vmem:[#allocation3 + $0x37] sm:$0xff] }
 0x675   : > { %10248 = vmatmul.msk.bf16.vlgmr.msra.gmra.mxu3 %vm277_vm3, %v12902_v17  ;;  %v4922_v17 = vld [vmem:[#allocation3 + $0x38] sm:$0xff]  ;;  %v4727_v34 = vpack.c.bf16 %v4697_v0, %v4696_v23  ;;  %v4925_v23 = vld [vmem:[#allocation3 + $0x50] sm:$0xff] }
 0x677   : > { %v4170_v3 = vpop.f32.mrf.mxu2 }
 0x678   : > { %v4226_v10 = vadd.f32 %v4170_v3, %v4000_v59  ;;  %v4396_v20 = vpop.f32.mrf.mxu3  ;;  %v3946_v56 = vpop.f32.mrf.mxu1  ;;  %v13184_v3 = vpack.c.bf16 %v4923_v21, %v4922_v17 }
 0x679   : > { %v4001_v14 = vadd.f32 %v3946_v56, %v12884_v55  ;;  %v13195_v0 = vpop.f32.mrf.mxu0 }
 0x67a   : > { %v13176_v11 = vadd.f32 %v4396_v20, %v4226_v10  ;;  %v14775_v10 = vld [vmem:[#allocation20_spill] sm:$0xff]  ;;  %v14776_v20 = vld [vmem:[#allocation19_spill] sm:$0xff]  ;;  %14778 = vst [vmem:[#allocation18_spill] sm:$0xff] %v13195_v0  ;;  %v14779_v0 = vld [vmem:[#allocation22_spill] sm:$0xff] }
 0x67b   : > { %v14777_v55 = vpack.c.bf16 %v14775_v10, %v14776_v20  ;;  %v4698_v20 = vld [vmem:[#allocation3 + $0x47] sm:$0xff] }
 0x67f   : > { %v4172_v46 = vpop.f32.mrf.mxu2 }
 0x680   : > { %v4227_v15 = vadd.f32 %v4172_v46, %v4001_v14  ;;  %v4398_v30 = vpop.f32.mrf.mxu3  ;;  %v3949_v13 = vpop.f32.mrf.mxu1  ;;  %10451 = vmatmul.msk.bf16.gmra.mxu0 %vm277_vm3, %v14777_v55  ;;  %v4924_v55 = vld [vmem:[#allocation3 + $0x48] sm:$0xff] }
 0x681   : > { %v4002_v59 = vadd.f32 %v3949_v13, %v12894_v58  ;;  %v4699_v13 = vld [vmem:[#allocation3 + $0x4f] sm:$0xff] }
 0x682   : > { %v13181_v45 = vadd.f32 %v4398_v30, %v4227_v15 }
 0x683   : > { %10205 = vmatmul.msk.bf16.gmra.mxu1 %vm277_vm3, %v4727_v34 }
 0x684   : > { %10227 = vmatmul.msk.bf16.gmra.mxu2 %vm277_vm3, %v13184_v3 }
 0x685   : > { %10249 = vmatmul.msk.bf16.gmra.mxu3 %vm277_vm3, %v12920_v22 }
 0x687   : > { %v4175_v56 = vpop.f32.mrf.mxu2 }
 0x688   : > { %v4228_v14 = vadd.f32 %v4175_v56, %v4002_v59  ;;  %v4401_v46 = vpop.f32.mrf.mxu3  ;;  %v3951_v58 = vpop.f32.mrf.mxu1  ;;  %v4728_v59 = vpack.c.bf16 %v4699_v13, %v4698_v20  ;;  %v13203_v56 = vpack.c.bf16 %v4925_v23, %v4924_v55 }
 0x689   : > { %v4003_v15 = vadd.f32 %v3951_v58, %v12899_v38  ;;  %v13209_v38 = vpop.f32.mrf.mxu0 }
 0x68a   : > { %v13197_v21 = vadd.f32 %v4401_v46, %v4228_v14  ;;  %v14780_v14 = vld [vmem:[#allocation21_spill] sm:$0xff]  ;;  %14782 = vst [vmem:[#allocation17_spill] sm:$0xff] %v13209_v38 }
 0x68b   : > { %v14781_v46 = vpack.c.bf16 %v14779_v0, %v14780_v14  ;;  %v4700_v14 = vld [vmem:[#allocation3 + $0x57] sm:$0xff] }
 0x68f   : > { %v4177_v30 = vpop.f32.mrf.mxu2 }
 0x690   : > { %v4229_v17 = vadd.f32 %v4177_v30, %v4003_v15  ;;  %v4403_v34 = vpop.f32.mrf.mxu3  ;;  %v3954_v10 = vpop.f32.mrf.mxu1  ;;  %10452 = vmatmul.msk.bf16.gmra.mxu0 %vm277_vm3, %v14781_v46  ;;  %v4926_v46 = vld [vmem:[#allocation3 + $0x58] sm:$0xff] }
 0x691   : > { %v4004_v22 = vadd.f32 %v3954_v10, %v12912_v51  ;;  %v13219_v23 = vpop.f32.mrf.mxu0  ;;  %v4927_v10 = vld [vmem:[#allocation3 + $0x60] sm:$0xff] }
 0x692   : > { %v13200_v16 = vadd.f32 %v4403_v34, %v4229_v17  ;;  %14783 = vst [vmem:[#allocation20_spill] sm:$0xff] %v13219_v23  ;;  %v4701_v34 = vld [vmem:[#allocation3 + $0x5f] sm:$0xff] }
 0x693   : > { %10206 = vmatmul.msk.bf16.gmra.mxu1 %vm277_vm3, %v4728_v59 }
 0x694   : > { %10228 = vmatmul.msk.bf16.gmra.mxu2 %vm277_vm3, %v13203_v56 }
 0x695   : > { %10250 = vmatmul.msk.bf16.gmra.mxu3 %vm277_vm3, %v12936_v48 }
 0x697   : > { %v4180_v58 = vpop.f32.mrf.mxu2 }
 0x698   : > { %v4230_v51 = vadd.f32 %v4180_v58, %v4004_v22  ;;  %v4406_v15 = vpop.f32.mrf.mxu3  ;;  %v3956_v30 = vpop.f32.mrf.mxu1  ;;  %v4729_v22 = vpack.c.bf16 %v4701_v34, %v4700_v14  ;;  %v13224_v58 = vpack.c.bf16 %v4927_v10, %v4926_v46  ;;  %v4929_v14 = vld [vmem:[#allocation3 + $0x70] sm:$0xff] }
 0x699   : > { %v4005_v0 = vadd.f32 %v3956_v30, %v12917_v6 }
 0x69a   : > { %v13216_v13 = vadd.f32 %v4406_v15, %v4230_v51  ;;  %v14784_v51 = vld [vmem:[#allocation25_spill] sm:$0xff]  ;;  %v14785_v15 = vld [vmem:[#allocation24_spill] sm:$0xff] }
 0x69b   : > { %v14786_v6 = vpack.c.bf16 %v14784_v51, %v14785_v15  ;;  %v4702_v15 = vld [vmem:[#allocation3 + $0x67] sm:$0xff] }
 0x69f   : > { %v4182_v17 = vpop.f32.mrf.mxu2 }
 0x6a0   : > { %v4231_v20 = vadd.f32 %v4182_v17, %v4005_v0  ;;  %v4408_v55 = vpop.f32.mrf.mxu3  ;;  %v3959_v59 = vpop.f32.mrf.mxu1  ;;  %10453 = vmatmul.msk.bf16.gmra.mxu0 %vm277_vm3, %v14786_v6  ;;  %v4928_v6 = vld [vmem:[#allocation3 + $0x68] sm:$0xff] }
 0x6a1   : > { %v4006_v48 = vadd.f32 %v3959_v59, %v12928_v50  ;;  %v13235_v0 = vpop.f32.mrf.mxu0  ;;  %v4703_v59 = vld [vmem:[#allocation3 + $0x6f] sm:$0xff] }
 0x6a2   : > { %v13221_v38 = vadd.f32 %v4408_v55, %v4231_v20  ;;  %14787 = vst [vmem:[#allocation19_spill] sm:$0xff] %v13235_v0  ;;  %v13245_v0 = vpack.c.bf16 %v4929_v14, %v4928_v6 }
 0x6a3   : > { %10207 = vmatmul.msk.bf16.gmra.mxu1 %vm277_vm3, %v4729_v22 }
 0x6a4   : > { %10229 = vmatmul.msk.bf16.gmra.mxu2 %vm277_vm3, %v13224_v58 }
 0x6a5   : > { %10251 = vmatmul.msk.bf16.gmra.mxu3 %vm277_vm3, %v12954_v7 }
 0x6a7   : > { %v4185_v30 = vpop.f32.mrf.mxu2 }
 0x6a8   : > { %v4232_v50 = vadd.f32 %v4185_v30, %v4006_v48  ;;  %v4411_v17 = vpop.f32.mrf.mxu3  ;;  %v3961_v34 = vpop.f32.mrf.mxu1  ;;  %v4730_v30 = vpack.c.bf16 %v4703_v59, %v4702_v15  ;;  %v4931_v15 = vld [vmem:[#allocation3 + $0x80] sm:$0xff] }
 0x6a9   : > { %v4007_v20 = vadd.f32 %v3961_v34, %v12933_v4  ;;  %v13240_v23 = vpop.f32.mrf.mxu0 }
 0x6aa   : > { %v13237_v10 = vadd.f32 %v4411_v17, %v4232_v50  ;;  %14788 = vst [vmem:[#allocation22_spill] sm:$0xff] %v13240_v23  ;;  %v14789_v50 = vld [vmem:[#allocation31_spill] sm:$0xff]  ;;  %v14790_v17 = vld [vmem:[#allocation30_spill] sm:$0xff] }
 0x6ab   : > { %v14791_v4 = vpack.c.bf16 %v14789_v50, %v14790_v17  ;;  %v4704_v17 = vld [vmem:[#allocation3 + $0x77] sm:$0xff] }
 0x6af   : > { %v4187_v55 = vpop.f32.mrf.mxu2 }
 0x6b0   : > { %v4233_v46 = vadd.f32 %v4187_v55, %v4007_v20  ;;  %v4413_v22 = vpop.f32.mrf.mxu3  ;;  %v3964_v51 = vpop.f32.mrf.mxu1  ;;  %10454 = vmatmul.msk.bf16.gmra.mxu0 %vm277_vm3, %v14791_v4  ;;  %v4930_v4 = vld [vmem:[#allocation3 + $0x78] sm:$0xff] }
 0x6b1   : > { %v4008_v48 = vadd.f32 %v3964_v51, %v12946_v39  ;;  %v4705_v51 = vld [vmem:[#allocation3 + $0x7f] sm:$0xff] }
 0x6b2   : > { %v13242_v7 = vadd.f32 %v4413_v22, %v4233_v46  ;;  %v13259_v46 = vpop.f32.mrf.mxu0 }
 0x6b3   : > { %10208 = vmatmul.msk.bf16.gmra.mxu1 %vm277_vm3, %v4730_v30  ;;  %14792 = vst [vmem:[#allocation21_spill] sm:$0xff] %v13259_v46 }
 0x6b4   : > { %10230 = vmatmul.msk.bf16.gmra.mxu2 %vm277_vm3, %v13245_v0 }
 0x6b5   : > { %10252 = vmatmul.msk.bf16.gmra.mxu3 %vm277_vm3, %v12972_v2 }
 0x6b7   : > { %v4190_v34 = vpop.f32.mrf.mxu2 }
 0x6b8   : > { %v4234_v20 = vadd.f32 %v4190_v34, %v4008_v48  ;;  %v4416_v55 = vpop.f32.mrf.mxu3  ;;  %v3966_v39 = vpop.f32.mrf.mxu1  ;;  %v4731_v48 = vpack.c.bf16 %v4705_v51, %v4704_v17  ;;  %v13264_v34 = vpack.c.bf16 %v4931_v15, %v4930_v4  ;;  %v4933_v17 = vld [vmem:[#allocation3 + $0x90] sm:$0xff] }
 0x6b9   : > { %v4009_v14 = vadd.f32 %v3966_v39, %v12951_v8 }
 0x6ba   : > { %v13256_v59 = vadd.f32 %v4416_v55, %v4234_v20  ;;  %v14793_v20 = vld [vmem:[#allocation33_spill] sm:$0xff]  ;;  %v14794_v55 = vld [vmem:[#allocation32_spill] sm:$0xff]  ;;  %v13275_v39 = vpop.f32.mrf.mxu0 }
 0x6bb   : > { %v14795_v8 = vpack.c.bf16 %v14793_v20, %v14794_v55  ;;  %14796 = vst [vmem:[#allocation25_spill] sm:$0xff] %v13275_v39 }
 0x6bf   : > { %v4192_v22 = vpop.f32.mrf.mxu2 }
 0x6c0   : > { %v4235_v6 = vadd.f32 %v4192_v22, %v4009_v14  ;;  %v4418_v30 = vpop.f32.mrf.mxu3  ;;  %v3969_v50 = vpop.f32.mrf.mxu1  ;;  %10455 = vmatmul.msk.bf16.gmra.mxu0 %vm277_vm3, %v14795_v8  ;;  %v4706_v8 = vld [vmem:[#allocation3 + $0x87] sm:$0xff] }
 0x6c1   : > { %v4010_v2 = vadd.f32 %v3969_v50, %v12964_v40  ;;  %v4707_v50 = vld [vmem:[#allocation3 + $0x8f] sm:$0xff] }
 0x6c2   : > { %v13261_v23 = vadd.f32 %v4418_v30, %v4235_v6  ;;  %v13280_v4 = vpop.f32.mrf.mxu0 }
 0x6c3   : > { %10209 = vmatmul.msk.bf16.gmra.mxu1 %vm277_vm3, %v4731_v48  ;;  %14797 = vst [vmem:[#allocation24_spill] sm:$0xff] %v13280_v4 }
 0x6c4   : > { %10231 = vmatmul.msk.bf16.gmra.mxu2 %vm277_vm3, %v13264_v34 }
 0x6c5   : > { %10253 = vmatmul.msk.bf16.gmra.mxu3 %vm277_vm3, %v12990_v9  ;;  %v4932_v9 = vld [vmem:[#allocation3 + $0x88] sm:$0xff] }
 0x6c6   : > { %v13285_v39 = vpack.c.bf16 %v4933_v17, %v4932_v9  ;;  %v4709_v9 = vld [vmem:[#allocation3 + $0x9f] sm:$0xff] }
 0x6c7   : > { %v4195_v14 = vpop.f32.mrf.mxu2 }
 0x6c8   : > { %v4236_v40 = vadd.f32 %v4195_v14, %v4010_v2  ;;  %v4421_v22 = vpop.f32.mrf.mxu3  ;;  %v3971_v51 = vpop.f32.mrf.mxu1  ;;  %v4732_v14 = vpack.c.bf16 %v4707_v50, %v4706_v8 }
 0x6c9   : > { %v4011_v6 = vadd.f32 %v3971_v51, %v12969_v53 }
 0x6ca   : > { %v13277_v15 = vadd.f32 %v4421_v22, %v4236_v40  ;;  %v14798_v40 = vld [vmem:[#allocation39_spill] sm:$0xff]  ;;  %v14799_v22 = vld [vmem:[#allocation38_spill] sm:$0xff]  ;;  %v6467_v50 = vpop.f32.mrf.mxu0 }
 0x6cb   : > { %v14800_v53 = vpack.c.bf16 %v14798_v40, %v14799_v22 }
 0x6cf   : > { %v4197_v30 = vpop.f32.mrf.mxu2 }
 0x6d0   : > { %v4237_v48 = vadd.f32 %v4197_v30, %v4011_v6  ;;  %v4423_v20 = vpop.f32.mrf.mxu3  ;;  %v3974_v55 = vpop.f32.mrf.mxu1  ;;  %10456 = vmatmul.msk.bf16.gmra.mxu0 %vm277_vm3, %v14800_v53 }
 0x6d1   : > { %v4012_v2 = vadd.f32 %v3974_v55, %v12982_v26  ;;  %v7203_v55 = vld [vmem:[#allocation3 + $0x104] sm:$0xff] }
 0x6d2   : > { %v13282_v46 = vadd.f32 %v4423_v20, %v4237_v48  ;;  %v7202_v20 = vld [vmem:[#allocation3 + $0xfc] sm:$0xff] }
 0x6d3   : > { %10210 = vmatmul.msk.bf16.gmra.mxu1 %vm277_vm3, %v4732_v14  ;;  %v4935_v14 = vld [vmem:[#allocation3 + $0xa0] sm:$0xff]  ;;  %v7223_v53 = vpack.c.bf16 %v7203_v55, %v7202_v20  ;;  %v4711_v20 = vld [vmem:[#allocation3 + $0xaf] sm:$0xff] }
 0x6d4   : > { %10232 = vmatmul.msk.bf16.gmra.mxu2 %vm277_vm3, %v13285_v39  ;;  %v4937_v55 = vld [vmem:[#allocation3 + $0xb0] sm:$0xff] }
 0x6d5   : > { %10254 = vmatmul.msk.bf16.gmra.mxu3 %vm277_vm3, %v13003_v52  ;;  %v4934_v52 = vld [vmem:[#allocation3 + $0x98] sm:$0xff] }
 0x6d7   : > { %v4200_v51 = vpop.f32.mrf.mxu2 }
 0x6d8   : > { %v4238_v6 = vadd.f32 %v4200_v51, %v4012_v2  ;;  %v4426_v30 = vpop.f32.mrf.mxu3  ;;  %v3976_v26 = vpop.f32.mrf.mxu1  ;;  %v4733_v51 = vpack.c.bf16 %v4709_v9, %v4708_v44  ;;  %v14803_v9 = vld [vmem:[#allocation52_spill] sm:$0xff] }
 0x6d9   : > { %v4013_v48 = vadd.f32 %v3976_v26, %v12987_v18  ;;  %v13305_v18 = vpop.f32.mrf.mxu0 }
 0x6da   : > { %v13296_v17 = vadd.f32 %v4426_v30, %v4238_v6  ;;  %v13302_v6 = vpack.c.bf16 %v4935_v14, %v4934_v52  ;;  %14801 = vst [vmem:[#allocation31_spill] sm:$0xff] %v13305_v18  ;;  %v4662_v14 = vadd.f32 %v14803_v9, %v13013_v28 }
 0x6df   : > { %v4202_v8 = vpop.f32.mrf.mxu2 }
 0x6e0   : > { %v4239_v40 = vadd.f32 %v4202_v8, %v4013_v48  ;;  %v4428_v22 = vpop.f32.mrf.mxu3  ;;  %v3979_v4 = vpop.f32.mrf.mxu1  ;;  %10457 = vmatmul.msk.bf16.gmra.mxu0 %vm277_vm3, %v7223_v53  ;;  %v4936_v53 = vld [vmem:[#allocation3 + $0xa8] sm:$0xff] }
 0x6e1   : > { %v4014_v2 = vadd.f32 %v3979_v4, %v12998_v33  ;;  %v13314_v44 = vpop.f32.mrf.mxu0 }
 0x6e2   : > { %v13299_v49 = vadd.f32 %v4428_v22, %v4239_v40  ;;  %14802 = vst [vmem:[#allocation30_spill] sm:$0xff] %v13314_v44  ;;  %v4710_v22 = vld [vmem:[#allocation3 + $0xa7] sm:$0xff] }
 0x6e3   : > { %10211 = vmatmul.msk.bf16.gmra.mxu1 %vm277_vm3, %v4733_v51  ;;  %v13318_v51 = vpack.c.bf16 %v4937_v55, %v4936_v53  ;;  %v4712_v53 = vld [vmem:[#allocation3 + $0xb7] sm:$0xff] }
 0x6e4   : > { %10233 = vmatmul.msk.bf16.gmra.mxu2 %vm277_vm3, %v13302_v6 }
 0x6e5   : > { %10255 = vmatmul.msk.bf16.gmra.mxu3 %vm277_vm3, %v13021_v5  ;;  %v4734_v5 = vpack.c.bf16 %v4711_v20, %v4710_v22  ;;  %v14808_v20 = vld [vmem:[#allocation53_spill] sm:$0xff] }
 0x6e6   : > { %v4663_v55 = vadd.f32 %v14808_v20, %v13018_v37  ;;  %v7207_v22 = vld [vmem:[#allocation3 + $0x124] sm:$0xff] }
 0x6e7   : > { %v4205_v30 = vpop.f32.mrf.mxu2 }
 0x6e8   : > { %v4240_v26 = vadd.f32 %v4205_v30, %v4014_v2  ;;  %v4431_v50 = vpop.f32.mrf.mxu3  ;;  %v3981_v48 = vpop.f32.mrf.mxu1  ;;  %v14804_v2 = vld [vmem:[#allocation85_spill] sm:$0xff]  ;;  %v14805_v30 = vld [vmem:[#allocation84_spill] sm:$0xff] }
 0x6ea   : > { %v13312_v33 = vadd.f32 %v4431_v50, %v4240_v26  ;;  %v14806_v26 = vpack.c.bf16 %v14804_v2, %v14805_v30  ;;  %v13329_v50 = vpop.f32.mrf.mxu0  ;;  %v4713_v2 = vld [vmem:[#allocation3 + $0xbf] sm:$0xff] }
 0x6eb   : > { %14807 = vst [vmem:[#allocation33_spill] sm:$0xff] %v13329_v50  ;;  %v4938_v30 = vld [vmem:[#allocation3 + $0xb8] sm:$0xff] }
 0x6ec   : > { %v14809_v50 = vld [vmem:[#allocation54_spill] sm:$0xff] }
 0x6ef   : > { %v4207_v4 = vpop.f32.mrf.mxu2 }
 0x6f0   : > { %v4433_v8 = vpop.f32.mrf.mxu3  ;;  %v4808_v40 = vpop.f32.mrf.mxu1  ;;  %10458 = vmatmul.msk.bf16.gmra.mxu0 %vm277_vm3, %v14806_v26  ;;  %v4939_v26 = vld [vmem:[#allocation3 + $0xc0] sm:$0xff] }
 0x6f1   : > { %v4888_v52 = vadd.f32 %v4808_v40, %v4662_v14  ;;  %v7206_v40 = vld [vmem:[#allocation3 + $0x11c] sm:$0xff]  ;;  %v13341_v20 = vpack.c.bf16 %v4939_v26, %v4938_v30  ;;  %v14812_v26 = vld [vmem:[#allocation58_spill] sm:$0xff] }
 0x6f2   : > { %v13337_v18 = vpop.f32.mrf.mxu0 }
 0x6f3   : > { %10212 = vmatmul.msk.bf16.gmra.mxu1 %vm277_vm3, %v4734_v5  ;;  %14810 = vst [vmem:[#allocation32_spill] sm:$0xff] %v13337_v18 }
 0x6f4   : > { %10234 = vmatmul.msk.bf16.gmra.mxu2 %vm277_vm3, %v13318_v51 }
 0x6f5   : > { %10256 = vmatmul.msk.bf16.gmra.mxu3 %vm277_vm3, %v13039_v41 }
 0x6f7   : > { %v5034_v28 = vpop.f32.mrf.mxu2 }
 0x6f8   : > { %v5114_v48 = vadd.f32 %v5034_v28, %v4888_v52  ;;  %v5260_v4 = vpop.f32.mrf.mxu3  ;;  %v4810_v8 = vpop.f32.mrf.mxu1  ;;  %v4664_v52 = vadd.f32 %v14809_v50, %v13031_v60  ;;  %v7225_v28 = vpack.c.bf16 %v7207_v22, %v7206_v40 }
 0x6f9   : > { %v4889_v14 = vadd.f32 %v4810_v8, %v4663_v55 }
 0x6fa   : > { %v13333_v9 = vadd.f32 %v5260_v4, %v5114_v48  ;;  %v4735_v4 = vpack.c.bf16 %v4713_v2, %v4712_v53  ;;  %v4715_v53 = vld [vmem:[#allocation3 + $0xcf] sm:$0xff] }
 0x6ff   : > { %v5036_v5 = vpop.f32.mrf.mxu2 }
 0x700   : > { %v5115_v41 = vadd.f32 %v5036_v5, %v4889_v14  ;;  %v5262_v43 = vpop.f32.mrf.mxu3  ;;  %v4813_v44 = vpop.f32.mrf.mxu1  ;;  %10459 = vmatmul.msk.bf16.gmra.mxu0 %vm277_vm3, %v7225_v28  ;;  %v4941_v5 = vld [vmem:[#allocation3 + $0xd0] sm:$0xff]  ;;  %v4940_v28 = vld [vmem:[#allocation3 + $0xc8] sm:$0xff] }
 0x701   : > { %v4890_v48 = vadd.f32 %v4813_v44, %v4664_v52 }
 0x702   : > { %v13339_v37 = vadd.f32 %v5262_v43, %v5115_v41  ;;  %v14811_v43 = vld [vmem:[#allocation55_spill] sm:$0xff]  ;;  %v4666_v41 = vadd.f32 %v14812_v26, %v13050_v57 }
 0x703   : > { %10213 = vmatmul.msk.bf16.gmra.mxu1 %vm277_vm3, %v4735_v4  ;;  %v4665_v8 = vadd.f32 %v14811_v43, %v13036_v54  ;;  %v13357_v54 = vpack.c.bf16 %v4941_v5, %v4940_v28  ;;  %v14813_v43 = vld [vmem:[#allocation62_spill] sm:$0xff]  ;;  %v4717_v5 = vld [vmem:[#allocation3 + $0xdf] sm:$0xff] }
 0x704   : > { %10235 = vmatmul.msk.bf16.gmra.mxu2 %vm277_vm3, %v13341_v20  ;;  %v4942_v28 = vld [vmem:[#allocation3 + $0xd8] sm:$0xff] }
 0x705   : > { %10257 = vmatmul.msk.bf16.gmra.mxu3 %vm277_vm3, %v13058_v62  ;;  %v4714_v62 = vld [vmem:[#allocation3 + $0xc7] sm:$0xff] }
 0x707   : > { %v5039_v60 = vpop.f32.mrf.mxu2 }
 0x708   : > { %v5116_v50 = vadd.f32 %v5039_v60, %v4890_v48  ;;  %v5265_v55 = vpop.f32.mrf.mxu3  ;;  %v4815_v44 = vpop.f32.mrf.mxu1  ;;  %v4736_v60 = vpack.c.bf16 %v4715_v53, %v4714_v62 }
 0x709   : > { %v4891_v40 = vadd.f32 %v4815_v44, %v4665_v8  ;;  %v4667_v8 = vadd.f32 %v14813_v43, %v13055_v24  ;;  %v14815_v43 = vld [vmem:[#allocation66_spill] sm:$0xff] }
 0x70a   : > { %v13351_v14 = vadd.f32 %v5265_v55, %v5116_v50 }
 0x70f   : > { %v5041_v22 = vpop.f32.mrf.mxu2 }
 0x710   : > { %v5117_v2 = vadd.f32 %v5041_v22, %v4891_v40  ;;  %v5267_v30 = vpop.f32.mrf.mxu3  ;;  %v4818_v52 = vpop.f32.mrf.mxu1 }
 0x711   : > { %v4892_v4 = vadd.f32 %v4818_v52, %v4666_v41  ;;  %v14814_v41 = vld [vmem:[#allocation63_spill] sm:$0xff] }
 0x712   : > { %v13355_v48 = vadd.f32 %v5267_v30, %v5117_v2  ;;  %v4943_v2 = vld [vmem:[#allocation3 + $0xe0] sm:$0xff]  ;;  %v4668_v52 = vadd.f32 %v14814_v41, %v13068_v1 }
 0x713   : > { %10214 = vmatmul.msk.bf16.gmra.mxu1 %vm277_vm3, %v4736_v60  ;;  %v13372_v24 = vpack.c.bf16 %v4943_v2, %v4942_v28  ;;  %v4719_v2 = vld [vmem:[#allocation3 + $0xef] sm:$0xff] }
 0x714   : > { %10236 = vmatmul.msk.bf16.gmra.mxu2 %vm277_vm3, %v13357_v54  ;;  %v4944_v28 = vld [vmem:[#allocation3 + $0xe8] sm:$0xff] }
 0x715   : > { %10258 = vmatmul.msk.bf16.gmra.mxu3 %vm277_vm3, %v13076_v42  ;;  %v4716_v42 = vld [vmem:[#allocation3 + $0xd7] sm:$0xff] }
 0x717   : > { %v5044_v50 = vpop.f32.mrf.mxu2 }
 0x718   : > { %v5118_v55 = vadd.f32 %v5044_v50, %v4892_v4  ;;  %v5270_v57 = vpop.f32.mrf.mxu3  ;;  %v4820_v44 = vpop.f32.mrf.mxu1  ;;  %v4737_v50 = vpack.c.bf16 %v4717_v5, %v4716_v42 }
 0x719   : > { %v4893_v22 = vadd.f32 %v4820_v44, %v4667_v8  ;;  %v4669_v8 = vadd.f32 %v14815_v43, %v13073_v36  ;;  %v14817_v43 = vld [vmem:[#allocation69_spill] sm:$0xff] }
 0x71a   : > { %v13366_v40 = vadd.f32 %v5270_v57, %v5118_v55 }
 0x71f   : > { %v5046_v53 = vpop.f32.mrf.mxu2 }
 0x720   : > { %v5119_v30 = vadd.f32 %v5046_v53, %v4893_v22  ;;  %v5272_v26 = vpop.f32.mrf.mxu3  ;;  %v4823_v62 = vpop.f32.mrf.mxu1 }
 0x721   : > { %v4894_v60 = vadd.f32 %v4823_v62, %v4668_v52  ;;  %v14816_v52 = vld [vmem:[#allocation67_spill] sm:$0xff] }
 0x722   : > { %v13370_v4 = vadd.f32 %v5272_v26, %v5119_v30  ;;  %v4945_v30 = vld [vmem:[#allocation3 + $0xf0] sm:$0xff]  ;;  %v4670_v62 = vadd.f32 %v14816_v52, %v13089_v35 }
 0x723   : > { %10215 = vmatmul.msk.bf16.gmra.mxu1 %vm277_vm3, %v4737_v50  ;;  %v13387_v36 = vpack.c.bf16 %v4945_v30, %v4944_v28  ;;  %v4721_v30 = vld [vmem:[#allocation3 + $0xff] sm:$0xff]  ;;  %v4720_v28 = vld [vmem:[#allocation3 + $0xf7] sm:$0xff] }
 0x724   : > { %10237 = vmatmul.msk.bf16.gmra.mxu2 %vm277_vm3, %v13372_v24 }
 0x725   : > { %10259 = vmatmul.msk.bf16.gmra.mxu3 %vm277_vm3, %v13095_v47  ;;  %v4718_v47 = vld [vmem:[#allocation3 + $0xe7] sm:$0xff] }
 0x727   : > { %v5049_v55 = vpop.f32.mrf.mxu2 }
 0x728   : > { %v5120_v57 = vadd.f32 %v5049_v55, %v4894_v60  ;;  %v5275_v1 = vpop.f32.mrf.mxu3  ;;  %v4825_v44 = vpop.f32.mrf.mxu1  ;;  %v4738_v55 = vpack.c.bf16 %v4719_v2, %v4718_v47  ;;  %v5173_v47 = vld [vmem:[#allocation3 + $0x10e] sm:$0xff] }
 0x729   : > { %v4895_v53 = vadd.f32 %v4825_v44, %v4669_v8  ;;  %v4671_v8 = vadd.f32 %v14817_v43, %v13092_v32  ;;  %v4739_v32 = vpack.c.bf16 %v4721_v30, %v4720_v28  ;;  %v14820_v28 = vld [vmem:[#allocation74_spill] sm:$0xff] }
 0x72a   : > { %v13381_v22 = vadd.f32 %v5275_v1, %v5120_v57 }
 0x72f   : > { %v5051_v5 = vpop.f32.mrf.mxu2 }
 0x730   : > { %v5121_v26 = vadd.f32 %v5051_v5, %v4895_v53  ;;  %v5277_v41 = vpop.f32.mrf.mxu3  ;;  %v4828_v42 = vpop.f32.mrf.mxu1 }
 0x731   : > { %v4896_v50 = vadd.f32 %v4828_v42, %v4670_v62  ;;  %v14818_v62 = vld [vmem:[#allocation71_spill] sm:$0xff] }
 0x732   : > { %v13385_v60 = vadd.f32 %v5277_v41, %v5121_v26  ;;  %v4947_v26 = vld [vmem:[#allocation3 + $0x100] sm:$0xff]  ;;  %v4672_v42 = vadd.f32 %v14818_v62, %v13109_v31  ;;  %v4948_v62 = vld [vmem:[#allocation3 + $0x108] sm:$0xff] }
 0x733   : > { %10216 = vmatmul.msk.bf16.gmra.mxu1 %vm277_vm3, %v4738_v55 }
 0x734   : > { %10238 = vmatmul.msk.bf16.gmra.mxu2 %vm277_vm3, %v13387_v36 }
 0x735   : > { %10260 = vmatmul.msk.bf16.gmra.mxu3 %vm277_vm3, %v13117_v12 }
 0x737   : > { %v5054_v57 = vpop.f32.mrf.mxu2 }
 0x738   : > { %v5122_v1 = vadd.f32 %v5054_v57, %v4896_v50  ;;  %v5280_v35 = vpop.f32.mrf.mxu3  ;;  %v4830_v44 = vpop.f32.mrf.mxu1  ;;  %v4946_v50 = vld [vmem:[#allocation3 + $0xf8] sm:$0xff] }
 0x739   : > { %v4897_v5 = vadd.f32 %v4830_v44, %v4671_v8  ;;  %v13402_v43 = vpack.c.bf16 %v4947_v26, %v4946_v50  ;;  %v14819_v44 = vld [vmem:[#allocation73_spill] sm:$0xff]  ;;  %v4674_v50 = vadd.f32 %v14820_v28, %v13134_v27  ;;  %v11170_v27 = vld [vmem:[%s14536_s3 + $0xb0] sm:$0xff] }
 0x73a   : > { %v13396_v53 = vadd.f32 %v5280_v35, %v5122_v1  ;;  %v5191_v1 = vpack.c.bf16 %v5173_v47, %v13140_v19  ;;  %v4722_v26 = vld [vmem:[#allocation3 + $0x107] sm:$0xff]  ;;  %v4723_v19 = vld [vmem:[#allocation3 + $0x10f] sm:$0xff]  ;;  %6840 = vmatpush.bf16.msra.mxu2 %v11170_v27 }
 0x73b   : > { %v5176_v28 = vld [vmem:[#allocation3 + $0x126] sm:$0xff] }
 0x73f   : > { %v5056_v2 = vpop.f32.mrf.mxu2 }
 0x740   : > { %v5123_v41 = vadd.f32 %v5056_v2, %v4897_v5  ;;  %v5282_v52 = vpop.f32.mrf.mxu3  ;;  %v4833_v12 = vpop.f32.mrf.mxu1  ;;  %v4673_v5 = vadd.f32 %v14819_v44, %v13114_v63  ;;  %v4740_v44 = vpack.c.bf16 %v4723_v19, %v4722_v26  ;;  %v14821_v26 = vld [vmem:[#allocation75_spill] sm:$0xff] }
 0x741   : > { %v4898_v57 = vadd.f32 %v4833_v12, %v4672_v42  ;;  %v4949_v42 = vld [vmem:[#allocation3 + $0x110] sm:$0xff] }
 0x742   : > { %v13400_v55 = vadd.f32 %v5282_v52, %v5123_v41 }
 0x743   : > { %10217 = vmatmul.msk.bf16.gmra.mxu1 %vm277_vm3, %v4739_v32  ;;  %v5174_v32 = vld [vmem:[#allocation3 + $0x116] sm:$0xff] }
 0x744   : > { %10239 = vmatmul.msk.bf16.gmra.mxu2 %vm277_vm3, %v13402_v43 }
 0x745   : > { %10261 = vmatmul.msk.bf16.gmra.mxu3 %vm277_vm3, %v5191_v1 }
 0x747   : > { %v5059_v31 = vpop.f32.mrf.mxu2 }
 0x748   : > { %v5124_v35 = vadd.f32 %v5059_v31, %v4898_v57  ;;  %v5285_v8 = vpop.f32.mrf.mxu3  ;;  %v4835_v2 = vpop.f32.mrf.mxu1  ;;  %v5175_v57 = vld [vmem:[#allocation3 + $0x11e] sm:$0xff] }
 0x749   : > { %v4899_v30 = vadd.f32 %v4835_v2, %v4673_v5 }
 0x74a   : > { %v13411_v41 = vadd.f32 %v5285_v8, %v5124_v35  ;;  %v13417_v35 = vpack.c.bf16 %v4949_v42, %v4948_v62  ;;  %v5192_v8 = vpack.c.bf16 %v5175_v57, %v5174_v32  ;;  %v4725_v57 = vld [vmem:[#allocation3 + $0x11f] sm:$0xf] }
 0x74f   : > { %v5061_v52 = vpop.f32.mrf.mxu2 }
 0x750   : > { %v5125_v47 = vadd.f32 %v5061_v52, %v4899_v30  ;;  %v5287_v12 = vpop.f32.mrf.mxu3  ;;  %v4838_v1 = vpop.f32.mrf.mxu1  ;;  %v4675_v52 = vadd.f32 %v14821_v26, %v13144_v25  ;;  %v14822_v25 = vld [vmem:[#allocation76_spill] sm:$0xff] }
 0x751   : > { %v4900_v63 = vadd.f32 %v4838_v1, %v4674_v50  ;;  %v5177_v50 = vld [vmem:[#allocation3 + $0x12e] sm:$0xf]  ;;  %v13433_v1 = vld [vmem:[#allocation3 + $0x118] sm:$0xff]  ;;  %v4676_v27 = vadd.f32 %v14822_v25, %v13158_v61  ;;  %v5825_v25 = vld [vmem:[#allocation3 + $0x41] sm:$0xff] }
 0x752   : > { %v13415_v31 = vadd.f32 %v5287_v12, %v5125_v47  ;;  %v11169_v47 = vld [vmem:[%s14536_s3 + $0xa8] sm:$0xff] }
 0x753   : > { %10218 = vmatmul.msk.bf16.gmra.mxu1 %vm277_vm3, %v4740_v44  ;;  %v4724_v12 = vld [vmem:[#allocation3 + $0x117] sm:$0xff] }
 0x754   : > { %10240 = vmatmul.msk.bf16.gmra.mxu2 %vm277_vm3, %v13417_v35  ;;  %6614 = vmatpush.bf16.msra.mxu1 %v11169_v47  ;;  %v11171_v47 = vld [vmem:[%s14536_s3 + $0xb8] sm:$0xff] }
 0x755   : > { %10262 = vmatmul.msk.bf16.gmra.mxu3 %vm277_vm3, %v5192_v8 }
 0x756   : > { %7066 = vmatpush.bf16.msra.mxu3 %v11171_v47  ;;  %v6051_v47 = vld [vmem:[#allocation3 + $0x42] sm:$0xff] }
 0x757   : > { %v5064_v5 = vpop.f32.mrf.mxu2 }
 0x758   : > { %v5126_v2 = vadd.f32 %v5064_v5, %v4900_v63  ;;  %v5290_v30 = vpop.f32.mrf.mxu3  ;;  %v4840_v19 = vpop.f32.mrf.mxu1  ;;  %v4951_v63 = vld [vmem:[#allocation3 + $0x120] sm:$0xf] }
 0x759   : > { %v4901_v42 = vadd.f32 %v4840_v19, %v4675_v52  ;;  %v4741_v52 = vpack.c.bf16 %v4725_v57, %v4724_v12  ;;  %v4967_v19 = vpack.c.bf16 %v4951_v63, %v13433_v1 }
 0x75a   : > { %v13428_v62 = vadd.f32 %v5290_v30, %v5126_v2  ;;  %v5193_v2 = vpack.c.bf16 %v5177_v50, %v5176_v28  ;;  %v14824_v50 = vld [vmem:[#allocation78_spill] sm:$0xff] }
 0x75f   : > { %v5066_v32 = vpop.f32.mrf.mxu2 }
 0x760   : > { %v5127_v44 = vadd.f32 %v5066_v32, %v4901_v42  ;;  %v5292_v8 = vpop.f32.mrf.mxu3  ;;  %v4843_v5 = vpop.f32.mrf.mxu1  ;;  %v4677_v32 = vadd.f32 %v14824_v50, %v13163_v29 }
 0x761   : > { %v4902_v26 = vadd.f32 %v4843_v5, %v4676_v27 }
 0x762   : > { %v13437_v30 = vadd.f32 %v5292_v8, %v5127_v44  ;;  %v5824_v8 = vld [vmem:[#allocation3 + $0x39] sm:$0xff] }
 0x763   : > { %10219 = vmatmul.msk.bf16.gmra.mxu1 %vm277_vm3, %v4741_v52  ;;  %v14825_v52 = vld [vmem:[#allocation79_spill] sm:$0xff] }
 0x764   : > { %14823 = vst [vmem:[#allocation39_spill] sm:$0xff] %v13437_v30  ;;  %10241 = vmatmul.msk.bf16.gmra.mxu2 %vm277_vm3, %v4967_v19  ;;  %v4678_v19 = vadd.f32 %v14825_v52, %v13176_v11  ;;  %v5856_v30 = vpack.c.bf16 %v5825_v25, %v5824_v8  ;;  %v14826_v11 = vld [vmem:[#allocation80_spill] sm:$0xff]  ;;  %v5827_v8 = vld [vmem:[#allocation3 + $0x51] sm:$0xff] }
 0x765   : > { %10263 = vmatmul.msk.bf16.gmra.mxu3 %vm277_vm3, %v5193_v2  ;;  %v6050_v2 = vld [vmem:[#allocation3 + $0x3a] sm:$0xff] }
 0x766   : > { %v6082_v29 = vpack.c.bf16 %v6051_v47, %v6050_v2 }
 0x767   : > { %v5069_v61 = vpop.f32.mrf.mxu2 }
 0x768   : > { %v5128_v42 = vadd.f32 %v5069_v61, %v4902_v26  ;;  %v5295_v28 = vpop.f32.mrf.mxu3  ;;  %v4845_v12 = vpop.f32.mrf.mxu1 }
 0x769   : > { %v4903_v63 = vadd.f32 %v4845_v12, %v4677_v32  ;;  %v4679_v32 = vadd.f32 %v14826_v11, %v13181_v45  ;;  %v6052_v45 = vld [vmem:[#allocation3 + $0x4a] sm:$0xff] }
 0x76a   : > { %v13448_v57 = vadd.f32 %v5295_v28, %v5128_v42 }
 0x76f   : > { %v5071_v44 = vpop.f32.mrf.mxu2 }
 0x770   : > { %v5129_v27 = vadd.f32 %v5071_v44, %v4903_v63  ;;  %v5297_v5 = vpop.f32.mrf.mxu3  ;;  %v4848_v18 = vpop.f32.mrf.mxu1 }
 0x771   : > { %v4904_v61 = vadd.f32 %v4848_v18, %v4678_v19  ;;  %v5826_v19 = vld [vmem:[#allocation3 + $0x49] sm:$0xff] }
 0x772   : > { %v13452_v26 = vadd.f32 %v5297_v5, %v5129_v27 }
 0x773   : > { %10292 = vmatmul.msk.bf16.vlgmr.msrb.gmra.mxu1 %vm277_vm3, %v13184_v3  ;;  %v14827_v3 = vld [vmem:[#allocation81_spill] sm:$0xff] }
 0x774   : > { %10314 = vmatmul.msk.bf16.vlgmr.msrb.gmra.mxu2 %vm277_vm3, %v5856_v30  ;;  %v4680_v5 = vadd.f32 %v14827_v3, %v13197_v21  ;;  %v6053_v30 = vld [vmem:[#allocation3 + $0x52] sm:$0xff] }
 0x775   : > { %10336 = vmatmul.msk.bf16.vlgmr.msrb.gmra.mxu3 %vm277_vm3, %v6082_v29  ;;  %v13468_v29 = vpack.c.bf16 %v6053_v30, %v6052_v45 }
 0x777   : > { %v5074_v42 = vpop.f32.mrf.mxu2 }
 0x778   : > { %v5130_v28 = vadd.f32 %v5074_v42, %v4904_v61  ;;  %v5300_v50 = vpop.f32.mrf.mxu3  ;;  %v4850_v12 = vpop.f32.mrf.mxu1  ;;  %v13466_v61 = vpack.c.bf16 %v5827_v8, %v5826_v19  ;;  %v5829_v8 = vld [vmem:[#allocation3 + $0x61] sm:$0xff] }
 0x779   : > { %v4905_v44 = vadd.f32 %v4850_v12, %v4679_v32 }
 0x77a   : > { %v13460_v63 = vadd.f32 %v5300_v50, %v5130_v28  ;;  %v14828_v50 = vld [vmem:[#allocation82_spill] sm:$0xff] }
 0x77b   : > { %v4681_v11 = vadd.f32 %v14828_v50, %v13200_v16  ;;  %v6054_v16 = vld [vmem:[#allocation3 + $0x5a] sm:$0xff] }
 0x77c   : > { %v14830_v50 = vld [vmem:[#allocation86_spill] sm:$0xff] }
 0x77f   : > { %v5076_v18 = vpop.f32.mrf.mxu2 }
 0x780   : > { %v5131_v25 = vadd.f32 %v5076_v18, %v4905_v44  ;;  %v5302_v27 = vpop.f32.mrf.mxu3  ;;  %v4853_v52 = vpop.f32.mrf.mxu1 }
 0x781   : > { %v4906_v47 = vadd.f32 %v4853_v52, %v4680_v5  ;;  %v6055_v5 = vld [vmem:[#allocation3 + $0x62] sm:$0xff]  ;;  %v5828_v52 = vld [vmem:[#allocation3 + $0x59] sm:$0xff] }
 0x782   : > { %v13464_v2 = vadd.f32 %v5302_v27, %v5131_v25  ;;  %v14829_v27 = vld [vmem:[#allocation83_spill] sm:$0xff]  ;;  %v13484_v45 = vpack.c.bf16 %v5829_v8, %v5828_v52  ;;  %v5830_v52 = vld [vmem:[#allocation3 + $0x69] sm:$0xff] }
 0x783   : > { %10293 = vmatmul.msk.bf16.gmra.mxu1 %vm277_vm3, %v13203_v56  ;;  %v4682_v3 = vadd.f32 %v14829_v27, %v13216_v13  ;;  %v14831_v27 = vld [vmem:[#allocation87_spill] sm:$0xff] }
 0x784   : > { %10315 = vmatmul.msk.bf16.gmra.mxu2 %vm277_vm3, %v13466_v61 }
 0x785   : > { %10337 = vmatmul.msk.bf16.gmra.mxu3 %vm277_vm3, %v13468_v29 }
 0x787   : > { %v5079_v21 = vpop.f32.mrf.mxu2 }
 0x788   : > { %v5132_v42 = vadd.f32 %v5079_v21, %v4906_v47  ;;  %v5305_v28 = vpop.f32.mrf.mxu3  ;;  %v4855_v32 = vpop.f32.mrf.mxu1  ;;  %v13486_v21 = vpack.c.bf16 %v6055_v5, %v6054_v16  ;;  %v6057_v5 = vld [vmem:[#allocation3 + $0x72] sm:$0xff] }
 0x789   : > { %v4907_v44 = vadd.f32 %v4855_v32, %v4681_v11  ;;  %v4683_v11 = vadd.f32 %v14830_v50, %v13221_v38  ;;  %v6056_v38 = vld [vmem:[#allocation3 + $0x6a] sm:$0xff] }
 0x78a   : > { %v13478_v12 = vadd.f32 %v5305_v28, %v5132_v42  ;;  %v13504_v50 = vpack.c.bf16 %v6057_v5, %v6056_v38  ;;  %v5832_v38 = vld [vmem:[#allocation3 + $0x79] sm:$0xff] }
 0x78f   : > { %v5081_v18 = vpop.f32.mrf.mxu2 }
 0x790   : > { %v5133_v25 = vadd.f32 %v5081_v18, %v4907_v44  ;;  %v5307_v56 = vpop.f32.mrf.mxu3  ;;  %v4858_v30 = vpop.f32.mrf.mxu1 }
 0x791   : > { %v4908_v47 = vadd.f32 %v4858_v30, %v4682_v3  ;;  %v4684_v3 = vadd.f32 %v14831_v27, %v13237_v10 }
 0x792   : > { %v13482_v19 = vadd.f32 %v5307_v56, %v5133_v25  ;;  %v5831_v25 = vld [vmem:[#allocation3 + $0x71] sm:$0xff] }
 0x793   : > { %10294 = vmatmul.msk.bf16.gmra.mxu1 %vm277_vm3, %v13224_v58 }
 0x794   : > { %10316 = vmatmul.msk.bf16.gmra.mxu2 %vm277_vm3, %v13484_v45 }
 0x795   : > { %10338 = vmatmul.msk.bf16.gmra.mxu3 %vm277_vm3, %v13486_v21 }
 0x797   : > { %v5084_v13 = vpop.f32.mrf.mxu2 }
 0x798   : > { %v5134_v42 = vadd.f32 %v5084_v13, %v4908_v47  ;;  %v5310_v28 = vpop.f32.mrf.mxu3  ;;  %v4860_v32 = vpop.f32.mrf.mxu1  ;;  %v13502_v13 = vpack.c.bf16 %v5831_v25, %v5830_v52 }
 0x799   : > { %v4909_v18 = vadd.f32 %v4860_v32, %v4683_v11  ;;  %v14833_v11 = vld [vmem:[#allocation88_spill] sm:$0xff] }
 0x79a   : > { %v13496_v44 = vadd.f32 %v5310_v28, %v5134_v42  ;;  %v4685_v32 = vadd.f32 %v14833_v11, %v13242_v7  ;;  %v6058_v7 = vld [vmem:[#allocation3 + $0x7a] sm:$0xff] }
 0x79f   : > { %v5086_v8 = vpop.f32.mrf.mxu2 }
 0x7a0   : > { %v5135_v56 = vadd.f32 %v5086_v8, %v4909_v18  ;;  %v5312_v58 = vpop.f32.mrf.mxu3  ;;  %v4863_v30 = vpop.f32.mrf.mxu1 }
 0x7a1   : > { %v4910_v47 = vadd.f32 %v4863_v30, %v4684_v3  ;;  %v14834_v3 = vld [vmem:[#allocation89_spill] sm:$0xff]  ;;  %v6059_v30 = vld [vmem:[#allocation3 + $0x82] sm:$0xff] }
 0x7a2   : > { %v13500_v16 = vadd.f32 %v5312_v58, %v5135_v56  ;;  %v5833_v58 = vld [vmem:[#allocation3 + $0x81] sm:$0xff]  ;;  %v4686_v5 = vadd.f32 %v14834_v3, %v13256_v59  ;;  %v13522_v11 = vpack.c.bf16 %v6059_v30, %v6058_v7  ;;  %v5834_v7 = vld [vmem:[#allocation3 + $0x89] sm:$0xff] }
 0x7a3   : > { %10295 = vmatmul.msk.bf16.gmra.mxu1 %vm277_vm3, %v13245_v0 }
 0x7a4   : > { %14832 = vst [vmem:[#allocation38_spill] sm:$0xff] %v13500_v16  ;;  %10317 = vmatmul.msk.bf16.gmra.mxu2 %vm277_vm3, %v13502_v13 }
 0x7a5   : > { %10339 = vmatmul.msk.bf16.gmra.mxu3 %vm277_vm3, %v13504_v50 }
 0x7a7   : > { %v5089_v10 = vpop.f32.mrf.mxu2 }
 0x7a8   : > { %v5136_v42 = vadd.f32 %v5089_v10, %v4910_v47  ;;  %v5315_v28 = vpop.f32.mrf.mxu3  ;;  %v4865_v18 = vpop.f32.mrf.mxu1  ;;  %v13520_v10 = vpack.c.bf16 %v5833_v58, %v5832_v38 }
 0x7a9   : > { %v4911_v25 = vadd.f32 %v4865_v18, %v4685_v32  ;;  %v14836_v32 = vld [vmem:[#allocation90_spill] sm:$0xff] }
 0x7aa   : > { %v13514_v8 = vadd.f32 %v5315_v28, %v5136_v42  ;;  %v4687_v18 = vadd.f32 %v14836_v32, %v13261_v23  ;;  %v6060_v23 = vld [vmem:[#allocation3 + $0x8a] sm:$0xff] }
 0x7af   : > { %v5091_v56 = vpop.f32.mrf.mxu2 }
 0x7b0   : > { %v5137_v27 = vadd.f32 %v5091_v56, %v4911_v25  ;;  %v5317_v0 = vpop.f32.mrf.mxu3  ;;  %v4868_v52 = vpop.f32.mrf.mxu1 }
 0x7b1   : > { %v4912_v47 = vadd.f32 %v4868_v52, %v4686_v5  ;;  %v14837_v5 = vld [vmem:[#allocation91_spill] sm:$0xff]  ;;  %v6061_v52 = vld [vmem:[#allocation3 + $0x92] sm:$0xff] }
 0x7b2   : > { %v13518_v16 = vadd.f32 %v5317_v0, %v5137_v27  ;;  %v5835_v0 = vld [vmem:[#allocation3 + $0x91] sm:$0xff]  ;;  %v4688_v30 = vadd.f32 %v14837_v5, %v13277_v15  ;;  %v13540_v32 = vpack.c.bf16 %v6061_v52, %v6060_v23  ;;  %v5836_v23 = vld [vmem:[#allocation3 + $0x99] sm:$0xff] }
 0x7b3   : > { %10296 = vmatmul.msk.bf16.gmra.mxu1 %vm277_vm3, %v13264_v34 }
 0x7b4   : > { %14835 = vst [vmem:[#allocation52_spill] sm:$0xff] %v13518_v16  ;;  %10318 = vmatmul.msk.bf16.gmra.mxu2 %vm277_vm3, %v13520_v10 }
 0x7b5   : > { %10340 = vmatmul.msk.bf16.gmra.mxu3 %vm277_vm3, %v13522_v11 }
 0x7b7   : > { %v5094_v59 = vpop.f32.mrf.mxu2 }
 0x7b8   : > { %v5138_v42 = vadd.f32 %v5094_v59, %v4912_v47  ;;  %v5320_v28 = vpop.f32.mrf.mxu3  ;;  %v4870_v25 = vpop.f32.mrf.mxu1  ;;  %v13538_v59 = vpack.c.bf16 %v5835_v0, %v5834_v7 }
 0x7b9   : > { %v4913_v58 = vadd.f32 %v4870_v25, %v4687_v18  ;;  %v14839_v18 = vld [vmem:[#allocation23_spill] sm:$0xff] }
 0x7ba   : > { %v13532_v56 = vadd.f32 %v5320_v28, %v5138_v42  ;;  %v4689_v25 = vadd.f32 %v14839_v18, %v13282_v46  ;;  %v6062_v46 = vld [vmem:[#allocation3 + $0x9a] sm:$0xff] }
 0x7bf   : > { %v5096_v27 = vpop.f32.mrf.mxu2 }
 0x7c0   : > { %v5139_v3 = vadd.f32 %v5096_v27, %v4913_v58  ;;  %v5322_v34 = vpop.f32.mrf.mxu3  ;;  %v4873_v38 = vpop.f32.mrf.mxu1 }
 0x7c1   : > { %v4914_v47 = vadd.f32 %v4873_v38, %v4688_v30  ;;  %v14840_v30 = vld [vmem:[#allocation44_spill] sm:$0xff] }
 0x7c2   : > { %v13536_v16 = vadd.f32 %v5322_v34, %v5139_v3  ;;  %v5837_v34 = vld [vmem:[#allocation3 + $0xa1] sm:$0xff]  ;;  %v4690_v52 = vadd.f32 %v14840_v30, %v13296_v17 }
 0x7c3   : > { %10297 = vmatmul.msk.bf16.gmra.mxu1 %vm277_vm3, %v13285_v39  ;;  %v6063_v38 = vld [vmem:[#allocation3 + $0xa2] sm:$0xff] }
 0x7c4   : > { %14838 = vst [vmem:[#allocation85_spill] sm:$0xff] %v13536_v16  ;;  %10319 = vmatmul.msk.bf16.gmra.mxu2 %vm277_vm3, %v13538_v59  ;;  %v13558_v18 = vpack.c.bf16 %v6063_v38, %v6062_v46  ;;  %v5838_v46 = vld [vmem:[#allocation3 + $0xa9] sm:$0xff] }
 0x7c5   : > { %10341 = vmatmul.msk.bf16.gmra.mxu3 %vm277_vm3, %v13540_v32 }
 0x7c7   : > { %v5099_v15 = vpop.f32.mrf.mxu2 }
 0x7c8   : > { %v5140_v42 = vadd.f32 %v5099_v15, %v4914_v47  ;;  %v5325_v28 = vpop.f32.mrf.mxu3  ;;  %v4875_v58 = vpop.f32.mrf.mxu1  ;;  %v13556_v15 = vpack.c.bf16 %v5837_v34, %v5836_v23 }
 0x7c9   : > { %v4915_v0 = vadd.f32 %v4875_v58, %v4689_v25  ;;  %v14842_v25 = vld [vmem:[#allocation45_spill] sm:$0xff] }
 0x7ca   : > { %v13550_v27 = vadd.f32 %v5325_v28, %v5140_v42  ;;  %v4691_v58 = vadd.f32 %v14842_v25, %v13299_v49  ;;  %v6064_v49 = vld [vmem:[#allocation3 + $0xaa] sm:$0xff] }
 0x7cf   : > { %v5101_v3 = vpop.f32.mrf.mxu2 }
 0x7d0   : > { %v5141_v5 = vadd.f32 %v5101_v3, %v4915_v0  ;;  %v5327_v39 = vpop.f32.mrf.mxu3  ;;  %v4878_v7 = vpop.f32.mrf.mxu1 }
 0x7d1   : > { %v4916_v47 = vadd.f32 %v4878_v7, %v4690_v52  ;;  %v14843_v52 = vld [vmem:[#allocation26_spill] sm:$0xff] }
 0x7d2   : > { %v13554_v16 = vadd.f32 %v5327_v39, %v5141_v5  ;;  %v5839_v39 = vld [vmem:[#allocation3 + $0xb1] sm:$0xff]  ;;  %v4692_v38 = vadd.f32 %v14843_v52, %v13312_v33  ;;  %v6067_v52 = vld [vmem:[#allocation3 + $0xc2] sm:$0xff] }
 0x7d3   : > { %10298 = vmatmul.msk.bf16.gmra.mxu1 %vm277_vm3, %v13302_v6  ;;  %v6065_v7 = vld [vmem:[#allocation3 + $0xb2] sm:$0xff] }
 0x7d4   : > { %14841 = vst [vmem:[#allocation84_spill] sm:$0xff] %v13554_v16  ;;  %10320 = vmatmul.msk.bf16.gmra.mxu2 %vm277_vm3, %v13556_v15  ;;  %v13576_v25 = vpack.c.bf16 %v6065_v7, %v6064_v49 }
 0x7d5   : > { %10342 = vmatmul.msk.bf16.gmra.mxu3 %vm277_vm3, %v13558_v18 }
 0x7d7   : > { %v5104_v17 = vpop.f32.mrf.mxu2 }
 0x7d8   : > { %v5142_v42 = vadd.f32 %v5104_v17, %v4916_v47  ;;  %v5330_v28 = vpop.f32.mrf.mxu3  ;;  %v4880_v0 = vpop.f32.mrf.mxu1  ;;  %v13574_v17 = vpack.c.bf16 %v5839_v39, %v5838_v46  ;;  %v6066_v46 = vld [vmem:[#allocation3 + $0xba] sm:$0xff] }
 0x7d9   : > { %v4917_v34 = vadd.f32 %v4880_v0, %v4691_v58  ;;  %v13590_v49 = vpack.c.bf16 %v6067_v52, %v6066_v46  ;;  %v6068_v46 = vld [vmem:[#allocation3 + $0xca] sm:$0xff] }
 0x7da   : > { %v13568_v3 = vadd.f32 %v5330_v28, %v5142_v42 }
 0x7db   : > { %14847 = vst [vmem:[#allocation55_spill] sm:$0xff] %v13590_v49 }
 0x7df   : > { %v5106_v5 = vpop.f32.mrf.mxu2 }
 0x7e0   : > { %v5143_v30 = vadd.f32 %v5106_v5, %v4917_v34  ;;  %v5332_v6 = vpop.f32.mrf.mxu3  ;;  %v4883_v23 = vpop.f32.mrf.mxu1  ;;  %v5841_v5 = vld [vmem:[#allocation3 + $0xc1] sm:$0xff] }
 0x7e1   : > { %v4918_v47 = vadd.f32 %v4883_v23, %v4692_v38  ;;  %v5840_v38 = vld [vmem:[#allocation3 + $0xb9] sm:$0xff] }
 0x7e2   : > { %v13572_v16 = vadd.f32 %v5332_v6, %v5143_v30  ;;  %v14845_v30 = vld [vmem:[#allocation27_spill] sm:$0xff]  ;;  %v13588_v23 = vpack.c.bf16 %v5841_v5, %v5840_v38 }
 0x7e3   : > { %10299 = vmatmul.msk.bf16.gmra.mxu1 %vm277_vm3, %v13318_v51  ;;  %v5566_v6 = vadd.f32 %v14845_v30, %v13333_v9  ;;  %v5842_v30 = vld [vmem:[#allocation3 + $0xc9] sm:$0xff] }
 0x7e4   : > { %10321 = vmatmul.msk.bf16.gmra.mxu2 %vm277_vm3, %v13574_v17  ;;  %14846 = vst [vmem:[#allocation54_spill] sm:$0xff] %v13588_v23 }
 0x7e5   : > { %10343 = vmatmul.msk.bf16.gmra.mxu3 %vm277_vm3, %v13576_v25 }
 0x7e7   : > { %v5109_v33 = vpop.f32.mrf.mxu2 }
 0x7e8   : > { %v5144_v42 = vadd.f32 %v5109_v33, %v4918_v47  ;;  %v5335_v28 = vpop.f32.mrf.mxu3  ;;  %v4885_v58 = vpop.f32.mrf.mxu1 }
 0x7ea   : > { %v13584_v0 = vadd.f32 %v5335_v28, %v5144_v42  ;;  %v14848_v42 = vld [vmem:[#allocation29_spill] sm:$0xff] }
 0x7eb   : > { %v5567_v28 = vadd.f32 %v14848_v42, %v13339_v37  ;;  %v14850_v42 = vld [vmem:[#allocation36_spill] sm:$0xff] }
 0x7ec   : > { %14844 = vst [vmem:[#allocation53_spill] sm:$0xff] %v13584_v0 }
 0x7ef   : > { %v5111_v34 = vpop.f32.mrf.mxu2 }
 0x7f0   : > { %v5337_v39 = vpop.f32.mrf.mxu3  ;;  %v5712_v51 = vpop.f32.mrf.mxu1 }
 0x7f1   : > { %v5792_v7 = vadd.f32 %v5712_v51, %v5566_v6  ;;  %v5843_v6 = vld [vmem:[#allocation3 + $0xd1] sm:$0xff]  ;;  %v14849_v51 = vld [vmem:[#allocation51_spill] sm:$0xff] }
 0x7f2   : > { %v5568_v38 = vadd.f32 %v14849_v51, %v13351_v14  ;;  %v13606_v0 = vpack.c.bf16 %v5843_v6, %v5842_v30  ;;  %v14851_v6 = vld [vmem:[#allocation37_spill] sm:$0xff] }
 0x7f3   : > { %10300 = vmatmul.msk.bf16.gmra.mxu1 %vm277_vm3, %v13341_v20 }
 0x7f4   : > { %10322 = vmatmul.msk.bf16.gmra.mxu2 %vm277_vm3, %v13588_v23 }
 0x7f5   : > { %10344 = vmatmul.msk.bf16.gmra.mxu3 %vm277_vm3, %v13590_v49  ;;  %v6069_v49 = vld [vmem:[#allocation3 + $0xd2] sm:$0xff] }
 0x7f6   : > { %v13608_v37 = vpack.c.bf16 %v6069_v49, %v6068_v46 }
 0x7f7   : > { %v5938_v47 = vpop.f32.mrf.mxu2 }
 0x7f8   : > { %v6018_v9 = vadd.f32 %v5938_v47, %v5792_v7  ;;  %v6164_v33 = vpop.f32.mrf.mxu3  ;;  %v5714_v58 = vpop.f32.mrf.mxu1 }
 0x7f9   : > { %v5793_v5 = vadd.f32 %v5714_v58, %v5567_v28  ;;  %v5569_v28 = vadd.f32 %v14850_v42, %v13355_v48  ;;  %v6070_v48 = vld [vmem:[#allocation3 + $0xda] sm:$0xff] }
 0x7fa   : > { %v13600_v34 = vadd.f32 %v6164_v33, %v6018_v9 }
 0x7ff   : > { %v5940_v39 = vpop.f32.mrf.mxu2 }
 0x800   : > { %v6019_v20 = vadd.f32 %v5940_v39, %v5793_v5  ;;  %v6166_v52 = vpop.f32.mrf.mxu3  ;;  %v5717_v23 = vpop.f32.mrf.mxu1  ;;  %v5845_v39 = vld [vmem:[#allocation3 + $0xe1] sm:$0xff] }
 0x801   : > { %v5794_v47 = vadd.f32 %v5717_v23, %v5568_v38  ;;  %v5844_v38 = vld [vmem:[#allocation3 + $0xd9] sm:$0xff] }
 0x802   : > { %v13604_v7 = vadd.f32 %v6166_v52, %v6019_v20  ;;  %v5570_v20 = vadd.f32 %v14851_v6, %v13366_v40  ;;  %v6071_v52 = vld [vmem:[#allocation3 + $0xe2] sm:$0xff] }
 0x803   : > { %10301 = vmatmul.msk.bf16.gmra.mxu1 %vm277_vm3, %v13357_v54  ;;  %v13626_v42 = vpack.c.bf16 %v6071_v52, %v6070_v48  ;;  %v5846_v48 = vld [vmem:[#allocation3 + $0xe9] sm:$0xff] }
 0x804   : > { %10323 = vmatmul.msk.bf16.gmra.mxu2 %vm277_vm3, %v13606_v0 }
 0x805   : > { %10345 = vmatmul.msk.bf16.gmra.mxu3 %vm277_vm3, %v13608_v37 }
 0x807   : > { %v5943_v14 = vpop.f32.mrf.mxu2 }
 0x808   : > { %v6020_v9 = vadd.f32 %v5943_v14, %v5794_v47  ;;  %v6169_v33 = vpop.f32.mrf.mxu3  ;;  %v5719_v23 = vpop.f32.mrf.mxu1  ;;  %v13624_v14 = vpack.c.bf16 %v5845_v39, %v5844_v38 }
 0x809   : > { %v5795_v49 = vadd.f32 %v5719_v23, %v5569_v28  ;;  %v14853_v28 = vld [vmem:[#allocation40_spill] sm:$0xff] }
 0x80a   : > { %v13618_v58 = vadd.f32 %v6169_v33, %v6020_v9  ;;  %v5571_v23 = vadd.f32 %v14853_v28, %v13370_v4  ;;  %v6072_v4 = vld [vmem:[#allocation3 + $0xea] sm:$0xff] }
 0x80f   : > { %v5945_v5 = vpop.f32.mrf.mxu2 }
 0x810   : > { %v6021_v30 = vadd.f32 %v5945_v5, %v5795_v49  ;;  %v6171_v54 = vpop.f32.mrf.mxu3  ;;  %v5722_v51 = vpop.f32.mrf.mxu1 }
 0x811   : > { %v5796_v47 = vadd.f32 %v5722_v51, %v5570_v20  ;;  %v14854_v20 = vld [vmem:[#allocation41_spill] sm:$0xff] }
 0x812   : > { %v13622_v46 = vadd.f32 %v6171_v54, %v6021_v30  ;;  %v5847_v54 = vld [vmem:[#allocation3 + $0xf1] sm:$0xff]  ;;  %v5572_v52 = vadd.f32 %v14854_v20, %v13381_v22 }
 0x813   : > { %10302 = vmatmul.msk.bf16.gmra.mxu1 %vm277_vm3, %v13372_v24  ;;  %v6073_v51 = vld [vmem:[#allocation3 + $0xf2] sm:$0xff] }
 0x814   : > { %14852 = vst [vmem:[#allocation58_spill] sm:$0xff] %v13622_v46  ;;  %10324 = vmatmul.msk.bf16.gmra.mxu2 %vm277_vm3, %v13624_v14  ;;  %v13644_v28 = vpack.c.bf16 %v6073_v51, %v6072_v4 }
 0x815   : > { %10346 = vmatmul.msk.bf16.gmra.mxu3 %vm277_vm3, %v13626_v42 }
 0x816   : > { %14856 = vst [vmem:[#allocation63_spill] sm:$0xff] %v13644_v28 }
 0x817   : > { %v5948_v40 = vpop.f32.mrf.mxu2 }
 0x818   : > { %v6022_v9 = vadd.f32 %v5948_v40, %v5796_v47  ;;  %v6174_v33 = vpop.f32.mrf.mxu3  ;;  %v5724_v49 = vpop.f32.mrf.mxu1  ;;  %v13642_v40 = vpack.c.bf16 %v5847_v54, %v5846_v48  ;;  %v6075_v48 = vld [vmem:[#allocation3 + $0x102] sm:$0xff] }
 0x819   : > { %v5797_v39 = vadd.f32 %v5724_v49, %v5571_v23  ;;  %v14857_v23 = vld [vmem:[#allocation42_spill] sm:$0xff] }
 0x81a   : > { %v13636_v5 = vadd.f32 %v6174_v33, %v6022_v9  ;;  %v5573_v49 = vadd.f32 %v14857_v23, %v13385_v60  ;;  %v14860_v23 = vld [vmem:[#allocation46_spill] sm:$0xff] }
 0x81f   : > { %v5950_v30 = vpop.f32.mrf.mxu2 }
 0x820   : > { %v6023_v6 = vadd.f32 %v5950_v30, %v5797_v39  ;;  %v6176_v24 = vpop.f32.mrf.mxu3  ;;  %v5727_v38 = vpop.f32.mrf.mxu1 }
 0x821   : > { %v5798_v47 = vadd.f32 %v5727_v38, %v5572_v52  ;;  %v14858_v52 = vld [vmem:[#allocation43_spill] sm:$0xff] }
 0x822   : > { %v13640_v46 = vadd.f32 %v6176_v24, %v6023_v6  ;;  %v5849_v24 = vld [vmem:[#allocation3 + $0x101] sm:$0xff]  ;;  %v5574_v51 = vadd.f32 %v14858_v52, %v13396_v53 }
 0x823   : > { %10303 = vmatmul.msk.bf16.gmra.mxu1 %vm277_vm3, %v13387_v36  ;;  %v6074_v38 = vld [vmem:[#allocation3 + $0xfa] sm:$0xff] }
 0x824   : > { %14855 = vst [vmem:[#allocation62_spill] sm:$0xff] %v13640_v46  ;;  %10325 = vmatmul.msk.bf16.gmra.mxu2 %vm277_vm3, %v13642_v40  ;;  %v5848_v46 = vld [vmem:[#allocation3 + $0xf9] sm:$0xff]  ;;  %v13662_v60 = vpack.c.bf16 %v6075_v48, %v6074_v38  ;;  %v6076_v38 = vld [vmem:[#allocation3 + $0x10a] sm:$0xff] }
 0x825   : > { %10347 = vmatmul.msk.bf16.gmra.mxu3 %vm277_vm3, %v13644_v28  ;;  %v13660_v28 = vpack.c.bf16 %v5849_v24, %v5848_v46  ;;  %v5850_v24 = vld [vmem:[#allocation3 + $0x109] sm:$0xff]  ;;  %v14861_v52 = vld [vmem:[#allocation47_spill] sm:$0xff]  ;;  %v6077_v48 = vld [vmem:[#allocation3 + $0x112] sm:$0xff] }
 0x827   : > { %v5953_v22 = vpop.f32.mrf.mxu2 }
 0x828   : > { %v6024_v9 = vadd.f32 %v5953_v22, %v5798_v47  ;;  %v6179_v33 = vpop.f32.mrf.mxu3  ;;  %v5729_v39 = vpop.f32.mrf.mxu1 }
 0x829   : > { %v5799_v54 = vadd.f32 %v5729_v39, %v5573_v49  ;;  %v5575_v49 = vadd.f32 %v14860_v23, %v13400_v55  ;;  %v13680_v55 = vpack.c.bf16 %v6077_v48, %v6076_v38  ;;  %v14863_v23 = vld [vmem:[#allocation48_spill] sm:$0xff]  ;;  %v6078_v48 = vld [vmem:[#allocation3 + $0x11a] sm:$0xff] }
 0x82a   : > { %v13654_v30 = vadd.f32 %v6179_v33, %v6024_v9 }
 0x82f   : > { %v5955_v6 = vpop.f32.mrf.mxu2 }
 0x830   : > { %v6025_v20 = vadd.f32 %v5955_v6, %v5799_v54  ;;  %v6181_v36 = vpop.f32.mrf.mxu3  ;;  %v5732_v4 = vpop.f32.mrf.mxu1 }
 0x831   : > { %v5800_v22 = vadd.f32 %v5732_v4, %v5574_v51  ;;  %v5576_v51 = vadd.f32 %v14861_v52, %v13411_v41 }
 0x832   : > { %v13658_v47 = vadd.f32 %v6181_v36, %v6025_v20  ;;  %v5851_v20 = vld [vmem:[#allocation3 + $0x111] sm:$0xff] }
 0x833   : > { %10304 = vmatmul.msk.bf16.gmra.mxu1 %vm277_vm3, %v13402_v43 }
 0x834   : > { %14859 = vst [vmem:[#allocation66_spill] sm:$0xff] %v13658_v47  ;;  %10326 = vmatmul.msk.bf16.gmra.mxu2 %vm277_vm3, %v13660_v28  ;;  %v13678_v47 = vpack.c.bf16 %v5851_v20, %v5850_v24  ;;  %v5627_v20 = vld [vmem:[#allocation3 + $0x120] sm:$0xff] }
 0x835   : > { %10348 = vmatmul.msk.bf16.gmra.mxu3 %vm277_vm3, %v13662_v60 }
 0x837   : > { %v5958_v53 = vpop.f32.mrf.mxu2 }
 0x838   : > { %v6026_v9 = vadd.f32 %v5958_v53, %v5800_v22  ;;  %v6184_v33 = vpop.f32.mrf.mxu3  ;;  %v5734_v39 = vpop.f32.mrf.mxu1 }
 0x839   : > { %v5801_v54 = vadd.f32 %v5734_v39, %v5575_v49  ;;  %v5577_v49 = vadd.f32 %v14863_v23, %v13415_v31  ;;  %v5644_v31 = vpack.c.bf16 %v5627_v20, %v13433_v1 }
 0x83a   : > { %v13672_v46 = vadd.f32 %v6184_v33, %v6026_v9 }
 0x83f   : > { %v5960_v6 = vpop.f32.mrf.mxu2 }
 0x840   : > { %v6027_v43 = vadd.f32 %v5960_v6, %v5801_v54  ;;  %v6186_v36 = vpop.f32.mrf.mxu3  ;;  %v5737_v4 = vpop.f32.mrf.mxu1 }
 0x841   : > { %v5802_v53 = vadd.f32 %v5737_v4, %v5576_v51  ;;  %v14864_v51 = vld [vmem:[#allocation50_spill] sm:$0xff]  ;;  %v6079_v4 = vld [vmem:[#allocation3 + $0x122] sm:$0xff] }
 0x842   : > { %v13676_v22 = vadd.f32 %v6186_v36, %v6027_v43  ;;  %v5852_v43 = vld [vmem:[#allocation3 + $0x119] sm:$0xff]  ;;  %v5578_v38 = vadd.f32 %v14864_v51, %v13428_v62  ;;  %v11176_v62 = vld [vmem:[%s14538_s5 + $0x18] sm:$0xff]  ;;  %v5629_v51 = vld [vmem:[#allocation3 + $0x130] sm:$0xf] }
 0x843   : > { %10305 = vmatmul.msk.bf16.gmra.mxu1 %vm277_vm3, %v13417_v35  ;;  %v5853_v35 = vld [vmem:[#allocation3 + $0x121] sm:$0xff]  ;;  %7846 = vmatpush.bf16.msrb.mxu2 %v11176_v62 }
 0x844   : > { %14862 = vst [vmem:[#allocation67_spill] sm:$0xff] %v13676_v22  ;;  %10327 = vmatmul.msk.bf16.gmra.mxu2 %vm277_vm3, %v13678_v47 }
 0x845   : > { %10349 = vmatmul.msk.bf16.gmra.mxu3 %vm277_vm3, %v13680_v55 }
 0x847   : > { %v5963_v41 = vpop.f32.mrf.mxu2 }
 0x848   : > { %v6028_v9 = vadd.f32 %v5963_v41, %v5802_v53  ;;  %v6189_v33 = vpop.f32.mrf.mxu3  ;;  %v5739_v39 = vpop.f32.mrf.mxu1 }
 0x849   : > { %v5803_v6 = vadd.f32 %v5739_v39, %v5577_v49  ;;  %v14865_v39 = vld [vmem:[#allocation39_spill] sm:$0xff] }
 0x84a   : > { %v13690_v54 = vadd.f32 %v6189_v33, %v6028_v9  ;;  %v13697_v9 = vpack.c.bf16 %v5853_v35, %v5852_v43  ;;  %v13699_v33 = vpack.c.bf16 %v6079_v4, %v6078_v48  ;;  %v5855_v48 = vld [vmem:[#allocation3 + $0x131] sm:$0xf] }
 0x84b   : > { %v6080_v4 = vld [vmem:[#allocation3 + $0x12a] sm:$0xff] }
 0x84f   : > { %v5965_v24 = vpop.f32.mrf.mxu2 }
 0x850   : > { %v6029_v36 = vadd.f32 %v5965_v24, %v5803_v6  ;;  %v6191_v52 = vpop.f32.mrf.mxu3  ;;  %v5742_v53 = vpop.f32.mrf.mxu1  ;;  %v14866_v6 = vld [vmem:[#allocation60_spill] sm:$0xff] }
 0x851   : > { %v5804_v22 = vadd.f32 %v5742_v53, %v5578_v38  ;;  %v5579_v24 = vadd.f32 %v14866_v6, %v14865_v39  ;;  %v5854_v38 = vld [vmem:[#allocation3 + $0x129] sm:$0xff]  ;;  %v6081_v53 = vld [vmem:[#allocation3 + $0x132] sm:$0xf] }
 0x852   : > { %v13694_v41 = vadd.f32 %v6191_v52, %v6029_v36  ;;  %v11174_v36 = vld [vmem:[%s14538_s5 + $0x8] sm:$0xff]  ;;  %v5628_v52 = vld [vmem:[#allocation3 + $0x128] sm:$0xff] }
 0x853   : > { %10306 = vmatmul.msk.bf16.gmra.mxu1 %vm277_vm3, %v5644_v31 }
 0x854   : > { %10328 = vmatmul.msk.bf16.gmra.mxu2 %vm277_vm3, %v13697_v9  ;;  %7809 = vmatpush.bf16.msrb.mxu1 %v11174_v36  ;;  %v11178_v36 = vld [vmem:[%s14538_s5 + $0x28] sm:$0xff] }
 0x855   : > { %10350 = vmatmul.msk.bf16.gmra.mxu3 %vm277_vm3, %v13699_v33 }
 0x856   : > { %7883 = vmatpush.bf16.msrb.mxu3 %v11178_v36 }
 0x857   : > { %v5968_v23 = vpop.f32.mrf.mxu2 }
 0x858   : > { %v6030_v49 = vadd.f32 %v5968_v23, %v5804_v22  ;;  %v6194_v1 = vpop.f32.mrf.mxu3  ;;  %v5744_v20 = vpop.f32.mrf.mxu1  ;;  %v14868_v23 = vld [vmem:[#allocation61_spill] sm:$0xff] }
 0x859   : > { %v5805_v35 = vadd.f32 %v5744_v20, %v5579_v24  ;;  %v5580_v39 = vadd.f32 %v14868_v23, %v13448_v57  ;;  %v6097_v24 = vpack.c.bf16 %v6081_v53, %v6080_v4  ;;  %v14870_v23 = vld [vmem:[#allocation57_spill] sm:$0xff] }
 0x85a   : > { %v13711_v43 = vadd.f32 %v6194_v1, %v6030_v49  ;;  %v5645_v49 = vpack.c.bf16 %v5629_v51, %v5628_v52  ;;  %v5871_v1 = vpack.c.bf16 %v5855_v48, %v5854_v38  ;;  %v14869_v51 = vld [vmem:[#allocation56_spill] sm:$0xff] }
 0x85b   : > { %v5581_v38 = vadd.f32 %v14869_v51, %v13452_v26 }
 0x85c   : > { %14867 = vst [vmem:[#allocation69_spill] sm:$0xff] %v13711_v43 }
 0x85f   : > { %v5970_v22 = vpop.f32.mrf.mxu2 }
 0x860   : > { %v6031_v31 = vadd.f32 %v5970_v22, %v5805_v35  ;;  %v6196_v62 = vpop.f32.mrf.mxu3  ;;  %v5747_v6 = vpop.f32.mrf.mxu1 }
 0x861   : > { %v5806_v43 = vadd.f32 %v5747_v6, %v5580_v39  ;;  %v5582_v39 = vadd.f32 %v14870_v23, %v13460_v63  ;;  %v14871_v63 = vld [vmem:[#allocation59_spill] sm:$0xff]  ;;  %v6957_v23 = vld [vmem:[#allocation3 + $0x63] sm:$0xff] }
 0x862   : > { %v13718_v20 = vadd.f32 %v6196_v62, %v6031_v31 }
 0x863   : > { %10307 = vmatmul.msk.bf16.gmra.mxu1 %vm277_vm3, %v5645_v49  ;;  %v6954_v49 = vld [vmem:[#allocation3 + $0x4b] sm:$0xff] }
 0x864   : > { %10329 = vmatmul.msk.bf16.gmra.mxu2 %vm277_vm3, %v5871_v1  ;;  %v6955_v1 = vld [vmem:[#allocation3 + $0x53] sm:$0xff] }
 0x865   : > { %10351 = vmatmul.msk.bf16.gmra.mxu3 %vm277_vm3, %v6097_v24  ;;  %v6986_v36 = vpack.c.bf16 %v6955_v1, %v6954_v49  ;;  %v6956_v1 = vld [vmem:[#allocation3 + $0x5b] sm:$0xff] }
 0x867   : > { %v5973_v35 = vpop.f32.mrf.mxu2 }
 0x868   : > { %v6032_v57 = vadd.f32 %v5973_v35, %v5806_v43  ;;  %v6199_v52 = vpop.f32.mrf.mxu3  ;;  %v5749_v48 = vpop.f32.mrf.mxu1 }
 0x869   : > { %v5807_v53 = vadd.f32 %v5749_v48, %v5581_v38 }
 0x86a   : > { %v13728_v4 = vadd.f32 %v6199_v52, %v6032_v57  ;;  %v5583_v52 = vadd.f32 %v14871_v63, %v13464_v2 }
 0x86f   : > { %v5975_v22 = vpop.f32.mrf.mxu2 }
 0x870   : > { %v6033_v31 = vadd.f32 %v5975_v22, %v5807_v53  ;;  %v6201_v62 = vpop.f32.mrf.mxu3  ;;  %v5752_v6 = vpop.f32.mrf.mxu1  ;;  %v11186_v53 = vld [vmem:[%s14538_s5 + $0x68] sm:$0xff] }
 0x871   : > { %v5808_v43 = vadd.f32 %v5752_v6, %v5582_v39  ;;  %8031 = vmatpush.bf16.msrb.mxu0 %v11186_v53  ;;  %v6987_v6 = vpack.c.bf16 %v6957_v23, %v6956_v1  ;;  %v14875_v1 = vld [vmem:[#allocation38_spill] sm:$0xff] }
 0x872   : > { %v13732_v24 = vadd.f32 %v6201_v62, %v6033_v31  ;;  %v14872_v31 = vld [vmem:[#allocation65_spill] sm:$0xff] }
 0x873   : > { %10380 = vmatmul.msk.bf16.vlgmr.msra.gmra.mxu1 %vm277_vm3, %v13466_v61  ;;  %v5584_v62 = vadd.f32 %v14872_v31, %v13478_v12  ;;  %v14873_v12 = vld [vmem:[#allocation64_spill] sm:$0xff] }
 0x874   : > { %10402 = vmatmul.msk.bf16.vlgmr.msra.gmra.mxu2 %vm277_vm3, %v13468_v29 }
 0x875   : > { %10424 = vmatmul.msk.bf16.vlgmr.msra.gmra.mxu3 %vm277_vm3, %v6986_v36 }
 0x877   : > { %v5978_v26 = vpop.f32.mrf.mxu2 }
 0x878   : > { %v6034_v35 = vadd.f32 %v5978_v26, %v5808_v43  ;;  %v6204_v57 = vpop.f32.mrf.mxu3  ;;  %v5754_v51 = vpop.f32.mrf.mxu1 }
 0x879   : > { %v5809_v48 = vadd.f32 %v5754_v51, %v5583_v52 }
 0x87a   : > { %v13741_v38 = vadd.f32 %v6204_v57, %v6034_v35  ;;  %v5585_v35 = vadd.f32 %v14873_v12, %v13482_v19 }
 0x87f   : > { %v5980_v61 = vpop.f32.mrf.mxu2 }
 0x880   : > { %v6035_v22 = vadd.f32 %v5980_v61, %v5809_v48  ;;  %v6206_v29 = vpop.f32.mrf.mxu3  ;;  %v5757_v39 = vpop.f32.mrf.mxu1 }
 0x881   : > { %v5810_v2 = vadd.f32 %v5757_v39, %v5584_v62  ;;  %v6958_v62 = vld [vmem:[#allocation3 + $0x6b] sm:$0xff] }
 0x882   : > { %v13748_v49 = vadd.f32 %v6206_v29, %v6035_v22  ;;  %v6959_v22 = vld [vmem:[#allocation3 + $0x73] sm:$0xff] }
 0x883   : > { %10381 = vmatmul.msk.bf16.gmra.mxu1 %vm277_vm3, %v13484_v45  ;;  %v14874_v45 = vld [vmem:[#allocation68_spill] sm:$0xff]  ;;  %v6988_v23 = vpack.c.bf16 %v6959_v22, %v6958_v62 }
 0x884   : > { %10403 = vmatmul.msk.bf16.gmra.mxu2 %vm277_vm3, %v13486_v21  ;;  %v5586_v61 = vadd.f32 %v14874_v45, %v13496_v44  ;;  %v14876_v44 = vld [vmem:[#allocation70_spill] sm:$0xff]  ;;  %v14878_v62 = vld [vmem:[#allocation52_spill] sm:$0xff] }
 0x885   : > { %10425 = vmatmul.msk.bf16.gmra.mxu3 %vm277_vm3, %v6987_v6  ;;  %v5587_v6 = vadd.f32 %v14876_v44, %v14875_v1 }
 0x887   : > { %v5983_v43 = vpop.f32.mrf.mxu2 }
 0x888   : > { %v6036_v36 = vadd.f32 %v5983_v43, %v5810_v2  ;;  %v6209_v26 = vpop.f32.mrf.mxu3  ;;  %v5759_v57 = vpop.f32.mrf.mxu1 }
 0x889   : > { %v5811_v52 = vadd.f32 %v5759_v57, %v5585_v35 }
 0x88a   : > { %v13757_v63 = vadd.f32 %v6209_v26, %v6036_v36 }
 0x88f   : > { %v5985_v51 = vpop.f32.mrf.mxu2 }
 0x890   : > { %v6037_v48 = vadd.f32 %v5985_v51, %v5811_v52  ;;  %v6211_v53 = vpop.f32.mrf.mxu3  ;;  %v5762_v21 = vpop.f32.mrf.mxu1  ;;  %v6961_v51 = vld [vmem:[#allocation3 + $0x83] sm:$0xff] }
 0x891   : > { %v5812_v31 = vadd.f32 %v5762_v21, %v5586_v61  ;;  %v6960_v61 = vld [vmem:[#allocation3 + $0x7b] sm:$0xff] }
 0x892   : > { %v13761_v29 = vadd.f32 %v6211_v53, %v6037_v48  ;;  %v13774_v48 = vpop.f32.mrf.mxu0  ;;  %v6989_v22 = vpack.c.bf16 %v6961_v51, %v6960_v61 }
 0x893   : > { %10382 = vmatmul.msk.bf16.gmra.mxu1 %vm277_vm3, %v13502_v13  ;;  %v14877_v13 = vld [vmem:[#allocation72_spill] sm:$0xff] }
 0x894   : > { %10404 = vmatmul.msk.bf16.gmra.mxu2 %vm277_vm3, %v13504_v50  ;;  %v5588_v52 = vadd.f32 %v14877_v13, %v13514_v8 }
 0x895   : > { %10426 = vmatmul.msk.bf16.gmra.mxu3 %vm277_vm3, %v6988_v23  ;;  %v14879_v23 = vld [vmem:[#allocation77_spill] sm:$0xff] }
 0x897   : > { %v5988_v19 = vpop.f32.mrf.mxu2 }
 0x898   : > { %v6038_v39 = vadd.f32 %v5988_v19, %v5812_v31  ;;  %v6214_v2 = vpop.f32.mrf.mxu3  ;;  %v5764_v43 = vpop.f32.mrf.mxu1  ;;  %v5589_v19 = vadd.f32 %v14879_v23, %v14878_v62 }
 0x899   : > { %v5813_v26 = vadd.f32 %v5764_v43, %v5587_v6 }
 0x89a   : > { %v13770_v36 = vadd.f32 %v6214_v2, %v6038_v39  ;;  %v13787_v44 = vpop.f32.mrf.mxu0 }
 0x89f   : > { %v5990_v12 = vpop.f32.mrf.mxu2 }
 0x8a0   : > { %v6039_v35 = vadd.f32 %v5990_v12, %v5813_v26  ;;  %v6216_v57 = vpop.f32.mrf.mxu3  ;;  %v5767_v50 = vpop.f32.mrf.mxu1  ;;  %v14880_v26 = vld [vmem:[#allocation92_spill] sm:$0xff]  ;;  %v6963_v12 = vld [vmem:[#allocation3 + $0x93] sm:$0xff] }
 0x8a1   : > { %v5814_v45 = vadd.f32 %v5767_v50, %v5588_v52  ;;  %v6962_v52 = vld [vmem:[#allocation3 + $0x8b] sm:$0xff] }
 0x8a2   : > { %v13776_v53 = vadd.f32 %v6216_v57, %v6039_v35  ;;  %v6990_v51 = vpack.c.bf16 %v6963_v12, %v6962_v52  ;;  %v13798_v50 = vpop.f32.mrf.mxu0  ;;  %v6964_v12 = vld [vmem:[#allocation3 + $0x9b] sm:$0xff] }
 0x8a3   : > { %10383 = vmatmul.msk.bf16.gmra.mxu1 %vm277_vm3, %v13520_v10 }
 0x8a4   : > { %10405 = vmatmul.msk.bf16.gmra.mxu2 %vm277_vm3, %v13522_v11  ;;  %v5590_v11 = vadd.f32 %v14880_v26, %v13532_v56 }
 0x8a5   : > { %10427 = vmatmul.msk.bf16.gmra.mxu3 %vm277_vm3, %v6989_v22  ;;  %v14881_v22 = vld [vmem:[#allocation85_spill] sm:$0xff] }
 0x8a7   : > { %v5993_v21 = vpop.f32.mrf.mxu2 }
 0x8a8   : > { %v6040_v31 = vadd.f32 %v5993_v21, %v5814_v45  ;;  %v6219_v8 = vpop.f32.mrf.mxu3  ;;  %v5769_v39 = vpop.f32.mrf.mxu1  ;;  %v14882_v21 = vld [vmem:[#allocation93_spill] sm:$0xff] }
 0x8a9   : > { %v5815_v1 = vadd.f32 %v5769_v39, %v5589_v19 }
 0x8aa   : > { %v13785_v2 = vadd.f32 %v6219_v8, %v6040_v31  ;;  %v5591_v31 = vadd.f32 %v14882_v21, %v14881_v22  ;;  %v13804_v39 = vpop.f32.mrf.mxu0 }
 0x8af   : > { %v5995_v6 = vpop.f32.mrf.mxu2 }
 0x8b0   : > { %v6041_v43 = vadd.f32 %v5995_v6, %v5815_v1  ;;  %v6221_v10 = vpop.f32.mrf.mxu3  ;;  %v5772_v35 = vpop.f32.mrf.mxu1 }
 0x8b1   : > { %v5816_v13 = vadd.f32 %v5772_v35, %v5590_v11 }
 0x8b2   : > { %v13791_v57 = vadd.f32 %v6221_v10, %v6041_v43  ;;  %v6965_v43 = vld [vmem:[#allocation3 + $0xa3] sm:$0xff]  ;;  %v13817_v22 = vpop.f32.mrf.mxu0 }
 0x8b3   : > { %10384 = vmatmul.msk.bf16.gmra.mxu1 %vm277_vm3, %v13538_v59  ;;  %v6991_v35 = vpack.c.bf16 %v6965_v43, %v6964_v12  ;;  %v6966_v43 = vld [vmem:[#allocation3 + $0xab] sm:$0xff] }
 0x8b4   : > { %10406 = vmatmul.msk.bf16.gmra.mxu2 %vm277_vm3, %v13540_v32  ;;  %v14883_v32 = vld [vmem:[#allocation94_spill] sm:$0xff] }
 0x8b5   : > { %10428 = vmatmul.msk.bf16.gmra.mxu3 %vm277_vm3, %v6990_v51  ;;  %v5592_v6 = vadd.f32 %v14883_v32, %v13550_v27  ;;  %v14885_v27 = vld [vmem:[#allocation95_spill] sm:$0xff] }
 0x8b7   : > { %v5998_v45 = vpop.f32.mrf.mxu2 }
 0x8b8   : > { %v6042_v61 = vadd.f32 %v5998_v45, %v5816_v13  ;;  %v6224_v56 = vpop.f32.mrf.mxu3  ;;  %v5774_v8 = vpop.f32.mrf.mxu1  ;;  %v14884_v45 = vld [vmem:[#allocation84_spill] sm:$0xff] }
 0x8b9   : > { %v5817_v23 = vadd.f32 %v5774_v8, %v5591_v31 }
 0x8ba   : > { %v13802_v62 = vadd.f32 %v6224_v56, %v6042_v61  ;;  %v5593_v61 = vadd.f32 %v14885_v27, %v14884_v45 }
 0x8bf   : > { %v6000_v19 = vpop.f32.mrf.mxu2 }
 0x8c0   : > { %v6043_v59 = vadd.f32 %v6000_v19, %v5817_v23  ;;  %v6226_v1 = vpop.f32.mrf.mxu3  ;;  %v5777_v10 = vpop.f32.mrf.mxu1  ;;  %v14886_v19 = vld [vmem:[#allocation96_spill] sm:$0xff] }
 0x8c1   : > { %v5818_v11 = vadd.f32 %v5777_v10, %v5592_v6 }
 0x8c2   : > { %v13808_v26 = vadd.f32 %v6226_v1, %v6043_v59  ;;  %v6967_v59 = vld [vmem:[#allocation3 + $0xb3] sm:$0xff] }
 0x8c3   : > { %10385 = vmatmul.msk.bf16.gmra.mxu1 %vm277_vm3, %v13556_v15  ;;  %v6992_v10 = vpack.c.bf16 %v6967_v59, %v6966_v43 }
 0x8c4   : > { %10407 = vmatmul.msk.bf16.gmra.mxu2 %vm277_vm3, %v13558_v18  ;;  %v5594_v18 = vadd.f32 %v14886_v19, %v13568_v3  ;;  %v11175_v3 = vld [vmem:[%s14538_s5 + $0x10] sm:$0xff] }
 0x8c5   : > { %10429 = vmatmul.msk.bf16.gmra.mxu3 %vm277_vm3, %v6991_v35  ;;  %7847 = vmatpush.bf16.msrb.mxu2 %v11175_v3  ;;  %v6969_v19 = vld [vmem:[#allocation3 + $0xc3] sm:$0xff] }
 0x8c7   : > { %v6003_v13 = vpop.f32.mrf.mxu2 }
 0x8c8   : > { %v6044_v52 = vadd.f32 %v6003_v13, %v5818_v11  ;;  %v6229_v51 = vpop.f32.mrf.mxu3  ;;  %v5779_v56 = vpop.f32.mrf.mxu1 }
 0x8c9   : > { %v5819_v31 = vadd.f32 %v5779_v56, %v5593_v61  ;;  %v13825_v11 = vpop.f32.mrf.mxu0 }
 0x8ca   : > { %v13819_v21 = vadd.f32 %v6229_v51, %v6044_v52  ;;  %v14887_v52 = vld [vmem:[#allocation97_spill] sm:$0xff] }
 0x8cb   : > { %v5595_v51 = vadd.f32 %v14887_v52, %v13572_v16  ;;  %v14891_v16 = vld [vmem:[#allocation54_spill] sm:$0xff] }
 0x8cf   : > { %v6005_v8 = vpop.f32.mrf.mxu2 }
 0x8d0   : > { %v6045_v23 = vadd.f32 %v6005_v8, %v5819_v31  ;;  %v6231_v15 = vpop.f32.mrf.mxu3  ;;  %v5782_v1 = vpop.f32.mrf.mxu1  ;;  %v14888_v8 = vld [vmem:[#allocation53_spill] sm:$0xff] }
 0x8d1   : > { %v5820_v6 = vadd.f32 %v5782_v1, %v5594_v18  ;;  %v13839_v61 = vpop.f32.mrf.mxu0 }
 0x8d2   : > { %v13823_v32 = vadd.f32 %v6231_v15, %v6045_v23  ;;  %v14889_v23 = vld [vmem:[#allocation98_spill] sm:$0xff] }
 0x8d3   : > { %10386 = vmatmul.msk.bf16.gmra.mxu1 %vm277_vm3, %v13574_v17  ;;  %v5596_v15 = vadd.f32 %v14889_v23, %v14888_v8  ;;  %v6970_v23 = vld [vmem:[#allocation3 + $0xcb] sm:$0xff] }
 0x8d4   : > { %10408 = vmatmul.msk.bf16.gmra.mxu2 %vm277_vm3, %v13576_v25 }
 0x8d5   : > { %10430 = vmatmul.msk.bf16.gmra.mxu3 %vm277_vm3, %v6992_v10  ;;  %v14892_v10 = vld [vmem:[#allocation55_spill] sm:$0xff] }
 0x8d7   : > { %v6008_v12 = vpop.f32.mrf.mxu2 }
 0x8d8   : > { %v6046_v35 = vadd.f32 %v6008_v12, %v5820_v6  ;;  %v6234_v13 = vpop.f32.mrf.mxu3  ;;  %v5784_v45 = vpop.f32.mrf.mxu1  ;;  %v6968_v6 = vld [vmem:[#allocation3 + $0xbb] sm:$0xff] }
 0x8d9   : > { %v5821_v17 = vadd.f32 %v5784_v45, %v5595_v51  ;;  %v6993_v43 = vpack.c.bf16 %v6969_v19, %v6968_v6  ;;  %v13850_v12 = vpop.f32.mrf.mxu0  ;;  %v11173_v51 = vld [vmem:[%s14538_s5] sm:$0xff] }
 0x8da   : > { %v13837_v27 = vadd.f32 %v6234_v13, %v6046_v35  ;;  %7810 = vmatpush.bf16.msrb.mxu1 %v11173_v51 }
 0x8df   : > { %v6010_v25 = vpop.f32.mrf.mxu2 }
 0x8e0   : > { %v6047_v56 = vadd.f32 %v6010_v25, %v5821_v17  ;;  %v6236_v31 = vpop.f32.mrf.mxu3  ;;  %v5787_v18 = vpop.f32.mrf.mxu1 }
 0x8e1   : > { %v5822_v1 = vadd.f32 %v5787_v18, %v5596_v15  ;;  %v13857_v8 = vpop.f32.mrf.mxu0  ;;  %v11177_v15 = vld [vmem:[%s14538_s5 + $0x20] sm:$0xff]  ;;  %v14894_v18 = vld [vmem:[#allocation28_spill] sm:$0xff] }
 0x8e2   : > { %v13843_v59 = vadd.f32 %v6236_v31, %v6047_v56  ;;  %v6971_v56 = vld [vmem:[#allocation3 + $0xd3] sm:$0xff]  ;;  %7884 = vmatpush.bf16.msrb.mxu3 %v11177_v15 }
 0x8e3   : > { %10387 = vmatmul.msk.bf16.gmra.mxu1 %vm277_vm3, %v14891_v16  ;;  %v6994_v19 = vpack.c.bf16 %v6971_v56, %v6970_v23 }
 0x8e4   : > { %14890 = vst [vmem:[#allocation71_spill] sm:$0xff] %v13843_v59  ;;  %10409 = vmatmul.msk.bf16.gmra.mxu2 %vm277_vm3, %v14892_v10 }
 0x8e5   : > { %10431 = vmatmul.msk.bf16.gmra.mxu3 %vm277_vm3, %v6993_v43 }
 0x8e7   : > { %v6013_v3 = vpop.f32.mrf.mxu2 }
 0x8e8   : > { %v6048_v35 = vadd.f32 %v6013_v3, %v5822_v1  ;;  %v6239_v13 = vpop.f32.mrf.mxu3  ;;  %v5789_v52 = vpop.f32.mrf.mxu1  ;;  %v6470_v1 = vadd.f32 %v14894_v18, %v13600_v34  ;;  %v6973_v18 = vld [vmem:[#allocation3 + $0xe3] sm:$0xff] }
 0x8e9   : > { %v13874_v34 = vpop.f32.mrf.mxu0 }
 0x8ea   : > { %v13855_v45 = vadd.f32 %v6239_v13, %v6048_v35  ;;  %v13872_v13 = vld [vmem:[%s14537_s4] ss:$0 sm:$0xff] }
 0x8ec   : > { %14893 = vst [vmem:[#allocation73_spill] sm:$0xff] %v13855_v45 }
 0x8ef   : > { %v6015_v17 = vpop.f32.mrf.mxu2 }
 0x8f0   : > { %v6241_v25 = vpop.f32.mrf.mxu3  ;;  %v6616_v31 = vpop.f32.mrf.mxu1 }
 0x8f1   : > { %v6696_v6 = vadd.f32 %v6616_v31, %v6470_v1 }
 0x8f3   : > { %10388 = vmatmul.msk.bf16.gmra.mxu1 %vm277_vm3, %v13606_v0  ;;  %v14895_v0 = vld [vmem:[#allocation31_spill] sm:$0xff] }
 0x8f4   : > { %10410 = vmatmul.msk.bf16.gmra.mxu2 %vm277_vm3, %v13608_v37  ;;  %v14896_v37 = vld [vmem:[#allocation49_spill] sm:$0xff] }
 0x8f5   : > { %10432 = vmatmul.msk.bf16.gmra.mxu3 %vm277_vm3, %v6994_v19  ;;  %v6471_v51 = vadd.f32 %v14896_v37, %v13604_v7  ;;  %v6972_v19 = vld [vmem:[#allocation3 + $0xdb] sm:$0xff]  ;;  %v7208_v37 = vld [vmem:[#allocation3 + $0x12c] sm:$0xff] }
 0x8f7   : > { %v6842_v43 = vpop.f32.mrf.mxu2 }
 0x8f8   : > { %v6922_v16 = vadd.f32 %v6842_v43, %v6696_v6  ;;  %v7068_v10 = vpop.f32.mrf.mxu3  ;;  %v6618_v3 = vpop.f32.mrf.mxu1  ;;  %v6995_v43 = vpack.c.bf16 %v6973_v18, %v6972_v19  ;;  %v14900_v18 = vld [vmem:[#allocation58_spill] sm:$0xff] }
 0x8f9   : > { %v6697_v25 = vadd.f32 %v6618_v3, %v6471_v51  ;;  %v13889_v3 = vpop.f32.mrf.mxu0  ;;  %v7209_v51 = vld [vmem:[#allocation3 + $0x134] sm:$0xff] }
 0x8fa   : > { %v7148_v35 = vadd.f32 %v7068_v10, %v6922_v16  ;;  %v14897_v16 = vld [vmem:[#allocation30_spill] sm:$0xff] }
 0x8fc   : > { %v7374_v52 = vadd.f32 %v14895_v0, %v7148_v35  ;;  %v14898_v35 = vld [vmem:[#allocation35_spill] sm:$0xff] }
 0x8fd   : > { %v6472_v7 = vadd.f32 %v14898_v35, %v13618_v58  ;;  %v11185_v58 = vld [vmem:[%s14538_s5 + $0x60] sm:$0xff] }
 0x8fe   : > { %v7410_v17 = vadd.f32 %v13872_v13, %v7374_v52  ;;  %8032 = vmatpush.bf16.msrb.mxu0 %v11185_v58 }
 0x8ff   : > { %v6844_v56 = vpop.f32.mrf.mxu2 }
 0x900   : > { %v7442_v31 = vmax.f32 %v7410_v17, 0.0  ;;  %v6923_v23 = vadd.f32 %v6844_v56, %v6697_v25  ;;  %v7070_v15 = vpop.f32.mrf.mxu3  ;;  %v6621_v1 = vpop.f32.mrf.mxu1  ;;  %v7226_v25 = vpack.c.bf16 %v7209_v51, %v7208_v37  ;;  %v6975_v37 = vld [vmem:[#allocation3 + $0xf3] sm:$0xff] }
 0x901   : > { %v6698_v52 = vadd.f32 %v6621_v1, %v6472_v7  ;;  %v14901_v1 = vld [vmem:[#allocation34_spill] sm:$0xff]  ;;  %v13901_v35 = vpop.f32.mrf.mxu0 }
 0x902   : > { %7475 = vst.msk [vmem:[#allocation4] sm:$0xff] %vm7474_vm6, %v7442_v31  ;;  %v7149_v6 = vadd.f32 %v7070_v15, %v6923_v23  ;;  %10460 = vmatmul.msk.bf16.gmra.mxu0 %vm277_vm3, %v7226_v25  ;;  %v14899_v15 = vld [vmem:[#allocation33_spill] sm:$0xff] }
 0x903   : > { %10389 = vmatmul.msk.bf16.gmra.mxu1 %vm277_vm3, %v13624_v14  ;;  %v6974_v25 = vld [vmem:[#allocation3 + $0xeb] sm:$0xff] }
 0x904   : > { %v7375_v10 = vadd.f32 %v14897_v16, %v7149_v6  ;;  %10411 = vmatmul.msk.bf16.gmra.mxu2 %vm277_vm3, %v13626_v42  ;;  %v6473_v6 = vadd.f32 %v14901_v1, %v14900_v18  ;;  %v6996_v58 = vpack.c.bf16 %v6975_v37, %v6974_v25  ;;  %v7210_v18 = vld [vmem:[#allocation3 + $0x13c] sm:$0xff]  ;;  %v7211_v1 = vld [vmem:[#allocation3 + $0x144] sm:$0xf]  ;;  %v14905_v37 = vld [vmem:[#allocation62_spill] sm:$0xff] }
 0x905   : > { %10433 = vmatmul.msk.bf16.gmra.mxu3 %vm277_vm3, %v6995_v43 }
 0x906   : > { %v7411_v0 = vadd.f32 %v13872_v13, %v7375_v10 }
 0x907   : > { %v6847_v17 = vpop.f32.mrf.mxu2 }
 0x908   : > { %v7443_v56 = vmax.f32 %v7411_v0, 0.0  ;;  %v6924_v14 = vadd.f32 %v6847_v17, %v6698_v52  ;;  %v7073_v31 = vpop.f32.mrf.mxu3  ;;  %v6623_v23 = vpop.f32.mrf.mxu1 }
 0x909   : > { %v6699_v16 = vadd.f32 %v6623_v23, %v6473_v6  ;;  %v14904_v23 = vld [vmem:[#allocation63_spill] sm:$0xff] }
 0x90a   : > { %7476 = vst.msk [vmem:[#allocation4 + $0x8] sm:$0xff] %vm7474_vm6, %v7443_v56  ;;  %v7150_v42 = vadd.f32 %v7073_v31, %v6924_v14  ;;  %v14902_v56 = vld [vmem:[#allocation32_spill] sm:$0xff]  ;;  %v14903_v31 = vld [vmem:[#allocation99_spill] sm:$0xff] }
 0x90c   : > { %v7376_v19 = vadd.f32 %v14899_v15, %v7150_v42  ;;  %v6474_v42 = vadd.f32 %v14903_v31, %v13636_v5  ;;  %v13914_v5 = vpop.f32.mrf.mxu0  ;;  %v6976_v31 = vld [vmem:[#allocation3 + $0xfb] sm:$0xff] }
 0x90e   : > { %v7412_v43 = vadd.f32 %v13872_v13, %v7376_v19 }
 0x90f   : > { %v6849_v10 = vpop.f32.mrf.mxu2 }
 0x910   : > { %v7444_v7 = vmax.f32 %v7412_v43, 0.0  ;;  %v6925_v0 = vadd.f32 %v6849_v10, %v6699_v16  ;;  %v7075_v52 = vpop.f32.mrf.mxu3  ;;  %v6626_v51 = vpop.f32.mrf.mxu1  ;;  %v7227_v43 = vpack.c.bf16 %v7211_v1, %v7210_v18 }
 0x911   : > { %v6700_v19 = vadd.f32 %v6626_v51, %v6474_v42  ;;  %v6977_v42 = vld [vmem:[#allocation3 + $0x103] sm:$0xff] }
 0x912   : > { %7477 = vst.msk [vmem:[#allocation4 + $0x10] sm:$0xff] %vm7474_vm6, %v7444_v7  ;;  %v7151_v17 = vadd.f32 %v7075_v52, %v6925_v0  ;;  %10461 = vmatmul.msk.bf16.gmra.mxu0 %vm277_vm3, %v7227_v43 }
 0x913   : > { %10390 = vmatmul.msk.bf16.gmra.mxu1 %vm277_vm3, %v13642_v40 }
 0x914   : > { %v7377_v14 = vadd.f32 %v14902_v56, %v7151_v17  ;;  %10412 = vmatmul.msk.bf16.gmra.mxu2 %vm277_vm3, %v14904_v23  ;;  %v14906_v17 = vld [vmem:[#allocation100_spill] sm:$0xff]  ;;  %v7510_v56 = vld [vmem:[#allocation4 + $0x1] sm:$0xff]  ;;  %v13922_v45 = vpop.f32.mrf.mxu0 }
 0x915   : > { %10434 = vmatmul.msk.bf16.gmra.mxu3 %vm277_vm3, %v6996_v58  ;;  %v6475_v51 = vadd.f32 %v14906_v17, %v14905_v37  ;;  %v7508_v23 = vld [vmem:[#allocation4] sm:$0xff] }
 0x916   : > { %v7413_v15 = vadd.f32 %v13872_v13, %v7377_v14 }
 0x917   : > { %v6852_v6 = vpop.f32.mrf.mxu2 }
 0x918   : > { %v7445_v16 = vmax.f32 %v7413_v15, 0.0  ;;  %v6926_v10 = vadd.f32 %v6852_v6, %v6700_v19  ;;  %v7078_v7 = vpop.f32.mrf.mxu3  ;;  %v6628_v0 = vpop.f32.mrf.mxu1  ;;  %v7509_v15 = vld [vmem:[#allocation4 + $0x8] sm:$0x1f] }
 0x919   : > { %v6701_v58 = vadd.f32 %v6628_v0, %v6475_v51  ;;  %v7511_v19 = vld [vmem:[#allocation4 + $0x9] sm:$0x1f]  ;;  %v6997_v51 = vpack.c.bf16 %v6977_v42, %v6976_v31 }
 0x91a   : > { %7478 = vst.msk [vmem:[#allocation4 + $0x18] sm:$0xff] %vm7474_vm6, %v7445_v16  ;;  %v7152_v40 = vadd.f32 %v7078_v7, %v6926_v10  ;;  %v7512_v7 = vmax.f32 %v7508_v23, %v7510_v56 }
 0x91c   : > { %v7378_v52 = vadd.f32 %v13774_v48, %v7152_v40 }
 0x91e   : > { %v7414_v25 = vadd.f32 %v13872_v13, %v7378_v52  ;;  %v7513_v52 = vmax.f32 %v7509_v15, %v7511_v19 }
 0x91f   : > { %v6854_v14 = vpop.f32.mrf.mxu2 }
 0x920   : > { %v7446_v18 = vmax.f32 %v7414_v25, 0.0  ;;  %v6927_v1 = vadd.f32 %v6854_v14, %v6701_v58  ;;  %v7080_v6 = vpop.f32.mrf.mxu3  ;;  %v6631_v48 = vpop.f32.mrf.mxu1  ;;  %v14907_v58 = vld [vmem:[#allocation101_spill] sm:$0xff] }
 0x921   : > { %v7514_v43 = vld [vmem:[#allocation4 + $0x12] sm:$0xff]  ;;  %v7515_v16 = vld [vmem:[#allocation4 + $0x1a] sm:$0x1f]  ;;  %v6476_v14 = vadd.f32 %v14907_v58, %v13654_v30 }
 0x922   : > { %v7516_v10 = vld [vmem:[#allocation4 + $0x13] sm:$0xff]  ;;  %v7517_v40 = vld [vmem:[#allocation4 + $0x1b] sm:$0x1f]  ;;  %7479 = vst.msk [vmem:[#allocation4 + $0x20] sm:$0xff] %vm7474_vm6, %v7446_v18  ;;  %v7153_v0 = vadd.f32 %v7080_v6, %v6927_v1 }
 0x923   : > { %v7518_v37 = vmax.f32 %v7514_v43, %v7516_v10  ;;  %v7519_v17 = vmax.f32 %v7515_v16, %v7517_v40  ;;  %10391 = vmatmul.msk.bf16.gmra.mxu1 %vm277_vm3, %v13660_v28  ;;  %v6702_v42 = vadd.f32 %v6631_v48, %v6476_v14  ;;  %v14908_v18 = vld [vmem:[#allocation66_spill] sm:$0xff] }
 0x924   : > { %v7379_v25 = vadd.f32 %v13787_v44, %v7153_v0  ;;  %10413 = vmatmul.msk.bf16.gmra.mxu2 %vm277_vm3, %v13662_v60  ;;  %v14909_v1 = vld [vmem:[#allocation102_spill] sm:$0xff] }
 0x925   : > { %v7520_v59 = vmax.f32 %v7512_v7, %v7518_v37  ;;  %v7521_v56 = vmax.f32 %v7513_v52, %v7519_v17  ;;  %10435 = vmatmul.msk.bf16.gmra.mxu3 %vm277_vm3, %v6997_v51  ;;  %v6477_v6 = vadd.f32 %v14909_v1, %v14908_v18  ;;  %v6978_v17 = vld [vmem:[#allocation3 + $0x10b] sm:$0xff] }
 0x926   : > { %v7415_v31 = vadd.f32 %v13872_v13, %v7379_v25 }
 0x927   : > { %7522 = vst.msk [vmem:[#allocation4] sm:$0xff] %vm7474_vm6, %v7520_v59  ;;  %v6857_v44 = vpop.f32.mrf.mxu2  ;;  %v13939_v59 = vpop.f32.mrf.mxu0 }
 0x928   : > { %7524 = vst.msk [vmem:[#allocation4 + $0x8] sm:$0x1f] %vm7523_vm7, %v7521_v56  ;;  %v7447_v23 = vmax.f32 %v7415_v31, 0.0  ;;  %v6928_v15 = vadd.f32 %v6857_v44, %v6702_v42  ;;  %v7083_v30 = vpop.f32.mrf.mxu3  ;;  %v6633_v19 = vpop.f32.mrf.mxu1 }
 0x929   : > { %v6703_v16 = vadd.f32 %v6633_v19, %v6477_v6 }
 0x92a   : > { %7480 = vst.msk [vmem:[#allocation4 + $0x28] sm:$0xff] %vm7474_vm6, %v7447_v23  ;;  %v7154_v28 = vadd.f32 %v7083_v30, %v6928_v15  ;;  %v14910_v23 = vld [vmem:[#allocation103_spill] sm:$0xff] }
 0x92b   : > { %v6478_v15 = vadd.f32 %v14910_v23, %v13672_v46 }
 0x92c   : > { %v7380_v60 = vadd.f32 %v13798_v50, %v7154_v28  ;;  %v6979_v50 = vld [vmem:[#allocation3 + $0x113] sm:$0xff] }
 0x92d   : > { %v6998_v31 = vpack.c.bf16 %v6979_v50, %v6978_v17 }
 0x92e   : > { %v7416_v43 = vadd.f32 %v13872_v13, %v7380_v60 }
 0x92f   : > { %v7525_v10 = vld [vmem:[#allocation4] ss:$2 sm:$0x7f]  ;;  %v6859_v48 = vpop.f32.mrf.mxu2  ;;  %v13959_v46 = vpop.f32.mrf.mxu0 }
 0x930   : > { %v7532_v7 = vrot.slane %v7525_v10, 6  ;;  %7540 = vst.msk [vmem:[#allocation5] sm:$0x1] %vm7539_vm8, %v7525_v10  ;;  %v7527_v40 = vrot.slane %v7525_v10, 1  ;;  %v7448_v37 = vmax.f32 %v7416_v43, 0.0  ;;  %v6929_v0 = vadd.f32 %v6859_v48, %v6703_v16  ;;  %v7085_v52 = vpop.f32.mrf.mxu3  ;;  %v6636_v25 = vpop.f32.mrf.mxu1  ;;  %v14911_v16 = vld [vmem:[#allocation67_spill] sm:$0xff] }
 0x931   : > { %v7528_v51 = vrot.slane %v7525_v10, 2  ;;  %v7529_v58 = vrot.slane %v7525_v10, 3  ;;  %v7530_v56 = vrot.slane %v7525_v10, 4  ;;  %v7531_v42 = vrot.slane %v7525_v10, 5  ;;  %v14912_v10 = vld [vmem:[#allocation104_spill] sm:$0xff] }
 0x932   : > { %7546 = vst.msk [vmem:[#allocation5 + $0x6] sm:$0x1] %vm7539_vm8, %v7532_v7  ;;  %v7155_v14 = vadd.f32 %v7085_v52, %v6929_v0  ;;  %v6704_v19 = vadd.f32 %v6636_v25, %v6478_v15  ;;  %v6479_v48 = vadd.f32 %v14912_v10, %v14911_v16  ;;  %v7549_v0 = vld [vmem:[#allocation4 + $0x25] sm:$0xff] }
 0x933   : > { %7481 = vst.msk [vmem:[#allocation4 + $0x30] sm:$0xff] %vm7474_vm6, %v7448_v37  ;;  %10392 = vmatmul.msk.bf16.gmra.mxu1 %vm277_vm3, %v13678_v47  ;;  %v7547_v37 = vld [vmem:[#allocation4 + $0x24] sm:$0xff] }
 0x934   : > { %7541 = vst.msk [vmem:[#allocation5 + $0x1] sm:$0x1] %vm7539_vm8, %v7527_v40  ;;  %v7381_v44 = vadd.f32 %v13804_v39, %v7155_v14  ;;  %10414 = vmatmul.msk.bf16.gmra.mxu2 %vm277_vm3, %v13680_v55  ;;  %v6980_v25 = vld [vmem:[#allocation3 + $0x11b] sm:$0xff] }
 0x935   : > { %7542 = vst.msk [vmem:[#allocation5 + $0x2] sm:$0x1] %vm7539_vm8, %v7528_v51  ;;  %10436 = vmatmul.msk.bf16.gmra.mxu3 %vm277_vm3, %v6998_v31 }
 0x936   : > { %7543 = vst.msk [vmem:[#allocation5 + $0x3] sm:$0x1] %vm7539_vm8, %v7529_v58  ;;  %v7417_v30 = vadd.f32 %v13872_v13, %v7381_v44  ;;  %v6981_v58 = vld [vmem:[#allocation3 + $0x123] sm:$0xff] }
 0x937   : > { %7544 = vst.msk [vmem:[#allocation5 + $0x4] sm:$0x1] %vm7539_vm8, %v7530_v56  ;;  %v6862_v39 = vpop.f32.mrf.mxu2  ;;  %v6999_v15 = vpack.c.bf16 %v6981_v58, %v6980_v25  ;;  %v6531_v25 = vld [vmem:[#allocation3 + $0x131] sm:$0xff] }
 0x938   : > { %7545 = vst.msk [vmem:[#allocation5 + $0x5] sm:$0x1] %vm7539_vm8, %v7531_v42  ;;  %v7449_v47 = vmax.f32 %v7417_v30, 0.0  ;;  %v6930_v28 = vadd.f32 %v6862_v39, %v6704_v19  ;;  %v7088_v60 = vpop.f32.mrf.mxu3  ;;  %v6638_v18 = vpop.f32.mrf.mxu1  ;;  %v14913_v39 = vld [vmem:[#allocation105_spill] sm:$0xff] }
 0x939   : > { %v8003_v55 = vld [vmem:[#allocation5 + $0x6] sm:$0x1]  ;;  %v6705_v40 = vadd.f32 %v6638_v18, %v6479_v48  ;;  %v13967_v42 = vpop.f32.mrf.mxu0  ;;  %v6756_v58 = vld [vmem:[#allocation3 + $0x12a] sm:$0xff] }
 0x93a   : > { %v8004_v1 = vpack.c.bf16 %v8003_v55, %v8003_v55  ;;  %7482 = vst.msk [vmem:[#allocation4 + $0x38] sm:$0xff] %vm7474_vm6, %v7449_v47  ;;  %v7156_v6 = vadd.f32 %v7088_v60, %v6930_v28  ;;  %v6480_v47 = vadd.f32 %v14913_v39, %v13690_v54  ;;  %v7548_v55 = vld [vmem:[#allocation4 + $0x2c] sm:$0x1f]  ;;  %v11194_v54 = vld [vmem:[%s14538_s5 + $0xa8] sm:$0xff] }
 0x93b   : > { %v7550_v18 = vld [vmem:[#allocation4 + $0x2d] sm:$0x1f]  ;;  %8178 = vmatpush.bf16.msra.mxu0 %v11194_v54 }
 0x93c   : > { %10548 = vmatmul.msk.bf16.vlgmr.msrb.gmra.mxu0 %vm7474_vm6, %v8004_v1  ;;  %v7382_v43 = vadd.f32 %v13817_v22, %v7156_v6  ;;  %v7551_v22 = vmax.f32 %v7547_v37, %v7549_v0  ;;  %v7552_v10 = vmax.f32 %v7548_v55, %v7550_v18  ;;  %v14915_v55 = vld [vmem:[#allocation69_spill] sm:$0xff]  ;;  %v14916_v18 = vld [vmem:[#allocation107_spill] sm:$0xff] }
 0x93e   : > { %v7418_v7 = vadd.f32 %v13872_v13, %v7382_v43 }
 0x93f   : > { %v6864_v52 = vpop.f32.mrf.mxu2 }
 0x940   : > { %v7450_v17 = vmax.f32 %v7418_v7, 0.0  ;;  %v6931_v50 = vadd.f32 %v6864_v52, %v6705_v40  ;;  %v7090_v51 = vpop.f32.mrf.mxu3  ;;  %v6641_v31 = vpop.f32.mrf.mxu1  ;;  %v14914_v52 = vld [vmem:[#allocation106_spill] sm:$0xff] }
 0x941   : > { %v7553_v14 = vld [vmem:[#allocation4 + $0x36] sm:$0xff]  ;;  %v6706_v60 = vadd.f32 %v6641_v31, %v6480_v47  ;;  %v13984_v40 = vpop.f32.mrf.mxu0 }
 0x942   : > { %v7555_v56 = vld [vmem:[#allocation4 + $0x37] sm:$0xff]  ;;  %7483 = vst.msk [vmem:[#allocation4 + $0x40] sm:$0xff] %vm7474_vm6, %v7450_v17  ;;  %v7157_v23 = vadd.f32 %v7090_v51, %v6931_v50  ;;  %v6481_v17 = vadd.f32 %v14914_v52, %v13694_v41 }
 0x943   : > { %v7557_v44 = vmax.f32 %v7553_v14, %v7555_v56  ;;  %10393 = vmatmul.msk.bf16.gmra.mxu1 %vm277_vm3, %v13697_v9  ;;  %v6530_v50 = vld [vmem:[#allocation3 + $0x129] sm:$0xff]  ;;  %v6757_v14 = vld [vmem:[#allocation3 + $0x132] sm:$0xff] }
 0x944   : > { %v7383_v19 = vadd.f32 %v13825_v11, %v7157_v23  ;;  %10415 = vmatmul.msk.bf16.gmra.mxu2 %vm277_vm3, %v13699_v33  ;;  %v11193_v51 = vld [vmem:[%s14538_s5 + $0xa0] sm:$0xff] }
 0x945   : > { %v7559_v30 = vmax.f32 %v7551_v22, %v7557_v44  ;;  %10437 = vmatmul.msk.bf16.gmra.mxu3 %vm277_vm3, %v6999_v15  ;;  %v6982_v22 = vld [vmem:[#allocation3 + $0x12b] sm:$0xff]  ;;  %v6983_v44 = vld [vmem:[#allocation3 + $0x133] sm:$0xff]  ;;  %8179 = vmatpush.bf16.msra.mxu0 %v11193_v51 }
 0x946   : > { %v7419_v28 = vadd.f32 %v13872_v13, %v7383_v19  ;;  %v6774_v19 = vpack.c.bf16 %v6757_v14, %v6756_v58  ;;  %v7000_v47 = vpack.c.bf16 %v6983_v44, %v6982_v22  ;;  %v6532_v14 = vld [vmem:[#allocation3 + $0x139] sm:$0xff]  ;;  %v6759_v22 = vld [vmem:[#allocation3 + $0x142] sm:$0xf] }
 0x947   : > { %7561 = vst.msk [vmem:[#allocation4 + $0x24] sm:$0xff] %vm7474_vm6, %v7559_v30  ;;  %v6867_v1 = vpop.f32.mrf.mxu2  ;;  %v6548_v30 = vpack.c.bf16 %v6531_v25, %v6530_v50  ;;  %v14917_v25 = vld [vmem:[#allocation108_spill] sm:$0xff] }
 0x948   : > { %v7451_v11 = vmax.f32 %v7419_v28, 0.0  ;;  %v6932_v6 = vadd.f32 %v6867_v1, %v6706_v60  ;;  %v7093_v43 = vpop.f32.mrf.mxu3  ;;  %v6643_v33 = vpop.f32.mrf.mxu1  ;;  %v6482_v1 = vadd.f32 %v14916_v18, %v14915_v55  ;;  %v6483_v58 = vadd.f32 %v14917_v25, %v13718_v20 }
 0x949   : > { %v7554_v9 = vld [vmem:[#allocation4 + $0x3e] sm:$0x1f]  ;;  %v6707_v31 = vadd.f32 %v6643_v33, %v6481_v17 }
 0x94a   : > { %v7556_v16 = vld [vmem:[#allocation4 + $0x3f] sm:$0x1f]  ;;  %7484 = vst.msk [vmem:[#allocation4 + $0x48] sm:$0xff] %vm7474_vm6, %v7451_v11  ;;  %v7158_v7 = vadd.f32 %v7093_v43, %v6932_v6  ;;  %v14001_v6 = vpop.f32.mrf.mxu0 }
 0x94b   : > { %v7558_v48 = vmax.f32 %v7554_v9, %v7556_v16 }
 0x94c   : > { %v7384_v0 = vadd.f32 %v13839_v61, %v7158_v7 }
 0x94d   : > { %v7560_v37 = vmax.f32 %v7552_v10, %v7558_v48 }
 0x94e   : > { %v7420_v56 = vadd.f32 %v13872_v13, %v7384_v0 }
 0x94f   : > { %7562 = vst.msk [vmem:[#allocation4 + $0x2c] sm:$0x1f] %vm7523_vm7, %v7560_v37  ;;  %v6869_v61 = vpop.f32.mrf.mxu2 }
 0x950   : > { %v7452_v23 = vmax.f32 %v7420_v56, 0.0  ;;  %v6933_v15 = vadd.f32 %v6869_v61, %v6707_v31  ;;  %v7095_v41 = vpop.f32.mrf.mxu3  ;;  %v6646_v39 = vpop.f32.mrf.mxu1  ;;  %v6533_v56 = vld [vmem:[#allocation3 + $0x141] sm:$0xf] }
 0x951   : > { %v6708_v54 = vadd.f32 %v6646_v39, %v6482_v1  ;;  %v6758_v31 = vld [vmem:[#allocation3 + $0x13a] sm:$0xff] }
 0x952   : > { %7485 = vst.msk [vmem:[#allocation4 + $0x50] sm:$0xff] %vm7474_vm6, %v7452_v23  ;;  %v7159_v28 = vadd.f32 %v7095_v41, %v6933_v15  ;;  %v6984_v23 = vld [vmem:[#allocation3 + $0x13b] sm:$0xff]  ;;  %v6985_v15 = vld [vmem:[#allocation3 + $0x143] sm:$0xf]  ;;  %v14016_v20 = vpop.f32.mrf.mxu0 }
 0x953   : > { %10394 = vmatmul.msk.bf16.gmra.mxu1 %vm277_vm3, %v6548_v30  ;;  %v6549_v30 = vpack.c.bf16 %v6533_v56, %v6532_v14  ;;  %v7001_v18 = vpack.c.bf16 %v6985_v15, %v6984_v23 }
 0x954   : > { %v7385_v60 = vadd.f32 %v13850_v12, %v7159_v28  ;;  %10416 = vmatmul.msk.bf16.gmra.mxu2 %vm277_vm3, %v6774_v19 }
 0x955   : > { %10438 = vmatmul.msk.bf16.gmra.mxu3 %vm277_vm3, %v7000_v47 }
 0x956   : > { %v7564_v11 = vld [vmem:[#allocation4 + $0x24] ss:$2 sm:$0x7f]  ;;  %v7421_v43 = vadd.f32 %v13872_v13, %v7385_v60  ;;  %v6775_v60 = vpack.c.bf16 %v6759_v22, %v6758_v31 }
 0x957   : > { %v7568_v9 = vrot.slane %v7564_v11, 3  ;;  %7579 = vst.msk [vmem:[#allocation5 + $0x7] sm:$0x1] %vm7539_vm8, %v7564_v11  ;;  %v6872_v16 = vpop.f32.mrf.mxu2  ;;  %v7566_v12 = vrot.slane %v7564_v11, 1  ;;  %v7567_v7 = vrot.slane %v7564_v11, 2  ;;  %v7569_v0 = vrot.slane %v7564_v11, 4 }
 0x958   : > { %v7453_v33 = vmax.f32 %v7421_v43, 0.0  ;;  %v6934_v10 = vadd.f32 %v6872_v16, %v6708_v54  ;;  %v7098_v48 = vpop.f32.mrf.mxu3  ;;  %v6648_v37 = vpop.f32.mrf.mxu1  ;;  %v7570_v17 = vrot.slane %v7564_v11, 5  ;;  %v7571_v50 = vrot.slane %v7564_v11, 6  ;;  %v11182_v11 = vld [vmem:[%s14538_s5 + $0x48] sm:$0xff]  ;;  %v14918_v54 = vld [vmem:[#allocation109_spill] sm:$0xff] }
 0x959   : > { %7582 = vst.msk [vmem:[#allocation5 + $0xa] sm:$0x1] %vm7539_vm8, %v7568_v9  ;;  %v6709_v61 = vadd.f32 %v6648_v37, %v6483_v58  ;;  %v6484_v9 = vadd.f32 %v14918_v54, %v13728_v4  ;;  %7957 = vmatpush.bf16.msra.mxu2 %v11182_v11  ;;  %v7589_v37 = vld [vmem:[#allocation4 + $0x51] sm:$0x1f]  ;;  %v7818_v11 = vld [vmem:[#allocation5 + $0x1] sm:$0x1] }
 0x95a   : > { %7486 = vst.msk [vmem:[#allocation4 + $0x58] sm:$0xff] %vm7474_vm6, %v7453_v33  ;;  %v7160_v52 = vadd.f32 %v7098_v48, %v6934_v10  ;;  %v11202_v33 = vld [vmem:[%s14538_s5 + $0xe8] sm:$0xff]  ;;  %v7588_v10 = vld [vmem:[#allocation4 + $0x49] sm:$0xff]  ;;  %v14033_v58 = vpop.f32.mrf.mxu0 }
 0x95b   : > { %7580 = vst.msk [vmem:[#allocation5 + $0x8] sm:$0x1] %vm7539_vm8, %v7566_v12  ;;  %8325 = vmatpush.bf16.msrb.mxu0 %v11202_v33 }
 0x95c   : > { %v7386_v51 = vadd.f32 %v13857_v8, %v7160_v52  ;;  %7581 = vst.msk [vmem:[#allocation5 + $0x9] sm:$0x1] %vm7539_vm8, %v7567_v7  ;;  %v7587_v7 = vld [vmem:[#allocation4 + $0x50] sm:$0x1f] }
 0x95d   : > { %7583 = vst.msk [vmem:[#allocation5 + $0xb] sm:$0x1] %vm7539_vm8, %v7569_v0  ;;  %v7591_v23 = vmax.f32 %v7587_v7, %v7589_v37 }
 0x95e   : > { %v7422_v44 = vadd.f32 %v13872_v13, %v7386_v51  ;;  %7584 = vst.msk [vmem:[#allocation5 + $0xc] sm:$0x1] %vm7539_vm8, %v7570_v17 }
 0x95f   : > { %v6874_v41 = vpop.f32.mrf.mxu2  ;;  %7585 = vst.msk [vmem:[#allocation5 + $0xd] sm:$0x1] %vm7539_vm8, %v7571_v50 }
 0x960   : > { %v8150_v8 = vld [vmem:[#allocation5 + $0xa] sm:$0x1]  ;;  %v7454_v19 = vmax.f32 %v7422_v44, 0.0  ;;  %v6935_v39 = vadd.f32 %v6874_v41, %v6709_v61  ;;  %v7100_v47 = vpop.f32.mrf.mxu3  ;;  %v6651_v55 = vpop.f32.mrf.mxu1  ;;  %v11180_v44 = vld [vmem:[%s14538_s5 + $0x38] sm:$0xff]  ;;  %v11201_v41 = vld [vmem:[%s14538_s5 + $0xe0] sm:$0xff] }
 0x961   : > { %v8151_v28 = vpack.c.bf16 %v8150_v8, %v8150_v8  ;;  %v6710_v12 = vadd.f32 %v6651_v55, %v6484_v9  ;;  %v11184_v61 = vld [vmem:[%s14538_s5 + $0x58] sm:$0xff]  ;;  %7920 = vmatpush.bf16.msra.mxu1 %v11180_v44  ;;  %8326 = vmatpush.bf16.msrb.mxu0 %v11201_v41  ;;  %v11181_v55 = vld [vmem:[%s14538_s5 + $0x40] sm:$0xff] }
 0x962   : > { %7487 = vst.msk [vmem:[#allocation4 + $0x60] sm:$0xff] %vm7474_vm6, %v7454_v19  ;;  %v7161_v1 = vadd.f32 %v7100_v47, %v6935_v39  ;;  %v14919_v19 = vld [vmem:[#allocation10_spill] sm:$0xff]  ;;  %7994 = vmatpush.bf16.msra.mxu3 %v11184_v61  ;;  %7958 = vmatpush.bf16.msra.mxu2 %v11181_v55  ;;  %v14061_v7 = vpop.f32.mrf.mxu0 }
 0x963   : > { %10600 = vmatmul.msk.bf16.vlgmr.msra.gmra.mxu0 %vm7474_vm6, %v8151_v28  ;;  %10395 = vmatmul.msk.bf16.gmra.mxu1 %vm277_vm3, %v6549_v30  ;;  %v6485_v39 = vadd.f32 %v14919_v19, %v13732_v24  ;;  %v11183_v24 = vld [vmem:[%s14538_s5 + $0x50] sm:$0xff]  ;;  %v11209_v19 = vld [vmem:[%s14538_s5 + $0x120] sm:$0xff] }
 0x964   : > { %v7387_v43 = vadd.f32 %v13874_v34, %v7161_v1  ;;  %10417 = vmatmul.msk.bf16.gmra.mxu2 %vm277_vm3, %v6775_v60  ;;  %v7586_v34 = vld [vmem:[#allocation4 + $0x48] sm:$0xff]  ;;  %v7782_v1 = vld [vmem:[#allocation5] sm:$0x1] }
 0x965   : > { %10439 = vmatmul.msk.bf16.gmra.mxu3 %vm277_vm3, %v7001_v18  ;;  %v7590_v14 = vmax.f32 %v7586_v34, %v7588_v10  ;;  %v7783_v10 = vpack.c.bf16 %v7782_v1, %v7782_v1 }
 0x966   : > { %v7423_v16 = vadd.f32 %v13872_v13, %v7387_v43  ;;  %7995 = vmatpush.bf16.msra.mxu3 %v11183_v24 }
 0x967   : > { %v6877_v48 = vpop.f32.mrf.mxu2 }
 0x968   : > { %v7455_v4 = vmax.f32 %v7423_v16, 0.0  ;;  %v6936_v0 = vadd.f32 %v6877_v48, %v6710_v12  ;;  %v7103_v52 = vpop.f32.mrf.mxu3  ;;  %v6653_v25 = vpop.f32.mrf.mxu1  ;;  %v7855_v16 = vld [vmem:[#allocation5 + $0x2] sm:$0x1]  ;;  %v7819_v48 = vpack.c.bf16 %v7818_v11, %v7818_v11 }
 0x969   : > { %v7592_v17 = vld [vmem:[#allocation4 + $0x5a] sm:$0xff]  ;;  %v7593_v50 = vld [vmem:[#allocation4 + $0x62] sm:$0x1f]  ;;  %v6711_v60 = vadd.f32 %v6653_v25, %v6485_v39  ;;  %v7856_v34 = vpack.c.bf16 %v7855_v16, %v7855_v16 }
 0x96a   : > { %v7594_v51 = vld [vmem:[#allocation4 + $0x5b] sm:$0xff]  ;;  %v7595_v56 = vld [vmem:[#allocation4 + $0x63] sm:$0x1f]  ;;  %7488 = vst.msk [vmem:[#allocation4 + $0x68] sm:$0xff] %vm7474_vm6, %v7455_v4  ;;  %v7162_v22 = vadd.f32 %v7103_v52, %v6936_v0  ;;  %v14920_v4 = vld [vmem:[#allocation9_spill] sm:$0xff] }
 0x96b   : > { %v7596_v31 = vmax.f32 %v7592_v17, %v7594_v51  ;;  %v7597_v15 = vmax.f32 %v7593_v50, %v7595_v56  ;;  %v6486_v0 = vadd.f32 %v14920_v4, %v13741_v38  ;;  %v11190_v51 = vld [vmem:[%s14538_s5 + $0x88] sm:$0xff] }
 0x96c   : > { %v7388_v30 = vadd.f32 %v13889_v3, %v7162_v22  ;;  %v11179_v3 = vld [vmem:[%s14538_s5 + $0x30] sm:$0xff] }
 0x96d   : > { %v7598_v8 = vmax.f32 %v7590_v14, %v7596_v31  ;;  %v7599_v47 = vmax.f32 %v7591_v23, %v7597_v15  ;;  %7921 = vmatpush.bf16.msra.mxu1 %v11179_v3  ;;  %v11188_v23 = vld [vmem:[%s14538_s5 + $0x78] sm:$0xff]  ;;  %v14097_v3 = vpop.f32.mrf.mxu0 }
 0x96e   : > { %v7424_v28 = vadd.f32 %v13872_v13, %v7388_v30  ;;  %v11192_v30 = vld [vmem:[%s14538_s5 + $0x98] sm:$0xff] }
 0x96f   : > { %7600 = vst.msk [vmem:[#allocation4 + $0x48] sm:$0xff] %vm7474_vm6, %v7598_v8  ;;  %v6879_v18 = vpop.f32.mrf.mxu2  ;;  %v11189_v8 = vld [vmem:[%s14538_s5 + $0x80] sm:$0xff] }
 0x970   : > { %7601 = vst.msk [vmem:[#allocation4 + $0x50] sm:$0x1f] %vm7523_vm7, %v7599_v47  ;;  %v7456_v43 = vmax.f32 %v7424_v28, 0.0  ;;  %v6937_v54 = vadd.f32 %v6879_v18, %v6711_v60  ;;  %v7105_v9 = vpop.f32.mrf.mxu3  ;;  %v6656_v12 = vpop.f32.mrf.mxu1  ;;  %v14921_v60 = vld [vmem:[#allocation12_spill] sm:$0xff] }
 0x971   : > { %v6712_v17 = vadd.f32 %v6656_v12, %v6486_v0  ;;  %v6487_v55 = vadd.f32 %v14921_v60, %v13748_v49  ;;  %v11191_v49 = vld [vmem:[%s14538_s5 + $0x90] sm:$0xff]  ;;  %v11198_v0 = vld [vmem:[%s14538_s5 + $0xc8] sm:$0xff] }
 0x972   : > { %7489 = vst.msk [vmem:[#allocation4 + $0x70] sm:$0xff] %vm7474_vm6, %v7456_v43  ;;  %v7163_v33 = vadd.f32 %v7105_v9, %v6937_v54  ;;  %v7892_v54 = vld [vmem:[#allocation5 + $0x3] sm:$0x1]  ;;  %v7929_v9 = vld [vmem:[#allocation5 + $0x4] sm:$0x1]  ;;  %v14923_v60 = vld [vmem:[#allocation14_spill] sm:$0xff] }
 0x973   : > { %10470 = vmatmul.msk.bf16.vlgmr.msrb.gmra.mxu1 %vm7474_vm6, %v7783_v10  ;;  %v7966_v10 = vld [vmem:[#allocation5 + $0x5] sm:$0x1]  ;;  %v7930_v4 = vpack.c.bf16 %v7929_v9, %v7929_v9 }
 0x974   : > { %v7389_v37 = vadd.f32 %v13901_v35, %v7163_v33  ;;  %10483 = vmatmul.msk.bf16.vlgmr.msrb.gmra.mxu2 %vm7474_vm6, %v7819_v48  ;;  %v11210_v35 = vld [vmem:[%s14538_s5 + $0x128] sm:$0xff]  ;;  %8067 = vmatpush.bf16.msrb.mxu1 %v11188_v23 }
 0x975   : > { %10496 = vmatmul.msk.bf16.vlgmr.msrb.gmra.mxu3 %vm7474_vm6, %v7856_v34  ;;  %8104 = vmatpush.bf16.msrb.mxu2 %v11190_v51 }
 0x976   : > { %v7425_v52 = vadd.f32 %v13872_v13, %v7389_v37  ;;  %8473 = vmatpush.bf16.msra.mxu0 %v11210_v35  ;;  %8141 = vmatpush.bf16.msrb.mxu3 %v11192_v30  ;;  %v7893_v37 = vpack.c.bf16 %v7892_v54, %v7892_v54  ;;  %v14922_v35 = vld [vmem:[#allocation11_spill] sm:$0xff] }
 0x977   : > { %v7603_v50 = vld [vmem:[#allocation4 + $0x48] ss:$2 sm:$0x7f]  ;;  %v6882_v25 = vpop.f32.mrf.mxu2 }
 0x978   : > { %7618 = vst.msk [vmem:[#allocation5 + $0xe] sm:$0x1] %vm7539_vm8, %v7603_v50  ;;  %v7608_v38 = vrot.slane %v7603_v50, 4  ;;  %v7605_v14 = vrot.slane %v7603_v50, 1  ;;  %v7457_v56 = vmax.f32 %v7425_v52, 0.0  ;;  %v6938_v31 = vadd.f32 %v6882_v25, %v6712_v17  ;;  %v7108_v22 = vpop.f32.mrf.mxu3  ;;  %v6658_v61 = vpop.f32.mrf.mxu1  ;;  %v11196_v52 = vld [vmem:[%s14538_s5 + $0xb8] sm:$0xff] }
 0x979   : > { %v7606_v44 = vrot.slane %v7603_v50, 2  ;;  %v7607_v15 = vrot.slane %v7603_v50, 3  ;;  %v7609_v39 = vrot.slane %v7603_v50, 5  ;;  %v7610_v47 = vrot.slane %v7603_v50, 6  ;;  %8105 = vmatpush.bf16.msrb.mxu2 %v11189_v8  ;;  %v11200_v50 = vld [vmem:[%s14538_s5 + $0xd8] sm:$0xff] }
 0x97a   : > { %7622 = vst.msk [vmem:[#allocation5 + $0x12] sm:$0x1] %vm7539_vm8, %v7608_v38  ;;  %v7164_v41 = vadd.f32 %v7108_v22, %v6938_v31  ;;  %8474 = vmatpush.bf16.msra.mxu0 %v11209_v19  ;;  %v6713_v18 = vadd.f32 %v6658_v61, %v6487_v55  ;;  %8142 = vmatpush.bf16.msrb.mxu3 %v11191_v49  ;;  %v11197_v38 = vld [vmem:[%s14538_s5 + $0xc0] sm:$0xff]  ;;  %v7627_v31 = vld [vmem:[#allocation4 + $0x6d] sm:$0xff]  ;;  %v8076_v49 = vld [vmem:[#allocation5 + $0x8] sm:$0x1] }
 0x97b   : > { %7490 = vst.msk [vmem:[#allocation4 + $0x78] sm:$0xff] %vm7474_vm6, %v7457_v56  ;;  %v7967_v17 = vpack.c.bf16 %v7966_v10, %v7966_v10  ;;  %v6488_v25 = vadd.f32 %v14922_v35, %v13757_v63  ;;  %v14129_v63 = vpop.f32.mrf.mxu0  ;;  %v6489_v55 = vadd.f32 %v14923_v60, %v13761_v29  ;;  %v8113_v10 = vld [vmem:[#allocation5 + $0x9] sm:$0x1] }
 0x97c   : > { %7619 = vst.msk [vmem:[#allocation5 + $0xf] sm:$0x1] %vm7539_vm8, %v7605_v14  ;;  %v7390_v28 = vadd.f32 %v13914_v5, %v7164_v41  ;;  %v11187_v5 = vld [vmem:[%s14538_s5 + $0x70] sm:$0xff] }
 0x97d   : > { %7620 = vst.msk [vmem:[#allocation5 + $0x10] sm:$0x1] %vm7539_vm8, %v7606_v44  ;;  %8068 = vmatpush.bf16.msrb.mxu1 %v11187_v5 }
 0x97e   : > { %7621 = vst.msk [vmem:[#allocation5 + $0x11] sm:$0x1] %vm7539_vm8, %v7607_v15  ;;  %v7426_v24 = vadd.f32 %v13872_v13, %v7390_v28 }
 0x97f   : > { %v8297_v1 = vld [vmem:[#allocation5 + $0xe] sm:$0x1]  ;;  %7623 = vst.msk [vmem:[#allocation5 + $0x13] sm:$0x1] %vm7539_vm8, %v7609_v39  ;;  %v6884_v11 = vpop.f32.mrf.mxu2 }
 0x980   : > { %v8298_v43 = vpack.c.bf16 %v8297_v1, %v8297_v1  ;;  %7624 = vst.msk [vmem:[#allocation5 + $0x14] sm:$0x1] %vm7539_vm8, %v7610_v47  ;;  %v7458_v16 = vmax.f32 %v7426_v24, 0.0  ;;  %v6939_v12 = vadd.f32 %v6884_v11, %v6713_v18  ;;  %v7110_v33 = vpop.f32.mrf.mxu3  ;;  %v6661_v48 = vpop.f32.mrf.mxu1  ;;  %v8039_v18 = vld [vmem:[#allocation5 + $0x7] sm:$0x1]  ;;  %v11195_v11 = vld [vmem:[%s14538_s5 + $0xb0] sm:$0xff] }
 0x981   : > { %v6714_v56 = vadd.f32 %v6661_v48, %v6488_v25  ;;  %v8445_v24 = vld [vmem:[#allocation5 + $0x12] sm:$0x1]  ;;  %v8114_v25 = vpack.c.bf16 %v8113_v10, %v8113_v10 }
 0x982   : > { %10652 = vmatmul.msk.bf16.vlgmr.msrb.gmra.mxu0 %vm7474_vm6, %v8298_v43  ;;  %7491 = vst.msk [vmem:[#allocation4 + $0x80] sm:$0xff] %vm7474_vm6, %v7458_v16  ;;  %v7165_v34 = vadd.f32 %v7110_v33, %v6939_v12  ;;  %v11199_v43 = vld [vmem:[%s14538_s5 + $0xd0] sm:$0xff]  ;;  %v7628_v54 = vld [vmem:[#allocation4 + $0x75] sm:$0x1f]  ;;  %v8446_v29 = vpack.c.bf16 %v8445_v24, %v8445_v24 }
 0x983   : > { %10509 = vmatmul.msk.bf16.vlgmr.msra.gmra.mxu1 %vm7474_vm6, %v7893_v37  ;;  %v14143_v48 = vpop.f32.mrf.mxu0 }
 0x984   : > { %v7391_v51 = vadd.f32 %v13922_v45, %v7165_v34  ;;  %10522 = vmatmul.msk.bf16.vlgmr.msra.gmra.mxu2 %vm7474_vm6, %v7930_v4  ;;  %8215 = vmatpush.bf16.msra.mxu1 %v11196_v52  ;;  %v7625_v45 = vld [vmem:[#allocation4 + $0x6c] sm:$0xff]  ;;  %v11218_v34 = vld [vmem:[%s14538_s5 + $0x168] sm:$0xff]  ;;  %v8040_v52 = vpack.c.bf16 %v8039_v18, %v8039_v18  ;;  %v14182_v18 = vld [vmem:[%s14537_s4] ss:$0 sm:$0xff] }
 0x985   : > { %10535 = vmatmul.msk.bf16.vlgmr.msra.gmra.mxu3 %vm7474_vm6, %v7967_v17  ;;  %8252 = vmatpush.bf16.msra.mxu2 %v11198_v0  ;;  %v7629_v30 = vmax.f32 %v7625_v45, %v7627_v31  ;;  %v8077_v17 = vpack.c.bf16 %v8076_v49, %v8076_v49  ;;  %v11217_v31 = vld [vmem:[%s14538_s5 + $0x160] sm:$0xff] }
 0x986   : > { %v7427_v14 = vadd.f32 %v13872_v13, %v7391_v51  ;;  %8289 = vmatpush.bf16.msra.mxu3 %v11200_v50  ;;  %8620 = vmatpush.bf16.msrb.mxu0 %v11218_v34 }
 0x987   : > { %v6887_v22 = vpop.f32.mrf.mxu2 }
 0x988   : > { %v7459_v44 = vmax.f32 %v7427_v14, 0.0  ;;  %v6940_v61 = vadd.f32 %v6887_v22, %v6714_v56  ;;  %v7113_v23 = vpop.f32.mrf.mxu3  ;;  %v6663_v8 = vpop.f32.mrf.mxu1  ;;  %8216 = vmatpush.bf16.msra.mxu1 %v11195_v11  ;;  %v14924_v56 = vld [vmem:[#allocation13_spill] sm:$0xff] }
 0x989   : > { %v7631_v15 = vld [vmem:[#allocation4 + $0x7e] sm:$0xff]  ;;  %8253 = vmatpush.bf16.msra.mxu2 %v11197_v38  ;;  %v6715_v5 = vadd.f32 %v6663_v8, %v6489_v55  ;;  %v6490_v45 = vadd.f32 %v14924_v56, %v13770_v36  ;;  %v11208_v8 = vld [vmem:[%s14538_s5 + $0x118] sm:$0xff]  ;;  %v8187_v55 = vld [vmem:[#allocation5 + $0xb] sm:$0x1] }
 0x98a   : > { %v7633_v41 = vld [vmem:[#allocation4 + $0x7f] sm:$0xff]  ;;  %7492 = vst.msk [vmem:[#allocation4 + $0x88] sm:$0xff] %vm7474_vm6, %v7459_v44  ;;  %v7166_v39 = vadd.f32 %v7113_v23, %v6940_v61  ;;  %8290 = vmatpush.bf16.msra.mxu3 %v11199_v43  ;;  %8621 = vmatpush.bf16.msrb.mxu0 %v11217_v31  ;;  %v11204_v61 = vld [vmem:[%s14538_s5 + $0xf8] sm:$0xff]  ;;  %v8224_v43 = vld [vmem:[#allocation5 + $0xc] sm:$0x1] }
 0x98b   : > { %v7635_v19 = vmax.f32 %v7631_v15, %v7633_v41  ;;  %v11206_v36 = vld [vmem:[%s14538_s5 + $0x108] sm:$0xff]  ;;  %v11225_v56 = vld [vmem:[%s14538_s5 + $0x1a0] sm:$0xff] }
 0x98c   : > { %v7392_v28 = vadd.f32 %v13939_v59, %v7166_v39  ;;  %v7626_v59 = vld [vmem:[#allocation4 + $0x74] sm:$0x1f]  ;;  %v14174_v39 = vpop.f32.mrf.mxu0 }
 0x98d   : > { %v7637_v47 = vmax.f32 %v7629_v30, %v7635_v19  ;;  %v7630_v50 = vmax.f32 %v7626_v59, %v7628_v54  ;;  %v8261_v59 = vld [vmem:[#allocation5 + $0xd] sm:$0x1] }
 0x98e   : > { %v7428_v1 = vadd.f32 %v13872_v13, %v7392_v28  ;;  %v14925_v28 = vld [vmem:[#allocation16_spill] sm:$0xff] }
 0x98f   : > { %7639 = vst.msk [vmem:[#allocation4 + $0x6c] sm:$0xff] %vm7474_vm6, %v7637_v47  ;;  %v6889_v9 = vpop.f32.mrf.mxu2  ;;  %v6491_v60 = vadd.f32 %v14925_v28, %v13776_v53  ;;  %v11207_v53 = vld [vmem:[%s14538_s5 + $0x110] sm:$0xff] }
 0x990   : > { %v7460_v16 = vmax.f32 %v7428_v1, 0.0  ;;  %v6941_v12 = vadd.f32 %v6889_v9, %v6715_v5  ;;  %v7115_v33 = vpop.f32.mrf.mxu3  ;;  %v6666_v0 = vpop.f32.mrf.mxu1 }
 0x991   : > { %v7632_v37 = vld [vmem:[#allocation4 + $0x86] sm:$0x1f]  ;;  %v6716_v44 = vadd.f32 %v6666_v0, %v6490_v45  ;;  %v8225_v0 = vpack.c.bf16 %v8224_v43, %v8224_v43 }
 0x992   : > { %v7634_v4 = vld [vmem:[#allocation4 + $0x87] sm:$0x1f]  ;;  %10704 = vmatmul.msk.bf16.vlgmr.msra.gmra.mxu0 %vm7474_vm6, %v8446_v29  ;;  %7493 = vst.msk [vmem:[#allocation4 + $0x90] sm:$0xff] %vm7474_vm6, %v7460_v16  ;;  %v7167_v35 = vadd.f32 %v7115_v33, %v6941_v12 }
 0x993   : > { %v7636_v51 = vmax.f32 %v7632_v37, %v7634_v4  ;;  %10561 = vmatmul.msk.bf16.vlgmr.msrb.gmra.mxu1 %vm7474_vm6, %v8040_v52  ;;  %v11226_v12 = vld [vmem:[%s14538_s5 + $0x1a8] sm:$0xff]  ;;  %v8188_v4 = vpack.c.bf16 %v8187_v55, %v8187_v55 }
 0x994   : > { %v7393_v14 = vadd.f32 %v13959_v46, %v7167_v35  ;;  %10574 = vmatmul.msk.bf16.vlgmr.msrb.gmra.mxu2 %vm7474_vm6, %v8077_v17  ;;  %8362 = vmatpush.bf16.msrb.mxu1 %v11204_v61  ;;  %v11214_v52 = vld [vmem:[%s14538_s5 + $0x148] sm:$0xff] }
 0x995   : > { %v7638_v38 = vmax.f32 %v7630_v50, %v7636_v51  ;;  %10587 = vmatmul.msk.bf16.vlgmr.msrb.gmra.mxu3 %vm7474_vm6, %v8114_v25  ;;  %8399 = vmatpush.bf16.msrb.mxu2 %v11206_v36  ;;  %v8262_v50 = vpack.c.bf16 %v8261_v59, %v8261_v59  ;;  %v14926_v25 = vld [vmem:[#allocation15_spill] sm:$0xff] }
 0x996   : > { %v7429_v22 = vadd.f32 %v13872_v13, %v7393_v14  ;;  %v11205_v13 = vld [vmem:[%s14538_s5 + $0x100] sm:$0xff]  ;;  %8436 = vmatpush.bf16.msrb.mxu3 %v11208_v8  ;;  %8768 = vmatpush.bf16.msra.mxu0 %v11226_v12  ;;  %v14206_v14 = vpop.f32.mrf.mxu0  ;;  %v11216_v8 = vld [vmem:[%s14538_s5 + $0x158] sm:$0xff] }
 0x997   : > { %7640 = vst.msk [vmem:[#allocation4 + $0x74] sm:$0x1f] %vm7523_vm7, %v7638_v38  ;;  %v6892_v46 = vpop.f32.mrf.mxu2  ;;  %v6492_v38 = vadd.f32 %v14926_v25, %v13785_v2 }
 0x998   : > { %v7461_v23 = vmax.f32 %v7429_v22, 0.0  ;;  %v6942_v15 = vadd.f32 %v6892_v46, %v6716_v44  ;;  %v7118_v41 = vpop.f32.mrf.mxu3  ;;  %v6668_v30 = vpop.f32.mrf.mxu1 }
 0x999   : > { %8400 = vmatpush.bf16.msrb.mxu2 %v11205_v13  ;;  %v6717_v5 = vadd.f32 %v6668_v30, %v6491_v60  ;;  %v14927_v13 = vld [vmem:[#allocation18_spill] sm:$0xff] }
 0x99a   : > { %7494 = vst.msk [vmem:[#allocation4 + $0x98] sm:$0xff] %vm7474_vm6, %v7461_v23  ;;  %v7168_v19 = vadd.f32 %v7118_v41, %v6942_v15  ;;  %8437 = vmatpush.bf16.msrb.mxu3 %v11207_v53  ;;  %8769 = vmatpush.bf16.msra.mxu0 %v11225_v56  ;;  %v11212_v15 = vld [vmem:[%s14538_s5 + $0x138] sm:$0xff]  ;;  %v11213_v41 = vld [vmem:[%s14538_s5 + $0x140] sm:$0xff] }
 0x99c   : > { %v7394_v47 = vadd.f32 %v13967_v42, %v7168_v19  ;;  %v11203_v42 = vld [vmem:[%s14538_s5 + $0xf0] sm:$0xff]  ;;  %v6493_v19 = vadd.f32 %v14927_v13, %v13791_v57 }
 0x99d   : > { %8363 = vmatpush.bf16.msrb.mxu1 %v11203_v42  ;;  %v8408_v42 = vld [vmem:[#allocation5 + $0x11] sm:$0x1] }
 0x99e   : > { %v7642_v24 = vld [vmem:[#allocation4 + $0x6c] ss:$2 sm:$0x7f]  ;;  %v7430_v1 = vadd.f32 %v14182_v18, %v7394_v47  ;;  %v8334_v47 = vld [vmem:[#allocation5 + $0xf] sm:$0x1]  ;;  %v7371_v55 = vpop.f32.mrf.mxu0 }
 0x99f   : > { %v7644_v49 = vrot.slane %v7642_v24, 1  ;;  %7657 = vst.msk [vmem:[#allocation5 + $0x15] sm:$0x1] %vm7539_vm8, %v7642_v24  ;;  %v6894_v11 = vpop.f32.mrf.mxu2  ;;  %v7648_v54 = vrot.slane %v7642_v24, 5  ;;  %v7645_v33 = vrot.slane %v7642_v24, 2  ;;  %v7646_v34 = vrot.slane %v7642_v24, 3 }
 0x9a0   : > { %v7462_v9 = vmax.f32 %v7430_v1, 0.0  ;;  %v6943_v29 = vadd.f32 %v6894_v11, %v6717_v5  ;;  %v7120_v16 = vpop.f32.mrf.mxu3  ;;  %v6671_v10 = vpop.f32.mrf.mxu1  ;;  %v7647_v17 = vrot.slane %v7642_v24, 4  ;;  %v7649_v51 = vrot.slane %v7642_v24, 6  ;;  %v8371_v24 = vld [vmem:[#allocation5 + $0x10] sm:$0x1]  ;;  %v11211_v1 = vld [vmem:[%s14538_s5 + $0x130] sm:$0xff] }
 0x9a1   : > { %7658 = vst.msk [vmem:[#allocation5 + $0x16] sm:$0x1] %vm7539_vm8, %v7644_v49  ;;  %v6718_v2 = vadd.f32 %v6671_v10, %v6492_v38  ;;  %v7664_v5 = vld [vmem:[#allocation4 + $0x90] sm:$0xff]  ;;  %v7665_v53 = vld [vmem:[#allocation4 + $0x98] sm:$0x1f]  ;;  %v8335_v10 = vpack.c.bf16 %v8334_v47, %v8334_v47 }
 0x9a2   : > { %7495 = vst.msk [vmem:[#allocation4 + $0xa0] sm:$0xff] %vm7474_vm6, %v7462_v9  ;;  %v7169_v37 = vadd.f32 %v7120_v16, %v6943_v29  ;;  %v7666_v49 = vld [vmem:[#allocation4 + $0x91] sm:$0xff]  ;;  %v7667_v11 = vld [vmem:[#allocation4 + $0x99] sm:$0x1f]  ;;  %v11234_v9 = vld [vmem:[%s14538_s5 + $0x1e8] sm:$0xff] }
 0x9a3   : > { %7662 = vst.msk [vmem:[#allocation5 + $0x1a] sm:$0x1] %vm7539_vm8, %v7648_v54  ;;  %10613 = vmatmul.msk.bf16.vlgmr.msra.gmra.mxu1 %vm7474_vm6, %v8188_v4  ;;  %v14928_v38 = vld [vmem:[#allocation17_spill] sm:$0xff] }
 0x9a4   : > { %v7395_v35 = vadd.f32 %v13984_v40, %v7169_v37  ;;  %10626 = vmatmul.msk.bf16.vlgmr.msra.gmra.mxu2 %vm7474_vm6, %v8225_v0  ;;  %7659 = vst.msk [vmem:[#allocation5 + $0x17] sm:$0x1] %vm7539_vm8, %v7645_v33  ;;  %8510 = vmatpush.bf16.msra.mxu1 %v11212_v15  ;;  %v7668_v37 = vmax.f32 %v7664_v5, %v7666_v49  ;;  %v11219_v5 = vld [vmem:[%s14538_s5 + $0x170] sm:$0xff] }
 0x9a5   : > { %10639 = vmatmul.msk.bf16.vlgmr.msra.gmra.mxu3 %vm7474_vm6, %v8262_v50  ;;  %8547 = vmatpush.bf16.msra.mxu2 %v11214_v52  ;;  %7660 = vst.msk [vmem:[#allocation5 + $0x18] sm:$0x1] %vm7539_vm8, %v7646_v34  ;;  %v8372_v34 = vpack.c.bf16 %v8371_v24, %v8371_v24  ;;  %v6494_v56 = vadd.f32 %v14928_v38, %v13802_v62  ;;  %v11222_v62 = vld [vmem:[%s14538_s5 + $0x188] sm:$0xff] }
 0x9a6   : > { %v7431_v40 = vadd.f32 %v14182_v18, %v7395_v35  ;;  %7661 = vst.msk [vmem:[#allocation5 + $0x19] sm:$0x1] %vm7539_vm8, %v7647_v17  ;;  %8583 = vmatpush.bf16.msra.mxu3 %v11216_v8  ;;  %v7669_v17 = vmax.f32 %v7665_v53, %v7667_v11  ;;  %v11220_v8 = vld [vmem:[%s14538_s5 + $0x178] sm:$0xff] }
 0x9a7   : > { %v6897_v45 = vpop.f32.mrf.mxu2  ;;  %7663 = vst.msk [vmem:[#allocation5 + $0x1b] sm:$0x1] %vm7539_vm8, %v7649_v51  ;;  %v8409_v51 = vpack.c.bf16 %v8408_v42, %v8408_v42 }
 0x9a8   : > { %v8592_v31 = vld [vmem:[#allocation5 + $0x16] sm:$0x1]  ;;  %v7463_v22 = vmax.f32 %v7431_v40, 0.0  ;;  %v6944_v44 = vadd.f32 %v6897_v45, %v6718_v2  ;;  %v7123_v46 = vpop.f32.mrf.mxu3  ;;  %v6673_v61 = vpop.f32.mrf.mxu1  ;;  %8511 = vmatpush.bf16.msra.mxu1 %v11211_v1  ;;  %v11233_v40 = vld [vmem:[%s14538_s5 + $0x1e0] sm:$0xff] }
 0x9a9   : > { %v8593_v36 = vpack.c.bf16 %v8592_v31, %v8592_v31  ;;  %8548 = vmatpush.bf16.msra.mxu2 %v11213_v41  ;;  %v6719_v60 = vadd.f32 %v6673_v61, %v6493_v19  ;;  %v14929_v19 = vld [vmem:[#allocation20_spill] sm:$0xff] }
 0x9aa   : > { %7496 = vst.msk [vmem:[#allocation4 + $0xa8] sm:$0xff] %vm7474_vm6, %v7463_v22  ;;  %v7170_v23 = vadd.f32 %v7123_v46, %v6944_v44  ;;  %v8740_v45 = vld [vmem:[#allocation5 + $0x1a] sm:$0x1]  ;;  %v6495_v47 = vadd.f32 %v14929_v19, %v13808_v26  ;;  %v11223_v26 = vld [vmem:[%s14538_s5 + $0x190] sm:$0xff] }
 0x9ab   : > { %10756 = vmatmul.msk.bf16.vlgmr.msrb.gmra.mxu0 %vm7474_vm6, %v8593_v36 }
 0x9ac   : > { %v7396_v30 = vadd.f32 %v14001_v6, %v7170_v23  ;;  %v11215_v6 = vld [vmem:[%s14538_s5 + $0x150] sm:$0xff]  ;;  %8915 = vmatpush.bf16.msrb.mxu0 %v11234_v9  ;;  %v8741_v23 = vpack.c.bf16 %v8740_v45, %v8740_v45 }
 0x9ad   : > { %8584 = vmatpush.bf16.msra.mxu3 %v11215_v6  ;;  %v11221_v6 = vld [vmem:[%s14538_s5 + $0x180] sm:$0xff] }
 0x9ae   : > { %v7432_v28 = vadd.f32 %v14182_v18, %v7396_v30  ;;  %v11224_v30 = vld [vmem:[%s14538_s5 + $0x198] sm:$0xff] }
 0x9af   : > { %v6899_v57 = vpop.f32.mrf.mxu2 }
 0x9b0   : > { %v7464_v43 = vmax.f32 %v7432_v28, 0.0  ;;  %v6945_v59 = vadd.f32 %v6899_v57, %v6719_v60  ;;  %v7125_v54 = vpop.f32.mrf.mxu3  ;;  %v6676_v33 = vpop.f32.mrf.mxu1  ;;  %8916 = vmatpush.bf16.msrb.mxu0 %v11233_v40  ;;  %v8482_v28 = vld [vmem:[#allocation5 + $0x13] sm:$0x1]  ;;  %v8519_v60 = vld [vmem:[#allocation5 + $0x14] sm:$0x1] }
 0x9b1   : > { %v7670_v29 = vld [vmem:[#allocation4 + $0xa2] sm:$0xff]  ;;  %v7671_v16 = vld [vmem:[#allocation4 + $0xaa] sm:$0x1f] }
 0x9b2   : > { %v7672_v12 = vld [vmem:[#allocation4 + $0xa3] sm:$0xff]  ;;  %v7673_v4 = vld [vmem:[#allocation4 + $0xab] sm:$0x1f]  ;;  %7497 = vst.msk [vmem:[#allocation4 + $0xb0] sm:$0xff] %vm7474_vm6, %v7464_v43  ;;  %v7171_v52 = vadd.f32 %v7125_v54, %v6945_v59  ;;  %v8555_v59 = vld [vmem:[#allocation5 + $0x15] sm:$0x1] }
 0x9b3   : > { %v7674_v0 = vmax.f32 %v7670_v29, %v7672_v12  ;;  %v7675_v50 = vmax.f32 %v7671_v16, %v7673_v4  ;;  %10665 = vmatmul.msk.bf16.vlgmr.msrb.gmra.mxu1 %vm7474_vm6, %v8335_v10  ;;  %v11242_v54 = vld [vmem:[%s14538_s5 + $0x228] sm:$0xff]  ;;  %v8483_v10 = vpack.c.bf16 %v8482_v28, %v8482_v28  ;;  %v8556_v4 = vpack.c.bf16 %v8555_v59, %v8555_v59  ;;  %v14932_v59 = vld [vmem:[#allocation21_spill] sm:$0xff] }
 0x9b4   : > { %v7397_v25 = vadd.f32 %v14016_v20, %v7171_v52  ;;  %10678 = vmatmul.msk.bf16.vlgmr.msrb.gmra.mxu2 %vm7474_vm6, %v8372_v34  ;;  %v6720_v20 = vadd.f32 %v6676_v33, %v6494_v56  ;;  %8657 = vmatpush.bf16.msrb.mxu1 %v11220_v8  ;;  %v11230_v16 = vld [vmem:[%s14538_s5 + $0x1c8] sm:$0xff]  ;;  %v8520_v34 = vpack.c.bf16 %v8519_v60, %v8519_v60 }
 0x9b5   : > { %v7676_v35 = vmax.f32 %v7668_v37, %v7674_v0  ;;  %v7677_v2 = vmax.f32 %v7669_v17, %v7675_v50  ;;  %10691 = vmatmul.msk.bf16.vlgmr.msrb.gmra.mxu3 %vm7474_vm6, %v8409_v51  ;;  %8694 = vmatpush.bf16.msrb.mxu2 %v11222_v62  ;;  %v14930_v17 = vld [vmem:[#allocation19_spill] sm:$0xff]  ;;  %v11241_v51 = vld [vmem:[%s14538_s5 + $0x220] sm:$0xff] }
 0x9b6   : > { %v7433_v31 = vadd.f32 %v14182_v18, %v7397_v25  ;;  %8731 = vmatpush.bf16.msrb.mxu3 %v11224_v30  ;;  %v6496_v50 = vadd.f32 %v14930_v17, %v13819_v21  ;;  %v11229_v62 = vld [vmem:[%s14538_s5 + $0x1c0] sm:$0xff]  ;;  %v8629_v30 = vld [vmem:[#allocation5 + $0x17] sm:$0x1] }
 0x9b7   : > { %7678 = vst.msk [vmem:[#allocation4 + $0x90] sm:$0xff] %vm7474_vm6, %v7676_v35  ;;  %v6902_v22 = vpop.f32.mrf.mxu2 }
 0x9b8   : > { %7679 = vst.msk [vmem:[#allocation4 + $0x98] sm:$0x1f] %vm7523_vm7, %v7677_v2  ;;  %v7465_v44 = vmax.f32 %v7433_v31, 0.0  ;;  %v6946_v46 = vadd.f32 %v6902_v22, %v6720_v20  ;;  %v7128_v36 = vpop.f32.mrf.mxu3  ;;  %v6678_v15 = vpop.f32.mrf.mxu1  ;;  %8658 = vmatpush.bf16.msrb.mxu1 %v11219_v5  ;;  %v11228_v20 = vld [vmem:[%s14538_s5 + $0x1b8] sm:$0xff]  ;;  %v8630_v5 = vpack.c.bf16 %v8629_v30, %v8629_v30 }
 0x9b9   : > { %v14257_v61 = vpop.f32.mrf.mxu0  ;;  %v6721_v24 = vadd.f32 %v6678_v15, %v6495_v47  ;;  %8695 = vmatpush.bf16.msrb.mxu2 %v11221_v6  ;;  %v11232_v22 = vld [vmem:[%s14538_s5 + $0x1d8] sm:$0xff]  ;;  %v11231_v15 = vld [vmem:[%s14538_s5 + $0x1d0] sm:$0xff]  ;;  %v8666_v47 = vld [vmem:[#allocation5 + $0x18] sm:$0x1] }
 0x9ba   : > { %7498 = vst.msk [vmem:[#allocation4 + $0xb8] sm:$0xff] %vm7474_vm6, %v7465_v44  ;;  %v7172_v41 = vadd.f32 %v7128_v36, %v6946_v46  ;;  %8732 = vmatpush.bf16.msrb.mxu3 %v11223_v26  ;;  %v14931_v46 = vld [vmem:[#allocation22_spill] sm:$0xff] }
 0x9bb   : > { %10808 = vmatmul.msk.bf16.vlgmr.msra.gmra.mxu0 %vm7474_vm6, %v8741_v23  ;;  %v6497_v36 = vadd.f32 %v14931_v46, %v13823_v32  ;;  %v11227_v23 = vld [vmem:[%s14538_s5 + $0x1b0] sm:$0xff] }
 0x9bc   : > { %v7398_v13 = vadd.f32 %v14033_v58, %v7172_v41  ;;  %9063 = vmatpush.bf16.msra.mxu0 %v11242_v54  ;;  %v6498_v54 = vadd.f32 %v14932_v59, %v13837_v27  ;;  %v11250_v27 = vld [vmem:[%s14538_s5 + $0x268] sm:$0xff] }
 0x9be   : > { %v7434_v55 = vadd.f32 %v14182_v18, %v7398_v13 }
 0x9bf   : > { %v7681_v1 = vld [vmem:[#allocation4 + $0x90] ss:$2 sm:$0x7f]  ;;  %v6904_v58 = vpop.f32.mrf.mxu2 }
 0x9c0   : > { %v7684_v49 = vrot.slane %v7681_v1, 2  ;;  %7696 = vst.msk [vmem:[#allocation5 + $0x1c] sm:$0x1] %vm7539_vm8, %v7681_v1  ;;  %v7688_v57 = vrot.slane %v7681_v1, 6  ;;  %v7466_v42 = vmax.f32 %v7434_v55, 0.0  ;;  %v6947_v53 = vadd.f32 %v6904_v58, %v6721_v24  ;;  %v7130_v11 = vpop.f32.mrf.mxu3  ;;  %v6681_v29 = vpop.f32.mrf.mxu1  ;;  %9064 = vmatpush.bf16.msra.mxu0 %v11241_v51  ;;  %v11238_v58 = vld [vmem:[%s14538_s5 + $0x208] sm:$0xff] }
 0x9c1   : > { %v8036_v43 = vpop.f32.mrf.mxu0  ;;  %v7683_v9 = vrot.slane %v7681_v1, 1  ;;  %v7685_v12 = vrot.slane %v7681_v1, 3  ;;  %v7686_v37 = vrot.slane %v7681_v1, 4  ;;  %v7687_v0 = vrot.slane %v7681_v1, 5  ;;  %v7703_v13 = vld [vmem:[#allocation4 + $0xb4] sm:$0xff] }
 0x9c2   : > { %7698 = vst.msk [vmem:[#allocation5 + $0x1e] sm:$0x1] %vm7539_vm8, %v7684_v49  ;;  %v7173_v33 = vadd.f32 %v7130_v11, %v6947_v53  ;;  %v6722_v35 = vadd.f32 %v6681_v29, %v6496_v50  ;;  %v8703_v55 = vld [vmem:[#allocation5 + $0x19] sm:$0x1] }
 0x9c3   : > { %7499 = vst.msk [vmem:[#allocation4 + $0xc0] sm:$0xff] %vm7474_vm6, %v7466_v42  ;;  %10717 = vmatmul.msk.bf16.vlgmr.msra.gmra.mxu1 %vm7474_vm6, %v8483_v10  ;;  %v8667_v42 = vpack.c.bf16 %v8666_v47, %v8666_v47  ;;  %v8704_v53 = vpack.c.bf16 %v8703_v55, %v8703_v55 }
 0x9c4   : > { %7702 = vst.msk [vmem:[#allocation5 + $0x22] sm:$0x1] %vm7539_vm8, %v7688_v57  ;;  %v7399_v52 = vadd.f32 %v14061_v7, %v7173_v33  ;;  %10730 = vmatmul.msk.bf16.vlgmr.msra.gmra.mxu2 %vm7474_vm6, %v8520_v34  ;;  %8805 = vmatpush.bf16.msra.mxu1 %v11228_v20 }
 0x9c5   : > { %7697 = vst.msk [vmem:[#allocation5 + $0x1d] sm:$0x1] %vm7539_vm8, %v7683_v9  ;;  %10743 = vmatmul.msk.bf16.vlgmr.msra.gmra.mxu3 %vm7474_vm6, %v8556_v4  ;;  %8841 = vmatpush.bf16.msra.mxu2 %v11230_v16 }
 0x9c6   : > { %7699 = vst.msk [vmem:[#allocation5 + $0x1f] sm:$0x1] %vm7539_vm8, %v7685_v12  ;;  %v7435_v7 = vadd.f32 %v14182_v18, %v7399_v52  ;;  %8878 = vmatpush.bf16.msra.mxu3 %v11232_v22  ;;  %v11239_v22 = vld [vmem:[%s14538_s5 + $0x210] sm:$0xff] }
 0x9c7   : > { %7700 = vst.msk [vmem:[#allocation5 + $0x20] sm:$0x1] %vm7539_vm8, %v7686_v37  ;;  %v6907_v21 = vpop.f32.mrf.mxu2 }
 0x9c8   : > { %7701 = vst.msk [vmem:[#allocation5 + $0x21] sm:$0x1] %vm7539_vm8, %v7687_v0  ;;  %v7467_v25 = vmax.f32 %v7435_v7, 0.0  ;;  %v6948_v38 = vadd.f32 %v6907_v21, %v6722_v35  ;;  %v7133_v56 = vpop.f32.mrf.mxu3  ;;  %v6683_v2 = vpop.f32.mrf.mxu1  ;;  %8806 = vmatpush.bf16.msra.mxu1 %v11227_v23  ;;  %v11236_v35 = vld [vmem:[%s14538_s5 + $0x1f8] sm:$0xff]  ;;  %v8813_v23 = vld [vmem:[#allocation5 + $0x1c] sm:$0x1] }
 0x9c9   : > { %v8887_v40 = vld [vmem:[#allocation5 + $0x1e] sm:$0x1]  ;;  %8842 = vmatpush.bf16.msra.mxu2 %v11229_v62  ;;  %v6723_v8 = vadd.f32 %v6683_v2, %v6497_v36  ;;  %v11240_v21 = vld [vmem:[%s14538_s5 + $0x218] sm:$0xff]  ;;  %v8777_v36 = vld [vmem:[#allocation5 + $0x1b] sm:$0x1] }
 0x9ca   : > { %v8888_v45 = vpack.c.bf16 %v8887_v40, %v8887_v40  ;;  %7500 = vst.msk [vmem:[#allocation4 + $0xc8] sm:$0xff] %vm7474_vm6, %v7467_v25  ;;  %v7174_v31 = vadd.f32 %v7133_v56, %v6948_v38  ;;  %8879 = vmatpush.bf16.msra.mxu3 %v11231_v15  ;;  %v7704_v12 = vld [vmem:[#allocation4 + $0xbc] sm:$0x1f]  ;;  %v14933_v56 = vld [vmem:[#allocation71_spill] sm:$0xff]  ;;  %v14934_v40 = vld [vmem:[#allocation25_spill] sm:$0xff]  ;;  %v8778_v47 = vpack.c.bf16 %v8777_v36, %v8777_v36 }
 0x9cb   : > { %v9035_v16 = vld [vmem:[#allocation5 + $0x22] sm:$0x1]  ;;  %v7706_v33 = vld [vmem:[#allocation4 + $0xbd] sm:$0x1f]  ;;  %v6499_v2 = vadd.f32 %v14934_v40, %v14933_v56  ;;  %v11252_v40 = vld [vmem:[%s14538_s5 + $0x278] sm:$0xff] }
 0x9cc   : > { %10860 = vmatmul.msk.bf16.vlgmr.msrb.gmra.mxu0 %vm7474_vm6, %v8888_v45  ;;  %v7400_v44 = vadd.f32 %v14097_v3, %v7174_v31  ;;  %v7705_v3 = vld [vmem:[#allocation4 + $0xb5] sm:$0xff]  ;;  %v9036_v17 = vpack.c.bf16 %v9035_v16, %v9035_v16  ;;  %v7708_v50 = vmax.f32 %v7704_v12, %v7706_v33  ;;  %v8850_v30 = vld [vmem:[#allocation5 + $0x1d] sm:$0x1] }
 0x9cd   : > { %v7707_v49 = vmax.f32 %v7703_v13, %v7705_v3  ;;  %9210 = vmatpush.bf16.msrb.mxu0 %v11250_v27  ;;  %v11249_v45 = vld [vmem:[%s14538_s5 + $0x260] sm:$0xff]  ;;  %v11246_v3 = vld [vmem:[%s14538_s5 + $0x248] sm:$0xff]  ;;  %v8851_v55 = vpack.c.bf16 %v8850_v30, %v8850_v30 }
 0x9ce   : > { %v7436_v41 = vadd.f32 %v14182_v18, %v7400_v44  ;;  %v11237_v62 = vld [vmem:[%s14538_s5 + $0x200] sm:$0xff]  ;;  %v11258_v27 = vld [vmem:[%s14538_s5 + $0x2a8] sm:$0xff] }
 0x9cf   : > { %v6909_v19 = vpop.f32.mrf.mxu2 }
 0x9d0   : > { %v7468_v32 = vmax.f32 %v7436_v41, 0.0  ;;  %v6949_v28 = vadd.f32 %v6909_v19, %v6723_v8  ;;  %v7135_v60 = vpop.f32.mrf.mxu3  ;;  %v6686_v6 = vpop.f32.mrf.mxu1 }
 0x9d1   : > { %v7709_v24 = vld [vmem:[#allocation4 + $0xc6] sm:$0xff]  ;;  %v6724_v29 = vadd.f32 %v6686_v6, %v6498_v54  ;;  %9211 = vmatpush.bf16.msrb.mxu0 %v11249_v45  ;;  %v7781_v45 = vld [vmem:[%s14539_s6] sm:$0x1] }
 0x9d2   : > { %v7711_v1 = vld [vmem:[#allocation4 + $0xc7] sm:$0xff]  ;;  %7501 = vst.msk [vmem:[#allocation4 + $0xd0] sm:$0xff] %vm7474_vm6, %v7468_v32  ;;  %v7175_v57 = vadd.f32 %v7135_v60, %v6949_v28  ;;  %v8814_v32 = vpack.c.bf16 %v8813_v23, %v8813_v23  ;;  %v11244_v28 = vld [vmem:[%s14538_s5 + $0x238] sm:$0xff] }
 0x9d3   : > { %v7713_v26 = vmax.f32 %v7709_v24, %v7711_v1  ;;  %10769 = vmatmul.msk.bf16.vlgmr.msrb.gmra.mxu1 %vm7474_vm6, %v8630_v5  ;;  %v11248_v60 = vld [vmem:[%s14538_s5 + $0x258] sm:$0xff] }
 0x9d4   : > { %v7401_v43 = vadd.f32 %v14129_v63, %v7175_v57  ;;  %10782 = vmatmul.msk.bf16.vlgmr.msrb.gmra.mxu2 %vm7474_vm6, %v8667_v42  ;;  %8952 = vmatpush.bf16.msrb.mxu1 %v11236_v35  ;;  %v14935_v1 = vld [vmem:[#allocation73_spill] sm:$0xff]  ;;  %v14936_v6 = vld [vmem:[#allocation24_spill] sm:$0xff] }
 0x9d5   : > { %v7715_v11 = vmax.f32 %v7707_v49, %v7713_v26  ;;  %10795 = vmatmul.msk.bf16.vlgmr.msrb.gmra.mxu3 %vm7474_vm6, %v8704_v53  ;;  %8989 = vmatpush.bf16.msrb.mxu2 %v11238_v58  ;;  %v6500_v5 = vadd.f32 %v14936_v6, %v14935_v1  ;;  %v11245_v49 = vld [vmem:[%s14538_s5 + $0x240] sm:$0xff] }
 0x9d6   : > { %v7437_v9 = vadd.f32 %v14182_v18, %v7401_v43  ;;  %9026 = vmatpush.bf16.msrb.mxu3 %v11240_v21  ;;  %v11247_v43 = vld [vmem:[%s14538_s5 + $0x250] sm:$0xff]  ;;  %v8998_v21 = vld [vmem:[#allocation5 + $0x21] sm:$0x1] }
 0x9d7   : > { %7717 = vst.msk [vmem:[#allocation4 + $0xb4] sm:$0xff] %vm7474_vm6, %v7715_v11  ;;  %v6912_v10 = vpop.f32.mrf.mxu2  ;;  %v11243_v11 = vld [vmem:[%s14538_s5 + $0x230] sm:$0xff] }
 0x9d8   : > { %v7469_v63 = vmax.f32 %v7437_v9, 0.0  ;;  %v6950_v34 = vadd.f32 %v6912_v10, %v6724_v29  ;;  %v7138_v37 = vpop.f32.mrf.mxu3  ;;  %v6688_v52 = vpop.f32.mrf.mxu1 }
 0x9d9   : > { %v7710_v4 = vld [vmem:[#allocation4 + $0xce] sm:$0x1f]  ;;  %v6725_v20 = vadd.f32 %v6688_v52, %v6499_v2  ;;  %8990 = vmatpush.bf16.msrb.mxu2 %v11237_v62  ;;  %v8961_v52 = vld [vmem:[#allocation5 + $0x20] sm:$0x1] }
 0x9da   : > { %v7712_v0 = vld [vmem:[#allocation4 + $0xcf] sm:$0x1f]  ;;  %7502 = vst.msk [vmem:[#allocation4 + $0xd8] sm:$0xff] %vm7474_vm6, %v7469_v63  ;;  %v7176_v7 = vadd.f32 %v7138_v37, %v6950_v34  ;;  %9027 = vmatpush.bf16.msrb.mxu3 %v11239_v22  ;;  %v8962_v56 = vpack.c.bf16 %v8961_v52, %v8961_v52 }
 0x9db   : > { %v7714_v51 = vmax.f32 %v7710_v4, %v7712_v0  ;;  %v8924_v0 = vld [vmem:[#allocation5 + $0x1f] sm:$0x1]  ;;  %v11256_v2 = vld [vmem:[%s14538_s5 + $0x298] sm:$0xff]  ;;  %v11255_v22 = vld [vmem:[%s14538_s5 + $0x290] sm:$0xff] }
 0x9dc   : > { %10912 = vmatmul.msk.bf16.vlgmr.msra.gmra.mxu0 %vm7474_vm6, %v9036_v17  ;;  %v7402_v38 = vadd.f32 %v14143_v48, %v7176_v7  ;;  %v11235_v48 = vld [vmem:[%s14538_s5 + $0x1f0] sm:$0xff] }
 0x9dd   : > { %v7716_v25 = vmax.f32 %v7708_v50, %v7714_v51  ;;  %8953 = vmatpush.bf16.msrb.mxu1 %v11235_v48  ;;  %9357 = vmatpush.bf16.msra.mxu0 %v11258_v27  ;;  %v11251_v48 = vld [vmem:[%s14538_s5 + $0x270] sm:$0xff] }
 0x9de   : > { %v7438_v31 = vadd.f32 %v14182_v18, %v7402_v38  ;;  %v8925_v38 = vpack.c.bf16 %v8924_v0, %v8924_v0  ;;  %v11263_v27 = vld [vmem:[%s14538_s5 + $0x2d0] sm:$0xff] }
 0x9df   : > { %7718 = vst.msk [vmem:[#allocation4 + $0xbc] sm:$0x1f] %vm7523_vm7, %v7716_v25  ;;  %v6914_v44 = vpop.f32.mrf.mxu2 }
 0x9e0   : > { %v14365_v46 = vpop.f32.mrf.mxu0  ;;  %v7470_v15 = vmax.f32 %v7438_v31, 0.0  ;;  %v6951_v41 = vadd.f32 %v6914_v44, %v6725_v20  ;;  %v7140_v8 = vpop.f32.mrf.mxu3  ;;  %v8999_v31 = vpack.c.bf16 %v8998_v21, %v8998_v21  ;;  %v11253_v20 = vld [vmem:[%s14538_s5 + $0x280] sm:$0xff] }
 0x9e1   : > { %v6691_v13 = vpop.f32.mrf.mxu1  ;;  %v7742_v23 = vld [vmem:[#allocation4 + $0xd8] sm:$0xff] }
 0x9e2   : > { %7503 = vst.msk [vmem:[#allocation4 + $0xe0] sm:$0xff] %vm7474_vm6, %v7470_v15  ;;  %v7177_v19 = vadd.f32 %v7140_v8, %v6951_v41  ;;  %v6726_v57 = vadd.f32 %v6691_v13, %v6500_v5 }
 0x9e3   : > { %10821 = vmatmul.msk.bf16.vlgmr.msra.gmra.mxu1 %vm7474_vm6, %v8778_v47 }
 0x9e4   : > { %v7403_v24 = vadd.f32 %v14174_v39, %v7177_v19  ;;  %10834 = vmatmul.msk.bf16.vlgmr.msra.gmra.mxu2 %vm7474_vm6, %v8814_v32  ;;  %9099 = vmatpush.bf16.msra.mxu1 %v11244_v28 }
 0x9e5   : > { %10847 = vmatmul.msk.bf16.vlgmr.msra.gmra.mxu3 %vm7474_vm6, %v8851_v55  ;;  %9136 = vmatpush.bf16.msra.mxu2 %v11246_v3 }
 0x9e6   : > { %v7720_v58 = vld [vmem:[#allocation4 + $0xb4] ss:$2 sm:$0x7f]  ;;  %v7439_v26 = vadd.f32 %v14182_v18, %v7403_v24  ;;  %9173 = vmatpush.bf16.msra.mxu3 %v11248_v60 }
 0x9e7   : > { %v7724_v42 = vrot.slane %v7720_v58, 3  ;;  %7735 = vst.msk [vmem:[#allocation5 + $0x23] sm:$0x1] %vm7539_vm8, %v7720_v58  ;;  %v6917_v39 = vpop.f32.mrf.mxu2  ;;  %v7722_v59 = vrot.slane %v7720_v58, 1  ;;  %v7723_v16 = vrot.slane %v7720_v58, 2  ;;  %v7725_v33 = vrot.slane %v7720_v58, 4 }
 0x9e8   : > { %v8183_v53 = vpop.f32.mrf.mxu0  ;;  %v7471_v54 = vmax.f32 %v7439_v26, 0.0  ;;  %v6952_v9 = vadd.f32 %v6917_v39, %v6726_v57  ;;  %v7143_v29 = vpop.f32.mrf.mxu3  ;;  %v7726_v63 = vrot.slane %v7720_v58, 5  ;;  %9100 = vmatpush.bf16.msra.mxu1 %v11243_v11  ;;  %v7727_v34 = vrot.slane %v7720_v58, 6  ;;  %v11266_v24 = vld [vmem:[%s14538_s5 + $0x2e8] sm:$0xff]  ;;  %v11265_v58 = vld [vmem:[%s14538_s5 + $0x2e0] sm:$0xff] }
 0x9e9   : > { %7738 = vst.msk [vmem:[#allocation5 + $0x26] sm:$0x1] %vm7539_vm8, %v7724_v42  ;;  %v6693_v12 = vpop.f32.mrf.mxu1  ;;  %9137 = vmatpush.bf16.msra.mxu2 %v11245_v49  ;;  %v7744_v44 = vld [vmem:[#allocation4 + $0xd9] sm:$0xff]  ;;  %v7745_v41 = vld [vmem:[#allocation4 + $0xe1] sm:$0x1f] }
 0x9ea   : > { %7504 = vst.msk [vmem:[#allocation4 + $0xe8] sm:$0xff] %vm7474_vm6, %v7471_v54  ;;  %v7178_v10 = vadd.f32 %v7143_v29, %v6952_v9  ;;  %9174 = vmatpush.bf16.msra.mxu3 %v11247_v43  ;;  %v7743_v15 = vld [vmem:[#allocation4 + $0xe0] sm:$0x1f]  ;;  %v7746_v32 = vmax.f32 %v7742_v23, %v7744_v44  ;;  %v11264_v12 = vld [vmem:[%s14538_s5 + $0x2d8] sm:$0xff] }
 0x9eb   : > { %7736 = vst.msk [vmem:[#allocation5 + $0x24] sm:$0x1] %vm7539_vm8, %v7722_v59  ;;  %v7747_v1 = vmax.f32 %v7743_v15, %v7745_v41  ;;  %v11262_v59 = vld [vmem:[%s14538_s5 + $0x2c8] sm:$0xff]  ;;  %v11268_v15 = vld [vmem:[%s14538_s5 + $0x2f8] sm:$0xff] }
 0x9ec   : > { %v7404_v37 = vadd.f32 %v14206_v14, %v7178_v10  ;;  %7737 = vst.msk [vmem:[#allocation5 + $0x25] sm:$0x1] %vm7539_vm8, %v7723_v16  ;;  %v11257_v14 = vld [vmem:[%s14538_s5 + $0x2a0] sm:$0xff]  ;;  %v11260_v16 = vld [vmem:[%s14538_s5 + $0x2b8] sm:$0xff] }
 0x9ed   : > { %7739 = vst.msk [vmem:[#allocation5 + $0x27] sm:$0x1] %vm7539_vm8, %v7725_v33  ;;  %9358 = vmatpush.bf16.msra.mxu0 %v11257_v14  ;;  %v11261_v10 = vld [vmem:[%s14538_s5 + $0x2c0] sm:$0xff] }
 0x9ee   : > { %v7440_v4 = vadd.f32 %v14182_v18, %v7404_v37  ;;  %7740 = vst.msk [vmem:[#allocation5 + $0x28] sm:$0x1] %vm7539_vm8, %v7726_v63  ;;  %v11254_v18 = vld [vmem:[%s14538_s5 + $0x288] sm:$0xff]  ;;  %v11259_v37 = vld [vmem:[%s14538_s5 + $0x2b0] sm:$0xff] }
 0x9ef   : > { %v6919_v17 = vpop.f32.mrf.mxu2  ;;  %7741 = vst.msk [vmem:[#allocation5 + $0x29] sm:$0x1] %vm7539_vm8, %v7727_v34  ;;  %v9071_v42 = vld [vmem:[#allocation5 + $0x23] sm:$0x1] }
 0x9f0   : > { %v9182_v50 = vld [vmem:[#allocation5 + $0x26] sm:$0x1]  ;;  %v7472_v51 = vmax.f32 %v7440_v4, 0.0  ;;  %v7145_v7 = vpop.f32.mrf.mxu3  ;;  %v9072_v9 = vpack.c.bf16 %v9071_v42, %v9071_v42 }
 0x9f1   : > { %v9183_v35 = vpack.c.bf16 %v9182_v50, %v9182_v50  ;;  %v7812_v25 = vpop.f32.mrf.mxu1 }
 0x9f2   : > { %7505 = vst.msk [vmem:[#allocation4 + $0xf0] sm:$0xff] %vm7474_vm6, %v7472_v51  ;;  %v7816_v62 = vadd.f32 %v7812_v25, %v7781_v45  ;;  %v9108_v39 = vld [vmem:[#allocation5 + $0x24] sm:$0x1] }
 0x9f3   : > { %10964 = vmatmul.msk.bf16.vlgmr.msrb.gmra.mxu0 %vm7474_vm6, %v9183_v35  ;;  %10873 = vmatmul.msk.bf16.vlgmr.msrb.gmra.mxu1 %vm7474_vm6, %v8925_v38  ;;  %v9145_v11 = vld [vmem:[#allocation5 + $0x25] sm:$0x1]  ;;  %v9109_v29 = vpack.c.bf16 %v9108_v39, %v9108_v39 }
 0x9f4   : > { %10886 = vmatmul.msk.bf16.vlgmr.msrb.gmra.mxu2 %vm7474_vm6, %v8962_v56  ;;  %9247 = vmatpush.bf16.msrb.mxu1 %v11252_v40  ;;  %v9146_v33 = vpack.c.bf16 %v9145_v11, %v9145_v11 }
 0x9f5   : > { %10899 = vmatmul.msk.bf16.vlgmr.msrb.gmra.mxu3 %vm7474_vm6, %v8999_v31  ;;  %9284 = vmatpush.bf16.msrb.mxu2 %v11254_v18  ;;  %v9256_v45 = vld [vmem:[#allocation5 + $0x28] sm:$0x1] }
 0x9f6   : > { %9321 = vmatpush.bf16.msrb.mxu3 %v11256_v2  ;;  %9505 = vmatpush.bf16.msrb.mxu0 %v11266_v24  ;;  %v9219_v2 = vld [vmem:[#allocation5 + $0x27] sm:$0x1]  ;;  %v9257_v23 = vpack.c.bf16 %v9256_v45, %v9256_v45 }
 0x9f7   : > { %v7849_v36 = vpop.f32.mrf.mxu2 }
 0x9f8   : > { %v7853_v8 = vadd.f32 %v7849_v36, %v7816_v62  ;;  %v7886_v30 = vpop.f32.mrf.mxu3  ;;  %9248 = vmatpush.bf16.msrb.mxu1 %v11251_v48  ;;  %v9293_v62 = vld [vmem:[#allocation5 + $0x29] sm:$0x1]  ;;  %v9220_v36 = vpack.c.bf16 %v9219_v2, %v9219_v2 }
 0x9f9   : > { %v7748_v13 = vld [vmem:[#allocation4 + $0xea] sm:$0xff]  ;;  %v7749_v3 = vld [vmem:[#allocation4 + $0xf2] sm:$0x1f]  ;;  %v7814_v47 = vpop.f32.mrf.mxu1  ;;  %9285 = vmatpush.bf16.msrb.mxu2 %v11253_v20  ;;  %v9294_v41 = vpack.c.bf16 %v9293_v62, %v9293_v62 }
 0x9fa   : > { %v7750_v19 = vld [vmem:[#allocation4 + $0xeb] sm:$0xff]  ;;  %v7751_v28 = vld [vmem:[#allocation4 + $0xf3] sm:$0x1f]  ;;  %v7890_v55 = vadd.f32 %v7886_v30, %v7853_v8  ;;  %9322 = vmatpush.bf16.msrb.mxu3 %v11255_v22  ;;  %9506 = vmatpush.bf16.msrb.mxu0 %v11265_v58  ;;  %v11270_v22 = vld [vmem:[%s14538_s5 + $0x308] sm:$0xff] }
 0x9fb   : > { %v7752_v60 = vmax.f32 %v7748_v13, %v7750_v19  ;;  %v7753_v6 = vmax.f32 %v7749_v3, %v7751_v28  ;;  %v11267_v30 = vld [vmem:[%s14538_s5 + $0x2f0] sm:$0xff] }
 0x9fd   : > { %v7754_v5 = vmax.f32 %v7746_v32, %v7752_v60  ;;  %v7755_v49 = vmax.f32 %v7747_v1, %v7753_v6 }
 0x9ff   : > { %7756 = vst.msk [vmem:[#allocation4 + $0xd8] sm:$0xff] %vm7474_vm6, %v7754_v5  ;;  %v14442_v26 = vpop.f32.mrf.mxu0  ;;  %v7851_v57 = vpop.f32.mrf.mxu2 }
 0xa00   : > { %7757 = vst.msk [vmem:[#allocation4 + $0xe0] sm:$0x1f] %vm7523_vm7, %v7755_v49  ;;  %v7888_v53 = vpop.f32.mrf.mxu3 }
 0xa01   : > { %v7923_v43 = vpop.f32.mrf.mxu1 }
 0xa02   : > { %v7927_v54 = vadd.f32 %v7923_v43, %v7890_v55 }
 0xa03   : > { %10925 = vmatmul.msk.bf16.vlgmr.msra.gmra.mxu1 %vm7474_vm6, %v9072_v9 }
 0xa04   : > { %10938 = vmatmul.msk.bf16.vlgmr.msra.gmra.mxu2 %vm7474_vm6, %v9109_v29  ;;  %9394 = vmatpush.bf16.msra.mxu1 %v11260_v16 }
 0xa05   : > { %10951 = vmatmul.msk.bf16.vlgmr.msra.gmra.mxu3 %vm7474_vm6, %v9146_v33  ;;  %9431 = vmatpush.bf16.msra.mxu2 %v11262_v59 }
 0xa06   : > { %9468 = vmatpush.bf16.msra.mxu3 %v11264_v12 }
 0xa07   : > { %v8330_v63 = vpop.f32.mrf.mxu0  ;;  %v7759_v34 = vld [vmem:[#allocation4 + $0xd8] ss:$2 sm:$0x7f]  ;;  %v7960_v4 = vpop.f32.mrf.mxu2 }
 0xa08   : > { %7774 = vst.msk [vmem:[#allocation5 + $0x2a] sm:$0x1] %vm7539_vm8, %v7759_v34  ;;  %v7764_v0 = vrot.slane %v7759_v34, 4  ;;  %v7761_v52 = vrot.slane %v7759_v34, 1  ;;  %v7762_v17 = vrot.slane %v7759_v34, 2  ;;  %v7964_v50 = vadd.f32 %v7960_v4, %v7927_v54  ;;  %v7997_v14 = vpop.f32.mrf.mxu3  ;;  %9395 = vmatpush.bf16.msra.mxu1 %v11259_v37 }
 0xa09   : > { %v7763_v51 = vrot.slane %v7759_v34, 3  ;;  %v7925_v7 = vpop.f32.mrf.mxu1  ;;  %9432 = vmatpush.bf16.msra.mxu2 %v11261_v10  ;;  %v7765_v35 = vrot.slane %v7759_v34, 5  ;;  %v7766_v25 = vrot.slane %v7759_v34, 6 }
 0xa0a   : > { %7778 = vst.msk [vmem:[#allocation5 + $0x2e] sm:$0x1] %vm7539_vm8, %v7764_v0  ;;  %v8001_v21 = vadd.f32 %v7997_v14, %v7964_v50  ;;  %9469 = vmatpush.bf16.msra.mxu3 %v11263_v27 }
 0xa0b   : > { %7775 = vst.msk [vmem:[#allocation5 + $0x2b] sm:$0x1] %vm7539_vm8, %v7761_v52 }
 0xa0c   : > { %7776 = vst.msk [vmem:[#allocation5 + $0x2c] sm:$0x1] %vm7539_vm8, %v7762_v17  ;;  %v8038_v31 = vadd.f32 %v14257_v61, %v8001_v21  ;;  %v11269_v61 = vld [vmem:[%s14538_s5 + $0x300] sm:$0xff] }
 0xa0d   : > { %7777 = vst.msk [vmem:[#allocation5 + $0x2d] sm:$0x1] %vm7539_vm8, %v7763_v51 }
 0xa0e   : > { %7779 = vst.msk [vmem:[#allocation5 + $0x2f] sm:$0x1] %vm7539_vm8, %v7765_v35 }
 0xa0f   : > { %v14472_v18 = vpop.f32.mrf.mxu0  ;;  %v9329_v38 = vld [vmem:[#allocation5 + $0x2a] sm:$0x1]  ;;  %7780 = vst.msk [vmem:[#allocation5 + $0x30] sm:$0x1] %vm7539_vm8, %v7766_v25  ;;  %v7962_v56 = vpop.f32.mrf.mxu2 }
 0xa10   : > { %v9330_v40 = vpack.c.bf16 %v9329_v38, %v9329_v38  ;;  %v7999_v20 = vpop.f32.mrf.mxu3 }
 0xa11   : > { %v8070_v48 = vpop.f32.mrf.mxu1  ;;  %v9477_v28 = vld [vmem:[#allocation5 + $0x2e] sm:$0x1] }
 0xa12   : > { %11016 = vmatmul.msk.bf16.vlgmr.msra.gmra.mxu0 %vm7474_vm6, %v9330_v40  ;;  %v8074_v44 = vadd.f32 %v8070_v48, %v8038_v31  ;;  %v9478_v24 = vpack.c.bf16 %v9477_v28, %v9477_v28  ;;  %v9366_v1 = vld [vmem:[#allocation5 + $0x2b] sm:$0x1] }
 0xa13   : > { %10977 = vmatmul.msk.bf16.vlgmr.msrb.gmra.mxu1 %vm7474_vm6, %v9220_v36  ;;  %v9403_v6 = vld [vmem:[#allocation5 + $0x2c] sm:$0x1]  ;;  %v9367_v42 = vpack.c.bf16 %v9366_v1, %v9366_v1 }
 0xa14   : > { %10990 = vmatmul.msk.bf16.vlgmr.msrb.gmra.mxu2 %vm7474_vm6, %v9257_v23  ;;  %9542 = vmatpush.bf16.msrb.mxu1 %v11268_v15  ;;  %v9440_v58 = vld [vmem:[#allocation5 + $0x2d] sm:$0x1]  ;;  %v9404_v39 = vpack.c.bf16 %v9403_v6, %v9403_v6 }
 0xa15   : > { %11003 = vmatmul.msk.bf16.vlgmr.msrb.gmra.mxu3 %vm7474_vm6, %v9294_v41  ;;  %9579 = vmatpush.bf16.msrb.mxu2 %v11270_v22  ;;  %v9441_v53 = vpack.c.bf16 %v9440_v58, %v9440_v58  ;;  %v9514_v33 = vld [vmem:[#allocation5 + $0x2f] sm:$0x1] }
 0xa16   : > { %v9551_v10 = vld [vmem:[#allocation5 + $0x30] sm:$0x1]  ;;  %v9515_v27 = vpack.c.bf16 %v9514_v33, %v9514_v33 }
 0xa17   : > { %v8478_v8 = vpop.f32.mrf.mxu0  ;;  %v8107_v13 = vpop.f32.mrf.mxu2  ;;  %v9552_v4 = vpack.c.bf16 %v9551_v10, %v9551_v10 }
 0xa18   : > { %v8111_v3 = vadd.f32 %v8107_v13, %v8074_v44  ;;  %v8144_v19 = vpop.f32.mrf.mxu3  ;;  %9543 = vmatpush.bf16.msrb.mxu1 %v11267_v30 }
 0xa19   : > { %v8072_v47 = vpop.f32.mrf.mxu1  ;;  %9580 = vmatpush.bf16.msrb.mxu2 %v11269_v61 }
 0xa1a   : > { %v8148_v32 = vadd.f32 %v8144_v19, %v8111_v3 }
 0xa1c   : > { %v8185_v60 = vadd.f32 %v14365_v46, %v8148_v32 }
 0xa1f   : > { %v8109_v55 = vpop.f32.mrf.mxu2 }
 0xa20   : > { %v8146_v5 = vpop.f32.mrf.mxu3 }
 0xa21   : > { %v8218_v49 = vpop.f32.mrf.mxu1 }
 0xa22   : > { %11068 = vmatmul.msk.bf16.vlgmr.msrb.gmra.mxu0 %vm7474_vm6, %v9478_v24  ;;  %v8222_v57 = vadd.f32 %v8218_v49, %v8185_v60 }
 0xa23   : > { %11029 = vmatmul.msk.bf16.vlgmr.msra.gmra.mxu1 %vm7474_vm6, %v9367_v42 }
 0xa24   : > { %11042 = vmatmul.msk.bf16.vlgmr.msra.gmra.mxu2 %vm7474_vm6, %v9404_v39 }
 0xa25   : > { %11055 = vmatmul.msk.bf16.vlgmr.msra.gmra.mxu3 %vm7474_vm6, %v9441_v53 }
 0xa27   : > { %v8255_v46 = vpop.f32.mrf.mxu2 }
 0xa28   : > { %v8623_v11 = vpop.f32.mrf.mxu0  ;;  %v8259_v43 = vadd.f32 %v8255_v46, %v8222_v57  ;;  %v8292_v59 = vpop.f32.mrf.mxu3 }
 0xa29   : > { %v8220_v54 = vpop.f32.mrf.mxu1 }
 0xa2a   : > { %v8296_v9 = vadd.f32 %v8292_v59, %v8259_v43 }
 0xa2c   : > { %v8332_v29 = vadd.f32 %v14442_v26, %v8296_v9 }
 0xa2f   : > { %v8257_v16 = vpop.f32.mrf.mxu2 }
 0xa30   : > { %v8625_v12 = vpop.f32.mrf.mxu0  ;;  %v8294_v63 = vpop.f32.mrf.mxu3 }
 0xa31   : > { %v8365_v34 = vpop.f32.mrf.mxu1 }
 0xa32   : > { %v8369_v37 = vadd.f32 %v8365_v34, %v8332_v29 }
 0xa33   : > { %11081 = vmatmul.msk.bf16.vlgmr.msrb.gmra.mxu1 %vm7474_vm6, %v9515_v27 }
 0xa34   : > { %11094 = vmatmul.msk.bf16.vlgmr.msrb.gmra.mxu2 %vm7474_vm6, %v9552_v4 }
 0xa37   : > { %v8402_v0 = vpop.f32.mrf.mxu2 }
 0xa38   : > { %v8771_v52 = vpop.f32.mrf.mxu0  ;;  %v8406_v17 = vadd.f32 %v8402_v0, %v8369_v37  ;;  %v8439_v50 = vpop.f32.mrf.mxu3 }
 0xa39   : > { %v8367_v14 = vpop.f32.mrf.mxu1 }
 0xa3a   : > { %v8443_v51 = vadd.f32 %v8439_v50, %v8406_v17 }
 0xa3c   : > { %v8480_v26 = vadd.f32 %v14472_v18, %v8443_v51 }
 0xa3f   : > { %v8404_v7 = vpop.f32.mrf.mxu2 }
 0xa40   : > { %v8773_v35 = vpop.f32.mrf.mxu0  ;;  %v8441_v21 = vpop.f32.mrf.mxu3 }
 0xa41   : > { %v8513_v25 = vpop.f32.mrf.mxu1 }
 0xa42   : > { %v8517_v38 = vadd.f32 %v8513_v25, %v8480_v26 }
 0xa47   : > { %v8550_v56 = vpop.f32.mrf.mxu2 }
 0xa48   : > { %v8554_v40 = vadd.f32 %v8550_v56, %v8517_v38  ;;  %v8586_v2 = vpop.f32.mrf.mxu3 }
 0xa49   : > { %v8918_v45 = vpop.f32.mrf.mxu0  ;;  %v8515_v31 = vpop.f32.mrf.mxu1 }
 0xa4a   : > { %v8590_v20 = vadd.f32 %v8586_v2, %v8554_v40 }
 0xa4c   : > { %v8627_v62 = vadd.f32 %v8623_v11, %v8590_v20 }
 0xa4f   : > { %v8552_v48 = vpop.f32.mrf.mxu2 }
 0xa50   : > { %v8588_v22 = vpop.f32.mrf.mxu3 }
 0xa51   : > { %v8920_v44 = vpop.f32.mrf.mxu0  ;;  %v8660_v36 = vpop.f32.mrf.mxu1 }
 0xa52   : > { %v8664_v23 = vadd.f32 %v8660_v36, %v8627_v62 }
 0xa57   : > { %v8697_v15 = vpop.f32.mrf.mxu2 }
 0xa58   : > { %v8701_v41 = vadd.f32 %v8697_v15, %v8664_v23  ;;  %v8734_v18 = vpop.f32.mrf.mxu3 }
 0xa59   : > { %v9066_v61 = vpop.f32.mrf.mxu0  ;;  %v8662_v8 = vpop.f32.mrf.mxu1 }
 0xa5a   : > { %v8738_v30 = vadd.f32 %v8734_v18, %v8701_v41 }
 0xa5c   : > { %v8775_v13 = vadd.f32 %v8771_v52, %v8738_v30 }
 0xa5f   : > { %v8699_v3 = vpop.f32.mrf.mxu2 }
 0xa60   : > { %v8736_v19 = vpop.f32.mrf.mxu3 }
 0xa61   : > { %v9068_v47 = vpop.f32.mrf.mxu0  ;;  %v8808_v32 = vpop.f32.mrf.mxu1 }
 0xa62   : > { %v8812_v28 = vadd.f32 %v8808_v32, %v8775_v13 }
 0xa67   : > { %v8844_v60 = vpop.f32.mrf.mxu2 }
 0xa68   : > { %v8848_v55 = vadd.f32 %v8844_v60, %v8812_v28  ;;  %v8881_v24 = vpop.f32.mrf.mxu3 }
 0xa69   : > { %v8810_v1 = vpop.f32.mrf.mxu1 }
 0xa6a   : > { %v8885_v6 = vadd.f32 %v8881_v24, %v8848_v55 }
 0xa6c   : > { %v8922_v5 = vadd.f32 %v8918_v45, %v8885_v6 }
 0xa6f   : > { %v8846_v58 = vpop.f32.mrf.mxu2 }
 0xa70   : > { %v9213_v49 = vpop.f32.mrf.mxu0  ;;  %v8883_v57 = vpop.f32.mrf.mxu3 }
 0xa71   : > { %v8955_v42 = vpop.f32.mrf.mxu1 }
 0xa72   : > { %v8959_v39 = vadd.f32 %v8955_v42, %v8922_v5 }
 0xa77   : > { %v8992_v53 = vpop.f32.mrf.mxu2 }
 0xa78   : > { %v9215_v46 = vpop.f32.mrf.mxu0  ;;  %v8996_v11 = vadd.f32 %v8992_v53, %v8959_v39  ;;  %v9029_v43 = vpop.f32.mrf.mxu3 }
 0xa79   : > { %v8957_v59 = vpop.f32.mrf.mxu1 }
 0xa7a   : > { %v9033_v54 = vadd.f32 %v9029_v43, %v8996_v11 }
 0xa7c   : > { %v9070_v9 = vadd.f32 %v9066_v61, %v9033_v54 }
 0xa7f   : > { %v8994_v29 = vpop.f32.mrf.mxu2 }
 0xa80   : > { %v9031_v16 = vpop.f32.mrf.mxu3 }
 0xa81   : > { %v9102_v12 = vpop.f32.mrf.mxu1 }
 0xa82   : > { %v9106_v0 = vadd.f32 %v9102_v12, %v9070_v9 }
 0xa87   : > { %v9139_v33 = vpop.f32.mrf.mxu2 }
 0xa88   : > { %v9176_v10 = vpop.f32.mrf.mxu3  ;;  %v9143_v52 = vadd.f32 %v9139_v33, %v9106_v0 }
 0xa89   : > { %v9104_v63 = vpop.f32.mrf.mxu1 }
 0xa8a   : > { %v9180_v14 = vadd.f32 %v9176_v10, %v9143_v52 }
 0xa8c   : > { %v9217_v7 = vadd.f32 %v9213_v49, %v9180_v14 }
 0xa8f   : > { %v9360_v34 = vpop.f32.mrf.mxu0  ;;  %v9141_v37 = vpop.f32.mrf.mxu2 }
 0xa90   : > { %v9178_v27 = vpop.f32.mrf.mxu3 }
 0xa91   : > { %v9250_v4 = vpop.f32.mrf.mxu1 }
 0xa92   : > { %v9254_v35 = vadd.f32 %v9250_v4, %v9217_v7 }
 0xa97   : > { %v9362_v17 = vpop.f32.mrf.mxu0  ;;  %v9287_v50 = vpop.f32.mrf.mxu2 }
 0xa98   : > { %v9324_v51 = vpop.f32.mrf.mxu3  ;;  %v9291_v38 = vadd.f32 %v9287_v50, %v9254_v35 }
 0xa99   : > { %v9252_v26 = vpop.f32.mrf.mxu1 }
 0xa9a   : > { %v9328_v2 = vadd.f32 %v9324_v51, %v9291_v38 }
 0xa9c   : > { %v9364_v20 = vadd.f32 %v9360_v34, %v9328_v2 }
 0xa9f   : > { %v9508_v21 = vpop.f32.mrf.mxu0  ;;  %v9289_v25 = vpop.f32.mrf.mxu2 }
 0xaa0   : > { %v9326_v56 = vpop.f32.mrf.mxu3 }
 0xaa1   : > { %v9397_v40 = vpop.f32.mrf.mxu1 }
 0xaa2   : > { %v9401_v22 = vadd.f32 %v9397_v40, %v9364_v20 }
 0xaa7   : > { %v9510_v45 = vpop.f32.mrf.mxu0  ;;  %v9434_v31 = vpop.f32.mrf.mxu2 }
 0xaa8   : > { %v9471_v62 = vpop.f32.mrf.mxu3  ;;  %v9438_v44 = vadd.f32 %v9434_v31, %v9401_v22 }
 0xaa9   : > { %v9399_v48 = vpop.f32.mrf.mxu1 }
 0xaaa   : > { %v9475_v23 = vadd.f32 %v9471_v62, %v9438_v44 }
 0xaac   : > { %v9512_v18 = vadd.f32 %v9508_v21, %v9475_v23 }
 0xaaf   : > { %v9436_v36 = vpop.f32.mrf.mxu2 }
 0xab0   : > { %v9473_v15 = vpop.f32.mrf.mxu3 }
 0xab1   : > { %v9545_v41 = vpop.f32.mrf.mxu1 }
 0xab2   : > { %v9549_v61 = vadd.f32 %v9545_v41, %v9512_v18 }
 0xab7   : > { %v9582_v8 = vpop.f32.mrf.mxu2 }
 0xab8   : > { %v9586_v30 = vadd.f32 %v9582_v8, %v9549_v61 }
 0xab9   : > { %v9547_v13 = vpop.f32.mrf.mxu1 }
 0xaba   : > { %9587 = vst [vmem:[%s270_s20] sm:$0x1] %v9586_v30 }
 0xabb   : > { %11369 = shalt.err (!%p11366_p3)
}
 0xabc   : > { %11272 = dma.vmem_to_hbm [thread:$0]  (%p11486_p5), %s9600_s21, 16, %s9602_s22, %s9589_s29  }
 0xabf   : > { %v9584_v3 = vpop.f32.mrf.mxu2 }
 0xac0 PF: > { %p11278_p4 = scmp.ge.s32.totalorder %s11404_s27, 2  ;;  %s9613_s23 = sand.u32 1, %s11392_s24  }
 0xac1   : > { %s9614_s17 = scalar_lea.sflag [#allocation7], %s9613_s23 }
 0xac2   : > { %p11275_p7 = pnand %p11278_p4, %p11490_p6 }
 0xac4   : > { %p11276_p8 = pneg %p11275_p7 }
 0xac6   : > { %11387 = dma.done.wait (%p11276_p8), %s9614_s17, 16  }
 0xac7   : > { %11389 = vsyncadd (%p11276_p8), %s9614_s17, 4294967280  ;;  %p17_p9 = scmp.ge.s32.totalorder %s11473_s30, 4   ;;  %s14937_s24 = smov %s11396_s25 }
 0xac8   : > { %s14938_s25 = smov %s11400_s26  ;;  %s14939_s26 = smov %s11484_s10 }
 0xac9   : > { %s14940_s27 = smov %s11473_s30  ;;  %19 = sbr.rel (!%p17_p9) target bundleno = 3 (0x3), region = 236 }
 0xace   :  { %9619 = vsyncpa [#allocation7], 1 }
 0xacf   :  { %9621 = vsyncpa [#allocation7 + $0x1], 1 }

</bundles_post_ra>
